<compile_context>
chip_gen: v7x
topology: tpu7x:2x2x1
jax: 0.10.0
libtpu: 0.0.40
codegen_flags: <defaults>
</compile_context>

<pallas_src>
import jax
import jax.numpy as jnp
from jax.experimental import pallas as pl
from jax.experimental.pallas import tpu as pltpu

EPS = 1e-5
_VMEM_LIMIT = 48 * 1024 * 1024


def _round_up(x, m):
    return (x + m - 1) // m * m


def _pick_tm(m):
    if m <= 4096:
        return m
    for t in (8192, 4096, 2048, 1024, 512, 256, 128):
        if m % t == 0:
            return t
    return m


# ---------------------------------------------------------------------------
# ConvTranspose3d kernel=(1,2,2), stride=(1,2,2): one (4*Cup, Cin) x (Cin, M) matmul
# ---------------------------------------------------------------------------
def _upconv_kernel(x_ref, w_ref, b_ref, o_ref):
    # x: (1, Cin, TM)   w: (4*Cup, Cin)   b: (4*Cup, 1)   o: (1, 4*Cup, TM)
    acc = jnp.dot(w_ref[...], x_ref[0], preferred_element_type=jnp.float32)
    o_ref[0] = (acc + b_ref[...]).astype(o_ref.dtype)


def conv_transpose3d_1x2x2(x_ncdhw, w, b):
    """x: (N,Cin,D,H,W); w: PyTorch layout (Cin,Cup,1,2,2); b: (Cup,).
    Returns the upsampled tensor as (N, D, Cup, 2H, 2W)."""
    N, Cin, D, H, W = x_ncdhw.shape
    Cup = w.shape[1]
    M = D * H * W
    TM = _pick_tm(M)

    x_flat = x_ncdhw.reshape(N, Cin, M)
    # rows ordered (i, j, co):  w_mat[(i*2 + j)*Cup + co, ci] = w[ci, co, 0, i, j]
    w_mat = jnp.transpose(w[:, :, 0, :, :], (2, 3, 1, 0)).reshape(4 * Cup, Cin)
    b_mat = jnp.tile(b, 4).reshape(4 * Cup, 1)

    out = pl.pallas_call(
        _upconv_kernel,
        out_shape=jax.ShapeDtypeStruct((N, 4 * Cup, M), jnp.float32),
        grid_spec=pltpu.PrefetchScalarGridSpec(
            num_scalar_prefetch=0,
            grid=(N, M // TM),
            in_specs=[
                pl.BlockSpec((1, Cin, TM), lambda n, m: (n, 0, m)),
                pl.BlockSpec((4 * Cup, Cin), lambda n, m: (0, 0)),
                pl.BlockSpec((4 * Cup, 1), lambda n, m: (0, 0)),
            ],
            out_specs=pl.BlockSpec((1, 4 * Cup, TM), lambda n, m: (n, 0, m)),
        ),
        compiler_params=pltpu.CompilerParams(
            dimension_semantics=("parallel", "parallel"),
            vmem_limit_bytes=_VMEM_LIMIT,
        ),
    )(x_flat, w_mat, b_mat)

    # sub-pixel interleave (i, j) -> (2h+i, 2w+j); single XLA relayout (TODO above).
    out = out.reshape(N, 2, 2, Cup, D, H, W)
    out = jnp.transpose(out, (0, 4, 3, 5, 1, 6, 2)).reshape(N, D, Cup, 2 * H, 2 * W)
    return out


# ---------------------------------------------------------------------------
# Shared 3x3x3 'same' conv core: 9 kd-stacked lane-offset taps -> MXU matmuls
# accumulated in registers, plus bias, store, and per-batch stat partials.
# ---------------------------------------------------------------------------
def _conv_taps(d, xpad_ref, w_ref, b_ref, masks_ref,
               out_ref, sum_ref, sq_ref, *, C, Cout, Ws, BLK, B):
    # Rows [d*C, (d+3)*C) of the flat scratch hold padded depth slabs d, d+1, d+2.
    row0 = pl.multiple_of(d * C, C)
    acc = None
    for kh in range(3):
        for kw in range(3):
            off = B + (kh - 1) * Ws + (kw - 1)
            patch = xpad_ref[pl.ds(row0, 3 * C), pl.ds(off, BLK)]       # (3C, BLK)
            t = jnp.dot(w_ref[kh * 3 + kw], patch,
                        preferred_element_type=jnp.float32)             # (Cout, BLK)
            if kw == 0:                       # cancel left-pad row wrap-around
                t = t * masks_ref[0:1, :]
            elif kw == 2:                     # cancel right-pad row wrap-around
                t = t * masks_ref[1:2, :]
            acc = t if acc is None else acc + t

    y = acc + b_ref[...]                                                # (Cout, BLK)
    out_ref[0, 0] = y.astype(out_ref.dtype)

    @pl.when(d == 0)
    def _init_stats():
        sum_ref[...] = jnp.zeros_like(sum_ref)
        sq_ref[...] = jnp.zeros_like(sq_ref)

    sum_ref[...] += jnp.sum(y, axis=1, keepdims=True).reshape(1, Cout, 1)
    sq_ref[...] += jnp.sum(y * y, axis=1, keepdims=True).reshape(1, Cout, 1)


def _make_conv1_kernel(*, D, HW, HWup, B, Cskip, Cup, Cout, Ws, BLK):
    """conv1: torch.cat([skip, up(x)]) + F.pad(diffH/diffW) + 'same' zero padding
    are all realised by the scratch fill (unfilled lanes stay zero)."""
    Ccat = Cskip + Cup

    def kernel(masks_ref, skip_ref, xup_ref, w_ref, b_ref,
               out_ref, sum_ref, sq_ref, xpad_ref):
        d = pl.program_id(1)

        @pl.when(d == 0)
        def _fill():
            xpad_ref[...] = jnp.zeros_like(xpad_ref)
            for di in range(D):
                r0 = (di + 1) * Ccat
                # skip read in native (N, Cskip, D, Hs*Ws) layout (wrapper reshape is free)
                xpad_ref[r0:r0 + Cskip, B:B + HW] = skip_ref[0, :, di, :]
                # up(x): rows >= 2H / cols >= 2W stay zero == F.pad(x,[0,dW,0,dH])
                xpad_ref[r0 + Cskip:r0 + Ccat, B:B + HWup] = xup_ref[0, di, :, :]

        _conv_taps(d, xpad_ref, w_ref, b_ref, masks_ref,
                   out_ref, sum_ref, sq_ref,
                   C=Ccat, Cout=Cout, Ws=Ws, BLK=BLK, B=B)

    return kernel


def _make_conv2_kernel(*, D, B, Cin, Cout, Ws, BLK):
    """conv2: previous layer's BatchNorm + ReLU fused into the scratch fill."""

    def kernel(masks_ref, x_ref, scale_ref, shift_ref, w_ref, b_ref,
               out_ref, sum_ref, sq_ref, xpad_ref):
        d = pl.program_id(1)

        @pl.when(d == 0)
        def _fill():
            xpad_ref[...] = jnp.zeros_like(xpad_ref)
            for di in range(D):
                t = x_ref[0, di] * scale_ref[0] + shift_ref[0]          # (Cin, BLK)
                xpad_ref[(di + 1) * Cin:(di + 2) * Cin, B:B + BLK] = jnp.maximum(t, 0.0)

        _conv_taps(d, xpad_ref, w_ref, b_ref, masks_ref,
                   out_ref, sum_ref, sq_ref,
                   C=Cin, Cout=Cout, Ws=Ws, BLK=BLK, B=B)

    return kernel


def _conv_pallas_call(kernel, inputs, in_specs, N, D, c_scratch, Cout, BLK, LBLK):
    out_shape = (
        jax.ShapeDtypeStruct((N, D, Cout, BLK), jnp.float32),   # raw conv output
        jax.ShapeDtypeStruct((N, Cout, 1), jnp.float32),        # per-batch sum
        jax.ShapeDtypeStruct((N, Cout, 1), jnp.float32),        # per-batch sum sq
    )
    out_specs = (
        pl.BlockSpec((1, 1, Cout, BLK), lambda n, d: (n, d, 0, 0)),
        pl.BlockSpec((1, Cout, 1), lambda n, d: (n, 0, 0)),
        pl.BlockSpec((1, Cout, 1), lambda n, d: (n, 0, 0)),
    )
    return pl.pallas_call(
        kernel,
        out_shape=out_shape,
        grid_spec=pltpu.PrefetchScalarGridSpec(
            num_scalar_prefetch=0,
            grid=(N, D),
            in_specs=in_specs,
            out_specs=out_specs,
            scratch_shapes=[
                pltpu.VMEM(((D + 2) * c_scratch, LBLK), jnp.float32),   # padded volume
            ],
        ),
        compiler_params=pltpu.CompilerParams(
            dimension_semantics=("parallel", "arbitrary"),
            vmem_limit_bytes=_VMEM_LIMIT,
        ),
    )(*inputs)


def conv1_concat_same(skip_r, xup_r, w, b, masks, *, Ws, B, LBLK):
    N, Cskip, D, HW = skip_r.shape
    Cup, HWup = xup_r.shape[2], xup_r.shape[3]
    Ccat = Cskip + Cup
    Cout = w.shape[0]
    BLK = HW
    # weights as (kh*3+kw, Cout, kd*Ccat + ci) to match the kd-stacked patch
    w9 = jnp.transpose(w, (3, 4, 0, 2, 1)).reshape(9, Cout, 3 * Ccat)
    b2 = b.reshape(Cout, 1)
    in_specs = [
        pl.BlockSpec((2, BLK), lambda n, d: (0, 0)),
        pl.BlockSpec((1, Cskip, D, HW), lambda n, d: (n, 0, 0, 0)),
        pl.BlockSpec((1, D, Cup, HWup), lambda n, d: (n, 0, 0, 0)),
        pl.BlockSpec((9, Cout, 3 * Ccat), lambda n, d: (0, 0, 0)),
        pl.BlockSpec((Cout, 1), lambda n, d: (0, 0)),
    ]
    kernel = _make_conv1_kernel(D=D, HW=HW, HWup=HWup, B=B, Cskip=Cskip, Cup=Cup,
                                Cout=Cout, Ws=Ws, BLK=BLK)
    return _conv_pallas_call(kernel, (masks, skip_r, xup_r, w9, b2), in_specs,
                             N, D, Ccat, Cout, BLK, LBLK)


def conv2_bnrelu_same(x_p, scale, shift, w, b, masks, *, Ws, B, LBLK):
    N, D, Cin, BLK = x_p.shape
    Cout = w.shape[0]
    w9 = jnp.transpose(w, (3, 4, 0, 2, 1)).reshape(9, Cout, 3 * Cin)
    b2 = b.reshape(Cout, 1)
    in_specs = [
        pl.BlockSpec((2, BLK), lambda n, d: (0, 0)),
        pl.BlockSpec((1, D, Cin, BLK), lambda n, d: (n, 0, 0, 0)),
        pl.BlockSpec((1, Cin, 1), lambda n, d: (0, 0, 0)),
        pl.BlockSpec((1, Cin, 1), lambda n, d: (0, 0, 0)),
        pl.BlockSpec((9, Cout, 3 * Cin), lambda n, d: (0, 0, 0)),
        pl.BlockSpec((Cout, 1), lambda n, d: (0, 0)),
    ]
    kernel = _make_conv2_kernel(D=D, B=B, Cin=Cin, Cout=Cout, Ws=Ws, BLK=BLK)
    return _conv_pallas_call(kernel, (masks, x_p, scale, shift, w9, b2), in_specs,
                             N, D, Cin, Cout, BLK, LBLK)


# ---------------------------------------------------------------------------
# Final BatchNorm affine + ReLU, writing the NCDHW output layout directly
# ---------------------------------------------------------------------------
def _bn_relu_kernel(x_ref, scale_ref, shift_ref, o_ref):
    y = x_ref[0, 0] * scale_ref[0] + shift_ref[0]
    o_ref[0] = jnp.maximum(y, 0.0).astype(o_ref.dtype)


def bn_relu_apply_nc(x_p, scale, shift):
    """x_p: (N, D, C, BLK) -> out: (N, C, D*BLK) (reshapes freely to NCDHW)."""
    N, D, C, BLK = x_p.shape
    return pl.pallas_call(
        _bn_relu_kernel,
        out_shape=jax.ShapeDtypeStruct((N, C, D * BLK), jnp.float32),
        grid_spec=pltpu.PrefetchScalarGridSpec(
            num_scalar_prefetch=0,
            grid=(N, D),
            in_specs=[
                pl.BlockSpec((1, 1, C, BLK), lambda n, d: (n, d, 0, 0)),
                pl.BlockSpec((1, C, 1), lambda n, d: (0, 0, 0)),
                pl.BlockSpec((1, C, 1), lambda n, d: (0, 0, 0)),
            ],
            out_specs=pl.BlockSpec((1, C, BLK), lambda n, d: (n, 0, d)),
        ),
        compiler_params=pltpu.CompilerParams(
            dimension_semantics=("parallel", "parallel"),
            vmem_limit_bytes=_VMEM_LIMIT,
        ),
    )(x_p, scale, shift)


def _bn_affine(sum_nc1, sq_nc1, count, gamma, beta):
    """Training-mode BatchNorm: biased batch variance -> per-channel scale/shift."""
    s = jnp.sum(sum_nc1, axis=(0, 2))
    q = jnp.sum(sq_nc1, axis=(0, 2))
    mean = s / count
    var = q / count - mean * mean
    scale = gamma * jax.lax.rsqrt(var + EPS)
    shift = beta - mean * scale
    C = scale.shape[0]
    return scale.reshape(1, C, 1), shift.reshape(1, C, 1)


# ---------------------------------------------------------------------------
# UpBlock3D forward
# ---------------------------------------------------------------------------
def up_block3d_forward(params, x_ncdhw, skip_ncdhw):
    N, Cin, D, H, W = x_ncdhw.shape
    Ns, Cskip, Ds, Hs, Ws = skip_ncdhw.shape
    assert Ns == N and Ds == D and Hs >= 2 * H and Ws >= 2 * W
    Cout = params["c1_w"].shape[0]

    BLK = Hs * Ws                              # dense lane block per depth slice
    B = _round_up(Ws + 1, 128)                 # aligned lane base of each depth slab
    LBLK = _round_up(B + BLK + Ws + 1, 128)    # slab length incl. zero guard zones

    # self.up : (N, D, Cup, 2H, 2W)
    xup = conv_transpose3d_1x2x2(x_ncdhw, params["up_w"], params["up_b"])
    Cup = xup.shape[2]

    # F.pad(x, [0, diffW, 0, diffH]): right-pad W (no-op when diffW == 0);
    # the bottom H pad is implicit (unfilled scratch rows stay zero).
    if Ws > 2 * W:
        xup = jnp.pad(xup, ((0, 0), (0, 0), (0, 0), (0, 0), (0, Ws - 2 * W)))
    xup_r = xup.reshape(N, D, Cup, (2 * H) * Ws)          # free reshape
    skip_r = skip_ncdhw.reshape(N, Cskip, D, BLK)         # free reshape (native layout)

    # lane masks that cancel the row wrap-around of the kw=0 / kw=2 taps
    lane_w = jnp.arange(BLK, dtype=jnp.int32) % Ws
    masks = jnp.stack([(lane_w != 0), (lane_w != Ws - 1)]).astype(jnp.float32)

    count = jnp.float32(N * D * Hs * Ws)

    # conv1 (concat + same-pad fused) with batch-stat side outputs
    y1, s1, q1 = conv1_concat_same(skip_r, xup_r, params["c1_w"], params["c1_b"],
                                   masks, Ws=Ws, B=B, LBLK=LBLK)
    scale1, shift1 = _bn_affine(s1, q1, count, params["bn1_g"], params["bn1_b"])

    # conv2 with BN1 + ReLU fused into its input stage
    y2, s2, q2 = conv2_bnrelu_same(y1, scale1, shift1, params["c2_w"], params["c2_b"],
                                   masks, Ws=Ws, B=B, LBLK=LBLK)
    scale2, shift2 = _bn_affine(s2, q2, count, params["bn2_g"], params["bn2_b"])

    # final BN2 + ReLU, written directly in NCD(HW) layout
    out = bn_relu_apply_nc(y2, scale2, shift2)
    return out.reshape(N, Cout, D, Hs, Ws)


# ---------------------------------------------------------------------------
# Deterministic parameter init (PyTorch-default-style shapes / uniform bounds)
# ---------------------------------------------------------------------------
def init_params(key, in_channels, skip_channels, out_channels):
    ks = jax.random.split(key, 6)
    cat_c = out_channels + skip_channels

    def u(k, shape, fan_in):
        bound = 1.0 / jnp.sqrt(jnp.float32(fan_in))
        return jax.random.uniform(k, shape, jnp.float32, -bound, bound)

    return {
        # ConvTranspose3d weight: (Cin, Cout, 1, 2, 2)
        "up_w": u(ks[0], (in_channels, out_channels, 1, 2, 2), in_channels * 4),
        "up_b": u(ks[1], (out_channels,), in_channels * 4),
        # Conv3d weights: (Cout, Cin, 3, 3, 3)
        "c1_w": u(ks[2], (out_channels, cat_c, 3, 3, 3), cat_c * 27),
        "c1_b": u(ks[3], (out_channels,), cat_c * 27),
        "c2_w": u(ks[4], (out_channels, out_channels, 3, 3, 3), out_channels * 27),
        "c2_b": u(ks[5], (out_channels,), out_channels * 27),
        # BatchNorm3d defaults: gamma=1, beta=0
        "bn1_g": jnp.ones((out_channels,), jnp.float32),
        "bn1_b": jnp.zeros((out_channels,), jnp.float32),
        "bn2_g": jnp.ones((out_channels,), jnp.float32),
        "bn2_b": jnp.zeros((out_channels,), jnp.float32),
    }


if __name__ == "__main__":
    key = jax.random.PRNGKey(0)
    k_x, k_skip, k_p = jax.random.split(key, 3)

    # UpBlock3D(in_channels=16, skip_channels=8, out_channels=8)
    N, Cin, Cskip, Cout = 2, 16, 8, 8
    D, H, W = 4, 16, 16  # x spatial; skip is (D, 2H, 2W) as in a U-Net decoder

    x = jax.random.normal(k_x, (N, Cin, D, H, W), jnp.float32)             # NCDHW
    skip = jax.random.normal(k_skip, (N, Cskip, D, 2 * H, 2 * W), jnp.float32)
    params = init_params(k_p, Cin, Cskip, Cout)

    fwd = jax.jit(up_block3d_forward)
    out = jax.block_until_ready(fwd(params, x, skip))

    assert out.shape == (N, Cout, D, 2 * H, 2 * W), out.shape
    assert bool(jnp.all(jnp.isfinite(out)))
    print("KERNEL_OK")
</pallas_src>

<mosaic_0001>
module attributes {stable_mosaic.version = 11 : i64} {
  func.func @_upconv_kernel(%arg0: i32, %arg1: i32, %arg2: memref<1x16x1024xf32, #tpu.memory_space<vmem>>, %arg3: memref<32x16xf32, #tpu.memory_space<vmem>>, %arg4: memref<32x1xf32, #tpu.memory_space<vmem>>, %arg5: memref<1x32x1024xf32, #tpu.memory_space<vmem>>) attributes {dimension_semantics = [#tpu.dimension_semantics<parallel>, #tpu.dimension_semantics<parallel>], iteration_bounds = array<i64: 2, 1>, scalar_prefetch = 0 : i64, scratch_operands = 0 : i64, tpu.core_type = #tpu.core_type<tc>, window_params = [{transform_indices = @transform_0, window_bounds = array<i64: 1, 16, 1024>}, {pipeline_mode = #tpu.pipeline_mode<synchronous>, transform_indices = @transform_1, window_bounds = array<i64: 32, 16>}, {pipeline_mode = #tpu.pipeline_mode<synchronous>, transform_indices = @transform_2, window_bounds = array<i64: 32, 1>}, {transform_indices = @transform_3, window_bounds = array<i64: 1, 32, 1024>}]} {
    %c0 = arith.constant 0 : index
    %c0_0 = arith.constant 0 : index
    %0 = vector.load %arg3[%c0, %c0_0] : memref<32x16xf32, #tpu.memory_space<vmem>>, vector<32x16xf32>
    %c0_1 = arith.constant 0 : index
    %c0_2 = arith.constant 0 : index
    %c0_3 = arith.constant 0 : index
    %1 = vector.load %arg2[%c0_1, %c0_2, %c0_3] : memref<1x16x1024xf32, #tpu.memory_space<vmem>>, vector<1x16x1024xf32>
    %2 = vector.shape_cast %1 : vector<1x16x1024xf32> to vector<16x1024xf32>
    %cst = arith.constant dense<0.000000e+00> : vector<32x1024xf32>
    %3 = tpu.matmul %0, %2, %cst {dimension_numbers = #tpu.dot_dimension_numbers<[1], [0], [0], [1], [0, 0, 1, 1], [], []>} : vector<32x16xf32>, vector<16x1024xf32>, vector<32x1024xf32> -> vector<32x1024xf32>
    %c0_4 = arith.constant 0 : index
    %c0_5 = arith.constant 0 : index
    %4 = vector.load %arg4[%c0_4, %c0_5] : memref<32x1xf32, #tpu.memory_space<vmem>>, vector<32x1xf32>
    %5 = vector.broadcast %4 : vector<32x1xf32> to vector<32x1024xf32>
    %6 = arith.addf %3, %5 : vector<32x1024xf32>
    %c0_6 = arith.constant 0 : index
    %c0_7 = arith.constant 0 : index
    %c0_8 = arith.constant 0 : index
    %7 = vector.load %arg5[%c0_6, %c0_7, %c0_8] : memref<1x32x1024xf32, #tpu.memory_space<vmem>>, vector<1x32x1024xf32>
    %8 = vector.shape_cast %7 : vector<1x32x1024xf32> to vector<32x1024xf32>
    %9 = vector.shape_cast %6 : vector<32x1024xf32> to vector<1x32x1024xf32>
    tpu.vector_store %arg5[%c0_6, %c0_7, %c0_8], %9 {strides = array<i32>} : memref<1x32x1024xf32, #tpu.memory_space<vmem>>, vector<1x32x1024xf32>,
    return
  }
  func.func @transform_0(%arg0: i32, %arg1: i32) -> (i32, i32, i32) {
    %c0_i32 = arith.constant 0 : i32
    %c0_i32_0 = arith.constant 0 : i32
    return %arg0, %c0_i32, %arg1 : i32, i32, i32
  }
  func.func @transform_1(%arg0: i32, %arg1: i32) -> (i32, i32) {
    %c0_i32 = arith.constant 0 : i32
    %c0_i32_0 = arith.constant 0 : i32
    %c0_i32_1 = arith.constant 0 : i32
    return %c0_i32, %c0_i32_0 : i32, i32
  }
  func.func @transform_2(%arg0: i32, %arg1: i32) -> (i32, i32) {
    %c0_i32 = arith.constant 0 : i32
    %c0_i32_0 = arith.constant 0 : i32
    %c0_i32_1 = arith.constant 0 : i32
    return %c0_i32, %c0_i32_0 : i32, i32
  }
  func.func @transform_3(%arg0: i32, %arg1: i32) -> (i32, i32, i32) {
    %c0_i32 = arith.constant 0 : i32
    %c0_i32_0 = arith.constant 0 : i32
    return %arg0, %c0_i32, %arg1 : i32, i32, i32
  }
}

module attributes {stable_mosaic.version = 11 : i64} {
  func.func @kernel(%arg0: i32, %arg1: i32, %arg2: memref<2x1024xf32, #tpu.memory_space<vmem>>, %arg3: memref<1x8x4x1024xf32, #tpu.memory_space<vmem>>, %arg4: memref<1x4x8x1024xf32, #tpu.memory_space<vmem>>, %arg5: memref<9x8x48xf32, #tpu.memory_space<vmem>>, %arg6: memref<8x1xf32, #tpu.memory_space<vmem>>, %arg7: memref<1x1x8x1024xf32, #tpu.memory_space<vmem>>, %arg8: memref<1x8x1xf32, #tpu.memory_space<vmem>>, %arg9: memref<1x8x1xf32, #tpu.memory_space<vmem>>, %arg10: memref<96x1280xf32, #tpu.memory_space<vmem>>) attributes {dimension_semantics = [#tpu.dimension_semantics<parallel>, #tpu.dimension_semantics<arbitrary>], iteration_bounds = array<i64: 2, 4>, scalar_prefetch = 0 : i64, scratch_operands = 1 : i64, tpu.core_type = #tpu.core_type<tc>, window_params = [{pipeline_mode = #tpu.pipeline_mode<synchronous>, transform_indices = @transform_0, window_bounds = array<i64: 2, 1024>}, {transform_indices = @transform_1, window_bounds = array<i64: 1, 8, 4, 1024>}, {transform_indices = @transform_2, window_bounds = array<i64: 1, 4, 8, 1024>}, {pipeline_mode = #tpu.pipeline_mode<synchronous>, transform_indices = @transform_3, window_bounds = array<i64: 9, 8, 48>}, {pipeline_mode = #tpu.pipeline_mode<synchronous>, transform_indices = @transform_4, window_bounds = array<i64: 8, 1>}, {transform_indices = @transform_5, window_bounds = array<i64: 1, 1, 8, 1024>}, {transform_indices = @transform_6, window_bounds = array<i64: 1, 8, 1>}, {transform_indices = @transform_7, window_bounds = array<i64: 1, 8, 1>}]} {
    %c0_i32 = arith.constant 0 : i32
    %0 = arith.cmpi eq, %arg1, %c0_i32 : i32
    %1 = arith.extui %0 : i1 to i32
    %c0_i32_0 = arith.constant 0 : i32
    %2 = arith.cmpi ne, %1, %c0_i32_0 : i32
    scf.if %2 {
      %cst_61 = arith.constant 0.000000e+00 : f32
      %98 = vector.broadcast %cst_61 : f32 to vector<96x1280xf32>
      %c0_62 = arith.constant 0 : index
      %c0_63 = arith.constant 0 : index
      %99 = vector.load %arg10[%c0_62, %c0_63] : memref<96x1280xf32, #tpu.memory_space<vmem>>, vector<96x1280xf32>
      tpu.vector_store %arg10[%c0_62, %c0_63], %98 {strides = array<i32>} : memref<96x1280xf32, #tpu.memory_space<vmem>>, vector<96x1280xf32>,
      %c0_64 = arith.constant 0 : index
      %c0_65 = arith.constant 0 : index
      %c0_66 = arith.constant 0 : index
      %c0_67 = arith.constant 0 : index
      %100 = vector.load %arg3[%c0_64, %c0_65, %c0_66, %c0_67] : memref<1x8x4x1024xf32, #tpu.memory_space<vmem>>, vector<1x8x1x1024xf32>
      %101 = vector.shape_cast %100 : vector<1x8x1x1024xf32> to vector<8x1024xf32>
      %c16 = arith.constant 16 : index
      %c128_68 = arith.constant 128 : index
      %102 = vector.load %arg10[%c16, %c128_68] : memref<96x1280xf32, #tpu.memory_space<vmem>>, vector<8x1024xf32>
      tpu.vector_store %arg10[%c16, %c128_68], %101 {strides = array<i32>} : memref<96x1280xf32, #tpu.memory_space<vmem>>, vector<8x1024xf32>,
      %c0_69 = arith.constant 0 : index
      %c0_70 = arith.constant 0 : index
      %c0_71 = arith.constant 0 : index
      %c0_72 = arith.constant 0 : index
      %103 = vector.load %arg4[%c0_69, %c0_70, %c0_71, %c0_72] : memref<1x4x8x1024xf32, #tpu.memory_space<vmem>>, vector<1x1x8x1024xf32>
      %104 = vector.shape_cast %103 : vector<1x1x8x1024xf32> to vector<8x1024xf32>
      %c24 = arith.constant 24 : index
      %c128_73 = arith.constant 128 : index
      %105 = vector.load %arg10[%c24, %c128_73] : memref<96x1280xf32, #tpu.memory_space<vmem>>, vector<8x1024xf32>
      tpu.vector_store %arg10[%c24, %c128_73], %104 {strides = array<i32>} : memref<96x1280xf32, #tpu.memory_space<vmem>>, vector<8x1024xf32>,
      %c0_74 = arith.constant 0 : index
      %c0_75 = arith.constant 0 : index
      %c1_76 = arith.constant 1 : index
      %c0_77 = arith.constant 0 : index
      %106 = vector.load %arg3[%c0_74, %c0_75, %c1_76, %c0_77] : memref<1x8x4x1024xf32, #tpu.memory_space<vmem>>, vector<1x8x1x1024xf32>
      %107 = vector.shape_cast %106 : vector<1x8x1x1024xf32> to vector<8x1024xf32>
      %c32 = arith.constant 32 : index
      %c128_78 = arith.constant 128 : index
      %108 = vector.load %arg10[%c32, %c128_78] : memref<96x1280xf32, #tpu.memory_space<vmem>>, vector<8x1024xf32>
      tpu.vector_store %arg10[%c32, %c128_78], %107 {strides = array<i32>} : memref<96x1280xf32, #tpu.memory_space<vmem>>, vector<8x1024xf32>,
      %c0_79 = arith.constant 0 : index
      %c1_80 = arith.constant 1 : index
      %c0_81 = arith.constant 0 : index
      %c0_82 = arith.constant 0 : index
      %109 = vector.load %arg4[%c0_79, %c1_80, %c0_81, %c0_82] : memref<1x4x8x1024xf32, #tpu.memory_space<vmem>>, vector<1x1x8x1024xf32>
      %110 = vector.shape_cast %109 : vector<1x1x8x1024xf32> to vector<8x1024xf32>
      %c40 = arith.constant 40 : index
      %c128_83 = arith.constant 128 : index
      %111 = vector.load %arg10[%c40, %c128_83] : memref<96x1280xf32, #tpu.memory_space<vmem>>, vector<8x1024xf32>
      tpu.vector_store %arg10[%c40, %c128_83], %110 {strides = array<i32>} : memref<96x1280xf32, #tpu.memory_space<vmem>>, vector<8x1024xf32>,
      %c0_84 = arith.constant 0 : index
      %c0_85 = arith.constant 0 : index
      %c2_86 = arith.constant 2 : index
      %c0_87 = arith.constant 0 : index
      %112 = vector.load %arg3[%c0_84, %c0_85, %c2_86, %c0_87] : memref<1x8x4x1024xf32, #tpu.memory_space<vmem>>, vector<1x8x1x1024xf32>
      %113 = vector.shape_cast %112 : vector<1x8x1x1024xf32> to vector<8x1024xf32>
      %c48 = arith.constant 48 : index
      %c128_88 = arith.constant 128 : index
      %114 = vector.load %arg10[%c48, %c128_88] : memref<96x1280xf32, #tpu.memory_space<vmem>>, vector<8x1024xf32>
      tpu.vector_store %arg10[%c48, %c128_88], %113 {strides = array<i32>} : memref<96x1280xf32, #tpu.memory_space<vmem>>, vector<8x1024xf32>,
      %c0_89 = arith.constant 0 : index
      %c2_90 = arith.constant 2 : index
      %c0_91 = arith.constant 0 : index
      %c0_92 = arith.constant 0 : index
      %115 = vector.load %arg4[%c0_89, %c2_90, %c0_91, %c0_92] : memref<1x4x8x1024xf32, #tpu.memory_space<vmem>>, vector<1x1x8x1024xf32>
      %116 = vector.shape_cast %115 : vector<1x1x8x1024xf32> to vector<8x1024xf32>
      %c56 = arith.constant 56 : index
      %c128_93 = arith.constant 128 : index
      %117 = vector.load %arg10[%c56, %c128_93] : memref<96x1280xf32, #tpu.memory_space<vmem>>, vector<8x1024xf32>
      tpu.vector_store %arg10[%c56, %c128_93], %116 {strides = array<i32>} : memref<96x1280xf32, #tpu.memory_space<vmem>>, vector<8x1024xf32>,
      %c0_94 = arith.constant 0 : index
      %c0_95 = arith.constant 0 : index
      %c3_96 = arith.constant 3 : index
      %c0_97 = arith.constant 0 : index
      %118 = vector.load %arg3[%c0_94, %c0_95, %c3_96, %c0_97] : memref<1x8x4x1024xf32, #tpu.memory_space<vmem>>, vector<1x8x1x1024xf32>
      %119 = vector.shape_cast %118 : vector<1x8x1x1024xf32> to vector<8x1024xf32>
      %c64 = arith.constant 64 : index
      %c128_98 = arith.constant 128 : index
      %120 = vector.load %arg10[%c64, %c128_98] : memref<96x1280xf32, #tpu.memory_space<vmem>>, vector<8x1024xf32>
      tpu.vector_store %arg10[%c64, %c128_98], %119 {strides = array<i32>} : memref<96x1280xf32, #tpu.memory_space<vmem>>, vector<8x1024xf32>,
      %c0_99 = arith.constant 0 : index
      %c3_100 = arith.constant 3 : index
      %c0_101 = arith.constant 0 : index
      %c0_102 = arith.constant 0 : index
      %121 = vector.load %arg4[%c0_99, %c3_100, %c0_101, %c0_102] : memref<1x4x8x1024xf32, #tpu.memory_space<vmem>>, vector<1x1x8x1024xf32>
      %122 = vector.shape_cast %121 : vector<1x1x8x1024xf32> to vector<8x1024xf32>
      %c72 = arith.constant 72 : index
      %c128_103 = arith.constant 128 : index
      %123 = vector.load %arg10[%c72, %c128_103] : memref<96x1280xf32, #tpu.memory_space<vmem>>, vector<8x1024xf32>
      tpu.vector_store %arg10[%c72, %c128_103], %122 {strides = array<i32>} : memref<96x1280xf32, #tpu.memory_space<vmem>>, vector<8x1024xf32>,
    } else {
    }
    %c16_i32 = arith.constant 16 : i32
    %3 = arith.muli %arg1, %c16_i32 : i32
    %4 = tpu.assume_multiple %3, 16 : i32
    %5 = arith.index_cast %4 : i32 to index
    %c95 = arith.constant 95 : index
    %6 = vector.load %arg10[%5, %c95] : memref<96x1280xf32, #tpu.memory_space<vmem>>, vector<48x1024xf32>
    %c0 = arith.constant 0 : index
    %c0_1 = arith.constant 0 : index
    %c0_2 = arith.constant 0 : index
    %7 = vector.load %arg5[%c0, %c0_1, %c0_2] : memref<9x8x48xf32, #tpu.memory_space<vmem>>, vector<1x8x48xf32>
    %8 = vector.shape_cast %7 : vector<1x8x48xf32> to vector<8x48xf32>
    %cst = arith.constant dense<0.000000e+00> : vector<8x1024xf32>
    %9 = tpu.matmul %8, %6, %cst {dimension_numbers = #tpu.dot_dimension_numbers<[1], [0], [0], [1], [0, 0, 1, 1], [], []>} : vector<8x48xf32>, vector<48x1024xf32>, vector<8x1024xf32> -> vector<8x1024xf32>
    %c0_3 = arith.constant 0 : index
    %c0_4 = arith.constant 0 : index
    %10 = vector.load %arg2[%c0_3, %c0_4] : memref<2x1024xf32, #tpu.memory_space<vmem>>, vector<1x1024xf32>
    %11 = vector.broadcast %10 : vector<1x1024xf32> to vector<8x1024xf32>
    %12 = arith.mulf %9, %11 : vector<8x1024xf32>
    %13 = arith.index_cast %4 : i32 to index
    %c96 = arith.constant 96 : index
    %14 = vector.load %arg10[%13, %c96] : memref<96x1280xf32, #tpu.memory_space<vmem>>, vector<48x1024xf32>
    %c1 = arith.constant 1 : index
    %c0_5 = arith.constant 0 : index
    %c0_6 = arith.constant 0 : index
    %15 = vector.load %arg5[%c1, %c0_5, %c0_6] : memref<9x8x48xf32, #tpu.memory_space<vmem>>, vector<1x8x48xf32>
    %16 = vector.shape_cast %15 : vector<1x8x48xf32> to vector<8x48xf32>
    %cst_7 = arith.constant dense<0.000000e+00> : vector<8x1024xf32>
    %17 = tpu.matmul %16, %14, %cst_7 {dimension_numbers = #tpu.dot_dimension_numbers<[1], [0], [0], [1], [0, 0, 1, 1], [], []>} : vector<8x48xf32>, vector<48x1024xf32>, vector<8x1024xf32> -> vector<8x1024xf32>
    %18 = arith.addf %12, %17 : vector<8x1024xf32>
    %19 = arith.index_cast %4 : i32 to index
    %c97 = arith.constant 97 : index
    %20 = vector.load %arg10[%19, %c97] : memref<96x1280xf32, #tpu.memory_space<vmem>>, vector<48x1024xf32>
    %c2 = arith.constant 2 : index
    %c0_8 = arith.constant 0 : index
    %c0_9 = arith.constant 0 : index
    %21 = vector.load %arg5[%c2, %c0_8, %c0_9] : memref<9x8x48xf32, #tpu.memory_space<vmem>>, vector<1x8x48xf32>
    %22 = vector.shape_cast %21 : vector<1x8x48xf32> to vector<8x48xf32>
    %cst_10 = arith.constant dense<0.000000e+00> : vector<8x1024xf32>
    %23 = tpu.matmul %22, %20, %cst_10 {dimension_numbers = #tpu.dot_dimension_numbers<[1], [0], [0], [1], [0, 0, 1, 1], [], []>} : vector<8x48xf32>, vector<48x1024xf32>, vector<8x1024xf32> -> vector<8x1024xf32>
    %c1_11 = arith.constant 1 : index
    %c0_12 = arith.constant 0 : index
    %24 = vector.load %arg2[%c1_11, %c0_12] : memref<2x1024xf32, #tpu.memory_space<vmem>>, vector<1x1024xf32>
    %25 = vector.broadcast %24 : vector<1x1024xf32> to vector<8x1024xf32>
    %26 = arith.mulf %23, %25 : vector<8x1024xf32>
    %27 = arith.addf %18, %26 : vector<8x1024xf32>
    %28 = arith.index_cast %4 : i32 to index
    %c127 = arith.constant 127 : index
    %29 = vector.load %arg10[%28, %c127] : memref<96x1280xf32, #tpu.memory_space<vmem>>, vector<48x1024xf32>
    %c3 = arith.constant 3 : index
    %c0_13 = arith.constant 0 : index
    %c0_14 = arith.constant 0 : index
    %30 = vector.load %arg5[%c3, %c0_13, %c0_14] : memref<9x8x48xf32, #tpu.memory_space<vmem>>, vector<1x8x48xf32>
    %31 = vector.shape_cast %30 : vector<1x8x48xf32> to vector<8x48xf32>
    %cst_15 = arith.constant dense<0.000000e+00> : vector<8x1024xf32>
    %32 = tpu.matmul %31, %29, %cst_15 {dimension_numbers = #tpu.dot_dimension_numbers<[1], [0], [0], [1], [0, 0, 1, 1], [], []>} : vector<8x48xf32>, vector<48x1024xf32>, vector<8x1024xf32> -> vector<8x1024xf32>
    %c0_16 = arith.constant 0 : index
    %c0_17 = arith.constant 0 : index
    %33 = vector.load %arg2[%c0_16, %c0_17] : memref<2x1024xf32, #tpu.memory_space<vmem>>, vector<1x1024xf32>
    %34 = vector.broadcast %33 : vector<1x1024xf32> to vector<8x1024xf32>
    %35 = arith.mulf %32, %34 : vector<8x1024xf32>
    %36 = arith.addf %27, %35 : vector<8x1024xf32>
    %37 = arith.index_cast %4 : i32 to index
    %c128 = arith.constant 128 : index
    %38 = vector.load %arg10[%37, %c128] : memref<96x1280xf32, #tpu.memory_space<vmem>>, vector<48x1024xf32>
    %c4 = arith.constant 4 : index
    %c0_18 = arith.constant 0 : index
    %c0_19 = arith.constant 0 : index
    %39 = vector.load %arg5[%c4, %c0_18, %c0_19] : memref<9x8x48xf32, #tpu.memory_space<vmem>>, vector<1x8x48xf32>
    %40 = vector.shape_cast %39 : vector<1x8x48xf32> to vector<8x48xf32>
    %cst_20 = arith.constant dense<0.000000e+00> : vector<8x1024xf32>
    %41 = tpu.matmul %40, %38, %cst_20 {dimension_numbers = #tpu.dot_dimension_numbers<[1], [0], [0], [1], [0, 0, 1, 1], [], []>} : vector<8x48xf32>, vector<48x1024xf32>, vector<8x1024xf32> -> vector<8x1024xf32>
    %42 = arith.addf %36, %41 : vector<8x1024xf32>
    %43 = arith.index_cast %4 : i32 to index
    %c129 = arith.constant 129 : index
    %44 = vector.load %arg10[%43, %c129] : memref<96x1280xf32, #tpu.memory_space<vmem>>, vector<48x1024xf32>
    %c5 = arith.constant 5 : index
    %c0_21 = arith.constant 0 : index
    %c0_22 = arith.constant 0 : index
    %45 = vector.load %arg5[%c5, %c0_21, %c0_22] : memref<9x8x48xf32, #tpu.memory_space<vmem>>, vector<1x8x48xf32>
    %46 = vector.shape_cast %45 : vector<1x8x48xf32> to vector<8x48xf32>
    %cst_23 = arith.constant dense<0.000000e+00> : vector<8x1024xf32>
    %47 = tpu.matmul %46, %44, %cst_23 {dimension_numbers = #tpu.dot_dimension_numbers<[1], [0], [0], [1], [0, 0, 1, 1], [], []>} : vector<8x48xf32>, vector<48x1024xf32>, vector<8x1024xf32> -> vector<8x1024xf32>
    %c1_24 = arith.constant 1 : index
    %c0_25 = arith.constant 0 : index
    %48 = vector.load %arg2[%c1_24, %c0_25] : memref<2x1024xf32, #tpu.memory_space<vmem>>, vector<1x1024xf32>
    %49 = vector.broadcast %48 : vector<1x1024xf32> to vector<8x1024xf32>
    %50 = arith.mulf %47, %49 : vector<8x1024xf32>
    %51 = arith.addf %42, %50 : vector<8x1024xf32>
    %52 = arith.index_cast %4 : i32 to index
    %c159 = arith.constant 159 : index
    %53 = vector.load %arg10[%52, %c159] : memref<96x1280xf32, #tpu.memory_space<vmem>>, vector<48x1024xf32>
    %c6 = arith.constant 6 : index
    %c0_26 = arith.constant 0 : index
    %c0_27 = arith.constant 0 : index
    %54 = vector.load %arg5[%c6, %c0_26, %c0_27] : memref<9x8x48xf32, #tpu.memory_space<vmem>>, vector<1x8x48xf32>
    %55 = vector.shape_cast %54 : vector<1x8x48xf32> to vector<8x48xf32>
    %cst_28 = arith.constant dense<0.000000e+00> : vector<8x1024xf32>
    %56 = tpu.matmul %55, %53, %cst_28 {dimension_numbers = #tpu.dot_dimension_numbers<[1], [0], [0], [1], [0, 0, 1, 1], [], []>} : vector<8x48xf32>, vector<48x1024xf32>, vector<8x1024xf32> -> vector<8x1024xf32>
    %c0_29 = arith.constant 0 : index
    %c0_30 = arith.constant 0 : index
    %57 = vector.load %arg2[%c0_29, %c0_30] : memref<2x1024xf32, #tpu.memory_space<vmem>>, vector<1x1024xf32>
    %58 = vector.broadcast %57 : vector<1x1024xf32> to vector<8x1024xf32>
    %59 = arith.mulf %56, %58 : vector<8x1024xf32>
    %60 = arith.addf %51, %59 : vector<8x1024xf32>
    %61 = arith.index_cast %4 : i32 to index
    %c160 = arith.constant 160 : index
    %62 = vector.load %arg10[%61, %c160] : memref<96x1280xf32, #tpu.memory_space<vmem>>, vector<48x1024xf32>
    %c7 = arith.constant 7 : index
    %c0_31 = arith.constant 0 : index
    %c0_32 = arith.constant 0 : index
    %63 = vector.load %arg5[%c7, %c0_31, %c0_32] : memref<9x8x48xf32, #tpu.memory_space<vmem>>, vector<1x8x48xf32>
    %64 = vector.shape_cast %63 : vector<1x8x48xf32> to vector<8x48xf32>
    %cst_33 = arith.constant dense<0.000000e+00> : vector<8x1024xf32>
    %65 = tpu.matmul %64, %62, %cst_33 {dimension_numbers = #tpu.dot_dimension_numbers<[1], [0], [0], [1], [0, 0, 1, 1], [], []>} : vector<8x48xf32>, vector<48x1024xf32>, vector<8x1024xf32> -> vector<8x1024xf32>
    %66 = arith.addf %60, %65 : vector<8x1024xf32>
    %67 = arith.index_cast %4 : i32 to index
    %c161 = arith.constant 161 : index
    %68 = vector.load %arg10[%67, %c161] : memref<96x1280xf32, #tpu.memory_space<vmem>>, vector<48x1024xf32>
    %c8 = arith.constant 8 : index
    %c0_34 = arith.constant 0 : index
    %c0_35 = arith.constant 0 : index
    %69 = vector.load %arg5[%c8, %c0_34, %c0_35] : memref<9x8x48xf32, #tpu.memory_space<vmem>>, vector<1x8x48xf32>
    %70 = vector.shape_cast %69 : vector<1x8x48xf32> to vector<8x48xf32>
    %cst_36 = arith.constant dense<0.000000e+00> : vector<8x1024xf32>
    %71 = tpu.matmul %70, %68, %cst_36 {dimension_numbers = #tpu.dot_dimension_numbers<[1], [0], [0], [1], [0, 0, 1, 1], [], []>} : vector<8x48xf32>, vector<48x1024xf32>, vector<8x1024xf32> -> vector<8x1024xf32>
    %c1_37 = arith.constant 1 : index
    %c0_38 = arith.constant 0 : index
    %72 = vector.load %arg2[%c1_37, %c0_38] : memref<2x1024xf32, #tpu.memory_space<vmem>>, vector<1x1024xf32>
    %73 = vector.broadcast %72 : vector<1x1024xf32> to vector<8x1024xf32>
    %74 = arith.mulf %71, %73 : vector<8x1024xf32>
    %75 = arith.addf %66, %74 : vector<8x1024xf32>
    %c0_39 = arith.constant 0 : index
    %c0_40 = arith.constant 0 : index
    %76 = vector.load %arg6[%c0_39, %c0_40] : memref<8x1xf32, #tpu.memory_space<vmem>>, vector<8x1xf32>
    %77 = vector.broadcast %76 : vector<8x1xf32> to vector<8x1024xf32>
    %78 = arith.addf %75, %77 : vector<8x1024xf32>
    %c0_41 = arith.constant 0 : index
    %c0_42 = arith.constant 0 : index
    %c0_43 = arith.constant 0 : index
    %c0_44 = arith.constant 0 : index
    %79 = vector.load %arg7[%c0_41, %c0_42, %c0_43, %c0_44] : memref<1x1x8x1024xf32, #tpu.memory_space<vmem>>, vector<1x1x8x1024xf32>
    %80 = vector.shape_cast %79 : vector<1x1x8x1024xf32> to vector<8x1024xf32>
    %81 = vector.shape_cast %78 : vector<8x1024xf32> to vector<1x1x8x1024xf32>
    tpu.vector_store %arg7[%c0_41, %c0_42, %c0_43, %c0_44], %81 {strides = array<i32>} : memref<1x1x8x1024xf32, #tpu.memory_space<vmem>>, vector<1x1x8x1024xf32>,
    %c0_i32_45 = arith.constant 0 : i32
    %82 = arith.cmpi eq, %arg1, %c0_i32_45 : i32
    %83 = arith.extui %82 : i1 to i32
    %c0_i32_46 = arith.constant 0 : i32
    %84 = arith.cmpi ne, %83, %c0_i32_46 : i32
    scf.if %84 {
      %cst_61 = arith.constant 0.000000e+00 : f32
      %98 = vector.broadcast %cst_61 : f32 to vector<1x8x1xf32>
      %c0_62 = arith.constant 0 : index
      %c0_63 = arith.constant 0 : index
      %c0_64 = arith.constant 0 : index
      %99 = vector.load %arg8[%c0_62, %c0_63, %c0_64] : memref<1x8x1xf32, #tpu.memory_space<vmem>>, vector<1x8x1xf32>
      tpu.vector_store %arg8[%c0_62, %c0_63, %c0_64], %98 {strides = array<i32>} : memref<1x8x1xf32, #tpu.memory_space<vmem>>, vector<1x8x1xf32>,
      %cst_65 = arith.constant 0.000000e+00 : f32
      %100 = vector.broadcast %cst_65 : f32 to vector<1x8x1xf32>
      %c0_66 = arith.constant 0 : index
      %c0_67 = arith.constant 0 : index
      %c0_68 = arith.constant 0 : index
      %101 = vector.load %arg9[%c0_66, %c0_67, %c0_68] : memref<1x8x1xf32, #tpu.memory_space<vmem>>, vector<1x8x1xf32>
      tpu.vector_store %arg9[%c0_66, %c0_67, %c0_68], %100 {strides = array<i32>} : memref<1x8x1xf32, #tpu.memory_space<vmem>>, vector<1x8x1xf32>,
    } else {
    }
    %c0_47 = arith.constant 0 : index
    %c0_48 = arith.constant 0 : index
    %c0_49 = arith.constant 0 : index
    %85 = vector.load %arg8[%c0_47, %c0_48, %c0_49] : memref<1x8x1xf32, #tpu.memory_space<vmem>>, vector<1x8x1xf32>
    %cst_50 = arith.constant dense<0.000000e+00> : vector<8xf32>
    %86 = vector.multi_reduction <add>, %78, %cst_50 [1] : vector<8x1024xf32> to vector<8xf32>
    %87 = vector.shape_cast %86 : vector<8xf32> to vector<8x1xf32>
    %88 = vector.shape_cast %87 : vector<8x1xf32> to vector<1x8x1xf32>
    %89 = arith.addf %85, %88 : vector<1x8x1xf32>
    %c0_51 = arith.constant 0 : index
    %c0_52 = arith.constant 0 : index
    %c0_53 = arith.constant 0 : index
    %90 = vector.load %arg8[%c0_51, %c0_52, %c0_53] : memref<1x8x1xf32, #tpu.memory_space<vmem>>, vector<1x8x1xf32>
    tpu.vector_store %arg8[%c0_51, %c0_52, %c0_53], %89 {strides = array<i32>} : memref<1x8x1xf32, #tpu.memory_space<vmem>>, vector<1x8x1xf32>,
    %c0_54 = arith.constant 0 : index
    %c0_55 = arith.constant 0 : index
    %c0_56 = arith.constant 0 : index
    %91 = vector.load %arg9[%c0_54, %c0_55, %c0_56] : memref<1x8x1xf32, #tpu.memory_space<vmem>>, vector<1x8x1xf32>
    %92 = arith.mulf %78, %78 : vector<8x1024xf32>
    %cst_57 = arith.constant dense<0.000000e+00> : vector<8xf32>
    %93 = vector.multi_reduction <add>, %92, %cst_57 [1] : vector<8x1024xf32> to vector<8xf32>
    %94 = vector.shape_cast %93 : vector<8xf32> to vector<8x1xf32>
    %95 = vector.shape_cast %94 : vector<8x1xf32> to vector<1x8x1xf32>
    %96 = arith.addf %91, %95 : vector<1x8x1xf32>
    %c0_58 = arith.constant 0 : index
    %c0_59 = arith.constant 0 : index
    %c0_60 = arith.constant 0 : index
    %97 = vector.load %arg9[%c0_58, %c0_59, %c0_60] : memref<1x8x1xf32, #tpu.memory_space<vmem>>, vector<1x8x1xf32>
    tpu.vector_store %arg9[%c0_58, %c0_59, %c0_60], %96 {strides = array<i32>} : memref<1x8x1xf32, #tpu.memory_space<vmem>>, vector<1x8x1xf32>,
    return
  }
  func.func @transform_0(%arg0: i32, %arg1: i32) -> (i32, i32) {
    %c0_i32 = arith.constant 0 : i32
    %c0_i32_0 = arith.constant 0 : i32
    %c0_i32_1 = arith.constant 0 : i32
    return %c0_i32, %c0_i32_0 : i32, i32
  }
  func.func @transform_1(%arg0: i32, %arg1: i32) -> (i32, i32, i32, i32) {
    %c0_i32 = arith.constant 0 : i32
    %c0_i32_0 = arith.constant 0 : i32
    %c0_i32_1 = arith.constant 0 : i32
    %c0_i32_2 = arith.constant 0 : i32
    return %arg0, %c0_i32, %c0_i32_0, %c0_i32_1 : i32, i32, i32, i32
  }
  func.func @transform_2(%arg0: i32, %arg1: i32) -> (i32, i32, i32, i32) {
    %c0_i32 = arith.constant 0 : i32
    %c0_i32_0 = arith.constant 0 : i32
    %c0_i32_1 = arith.constant 0 : i32
    %c0_i32_2 = arith.constant 0 : i32
    return %arg0, %c0_i32, %c0_i32_0, %c0_i32_1 : i32, i32, i32, i32
  }
  func.func @transform_3(%arg0: i32, %arg1: i32) -> (i32, i32, i32) {
    %c0_i32 = arith.constant 0 : i32
    %c0_i32_0 = arith.constant 0 : i32
    %c0_i32_1 = arith.constant 0 : i32
    %c0_i32_2 = arith.constant 0 : i32
    return %c0_i32, %c0_i32_0, %c0_i32_1 : i32, i32, i32
  }
  func.func @transform_4(%arg0: i32, %arg1: i32) -> (i32, i32) {
    %c0_i32 = arith.constant 0 : i32
    %c0_i32_0 = arith.constant 0 : i32
    %c0_i32_1 = arith.constant 0 : i32
    return %c0_i32, %c0_i32_0 : i32, i32
  }
  func.func @transform_5(%arg0: i32, %arg1: i32) -> (i32, i32, i32, i32) {
    %c0_i32 = arith.constant 0 : i32
    %c0_i32_0 = arith.constant 0 : i32
    %c0_i32_1 = arith.constant 0 : i32
    return %arg0, %arg1, %c0_i32, %c0_i32_0 : i32, i32, i32, i32
  }
  func.func @transform_6(%arg0: i32, %arg1: i32) -> (i32, i32, i32) {
    %c0_i32 = arith.constant 0 : i32
    %c0_i32_0 = arith.constant 0 : i32
    %c0_i32_1 = arith.constant 0 : i32
    return %arg0, %c0_i32, %c0_i32_0 : i32, i32, i32
  }
  func.func @transform_7(%arg0: i32, %arg1: i32) -> (i32, i32, i32) {
    %c0_i32 = arith.constant 0 : i32
    %c0_i32_0 = arith.constant 0 : i32
    %c0_i32_1 = arith.constant 0 : i32
    return %arg0, %c0_i32, %c0_i32_0 : i32, i32, i32
  }
}

module attributes {stable_mosaic.version = 11 : i64} {
  func.func @kernel(%arg0: i32, %arg1: i32, %arg2: memref<2x1024xf32, #tpu.memory_space<vmem>>, %arg3: memref<1x4x8x1024xf32, #tpu.memory_space<vmem>>, %arg4: memref<1x8x1xf32, #tpu.memory_space<vmem>>, %arg5: memref<1x8x1xf32, #tpu.memory_space<vmem>>, %arg6: memref<9x8x24xf32, #tpu.memory_space<vmem>>, %arg7: memref<8x1xf32, #tpu.memory_space<vmem>>, %arg8: memref<1x1x8x1024xf32, #tpu.memory_space<vmem>>, %arg9: memref<1x8x1xf32, #tpu.memory_space<vmem>>, %arg10: memref<1x8x1xf32, #tpu.memory_space<vmem>>, %arg11: memref<48x1280xf32, #tpu.memory_space<vmem>>) attributes {dimension_semantics = [#tpu.dimension_semantics<parallel>, #tpu.dimension_semantics<arbitrary>], iteration_bounds = array<i64: 2, 4>, scalar_prefetch = 0 : i64, scratch_operands = 1 : i64, tpu.core_type = #tpu.core_type<tc>, window_params = [{pipeline_mode = #tpu.pipeline_mode<synchronous>, transform_indices = @transform_0, window_bounds = array<i64: 2, 1024>}, {transform_indices = @transform_1, window_bounds = array<i64: 1, 4, 8, 1024>}, {pipeline_mode = #tpu.pipeline_mode<synchronous>, transform_indices = @transform_2, window_bounds = array<i64: 1, 8, 1>}, {pipeline_mode = #tpu.pipeline_mode<synchronous>, transform_indices = @transform_3, window_bounds = array<i64: 1, 8, 1>}, {pipeline_mode = #tpu.pipeline_mode<synchronous>, transform_indices = @transform_4, window_bounds = array<i64: 9, 8, 24>}, {pipeline_mode = #tpu.pipeline_mode<synchronous>, transform_indices = @transform_5, window_bounds = array<i64: 8, 1>}, {transform_indices = @transform_6, window_bounds = array<i64: 1, 1, 8, 1024>}, {transform_indices = @transform_7, window_bounds = array<i64: 1, 8, 1>}, {transform_indices = @transform_8, window_bounds = array<i64: 1, 8, 1>}]} {
    %c0_i32 = arith.constant 0 : i32
    %0 = arith.cmpi eq, %arg1, %c0_i32 : i32
    %1 = arith.extui %0 : i1 to i32
    %c0_i32_0 = arith.constant 0 : i32
    %2 = arith.cmpi ne, %1, %c0_i32_0 : i32
    scf.if %2 {
      %cst_61 = arith.constant 0.000000e+00 : f32
      %98 = vector.broadcast %cst_61 : f32 to vector<48x1280xf32>
      %c0_62 = arith.constant 0 : index
      %c0_63 = arith.constant 0 : index
      %99 = vector.load %arg11[%c0_62, %c0_63] : memref<48x1280xf32, #tpu.memory_space<vmem>>, vector<48x1280xf32>
      tpu.vector_store %arg11[%c0_62, %c0_63], %98 {strides = array<i32>} : memref<48x1280xf32, #tpu.memory_space<vmem>>, vector<48x1280xf32>,
      %c0_64 = arith.constant 0 : index
      %c0_65 = arith.constant 0 : index
      %c0_66 = arith.constant 0 : index
      %c0_67 = arith.constant 0 : index
      %100 = vector.load %arg3[%c0_64, %c0_65, %c0_66, %c0_67] : memref<1x4x8x1024xf32, #tpu.memory_space<vmem>>, vector<1x1x8x1024xf32>
      %101 = vector.shape_cast %100 : vector<1x1x8x1024xf32> to vector<8x1024xf32>
      %c0_68 = arith.constant 0 : index
      %c0_69 = arith.constant 0 : index
      %c0_70 = arith.constant 0 : index
      %102 = vector.load %arg4[%c0_68, %c0_69, %c0_70] : memref<1x8x1xf32, #tpu.memory_space<vmem>>, vector<1x8x1xf32>
      %103 = vector.shape_cast %102 : vector<1x8x1xf32> to vector<8x1xf32>
      %104 = vector.broadcast %103 : vector<8x1xf32> to vector<8x1024xf32>
      %105 = arith.mulf %101, %104 : vector<8x1024xf32>
      %c0_71 = arith.constant 0 : index
      %c0_72 = arith.constant 0 : index
      %c0_73 = arith.constant 0 : index
      %106 = vector.load %arg5[%c0_71, %c0_72, %c0_73] : memref<1x8x1xf32, #tpu.memory_space<vmem>>, vector<1x8x1xf32>
      %107 = vector.shape_cast %106 : vector<1x8x1xf32> to vector<8x1xf32>
      %108 = vector.broadcast %107 : vector<8x1xf32> to vector<8x1024xf32>
      %109 = arith.addf %105, %108 : vector<8x1024xf32>
      %cst_74 = arith.constant 0.000000e+00 : f32
      %110 = vector.broadcast %cst_74 : f32 to vector<8x1024xf32>
      %111 = arith.maximumf %109, %110 : vector<8x1024xf32>
      %c8_75 = arith.constant 8 : index
      %c128_76 = arith.constant 128 : index
      %112 = vector.load %arg11[%c8_75, %c128_76] : memref<48x1280xf32, #tpu.memory_space<vmem>>, vector<8x1024xf32>
      tpu.vector_store %arg11[%c8_75, %c128_76], %111 {strides = array<i32>} : memref<48x1280xf32, #tpu.memory_space<vmem>>, vector<8x1024xf32>,
      %c0_77 = arith.constant 0 : index
      %c1_78 = arith.constant 1 : index
      %c0_79 = arith.constant 0 : index
      %c0_80 = arith.constant 0 : index
      %113 = vector.load %arg3[%c0_77, %c1_78, %c0_79, %c0_80] : memref<1x4x8x1024xf32, #tpu.memory_space<vmem>>, vector<1x1x8x1024xf32>
      %114 = vector.shape_cast %113 : vector<1x1x8x1024xf32> to vector<8x1024xf32>
      %c0_81 = arith.constant 0 : index
      %c0_82 = arith.constant 0 : index
      %c0_83 = arith.constant 0 : index
      %115 = vector.load %arg4[%c0_81, %c0_82, %c0_83] : memref<1x8x1xf32, #tpu.memory_space<vmem>>, vector<1x8x1xf32>
      %116 = vector.shape_cast %115 : vector<1x8x1xf32> to vector<8x1xf32>
      %117 = vector.broadcast %116 : vector<8x1xf32> to vector<8x1024xf32>
      %118 = arith.mulf %114, %117 : vector<8x1024xf32>
      %c0_84 = arith.constant 0 : index
      %c0_85 = arith.constant 0 : index
      %c0_86 = arith.constant 0 : index
      %119 = vector.load %arg5[%c0_84, %c0_85, %c0_86] : memref<1x8x1xf32, #tpu.memory_space<vmem>>, vector<1x8x1xf32>
      %120 = vector.shape_cast %119 : vector<1x8x1xf32> to vector<8x1xf32>
      %121 = vector.broadcast %120 : vector<8x1xf32> to vector<8x1024xf32>
      %122 = arith.addf %118, %121 : vector<8x1024xf32>
      %cst_87 = arith.constant 0.000000e+00 : f32
      %123 = vector.broadcast %cst_87 : f32 to vector<8x1024xf32>
      %124 = arith.maximumf %122, %123 : vector<8x1024xf32>
      %c16 = arith.constant 16 : index
      %c128_88 = arith.constant 128 : index
      %125 = vector.load %arg11[%c16, %c128_88] : memref<48x1280xf32, #tpu.memory_space<vmem>>, vector<8x1024xf32>
      tpu.vector_store %arg11[%c16, %c128_88], %124 {strides = array<i32>} : memref<48x1280xf32, #tpu.memory_space<vmem>>, vector<8x1024xf32>,
      %c0_89 = arith.constant 0 : index
      %c2_90 = arith.constant 2 : index
      %c0_91 = arith.constant 0 : index
      %c0_92 = arith.constant 0 : index
      %126 = vector.load %arg3[%c0_89, %c2_90, %c0_91, %c0_92] : memref<1x4x8x1024xf32, #tpu.memory_space<vmem>>, vector<1x1x8x1024xf32>
      %127 = vector.shape_cast %126 : vector<1x1x8x1024xf32> to vector<8x1024xf32>
      %c0_93 = arith.constant 0 : index
      %c0_94 = arith.constant 0 : index
      %c0_95 = arith.constant 0 : index
      %128 = vector.load %arg4[%c0_93, %c0_94, %c0_95] : memref<1x8x1xf32, #tpu.memory_space<vmem>>, vector<1x8x1xf32>
      %129 = vector.shape_cast %128 : vector<1x8x1xf32> to vector<8x1xf32>
      %130 = vector.broadcast %129 : vector<8x1xf32> to vector<8x1024xf32>
      %131 = arith.mulf %127, %130 : vector<8x1024xf32>
      %c0_96 = arith.constant 0 : index
      %c0_97 = arith.constant 0 : index
      %c0_98 = arith.constant 0 : index
      %132 = vector.load %arg5[%c0_96, %c0_97, %c0_98] : memref<1x8x1xf32, #tpu.memory_space<vmem>>, vector<1x8x1xf32>
      %133 = vector.shape_cast %132 : vector<1x8x1xf32> to vector<8x1xf32>
      %134 = vector.broadcast %133 : vector<8x1xf32> to vector<8x1024xf32>
      %135 = arith.addf %131, %134 : vector<8x1024xf32>
      %cst_99 = arith.constant 0.000000e+00 : f32
      %136 = vector.broadcast %cst_99 : f32 to vector<8x1024xf32>
      %137 = arith.maximumf %135, %136 : vector<8x1024xf32>
      %c24 = arith.constant 24 : index
      %c128_100 = arith.constant 128 : index
      %138 = vector.load %arg11[%c24, %c128_100] : memref<48x1280xf32, #tpu.memory_space<vmem>>, vector<8x1024xf32>
      tpu.vector_store %arg11[%c24, %c128_100], %137 {strides = array<i32>} : memref<48x1280xf32, #tpu.memory_space<vmem>>, vector<8x1024xf32>,
      %c0_101 = arith.constant 0 : index
      %c3_102 = arith.constant 3 : index
      %c0_103 = arith.constant 0 : index
      %c0_104 = arith.constant 0 : index
      %139 = vector.load %arg3[%c0_101, %c3_102, %c0_103, %c0_104] : memref<1x4x8x1024xf32, #tpu.memory_space<vmem>>, vector<1x1x8x1024xf32>
      %140 = vector.shape_cast %139 : vector<1x1x8x1024xf32> to vector<8x1024xf32>
      %c0_105 = arith.constant 0 : index
      %c0_106 = arith.constant 0 : index
      %c0_107 = arith.constant 0 : index
      %141 = vector.load %arg4[%c0_105, %c0_106, %c0_107] : memref<1x8x1xf32, #tpu.memory_space<vmem>>, vector<1x8x1xf32>
      %142 = vector.shape_cast %141 : vector<1x8x1xf32> to vector<8x1xf32>
      %143 = vector.broadcast %142 : vector<8x1xf32> to vector<8x1024xf32>
      %144 = arith.mulf %140, %143 : vector<8x1024xf32>
      %c0_108 = arith.constant 0 : index
      %c0_109 = arith.constant 0 : index
      %c0_110 = arith.constant 0 : index
      %145 = vector.load %arg5[%c0_108, %c0_109, %c0_110] : memref<1x8x1xf32, #tpu.memory_space<vmem>>, vector<1x8x1xf32>
      %146 = vector.shape_cast %145 : vector<1x8x1xf32> to vector<8x1xf32>
      %147 = vector.broadcast %146 : vector<8x1xf32> to vector<8x1024xf32>
      %148 = arith.addf %144, %147 : vector<8x1024xf32>
      %cst_111 = arith.constant 0.000000e+00 : f32
      %149 = vector.broadcast %cst_111 : f32 to vector<8x1024xf32>
      %150 = arith.maximumf %148, %149 : vector<8x1024xf32>
      %c32 = arith.constant 32 : index
      %c128_112 = arith.constant 128 : index
      %151 = vector.load %arg11[%c32, %c128_112] : memref<48x1280xf32, #tpu.memory_space<vmem>>, vector<8x1024xf32>
      tpu.vector_store %arg11[%c32, %c128_112], %150 {strides = array<i32>} : memref<48x1280xf32, #tpu.memory_space<vmem>>, vector<8x1024xf32>,
    } else {
    }
    %c8_i32 = arith.constant 8 : i32
    %3 = arith.muli %arg1, %c8_i32 : i32
    %4 = tpu.assume_multiple %3, 8 : i32
    %5 = arith.index_cast %4 : i32 to index
    %c95 = arith.constant 95 : index
    %6 = vector.load %arg11[%5, %c95] : memref<48x1280xf32, #tpu.memory_space<vmem>>, vector<24x1024xf32>
    %c0 = arith.constant 0 : index
    %c0_1 = arith.constant 0 : index
    %c0_2 = arith.constant 0 : index
    %7 = vector.load %arg6[%c0, %c0_1, %c0_2] : memref<9x8x24xf32, #tpu.memory_space<vmem>>, vector<1x8x24xf32>
    %8 = vector.shape_cast %7 : vector<1x8x24xf32> to vector<8x24xf32>
    %cst = arith.constant dense<0.000000e+00> : vector<8x1024xf32>
    %9 = tpu.matmul %8, %6, %cst {dimension_numbers = #tpu.dot_dimension_numbers<[1], [0], [0], [1], [0, 0, 1, 1], [], []>} : vector<8x24xf32>, vector<24x1024xf32>, vector<8x1024xf32> -> vector<8x1024xf32>
    %c0_3 = arith.constant 0 : index
    %c0_4 = arith.constant 0 : index
    %10 = vector.load %arg2[%c0_3, %c0_4] : memref<2x1024xf32, #tpu.memory_space<vmem>>, vector<1x1024xf32>
    %11 = vector.broadcast %10 : vector<1x1024xf32> to vector<8x1024xf32>
    %12 = arith.mulf %9, %11 : vector<8x1024xf32>
    %13 = arith.index_cast %4 : i32 to index
    %c96 = arith.constant 96 : index
    %14 = vector.load %arg11[%13, %c96] : memref<48x1280xf32, #tpu.memory_space<vmem>>, vector<24x1024xf32>
    %c1 = arith.constant 1 : index
    %c0_5 = arith.constant 0 : index
    %c0_6 = arith.constant 0 : index
    %15 = vector.load %arg6[%c1, %c0_5, %c0_6] : memref<9x8x24xf32, #tpu.memory_space<vmem>>, vector<1x8x24xf32>
    %16 = vector.shape_cast %15 : vector<1x8x24xf32> to vector<8x24xf32>
    %cst_7 = arith.constant dense<0.000000e+00> : vector<8x1024xf32>
    %17 = tpu.matmul %16, %14, %cst_7 {dimension_numbers = #tpu.dot_dimension_numbers<[1], [0], [0], [1], [0, 0, 1, 1], [], []>} : vector<8x24xf32>, vector<24x1024xf32>, vector<8x1024xf32> -> vector<8x1024xf32>
    %18 = arith.addf %12, %17 : vector<8x1024xf32>
    %19 = arith.index_cast %4 : i32 to index
    %c97 = arith.constant 97 : index
    %20 = vector.load %arg11[%19, %c97] : memref<48x1280xf32, #tpu.memory_space<vmem>>, vector<24x1024xf32>
    %c2 = arith.constant 2 : index
    %c0_8 = arith.constant 0 : index
    %c0_9 = arith.constant 0 : index
    %21 = vector.load %arg6[%c2, %c0_8, %c0_9] : memref<9x8x24xf32, #tpu.memory_space<vmem>>, vector<1x8x24xf32>
    %22 = vector.shape_cast %21 : vector<1x8x24xf32> to vector<8x24xf32>
    %cst_10 = arith.constant dense<0.000000e+00> : vector<8x1024xf32>
    %23 = tpu.matmul %22, %20, %cst_10 {dimension_numbers = #tpu.dot_dimension_numbers<[1], [0], [0], [1], [0, 0, 1, 1], [], []>} : vector<8x24xf32>, vector<24x1024xf32>, vector<8x1024xf32> -> vector<8x1024xf32>
    %c1_11 = arith.constant 1 : index
    %c0_12 = arith.constant 0 : index
    %24 = vector.load %arg2[%c1_11, %c0_12] : memref<2x1024xf32, #tpu.memory_space<vmem>>, vector<1x1024xf32>
    %25 = vector.broadcast %24 : vector<1x1024xf32> to vector<8x1024xf32>
    %26 = arith.mulf %23, %25 : vector<8x1024xf32>
    %27 = arith.addf %18, %26 : vector<8x1024xf32>
    %28 = arith.index_cast %4 : i32 to index
    %c127 = arith.constant 127 : index
    %29 = vector.load %arg11[%28, %c127] : memref<48x1280xf32, #tpu.memory_space<vmem>>, vector<24x1024xf32>
    %c3 = arith.constant 3 : index
    %c0_13 = arith.constant 0 : index
    %c0_14 = arith.constant 0 : index
    %30 = vector.load %arg6[%c3, %c0_13, %c0_14] : memref<9x8x24xf32, #tpu.memory_space<vmem>>, vector<1x8x24xf32>
    %31 = vector.shape_cast %30 : vector<1x8x24xf32> to vector<8x24xf32>
    %cst_15 = arith.constant dense<0.000000e+00> : vector<8x1024xf32>
    %32 = tpu.matmul %31, %29, %cst_15 {dimension_numbers = #tpu.dot_dimension_numbers<[1], [0], [0], [1], [0, 0, 1, 1], [], []>} : vector<8x24xf32>, vector<24x1024xf32>, vector<8x1024xf32> -> vector<8x1024xf32>
    %c0_16 = arith.constant 0 : index
    %c0_17 = arith.constant 0 : index
    %33 = vector.load %arg2[%c0_16, %c0_17] : memref<2x1024xf32, #tpu.memory_space<vmem>>, vector<1x1024xf32>
    %34 = vector.broadcast %33 : vector<1x1024xf32> to vector<8x1024xf32>
    %35 = arith.mulf %32, %34 : vector<8x1024xf32>
    %36 = arith.addf %27, %35 : vector<8x1024xf32>
    %37 = arith.index_cast %4 : i32 to index
    %c128 = arith.constant 128 : index
    %38 = vector.load %arg11[%37, %c128] : memref<48x1280xf32, #tpu.memory_space<vmem>>, vector<24x1024xf32>
    %c4 = arith.constant 4 : index
    %c0_18 = arith.constant 0 : index
    %c0_19 = arith.constant 0 : index
    %39 = vector.load %arg6[%c4, %c0_18, %c0_19] : memref<9x8x24xf32, #tpu.memory_space<vmem>>, vector<1x8x24xf32>
    %40 = vector.shape_cast %39 : vector<1x8x24xf32> to vector<8x24xf32>
    %cst_20 = arith.constant dense<0.000000e+00> : vector<8x1024xf32>
    %41 = tpu.matmul %40, %38, %cst_20 {dimension_numbers = #tpu.dot_dimension_numbers<[1], [0], [0], [1], [0, 0, 1, 1], [], []>} : vector<8x24xf32>, vector<24x1024xf32>, vector<8x1024xf32> -> vector<8x1024xf32>
    %42 = arith.addf %36, %41 : vector<8x1024xf32>
    %43 = arith.index_cast %4 : i32 to index
    %c129 = arith.constant 129 : index
    %44 = vector.load %arg11[%43, %c129] : memref<48x1280xf32, #tpu.memory_space<vmem>>, vector<24x1024xf32>
    %c5 = arith.constant 5 : index
    %c0_21 = arith.constant 0 : index
    %c0_22 = arith.constant 0 : index
    %45 = vector.load %arg6[%c5, %c0_21, %c0_22] : memref<9x8x24xf32, #tpu.memory_space<vmem>>, vector<1x8x24xf32>
    %46 = vector.shape_cast %45 : vector<1x8x24xf32> to vector<8x24xf32>
    %cst_23 = arith.constant dense<0.000000e+00> : vector<8x1024xf32>
    %47 = tpu.matmul %46, %44, %cst_23 {dimension_numbers = #tpu.dot_dimension_numbers<[1], [0], [0], [1], [0, 0, 1, 1], [], []>} : vector<8x24xf32>, vector<24x1024xf32>, vector<8x1024xf32> -> vector<8x1024xf32>
    %c1_24 = arith.constant 1 : index
    %c0_25 = arith.constant 0 : index
    %48 = vector.load %arg2[%c1_24, %c0_25] : memref<2x1024xf32, #tpu.memory_space<vmem>>, vector<1x1024xf32>
    %49 = vector.broadcast %48 : vector<1x1024xf32> to vector<8x1024xf32>
    %50 = arith.mulf %47, %49 : vector<8x1024xf32>
    %51 = arith.addf %42, %50 : vector<8x1024xf32>
    %52 = arith.index_cast %4 : i32 to index
    %c159 = arith.constant 159 : index
    %53 = vector.load %arg11[%52, %c159] : memref<48x1280xf32, #tpu.memory_space<vmem>>, vector<24x1024xf32>
    %c6 = arith.constant 6 : index
    %c0_26 = arith.constant 0 : index
    %c0_27 = arith.constant 0 : index
    %54 = vector.load %arg6[%c6, %c0_26, %c0_27] : memref<9x8x24xf32, #tpu.memory_space<vmem>>, vector<1x8x24xf32>
    %55 = vector.shape_cast %54 : vector<1x8x24xf32> to vector<8x24xf32>
    %cst_28 = arith.constant dense<0.000000e+00> : vector<8x1024xf32>
    %56 = tpu.matmul %55, %53, %cst_28 {dimension_numbers = #tpu.dot_dimension_numbers<[1], [0], [0], [1], [0, 0, 1, 1], [], []>} : vector<8x24xf32>, vector<24x1024xf32>, vector<8x1024xf32> -> vector<8x1024xf32>
    %c0_29 = arith.constant 0 : index
    %c0_30 = arith.constant 0 : index
    %57 = vector.load %arg2[%c0_29, %c0_30] : memref<2x1024xf32, #tpu.memory_space<vmem>>, vector<1x1024xf32>
    %58 = vector.broadcast %57 : vector<1x1024xf32> to vector<8x1024xf32>
    %59 = arith.mulf %56, %58 : vector<8x1024xf32>
    %60 = arith.addf %51, %59 : vector<8x1024xf32>
    %61 = arith.index_cast %4 : i32 to index
    %c160 = arith.constant 160 : index
    %62 = vector.load %arg11[%61, %c160] : memref<48x1280xf32, #tpu.memory_space<vmem>>, vector<24x1024xf32>
    %c7 = arith.constant 7 : index
    %c0_31 = arith.constant 0 : index
    %c0_32 = arith.constant 0 : index
    %63 = vector.load %arg6[%c7, %c0_31, %c0_32] : memref<9x8x24xf32, #tpu.memory_space<vmem>>, vector<1x8x24xf32>
    %64 = vector.shape_cast %63 : vector<1x8x24xf32> to vector<8x24xf32>
    %cst_33 = arith.constant dense<0.000000e+00> : vector<8x1024xf32>
    %65 = tpu.matmul %64, %62, %cst_33 {dimension_numbers = #tpu.dot_dimension_numbers<[1], [0], [0], [1], [0, 0, 1, 1], [], []>} : vector<8x24xf32>, vector<24x1024xf32>, vector<8x1024xf32> -> vector<8x1024xf32>
    %66 = arith.addf %60, %65 : vector<8x1024xf32>
    %67 = arith.index_cast %4 : i32 to index
    %c161 = arith.constant 161 : index
    %68 = vector.load %arg11[%67, %c161] : memref<48x1280xf32, #tpu.memory_space<vmem>>, vector<24x1024xf32>
    %c8 = arith.constant 8 : index
    %c0_34 = arith.constant 0 : index
    %c0_35 = arith.constant 0 : index
    %69 = vector.load %arg6[%c8, %c0_34, %c0_35] : memref<9x8x24xf32, #tpu.memory_space<vmem>>, vector<1x8x24xf32>
    %70 = vector.shape_cast %69 : vector<1x8x24xf32> to vector<8x24xf32>
    %cst_36 = arith.constant dense<0.000000e+00> : vector<8x1024xf32>
    %71 = tpu.matmul %70, %68, %cst_36 {dimension_numbers = #tpu.dot_dimension_numbers<[1], [0], [0], [1], [0, 0, 1, 1], [], []>} : vector<8x24xf32>, vector<24x1024xf32>, vector<8x1024xf32> -> vector<8x1024xf32>
    %c1_37 = arith.constant 1 : index
    %c0_38 = arith.constant 0 : index
    %72 = vector.load %arg2[%c1_37, %c0_38] : memref<2x1024xf32, #tpu.memory_space<vmem>>, vector<1x1024xf32>
    %73 = vector.broadcast %72 : vector<1x1024xf32> to vector<8x1024xf32>
    %74 = arith.mulf %71, %73 : vector<8x1024xf32>
    %75 = arith.addf %66, %74 : vector<8x1024xf32>
    %c0_39 = arith.constant 0 : index
    %c0_40 = arith.constant 0 : index
    %76 = vector.load %arg7[%c0_39, %c0_40] : memref<8x1xf32, #tpu.memory_space<vmem>>, vector<8x1xf32>
    %77 = vector.broadcast %76 : vector<8x1xf32> to vector<8x1024xf32>
    %78 = arith.addf %75, %77 : vector<8x1024xf32>
    %c0_41 = arith.constant 0 : index
    %c0_42 = arith.constant 0 : index
    %c0_43 = arith.constant 0 : index
    %c0_44 = arith.constant 0 : index
    %79 = vector.load %arg8[%c0_41, %c0_42, %c0_43, %c0_44] : memref<1x1x8x1024xf32, #tpu.memory_space<vmem>>, vector<1x1x8x1024xf32>
    %80 = vector.shape_cast %79 : vector<1x1x8x1024xf32> to vector<8x1024xf32>
    %81 = vector.shape_cast %78 : vector<8x1024xf32> to vector<1x1x8x1024xf32>
    tpu.vector_store %arg8[%c0_41, %c0_42, %c0_43, %c0_44], %81 {strides = array<i32>} : memref<1x1x8x1024xf32, #tpu.memory_space<vmem>>, vector<1x1x8x1024xf32>,
    %c0_i32_45 = arith.constant 0 : i32
    %82 = arith.cmpi eq, %arg1, %c0_i32_45 : i32
    %83 = arith.extui %82 : i1 to i32
    %c0_i32_46 = arith.constant 0 : i32
    %84 = arith.cmpi ne, %83, %c0_i32_46 : i32
    scf.if %84 {
      %cst_61 = arith.constant 0.000000e+00 : f32
      %98 = vector.broadcast %cst_61 : f32 to vector<1x8x1xf32>
      %c0_62 = arith.constant 0 : index
      %c0_63 = arith.constant 0 : index
      %c0_64 = arith.constant 0 : index
      %99 = vector.load %arg9[%c0_62, %c0_63, %c0_64] : memref<1x8x1xf32, #tpu.memory_space<vmem>>, vector<1x8x1xf32>
      tpu.vector_store %arg9[%c0_62, %c0_63, %c0_64], %98 {strides = array<i32>} : memref<1x8x1xf32, #tpu.memory_space<vmem>>, vector<1x8x1xf32>,
      %cst_65 = arith.constant 0.000000e+00 : f32
      %100 = vector.broadcast %cst_65 : f32 to vector<1x8x1xf32>
      %c0_66 = arith.constant 0 : index
      %c0_67 = arith.constant 0 : index
      %c0_68 = arith.constant 0 : index
      %101 = vector.load %arg10[%c0_66, %c0_67, %c0_68] : memref<1x8x1xf32, #tpu.memory_space<vmem>>, vector<1x8x1xf32>
      tpu.vector_store %arg10[%c0_66, %c0_67, %c0_68], %100 {strides = array<i32>} : memref<1x8x1xf32, #tpu.memory_space<vmem>>, vector<1x8x1xf32>,
    } else {
    }
    %c0_47 = arith.constant 0 : index
    %c0_48 = arith.constant 0 : index
    %c0_49 = arith.constant 0 : index
    %85 = vector.load %arg9[%c0_47, %c0_48, %c0_49] : memref<1x8x1xf32, #tpu.memory_space<vmem>>, vector<1x8x1xf32>
    %cst_50 = arith.constant dense<0.000000e+00> : vector<8xf32>
    %86 = vector.multi_reduction <add>, %78, %cst_50 [1] : vector<8x1024xf32> to vector<8xf32>
    %87 = vector.shape_cast %86 : vector<8xf32> to vector<8x1xf32>
    %88 = vector.shape_cast %87 : vector<8x1xf32> to vector<1x8x1xf32>
    %89 = arith.addf %85, %88 : vector<1x8x1xf32>
    %c0_51 = arith.constant 0 : index
    %c0_52 = arith.constant 0 : index
    %c0_53 = arith.constant 0 : index
    %90 = vector.load %arg9[%c0_51, %c0_52, %c0_53] : memref<1x8x1xf32, #tpu.memory_space<vmem>>, vector<1x8x1xf32>
    tpu.vector_store %arg9[%c0_51, %c0_52, %c0_53], %89 {strides = array<i32>} : memref<1x8x1xf32, #tpu.memory_space<vmem>>, vector<1x8x1xf32>,
    %c0_54 = arith.constant 0 : index
    %c0_55 = arith.constant 0 : index
    %c0_56 = arith.constant 0 : index
    %91 = vector.load %arg10[%c0_54, %c0_55, %c0_56] : memref<1x8x1xf32, #tpu.memory_space<vmem>>, vector<1x8x1xf32>
    %92 = arith.mulf %78, %78 : vector<8x1024xf32>
    %cst_57 = arith.constant dense<0.000000e+00> : vector<8xf32>
    %93 = vector.multi_reduction <add>, %92, %cst_57 [1] : vector<8x1024xf32> to vector<8xf32>
    %94 = vector.shape_cast %93 : vector<8xf32> to vector<8x1xf32>
    %95 = vector.shape_cast %94 : vector<8x1xf32> to vector<1x8x1xf32>
    %96 = arith.addf %91, %95 : vector<1x8x1xf32>
    %c0_58 = arith.constant 0 : index
    %c0_59 = arith.constant 0 : index
    %c0_60 = arith.constant 0 : index
    %97 = vector.load %arg10[%c0_58, %c0_59, %c0_60] : memref<1x8x1xf32, #tpu.memory_space<vmem>>, vector<1x8x1xf32>
    tpu.vector_store %arg10[%c0_58, %c0_59, %c0_60], %96 {strides = array<i32>} : memref<1x8x1xf32, #tpu.memory_space<vmem>>, vector<1x8x1xf32>,
    return
  }
  func.func @transform_0(%arg0: i32, %arg1: i32) -> (i32, i32) {
    %c0_i32 = arith.constant 0 : i32
    %c0_i32_0 = arith.constant 0 : i32
    %c0_i32_1 = arith.constant 0 : i32
    return %c0_i32, %c0_i32_0 : i32, i32
  }
  func.func @transform_1(%arg0: i32, %arg1: i32) -> (i32, i32, i32, i32) {
    %c0_i32 = arith.constant 0 : i32
    %c0_i32_0 = arith.constant 0 : i32
    %c0_i32_1 = arith.constant 0 : i32
    %c0_i32_2 = arith.constant 0 : i32
    return %arg0, %c0_i32, %c0_i32_0, %c0_i32_1 : i32, i32, i32, i32
  }
  func.func @transform_2(%arg0: i32, %arg1: i32) -> (i32, i32, i32) {
    %c0_i32 = arith.constant 0 : i32
    %c0_i32_0 = arith.constant 0 : i32
    %c0_i32_1 = arith.constant 0 : i32
    %c0_i32_2 = arith.constant 0 : i32
    return %c0_i32, %c0_i32_0, %c0_i32_1 : i32, i32, i32
  }
  func.func @transform_3(%arg0: i32, %arg1: i32) -> (i32, i32, i32) {
    %c0_i32 = arith.constant 0 : i32
    %c0_i32_0 = arith.constant 0 : i32
    %c0_i32_1 = arith.constant 0 : i32
    %c0_i32_2 = arith.constant 0 : i32
    return %c0_i32, %c0_i32_0, %c0_i32_1 : i32, i32, i32
  }
  func.func @transform_4(%arg0: i32, %arg1: i32) -> (i32, i32, i32) {
    %c0_i32 = arith.constant 0 : i32
    %c0_i32_0 = arith.constant 0 : i32
    %c0_i32_1 = arith.constant 0 : i32
    %c0_i32_2 = arith.constant 0 : i32
    return %c0_i32, %c0_i32_0, %c0_i32_1 : i32, i32, i32
  }
  func.func @transform_5(%arg0: i32, %arg1: i32) -> (i32, i32) {
    %c0_i32 = arith.constant 0 : i32
    %c0_i32_0 = arith.constant 0 : i32
    %c0_i32_1 = arith.constant 0 : i32
    return %c0_i32, %c0_i32_0 : i32, i32
  }
  func.func @transform_6(%arg0: i32, %arg1: i32) -> (i32, i32, i32, i32) {
    %c0_i32 = arith.constant 0 : i32
    %c0_i32_0 = arith.constant 0 : i32
    %c0_i32_1 = arith.constant 0 : i32
    return %arg0, %arg1, %c0_i32, %c0_i32_0 : i32, i32, i32, i32
  }
  func.func @transform_7(%arg0: i32, %arg1: i32) -> (i32, i32, i32) {
    %c0_i32 = arith.constant 0 : i32
    %c0_i32_0 = arith.constant 0 : i32
    %c0_i32_1 = arith.constant 0 : i32
    return %arg0, %c0_i32, %c0_i32_0 : i32, i32, i32
  }
  func.func @transform_8(%arg0: i32, %arg1: i32) -> (i32, i32, i32) {
    %c0_i32 = arith.constant 0 : i32
    %c0_i32_0 = arith.constant 0 : i32
    %c0_i32_1 = arith.constant 0 : i32
    return %arg0, %c0_i32, %c0_i32_0 : i32, i32, i32
  }
}

module attributes {stable_mosaic.version = 11 : i64} {
  func.func @_bn_relu_kernel(%arg0: i32, %arg1: i32, %arg2: memref<1x1x8x1024xf32, #tpu.memory_space<vmem>>, %arg3: memref<1x8x1xf32, #tpu.memory_space<vmem>>, %arg4: memref<1x8x1xf32, #tpu.memory_space<vmem>>, %arg5: memref<1x8x1024xf32, #tpu.memory_space<vmem>>) attributes {dimension_semantics = [#tpu.dimension_semantics<parallel>, #tpu.dimension_semantics<parallel>], iteration_bounds = array<i64: 2, 4>, scalar_prefetch = 0 : i64, scratch_operands = 0 : i64, tpu.core_type = #tpu.core_type<tc>, window_params = [{transform_indices = @transform_0, window_bounds = array<i64: 1, 1, 8, 1024>}, {pipeline_mode = #tpu.pipeline_mode<synchronous>, transform_indices = @transform_1, window_bounds = array<i64: 1, 8, 1>}, {pipeline_mode = #tpu.pipeline_mode<synchronous>, transform_indices = @transform_2, window_bounds = array<i64: 1, 8, 1>}, {transform_indices = @transform_3, window_bounds = array<i64: 1, 8, 1024>}]} {
    %c0 = arith.constant 0 : index
    %c0_0 = arith.constant 0 : index
    %c0_1 = arith.constant 0 : index
    %c0_2 = arith.constant 0 : index
    %0 = vector.load %arg2[%c0, %c0_0, %c0_1, %c0_2] : memref<1x1x8x1024xf32, #tpu.memory_space<vmem>>, vector<1x1x8x1024xf32>
    %1 = vector.shape_cast %0 : vector<1x1x8x1024xf32> to vector<8x1024xf32>
    %c0_3 = arith.constant 0 : index
    %c0_4 = arith.constant 0 : index
    %c0_5 = arith.constant 0 : index
    %2 = vector.load %arg3[%c0_3, %c0_4, %c0_5] : memref<1x8x1xf32, #tpu.memory_space<vmem>>, vector<1x8x1xf32>
    %3 = vector.shape_cast %2 : vector<1x8x1xf32> to vector<8x1xf32>
    %4 = vector.broadcast %3 : vector<8x1xf32> to vector<8x1024xf32>
    %5 = arith.mulf %1, %4 : vector<8x1024xf32>
    %c0_6 = arith.constant 0 : index
    %c0_7 = arith.constant 0 : index
    %c0_8 = arith.constant 0 : index
    %6 = vector.load %arg4[%c0_6, %c0_7, %c0_8] : memref<1x8x1xf32, #tpu.memory_space<vmem>>, vector<1x8x1xf32>
    %7 = vector.shape_cast %6 : vector<1x8x1xf32> to vector<8x1xf32>
    %8 = vector.broadcast %7 : vector<8x1xf32> to vector<8x1024xf32>
    %9 = arith.addf %5, %8 : vector<8x1024xf32>
    %cst = arith.constant 0.000000e+00 : f32
    %10 = vector.broadcast %cst : f32 to vector<8x1024xf32>
    %11 = arith.maximumf %9, %10 : vector<8x1024xf32>
    %c0_9 = arith.constant 0 : index
    %c0_10 = arith.constant 0 : index
    %c0_11 = arith.constant 0 : index
    %12 = vector.load %arg5[%c0_9, %c0_10, %c0_11] : memref<1x8x1024xf32, #tpu.memory_space<vmem>>, vector<1x8x1024xf32>
    %13 = vector.shape_cast %12 : vector<1x8x1024xf32> to vector<8x1024xf32>
    %14 = vector.shape_cast %11 : vector<8x1024xf32> to vector<1x8x1024xf32>
    tpu.vector_store %arg5[%c0_9, %c0_10, %c0_11], %14 {strides = array<i32>} : memref<1x8x1024xf32, #tpu.memory_space<vmem>>, vector<1x8x1024xf32>,
    return
  }
  func.func @transform_0(%arg0: i32, %arg1: i32) -> (i32, i32, i32, i32) {
    %c0_i32 = arith.constant 0 : i32
    %c0_i32_0 = arith.constant 0 : i32
    %c0_i32_1 = arith.constant 0 : i32
    return %arg0, %arg1, %c0_i32, %c0_i32_0 : i32, i32, i32, i32
  }
  func.func @transform_1(%arg0: i32, %arg1: i32) -> (i32, i32, i32) {
    %c0_i32 = arith.constant 0 : i32
    %c0_i32_0 = arith.constant 0 : i32
    %c0_i32_1 = arith.constant 0 : i32
    %c0_i32_2 = arith.constant 0 : i32
    return %c0_i32, %c0_i32_0, %c0_i32_1 : i32, i32, i32
  }
  func.func @transform_2(%arg0: i32, %arg1: i32) -> (i32, i32, i32) {
    %c0_i32 = arith.constant 0 : i32
    %c0_i32_0 = arith.constant 0 : i32
    %c0_i32_1 = arith.constant 0 : i32
    %c0_i32_2 = arith.constant 0 : i32
    return %c0_i32, %c0_i32_0, %c0_i32_1 : i32, i32, i32
  }
  func.func @transform_3(%arg0: i32, %arg1: i32) -> (i32, i32, i32) {
    %c0_i32 = arith.constant 0 : i32
    %c0_i32_0 = arith.constant 0 : i32
    return %arg0, %c0_i32, %arg1 : i32, i32, i32
  }
}

</mosaic_0001>

<bundles_post_ra>
// kernel: tile.8
= control target key start
LH: loop header
LB: loop body
LE: loop exit
PB: predicated region body
PF: predicated region fallthrough
CT: control target
= control target key end

     0   :  { %2 = vsyncpa [#allocation1], 0  ;;  %s44_s6 = smov [#allocation0]   ;;  %s70_s0 = inlined_call_operand.hbm [shape: f32[8], index: 0, kind: input, shape index: {}]   ;;  %s71_s1 = inlined_call_operand.vmem [shape: f32[4,8], index: 1, kind: output, shape index: {}]  }
   0x1   :  { %s9_s7 = sshll.u32 %s44_s6, 4  ;;  %s20_s10 = scalar_lea.hbm %s70_s0, 16  ;;  %s10_s7 = int_to_ptr.vmem [resolvable:$true] %s9_s7 }
   0x2   :  { %p21_p0 = scmp.ne.s32.totalorder %s70_s0, %s20_s10  ;;  %p24_p1 = scmp.lt.u32.totalorder %s20_s10, %s70_s0 }
   0x4   :  { %p26_p2 = pnand %p24_p1, %p21_p0 }
   0x6   :  { %29 = shalt.err (!%p26_p2)
}
   0x7   :  { %s30_s15 = scalar_lea.vmem %s10_s7, 16  ;;  %s34_s16 = scalar_lea.vmem %s10_s7, 32 }
   0x8   :  { %p31_p3 = scmp.ne.s32.totalorder %s10_s7, %s30_s15  ;;  %p35_p4 = scmp.lt.s32.totalorder %s10_s7, %s10_s7 }
   0x9   :  { %p36_p5 = scmp.lt.s32.totalorder %s34_s16, %s30_s15 }
   0xb   :  { %p37_p6 = por %p36_p5, %p35_p4 }
   0xd   :  { %p38_p7 = pnand %p37_p6, %p31_p3 }
   0xf   :  { %41 = shalt.err (!%p38_p7)
}
  0x10   :  { %12 = dma.hbm_to_vmem [thread:$0]  %s70_s0, 16, %s10_s7, [#allocation1]  }
  0x11   :  { %42 = dma.done.wait [#allocation1], 16  }
  0x12   :  { %43 = vsyncadd [#allocation1], 4294967280  ;;  %v16_v0 = vld [vmem:[#allocation0] ss:$0 sm:$0xff] }
  0x13   :  { %17 = vst [vmem:[%s71_s1] sm:$0xf] %v16_v0 }
  0x14   :  { %18 = vsyncpa [#allocation1], 1 }

// kernel: tile.0
= control target key start
LH: loop header
LB: loop body
LE: loop exit
PB: predicated region body
PF: predicated region fallthrough
CT: control target
= control target key end

     0   :  { %s66_s8 = smov 125   ;;  %vm7_vm0 = vcmask 7168   ;;  %s67_s11 = smov 126   ;;  %s117_s0 = inlined_call_operand.vmem [shape: f32[4,8], index: 0, kind: input, shape index: {}]   ;;  %s118_s1 = inlined_call_operand.vmem [shape: f32[32,1], index: 1, kind: output, shape index: {}]  }
   0x1   :  { %v4_v0 = vld [vmem:[%s117_s0] sm:$0xf]  ;;  %s65_s0 = smov 127   ;;  %s68_s12 = smov 124  }
   0x2   :  { %5 = vst [vmem:[#allocation0] sm:$0xf] %v4_v0  ;;  %s69_s13 = smov 123   ;;  %s70_s14 = smov 122  }
   0x3   :  { %s71_s15 = smov 121  }
   0x9   :  { %v9_v1 = vld [vmem:[#allocation0] sm:$0xf]  }
   0xa   :  { %v21_v2 = vld [vmem:[#allocation0] sm:$0xf]   ;;  %10 = vrot.lane.b32.xlu0 %v9_v1, %s65_s0 }
   0xb   :  { %22 = vrot.lane.b32.xlu1 %v21_v2, %s66_s8  ;;  %v15_v3 = vld [vmem:[#allocation0] sm:$0xf]  }
   0xc   :  { %v27_v4 = vld [vmem:[#allocation0] sm:$0xf]  }
   0xd   :  { %v6_v5 = vld [vmem:[#allocation0] sm:$0xf]  }
   0xe   :  { %8 = vst.msk [vmem:[%s118_s1] ss:$8 sm:$0xf] %vm7_vm0, %v6_v5   ;;  %16 = vrot.lane.b32.xlu0 %v15_v3, %s67_s11  ;;  %v33_v6 = vld [vmem:[#allocation0] sm:$0xf]  }
   0xf   :  { %28 = vrot.lane.b32.xlu1 %v27_v4, %s68_s12  ;;  %v39_v7 = vld [vmem:[#allocation0] sm:$0xf]  }
  0x10   :  { %v45_v8 = vld [vmem:[#allocation0] sm:$0xf]  }
  0x12   :  { %34 = vrot.lane.b32.xlu0 %v33_v6, %s69_s13 }
  0x13   :  { %40 = vrot.lane.b32.xlu1 %v39_v7, %s70_s14 }
  0x16   :  { %46 = vrot.lane.b32.xlu0 %v45_v8, %s71_s15 }
  0x7c   :  { %v11_v9 = vpop.permute.xlu0 %10  }
  0x7d   :  { %v23_v10 = vpop.permute.xlu1 %22   ;;  %51 = vst.msk [vmem:[%s118_s1 + $0x1] ss:$8 sm:$0xf] %vm7_vm0, %v11_v9  }
  0x7e   :  { %53 = vst.msk [vmem:[%s118_s1 + $0x3] ss:$8 sm:$0xf] %vm7_vm0, %v23_v10  }
  0x80   :  { %v17_v11 = vpop.permute.xlu0 %16  }
  0x81   :  { %v29_v12 = vpop.permute.xlu1 %28   ;;  %52 = vst.msk [vmem:[%s118_s1 + $0x2] ss:$8 sm:$0xf] %vm7_vm0, %v17_v11  }
  0x82   :  { %54 = vst.msk [vmem:[%s118_s1 + $0x4] ss:$8 sm:$0xf] %vm7_vm0, %v29_v12  }
  0x84   :  { %v35_v13 = vpop.permute.xlu0 %34  }
  0x85   :  { %v41_v14 = vpop.permute.xlu1 %40   ;;  %55 = vst.msk [vmem:[%s118_s1 + $0x5] ss:$8 sm:$0xf] %vm7_vm0, %v35_v13  }
  0x86   :  { %56 = vst.msk [vmem:[%s118_s1 + $0x6] ss:$8 sm:$0xf] %vm7_vm0, %v41_v14  }
  0x88   :  { %v47_v15 = vpop.permute.xlu0 %46  }
  0x89   :  { %57 = vst.msk [vmem:[%s118_s1 + $0x7] ss:$8 sm:$0xf] %vm7_vm0, %v47_v15  }

// kernel: up_block3d_forward.4
= control target key start
LH: loop header
LB: loop body
LE: loop exit
PB: predicated region body
PF: predicated region fallthrough
CT: control target
= control target key end

     0   :  { %s861_s12 = smov 0   ;;  %s863_s13 = smov 0   ;;  %s1026_s0 = inlined_call_operand.vmem [shape: f32[2,16,1024], index: 0, kind: input, shape index: {}]   ;;  %s1027_s1 = inlined_call_operand.vmem [shape: f32[32,16], index: 1, kind: input, shape index: {}]   ;;  %s1028_s2 = inlined_call_operand.vmem [shape: f32[32,1], index: 2, kind: input, shape index: {}]   ;;  %s1029_s3 = inlined_call_operand.vmem [shape: f32[2,32,1024], index: 3, kind: output, shape index: {}]  }
   0x1   :  { %s865_s14 = smov 0  }
   0x2 LB: > { %s25_s15 = sadd.s32 1, %s833_s13  ;;  %p746_p0 = scmp.ge.s32.totalorder %s837_s14, 1  ;;  %s837_s14 = sphi %s865_s14, %s13_s14   ;;  %s833_s13 = sphi %s863_s13, %s1031_s13   ;;  %s829_s12 = sphi %s861_s12, %s1030_s12  }
   0x3   : > { %p27_p1 = scmp.ge.s32.totalorder %s25_s15, 2  ;;  %p158_p2 = scmp.lt.s32.totalorder %s837_s14, 3 }
   0x5   : > { %s1033_s15 = smov (%p27_p1, %s25_s15), 0  ;;  %p159_p3 = pnand %p746_p0, %p158_p2 }
   0x6   : > { %p191_p4 = scmp.lt.s32.totalorder (!%p159_p3), %s829_s12, 1  ;;  %v839_v0 = vmov (!%p159_p3), 0.0   ;;  %v230_v1 = vld [vmem:[%s1028_s2] sm:$0xff] (!%p159_p3)  ;;  %v840_v2 = vmov (!%p159_p3), 0   ;;  %v232_v3 = vld [vmem:[%s1028_s2 + $0x10] sm:$0xff] (!%p159_p3)  ;;  %v231_v4 = vld [vmem:[%s1028_s2 + $0x8] sm:$0xff] (!%p159_p3) }
   0x7   : > { %162 = sbr.rel (%p159_p3) target bundleno = 270 (0x10e), region = 32  ;;  %331 = vmatprep.mubr.f32.mxu0 (!%p159_p3), %v839_v0  ;;  %420 = vmatprep.mubr.f32.mxu1 (!%p159_p3), %v839_v0  ;;  %v233_v5 = vld [vmem:[%s1028_s2 + $0x18] sm:$0xff] (!%p159_p3)  ;;  %v210_v17 = vld [vmem:[%s1027_s1] sm:$0xff] (!%p159_p3)  ;;  %vm254_vm0 = vcmask (!%p159_p3), 130048   ;;  %v211_v31 = vld [vmem:[%s1027_s1 + $0x8] sm:$0xff] (!%p159_p3) }
   0x8   : > { %813 = vset.pattern.permute.xlu0 (!%p159_p3), %v840_v2  ;;  %814 = vset.pattern.permute.xlu1 (!%p159_p3), %v840_v2  ;;  %v212_v32 = vld [vmem:[%s1027_s1 + $0x10] sm:$0xff] (!%p159_p3)  ;;  %v213_v33 = vld [vmem:[%s1027_s1 + $0x18] sm:$0xff] (!%p159_p3) }
   0x9   : > { %236 = vperm.xlu0 (!%p159_p3), %813, %v230_v1   ;;  %246 = vperm.xlu1 (!%p159_p3), %814, %v232_v3  }
   0xd   : > { %241 = vperm.xlu0 (!%p159_p3), %813, %v231_v4   ;;  %251 = vperm.xlu1 (!%p159_p3), %814, %v233_v5  }
   0xe   : > { %s1035_s12 = smov (!%p191_p4, %s829_s12), 1 }
   0xf   : > { %s769_s20 = sshll.u32 %s1035_s12, 7  ;;  %s770_s9 = sshll.u32 %s1035_s12, 8 }
  0x10   : > { %s899_s27 = scalar_lea.vmem %s1026_s0, %s769_s20  ;;  %s963_s16 = scalar_lea.vmem %s1029_s3, %s770_s9 }
  0x11   : > { %v215_v6 = vld [vmem:[%s899_s27 + $0x8] sm:$0xff]  ;;  %v217_v8 = vld [vmem:[%s899_s27 + $0x18] sm:$0xff]  ;;  %v214_v11 = vld [vmem:[%s899_s27] sm:$0xff] }
  0x12   : > { %v223_v7 = vld [vmem:[%s899_s27 + $0x48] sm:$0xff]  ;;  %v225_v10 = vld [vmem:[%s899_s27 + $0x58] sm:$0xff]  ;;  %v222_v12 = vld [vmem:[%s899_s27 + $0x40] sm:$0xff] }
  0x13   : > { %v771_v9 = vpack.c.bf16 %v223_v7, %v215_v6  ;;  %v775_v13 = vpack.c.bf16 %v225_v10, %v217_v8  ;;  %v773_v14 = vpack.c.bf16 %v222_v12, %v214_v11  ;;  %v216_v15 = vld [vmem:[%s899_s27 + $0x10] sm:$0xff]  ;;  %v219_v18 = vld [vmem:[%s899_s27 + $0x28] sm:$0xff]  ;;  %v221_v21 = vld [vmem:[%s899_s27 + $0x38] sm:$0xff] }
  0x14   : > { %v224_v16 = vld [vmem:[%s899_s27 + $0x50] sm:$0xff]  ;;  %v227_v20 = vld [vmem:[%s899_s27 + $0x68] sm:$0xff]  ;;  %v229_v22 = vld [vmem:[%s899_s27 + $0x78] sm:$0xff] }
  0x15   : > { %772 = vmatprep.subr.bf16.mxu0 %v771_v9  ;;  %v777_v19 = vpack.c.bf16 %v224_v16, %v216_v15  ;;  %776 = vmatprep.subr.bf16.mxu1 %v775_v13  ;;  %v779_v23 = vpack.c.bf16 %v227_v20, %v219_v18  ;;  %v783_v24 = vpack.c.bf16 %v229_v22, %v221_v21  ;;  %v218_v25 = vld [vmem:[%s899_s27 + $0x20] sm:$0xff]  ;;  %v220_v27 = vld [vmem:[%s899_s27 + $0x30] sm:$0xff] }
  0x16   : > { %774 = vmatpush1.bf16.msra.mxu0 %v773_v14  ;;  %v226_v26 = vld [vmem:[%s899_s27 + $0x60] sm:$0xff]  ;;  %v228_v29 = vld [vmem:[%s899_s27 + $0x70] sm:$0xff] }
  0x17   : > { %778 = vmatpush1.bf16.msra.mxu1 %v777_v19  ;;  %v781_v28 = vpack.c.bf16 %v226_v26, %v218_v25  ;;  %780 = vmatprep.subr.bf16.mxu0 %v779_v23  ;;  %v785_v30 = vpack.c.bf16 %v228_v29, %v220_v27 }
  0x18   : > { %784 = vmatprep.subr.bf16.mxu1 %v783_v24 }
  0x19   : > { %751 = vmatmul.mubr.msk.f32.vlgmr.msra.gmra.mrb[0].mxu0 %vm254_vm0, %v210_v17 }
  0x1a   : > { %755 = vmatmul.mubr.msk.f32.vlgmr.msra.gmra.mrb[0].mxu1 %vm254_vm0, %v210_v17  ;;  %782 = vmatpush1.bf16.msra.mxu0 %v781_v28 }
  0x1b   : > { %786 = vmatpush1.bf16.msra.mxu1 %v785_v30  ;;  %337 = vmatprep.mubr.f32.mxu0 %v839_v0 }
  0x1c   : > { %426 = vmatprep.mubr.f32.mxu1 %v839_v0 }
  0x1d   : > { %752 = vmatmul.mubr.msk.f32.gmra.mrb[2].mxu0 %vm254_vm0, %v211_v31 }
  0x1e   : > { %756 = vmatmul.mubr.msk.f32.gmra.mrb[2].mxu1 %vm254_vm0, %v211_v31  ;;  %343 = vmatprep.mubr.f32.mxu0 %v839_v0 }
  0x1f   : > { %432 = vmatprep.mubr.f32.mxu1 %v839_v0 }
  0x21   : > { %753 = vmatmul.mubr.msk.f32.gmra.mrb[4].mxu0 %vm254_vm0, %v212_v32 }
  0x22   : > { %757 = vmatmul.mubr.msk.f32.gmra.mrb[4].mxu1 %vm254_vm0, %v212_v32  ;;  %349 = vmatprep.mubr.f32.mxu0 %v839_v0 }
  0x23   : > { %438 = vmatprep.mubr.f32.mxu1 %v839_v0 }
  0x25   : > { %754 = vmatmul.mubr.msk.f32.gmra.mrb[6].mxu0 %vm254_vm0, %v213_v33 }
  0x26   : > { %758 = vmatmul.mubr.msk.f32.gmra.mrb[6].mxu1 %vm254_vm0, %v213_v33  ;;  %509 = vmatprep.mubr.f32.mxu0 %v839_v0 }
  0x27   : > { %598 = vmatprep.mubr.f32.mxu1 %v839_v0 }
  0x29   : > { %759 = vmatmul.mubr.msk.f32.vlgmr.msra.gmra.mrb[8].mxu0 %vm254_vm0, %v210_v17 }
  0x2a   : > { %763 = vmatmul.mubr.msk.f32.vlgmr.msra.gmra.mrb[8].mxu1 %vm254_vm0, %v210_v17  ;;  %515 = vmatprep.mubr.f32.mxu0 %v839_v0 }
  0x2b   : > { %604 = vmatprep.mubr.f32.mxu1 %v839_v0 }
  0x2d   : > { %760 = vmatmul.mubr.msk.f32.gmra.mrb[10].mxu0 %vm254_vm0, %v211_v31 }
  0x2e   : > { %764 = vmatmul.mubr.msk.f32.gmra.mrb[10].mxu1 %vm254_vm0, %v211_v31  ;;  %521 = vmatprep.mubr.f32.mxu0 %v839_v0 }
  0x2f   : > { %610 = vmatprep.mubr.f32.mxu1 %v839_v0 }
  0x31   : > { %761 = vmatmul.mubr.msk.f32.gmra.mrb[12].mxu0 %vm254_vm0, %v212_v32 }
  0x32   : > { %765 = vmatmul.mubr.msk.f32.gmra.mrb[12].mxu1 %vm254_vm0, %v212_v32  ;;  %527 = vmatprep.mubr.f32.mxu0 %v839_v0 }
  0x33   : > { %616 = vmatprep.mubr.f32.mxu1 %v839_v0 }
  0x35   : > { %762 = vmatmul.mubr.msk.f32.gmra.mrb[14].mxu0 %vm254_vm0, %v213_v33 }
  0x36   : > { %766 = vmatmul.mubr.msk.f32.gmra.mrb[14].mxu1 %vm254_vm0, %v213_v33 }
  0x88   : > { %v237_v34 = vpop.permute.xlu0 %236  ;;  %v970_v45 = vpop.permute.xlu1 %246 }
  0x8c   : > { %v965_v42 = vpop.permute.xlu0 %241  ;;  %v252_v60 = vpop.permute.xlu1 %251 }
  0xec   : > { %v333_v35 = vpop.f32.mrb[0].mxu0 }
  0xed   : > { %v422_v36 = vpop.f32.mrb[0].mxu1  ;;  %v334_v37 = vadd.f32 %v333_v35, %v237_v34  ;;  %v335_v38 = vpop.f32.mrb[1].mxu0 }
  0xee   : > { %v423_v39 = vadd.f32 %v422_v36, %v237_v34  ;;  %v336_v40 = vadd.f32 %v335_v38, %v237_v34  ;;  %v424_v41 = vpop.f32.mrb[1].mxu1 }
  0xef   : > { %623 = vst [vmem:[%s963_s16] sm:$0xff] %v334_v37  ;;  %v425_v43 = vadd.f32 %v424_v41, %v237_v34 }
  0xf0   : > { %625 = vst [vmem:[%s963_s16 + $0x10] sm:$0xff] %v423_v39  ;;  %624 = vst [vmem:[%s963_s16 + $0x8] sm:$0xff] %v336_v40  ;;  %v339_v44 = vpop.f32.mrb[2].mxu0 }
  0xf1   : > { %626 = vst [vmem:[%s963_s16 + $0x18] sm:$0xff] %v425_v43  ;;  %v428_v46 = vpop.f32.mrb[2].mxu1  ;;  %v340_v47 = vadd.f32 %v339_v44, %v965_v42  ;;  %v341_v48 = vpop.f32.mrb[3].mxu0 }
  0xf2   : > { %v429_v49 = vadd.f32 %v428_v46, %v965_v42  ;;  %v342_v50 = vadd.f32 %v341_v48, %v965_v42  ;;  %v430_v51 = vpop.f32.mrb[3].mxu1 }
  0xf3   : > { %631 = vst [vmem:[%s963_s16 + $0x40] sm:$0xff] %v340_v47  ;;  %v431_v52 = vadd.f32 %v430_v51, %v965_v42 }
  0xf4   : > { %633 = vst [vmem:[%s963_s16 + $0x50] sm:$0xff] %v429_v49  ;;  %632 = vst [vmem:[%s963_s16 + $0x48] sm:$0xff] %v342_v50  ;;  %v345_v53 = vpop.f32.mrb[4].mxu0 }
  0xf5   : > { %634 = vst [vmem:[%s963_s16 + $0x58] sm:$0xff] %v431_v52  ;;  %v434_v54 = vpop.f32.mrb[4].mxu1  ;;  %v346_v55 = vadd.f32 %v345_v53, %v970_v45  ;;  %v347_v56 = vpop.f32.mrb[5].mxu0 }
  0xf6   : > { %v435_v57 = vadd.f32 %v434_v54, %v970_v45  ;;  %v348_v58 = vadd.f32 %v347_v56, %v970_v45  ;;  %v436_v59 = vpop.f32.mrb[5].mxu1 }
  0xf7   : > { %639 = vst [vmem:[%s963_s16 + $0x80] sm:$0xff] %v346_v55  ;;  %v437_v61 = vadd.f32 %v436_v59, %v970_v45 }
  0xf8   : > { %641 = vst [vmem:[%s963_s16 + $0x90] sm:$0xff] %v435_v57  ;;  %640 = vst [vmem:[%s963_s16 + $0x88] sm:$0xff] %v348_v58  ;;  %v351_v62 = vpop.f32.mrb[6].mxu0 }
  0xf9   : > { %642 = vst [vmem:[%s963_s16 + $0x98] sm:$0xff] %v437_v61  ;;  %v440_v63 = vpop.f32.mrb[6].mxu1  ;;  %v352_v0 = vadd.f32 %v351_v62, %v252_v60  ;;  %v353_v1 = vpop.f32.mrb[7].mxu0 }
  0xfa   : > { %v441_v2 = vadd.f32 %v440_v63, %v252_v60  ;;  %v354_v3 = vadd.f32 %v353_v1, %v252_v60  ;;  %v442_v4 = vpop.f32.mrb[7].mxu1 }
  0xfb   : > { %647 = vst [vmem:[%s963_s16 + $0xc0] sm:$0xff] %v352_v0  ;;  %v443_v5 = vadd.f32 %v442_v4, %v252_v60 }
  0xfc   : > { %649 = vst [vmem:[%s963_s16 + $0xd0] sm:$0xff] %v441_v2  ;;  %648 = vst [vmem:[%s963_s16 + $0xc8] sm:$0xff] %v354_v3  ;;  %v511_v6 = vpop.f32.mrb[8].mxu0 }
  0xfd   : > { %650 = vst [vmem:[%s963_s16 + $0xd8] sm:$0xff] %v443_v5  ;;  %v512_v7 = vadd.f32 %v511_v6, %v237_v34  ;;  %v600_v8 = vpop.f32.mrb[8].mxu1  ;;  %v513_v9 = vpop.f32.mrb[9].mxu0 }
  0xfe   : > { %v601_v10 = vadd.f32 %v600_v8, %v237_v34  ;;  %v514_v11 = vadd.f32 %v513_v9, %v237_v34  ;;  %v602_v12 = vpop.f32.mrb[9].mxu1 }
  0xff   : > { %627 = vst [vmem:[%s963_s16 + $0x20] sm:$0xff] %v512_v7  ;;  %v603_v13 = vadd.f32 %v602_v12, %v237_v34 }
 0x100   : > { %629 = vst [vmem:[%s963_s16 + $0x30] sm:$0xff] %v601_v10  ;;  %628 = vst [vmem:[%s963_s16 + $0x28] sm:$0xff] %v514_v11  ;;  %v517_v14 = vpop.f32.mrb[10].mxu0 }
 0x101   : > { %630 = vst [vmem:[%s963_s16 + $0x38] sm:$0xff] %v603_v13  ;;  %v518_v15 = vadd.f32 %v517_v14, %v965_v42  ;;  %v606_v16 = vpop.f32.mrb[10].mxu1  ;;  %v519_v17 = vpop.f32.mrb[11].mxu0 }
 0x102   : > { %v607_v18 = vadd.f32 %v606_v16, %v965_v42  ;;  %v520_v19 = vadd.f32 %v519_v17, %v965_v42  ;;  %v608_v20 = vpop.f32.mrb[11].mxu1 }
 0x103   : > { %635 = vst [vmem:[%s963_s16 + $0x60] sm:$0xff] %v518_v15  ;;  %v609_v21 = vadd.f32 %v608_v20, %v965_v42 }
 0x104   : > { %637 = vst [vmem:[%s963_s16 + $0x70] sm:$0xff] %v607_v18  ;;  %636 = vst [vmem:[%s963_s16 + $0x68] sm:$0xff] %v520_v19  ;;  %v523_v22 = vpop.f32.mrb[12].mxu0 }
 0x105   : > { %638 = vst [vmem:[%s963_s16 + $0x78] sm:$0xff] %v609_v21  ;;  %v524_v23 = vadd.f32 %v523_v22, %v970_v45  ;;  %v612_v24 = vpop.f32.mrb[12].mxu1  ;;  %v525_v25 = vpop.f32.mrb[13].mxu0 }
 0x106   : > { %v613_v26 = vadd.f32 %v612_v24, %v970_v45  ;;  %v526_v27 = vadd.f32 %v525_v25, %v970_v45  ;;  %v614_v28 = vpop.f32.mrb[13].mxu1 }
 0x107   : > { %643 = vst [vmem:[%s963_s16 + $0xa0] sm:$0xff] %v524_v23  ;;  %v615_v29 = vadd.f32 %v614_v28, %v970_v45 }
 0x108   : > { %645 = vst [vmem:[%s963_s16 + $0xb0] sm:$0xff] %v613_v26  ;;  %644 = vst [vmem:[%s963_s16 + $0xa8] sm:$0xff] %v526_v27  ;;  %v529_v30 = vpop.f32.mrb[14].mxu0 }
 0x109   : > { %646 = vst [vmem:[%s963_s16 + $0xb8] sm:$0xff] %v615_v29  ;;  %v530_v31 = vadd.f32 %v529_v30, %v252_v60  ;;  %v618_v32 = vpop.f32.mrb[14].mxu1  ;;  %v531_v33 = vpop.f32.mrb[15].mxu0 }
 0x10a   : > { %v619_v34 = vadd.f32 %v618_v32, %v252_v60  ;;  %v532_v35 = vadd.f32 %v531_v33, %v252_v60  ;;  %v620_v36 = vpop.f32.mrb[15].mxu1 }
 0x10b   : > { %651 = vst [vmem:[%s963_s16 + $0xe0] sm:$0xff] %v530_v31  ;;  %v621_v37 = vadd.f32 %v620_v36, %v252_v60 }
 0x10c   : > { %653 = vst [vmem:[%s963_s16 + $0xf0] sm:$0xff] %v619_v34  ;;  %652 = vst [vmem:[%s963_s16 + $0xe8] sm:$0xff] %v532_v35 }
 0x10d   : > { %654 = vst [vmem:[%s963_s16 + $0xf8] sm:$0xff] %v621_v37 }
 0x10e PF: > { %s13_s14 = sadd.s32 1, %s837_s14   ;;  %s1030_s12 = smov %s833_s13 }
 0x10f   : > { %p10_p5 = scmp.ge.s32.totalorder %s13_s14, 4   ;;  %s1031_s13 = smov %s1033_s15 }
 0x111   :  { %12 = sbr.rel (!%p10_p5) target bundleno = 2 (0x2), region = 62 }

// kernel: up_block3d_forward.7
= control target key start
LH: loop header
LB: loop body
LE: loop exit
PB: predicated region body
PF: predicated region fallthrough
CT: control target
= control target key end

     0   :  { %s469_s12 = smov 0   ;;  %s471_s13 = smov 0   ;;  %s531_s0 = inlined_call_operand.vmem [shape: f32[2,4,8,1024], index: 0, kind: input, shape index: {}]   ;;  %s532_s1 = inlined_call_operand.vmem [shape: f32[1,8,1], index: 1, kind: input, shape index: {}]   ;;  %s533_s2 = inlined_call_operand.vmem [shape: f32[1,8,1], index: 2, kind: input, shape index: {}]   ;;  %s534_s3 = inlined_call_operand.vmem [shape: f32[2,8,4096], index: 3, kind: output, shape index: {}]  }
   0x1   :  { %s473_s14 = smov 0   ;;  %s475_s15 = smov 0  }
   0x2   :  { %s477_s16 = smov 0  }
   0x3 LB: > { %s22_s17 = sadd.s32 1, %s438_s14  ;;  %s25_s18 = sadd.s32 1, %s442_s15  ;;  %s446_s16 = sphi %s477_s16, %s13_s16   ;;  %s442_s15 = sphi %s475_s15, %s538_s15   ;;  %s438_s14 = sphi %s473_s14, %s537_s14   ;;  %s434_s13 = sphi %s471_s13, %s536_s13   ;;  %s430_s12 = sphi %s469_s12, %s535_s12  }
   0x4   : > { %p23_p0 = scmp.ge.s32.totalorder %s22_s17, 4  ;;  %p357_p1 = scmp.ge.s32.totalorder %s446_s16, 1 }
   0x5   : > { %p157_p2 = scmp.lt.s32.totalorder %s446_s16, 9 }
   0x6   : > { %s540_s17 = smov (%p23_p0, %s22_s17), 0  ;;  %s542_s18 = smov (!%p23_p0, %s25_s18), %s442_s15 }
   0x7   : > { %p158_p3 = pnand %p357_p1, %p157_p2  ;;  %p27_p4 = scmp.ge.s32.totalorder %s542_s18, 2 }
   0x8   : > { %v216_v0 = vld [vmem:[%s532_s1] sm:$0xff] (!%p158_p3)  ;;  %v448_v1 = vmov (!%p158_p3), 0   ;;  %p189_p5 = scmp.lt.s32.totalorder (!%p158_p3), %s434_s13, 1  ;;  %p191_p6 = scmp.lt.s32.totalorder (!%p158_p3), %s430_s12, 3 }
   0x9   : > { %s544_s18 = smov (%p27_p4, %s542_s18), 0  ;;  %161 = sbr.rel (%p158_p3) target bundleno = 151 (0x97), region = 32 }
   0xa   : > { %407 = vset.pattern.permute.xlu0 (!%p158_p3), %v448_v1  ;;  %v230_v2 = vld [vmem:[%s533_s2] sm:$0xff] (!%p158_p3)  ;;  %s361_s27 = sshll.u32 (!%p158_p3), %s430_s12, 3 }
   0xb   : > { %219 = vperm.xlu0 (!%p158_p3), %407, %v216_v0   ;;  %p201_p7 = scmp.lt.s32.totalorder (!%p158_p3), %s361_s27, 31 }
   0xf   : > { %233 = vperm.xlu0 (!%p158_p3), %407, %v230_v2  }
  0x10   : > { %s546_s13 = smov (!%p189_p5, %s434_s13), 1  ;;  %s548_s27 = smov (!%p201_p7, %s361_s27), 31 }
  0x11   : > { %s192_s23 = scalar_select %p191_p6, %s430_s12, 3 }
  0x12   : > { %s359_s25 = sshll.u32 %s546_s13, 5 }
  0x13   : > { %s358_s24 = sshll.u32 %s192_s23, 3  ;;  %s204_s5 = sadd.s32 %s359_s25, %s548_s27 }
  0x14   : > { %s195_s26 = sadd.s32 %s359_s25, %s358_s24  ;;  %s363_s6 = sshll.u32 %s204_s5, 3 }
  0x15   : > { %s360_s28 = sshll.u32 %s195_s26, 3  ;;  %s206_s9 = scalar_lea.vmem %s534_s3, %s363_s6 }
  0x16   : > { %s197_s4 = scalar_lea.vmem %s531_s0, %s360_s28 }
  0x17   : > { %v208_v3 = vld [vmem:[%s197_s4] sm:$0xff]  ;;  %v209_v4 = vld [vmem:[%s197_s4 + $0x8] sm:$0xff]  ;;  %v210_v6 = vld [vmem:[%s197_s4 + $0x10] sm:$0xff] }
  0x18   : > { %v211_v7 = vld [vmem:[%s197_s4 + $0x18] sm:$0xff]  ;;  %v212_v8 = vld [vmem:[%s197_s4 + $0x20] sm:$0xff]  ;;  %v213_v9 = vld [vmem:[%s197_s4 + $0x28] sm:$0xff] }
  0x19   : > { %v214_v10 = vld [vmem:[%s197_s4 + $0x30] sm:$0xff]  ;;  %v215_v11 = vld [vmem:[%s197_s4 + $0x38] sm:$0xff] }
  0x8a   : > { %v220_v5 = vpop.permute.xlu0 %219 }
  0x8b   : > { %v222_v12 = vmul.f32 %v220_v5, %v208_v3  ;;  %v223_v13 = vmul.f32 %v220_v5, %v209_v4  ;;  %v224_v14 = vmul.f32 %v220_v5, %v210_v6  ;;  %v225_v15 = vmul.f32 %v220_v5, %v211_v7 }
  0x8c   : > { %v226_v17 = vmul.f32 %v220_v5, %v212_v8  ;;  %v227_v18 = vmul.f32 %v220_v5, %v213_v9  ;;  %v228_v19 = vmul.f32 %v220_v5, %v214_v10  ;;  %v229_v20 = vmul.f32 %v220_v5, %v215_v11 }
  0x8e   : > { %v234_v16 = vpop.permute.xlu0 %233 }
  0x8f   : > { %v236_v21 = vadd.f32 %v234_v16, %v222_v12  ;;  %v237_v22 = vadd.f32 %v234_v16, %v223_v13  ;;  %v238_v23 = vadd.f32 %v234_v16, %v224_v14  ;;  %v239_v24 = vadd.f32 %v234_v16, %v225_v15 }
  0x90   : > { %v240_v25 = vadd.f32 %v234_v16, %v226_v17  ;;  %v241_v26 = vadd.f32 %v234_v16, %v227_v18  ;;  %v242_v27 = vadd.f32 %v234_v16, %v228_v19  ;;  %v243_v28 = vadd.f32 %v234_v16, %v229_v20 }
  0x91   : > { %v244_v29 = vmax.f32 %v236_v21, 0.0  ;;  %v245_v30 = vmax.f32 %v237_v22, 0.0  ;;  %v246_v31 = vmax.f32 %v238_v23, 0.0  ;;  %v247_v32 = vmax.f32 %v239_v24, 0.0 }
  0x92   : > { %v248_v33 = vmax.f32 %v240_v25, 0.0  ;;  %v249_v34 = vmax.f32 %v241_v26, 0.0  ;;  %v250_v35 = vmax.f32 %v242_v27, 0.0  ;;  %v251_v36 = vmax.f32 %v243_v28, 0.0 }
  0x93   : > { %252 = vst [vmem:[%s206_s9] sm:$0xff] %v244_v29  ;;  %253 = vst [vmem:[%s206_s9 + $0x8] sm:$0xff] %v245_v30 }
  0x94   : > { %254 = vst [vmem:[%s206_s9 + $0x10] sm:$0xff] %v246_v31  ;;  %255 = vst [vmem:[%s206_s9 + $0x18] sm:$0xff] %v247_v32 }
  0x95   : > { %256 = vst [vmem:[%s206_s9 + $0x20] sm:$0xff] %v248_v33  ;;  %257 = vst [vmem:[%s206_s9 + $0x28] sm:$0xff] %v249_v34 }
  0x96   : > { %258 = vst [vmem:[%s206_s9 + $0x30] sm:$0xff] %v250_v35  ;;  %259 = vst [vmem:[%s206_s9 + $0x38] sm:$0xff] %v251_v36 }
  0x97 PF: > { %s13_s16 = sadd.s32 1, %s446_s16   ;;  %s535_s12 = smov %s438_s14 }
  0x98   : > { %p10_p8 = scmp.ge.s32.totalorder %s13_s16, 10   ;;  %s536_s13 = smov %s442_s15 }
  0x99   : > { %s537_s14 = smov %s540_s17  ;;  %s538_s15 = smov %s544_s18 }
  0x9a   :  { %12 = sbr.rel (!%p10_p8) target bundleno = 3 (0x3), region = 62 }

// kernel: up_block3d_forward.5
= control target key start
LH: loop header
LB: loop body
LE: loop exit
PB: predicated region body
PF: predicated region fallthrough
CT: control target
= control target key end

     0   :  { %s8057_s24 = smov 0   ;;  %s8059_s25 = smov 0   ;;  %s10875_s0 = inlined_call_operand.vmem [shape: f32[2,1024], index: 0, kind: input, shape index: {}]   ;;  %s10876_s1 = inlined_call_operand.vmem [shape: f32[2,8,4,1024], index: 1, kind: input, shape index: {}]   ;;  %s10877_s2 = inlined_call_operand.vmem [shape: f32[2,4,8,1024], index: 2, kind: input, shape index: {}]   ;;  %s10878_s3 = inlined_call_operand.vmem [shape: f32[9,8,48], index: 3, kind: input, shape index: {}]   ;;  %s10879_s4 = inlined_call_operand.vmem [shape: f32[8,1], index: 4, kind: input, shape index: {}]   ;;  %s10880_s5 = inlined_call_operand.vmem [shape: f32[2,4,8,1024], index: 5, kind: output, shape index: {0}]   ;;  %s10881_s6 = inlined_call_operand.vmem [shape: f32[2,8,1], index: 6, kind: output, shape index: {1}]   ;;  %s10882_s7 = inlined_call_operand.vmem [shape: f32[2,8,1], index: 7, kind: output, shape index: {2}]  }
   0x1   :  { %10934 = sst [smem:[#allocation19_spill]] %s10876_s1  ;;  %s8061_s26 = smov 0  }
   0x2   :  { %s8063_s27 = smov 0   ;;  %s8065_s28 = smov 0  }
   0x3 LB: > { %s27_s29 = sadd.s32 1, %s7994_s26  ;;  %s30_s30 = sadd.s32 1, %s7998_s27  ;;  %s8002_s28 = sphi %s8065_s28, %s18_s28   ;;  %s7998_s27 = sphi %s8063_s27, %s11050_s27   ;;  %s7994_s26 = sphi %s8061_s26, %s11049_s26   ;;  %s7990_s25 = sphi %s8059_s25, %s11048_s25   ;;  %s7986_s24 = sphi %s8057_s24, %s11047_s24  }
   0x4   : > { %p28_p0 = scmp.ge.s32.totalorder %s27_s29, 4  ;;  %p6121_p1 = scmp.ge.s32.totalorder %s8002_s28, 1 }
   0x5   : > { %p266_p2 = scmp.lt.s32.totalorder %s8002_s28, 9 }
   0x6   : > { %s11052_s29 = smov (%p28_p0, %s27_s29), 0  ;;  %s11054_s30 = smov (!%p28_p0, %s30_s30), %s7998_s27 }
   0x7   : > { %10935 = sst [smem:[#allocation3_spill]] %s11052_s29  ;;  %p267_p3 = pnand %p6121_p1, %p266_p2 }
   0x8   : > { %p32_p4 = scmp.ge.s32.totalorder %s11054_s30, 2 }
   0x9   : > { %270 = sbr.rel (%p267_p3) target bundleno = 1037 (0x40d), region = 40 }
   0xa   : > { %s11056_s30 = smov (%p32_p4, %s11054_s30), 0 }
   0xb   : > { %10936 = sst [smem:[#allocation4_spill]] %s11056_s30 }
  0x10   : > { %p315_p5 = scmp.lt.s32.totalorder %s7990_s25, 1  ;;  %p327_p6 = scmp.lt.s32.totalorder %s7986_s24, 3 }
  0x11   : > { %s10937_s1 = sld [smem:[#allocation19_spill]]  ;;  %p6131_p7 = scmp.ne.s32.totalorder %s7986_s24, 0 }
  0x12   : > { %s11058_s25 = smov (!%p315_p5, %s7990_s25), 1  ;;  %v500_v2 = vlaneseq (!%p6131_p7)  ;;  %v8004_v4 = vmov (!%p6131_p7), 0.0   ;;  %v8005_v14 = vmov (!%p6131_p7), 1966171168  }
  0x13   : > { %s328_s8 = scalar_select %p327_p6, %s7986_s24, 3 }
  0x14   : > { %s6237_s9 = sshll.u32 %s11058_s25, 8  ;;  %s6127_s10 = sshll.u32 %s11058_s25, 5  ;;  %346 = vst [vmem:[#allocation2] sm:$0xff] (!%p6131_p7), %v8004_v4  ;;  %347 = vst [vmem:[#allocation2 + $0x8] sm:$0xff] (!%p6131_p7), %v8004_v4  ;;  %v498_v15 = vunpack.c.l.s4 (!%p6131_p7), %v8005_v14  ;;  %v501_v16 = vshrl.u32 (!%p6131_p7), %v500_v2, 7 }
  0x15   : > { %s8099_s16 = scalar_lea.vmem %s10877_s2, %s6237_s9  ;;  %s6126_s17 = sshll.u32 %s328_s8, 3  ;;  %348 = vst [vmem:[#allocation2 + $0x10] sm:$0xff] (!%p6131_p7), %v8004_v4  ;;  %349 = vst [vmem:[#allocation2 + $0x18] sm:$0xff] (!%p6131_p7), %v8004_v4 }
  0x16   : > { %s6129_s18 = sshll.u32 %s11058_s25, 3  ;;  %s331_s19 = sadd.s32 %s6127_s10, %s6126_s17  ;;  %v641_v3 = vld [vmem:[%s8099_s16] sm:$0xff] (!%p6131_p7)  ;;  %350 = vst [vmem:[#allocation2 + $0x20] sm:$0xff] (!%p6131_p7), %v8004_v4  ;;  %351 = vst [vmem:[#allocation2 + $0x28] sm:$0xff] (!%p6131_p7), %v8004_v4  ;;  %v642_v11 = vld [vmem:[%s8099_s16 + $0x8] sm:$0xff] (!%p6131_p7)  ;;  %v499_v28 = vunpack.c.0.s8 (!%p6131_p7), %v498_v15 }
  0x17   : > { %s8094_s13 = scalar_lea.vmem %s10937_s1, %s6237_s9  ;;  %s8104_s22 = scalar_lea.vmem %s10881_s6, %s6129_s18  ;;  %352 = vst [vmem:[#allocation2 + $0x30] sm:$0xff] (!%p6131_p7), %v8004_v4  ;;  %353 = vst [vmem:[#allocation2 + $0x38] sm:$0xff] (!%p6131_p7), %v8004_v4  ;;  %v643_v12 = vld [vmem:[%s8099_s16 + $0x10] sm:$0xff] (!%p6131_p7)  ;;  %v644_v13 = vld [vmem:[%s8099_s16 + $0x18] sm:$0xff] (!%p6131_p7) }
  0x18   : > { %s6128_s23 = sshll.u32 %s331_s19, 3  ;;  %s8109_s11 = scalar_lea.vmem %s10882_s7, %s6129_s18  ;;  %v8120_v0 = vld [vmem:[%s8094_s13] ss:$4 sm:$0xff] (!%p6131_p7)  ;;  %354 = vst [vmem:[#allocation2 + $0x40] sm:$0xff] (!%p6131_p7), %v8004_v4  ;;  %355 = vst [vmem:[#allocation2 + $0x48] sm:$0xff] (!%p6131_p7), %v8004_v4  ;;  %v8194_v39 = vsub.s32 (!%p6131_p7), %v499_v28, %v501_v16 }
  0x19   : > { %s8114_s14 = scalar_lea.vmem %s10880_s5, %s6128_s23  ;;  %345 = sbr.rel (%p6131_p7) target bundleno = 91 (0x5b), region = 44  ;;  %v8123_v1 = vld [vmem:[%s8094_s13 + $0x20] ss:$4 sm:$0xff] (!%p6131_p7)  ;;  %356 = vst [vmem:[#allocation2 + $0x50] sm:$0xff] (!%p6131_p7), %v8004_v4  ;;  %357 = vst [vmem:[#allocation2 + $0x58] sm:$0xff] (!%p6131_p7), %v8004_v4 }
  0x1a   : > { %358 = vst [vmem:[#allocation2 + $0x60] sm:$0xff] (!%p6131_p7), %v8004_v4  ;;  %359 = vst [vmem:[#allocation2 + $0x68] sm:$0xff] (!%p6131_p7), %v8004_v4  ;;  %v8127_v5 = vld [vmem:[%s8094_s13 + $0x40] ss:$4 sm:$0xff] (!%p6131_p7)  ;;  %v489_v20 = vcombine.low (!%p6131_p7), %v8120_v0, %v8123_v1  ;;  %v490_v21 = vcombine.high (!%p6131_p7), %v8120_v0, %v8123_v1  ;;  %v8157_v23 = vld [vmem:[%s8094_s13 + $0x1] ss:$4 sm:$0xff] (!%p6131_p7) }
  0x1b   : > { %360 = vst [vmem:[#allocation2 + $0x70] sm:$0xff] (!%p6131_p7), %v8004_v4  ;;  %361 = vst [vmem:[#allocation2 + $0x78] sm:$0xff] (!%p6131_p7), %v8004_v4  ;;  %v8130_v6 = vld [vmem:[%s8094_s13 + $0x60] ss:$4 sm:$0xff] (!%p6131_p7)  ;;  %v8160_v24 = vld [vmem:[%s8094_s13 + $0x21] ss:$4 sm:$0xff] (!%p6131_p7) }
  0x1c   : > { %362 = vst [vmem:[#allocation2 + $0x80] sm:$0xff] (!%p6131_p7), %v8004_v4  ;;  %363 = vst [vmem:[#allocation2 + $0x88] sm:$0xff] (!%p6131_p7), %v8004_v4  ;;  %v8133_v7 = vld [vmem:[%s8094_s13 + $0x80] ss:$4 sm:$0xff] (!%p6131_p7)  ;;  %v491_v25 = vcombine.low (!%p6131_p7), %v8127_v5, %v8130_v6  ;;  %v8169_v29 = vld [vmem:[%s8094_s13 + $0x41] ss:$4 sm:$0xff] (!%p6131_p7)  ;;  %v492_v32 = vcombine.high (!%p6131_p7), %v8127_v5, %v8130_v6  ;;  %v681_v38 = vcombine.low (!%p6131_p7), %v8157_v23, %v8160_v24 }
  0x1d   : > { %364 = vst [vmem:[#allocation2 + $0x90] sm:$0xff] (!%p6131_p7), %v8004_v4  ;;  %365 = vst [vmem:[#allocation2 + $0x98] sm:$0xff] (!%p6131_p7), %v8004_v4  ;;  %v8136_v8 = vld [vmem:[%s8094_s13 + $0xa0] ss:$4 sm:$0xff] (!%p6131_p7)  ;;  %v8172_v30 = vld [vmem:[%s8094_s13 + $0x61] ss:$4 sm:$0xff] (!%p6131_p7)  ;;  %v682_v41 = vcombine.high (!%p6131_p7), %v8157_v23, %v8160_v24  ;;  %v503_v53 = vrot.slane (!%p6131_p7), %v489_v20, %v8194_v39  ;;  %v510_v59 = vrot.slane (!%p6131_p7), %v490_v21, %v8194_v39 }
  0x1e   : > { %366 = vst [vmem:[#allocation2 + $0xa0] sm:$0xff] (!%p6131_p7), %v8004_v4  ;;  %375 = vst [vmem:[#allocation2 + $0xe8] sm:$0xff] (!%p6131_p7), %v8004_v4  ;;  %v8139_v9 = vld [vmem:[%s8094_s13 + $0xc0] ss:$4 sm:$0xff] (!%p6131_p7)  ;;  %v493_v26 = vcombine.low (!%p6131_p7), %v8133_v7, %v8136_v8  ;;  %v8175_v31 = vld [vmem:[%s8094_s13 + $0x81] ss:$4 sm:$0xff] (!%p6131_p7)  ;;  %v494_v33 = vcombine.high (!%p6131_p7), %v8133_v7, %v8136_v8  ;;  %v683_v40 = vcombine.low (!%p6131_p7), %v8169_v29, %v8172_v30 }
  0x1f   : > { %376 = vst [vmem:[#allocation2 + $0xf0] sm:$0xff] (!%p6131_p7), %v8004_v4  ;;  %385 = vst [vmem:[#allocation2 + $0x138] sm:$0xff] (!%p6131_p7), %v8004_v4  ;;  %v8142_v10 = vld [vmem:[%s8094_s13 + $0xe0] ss:$4 sm:$0xff] (!%p6131_p7)  ;;  %v8184_v35 = vld [vmem:[%s8094_s13 + $0xa1] ss:$4 sm:$0xff] (!%p6131_p7)  ;;  %v684_v42 = vcombine.high (!%p6131_p7), %v8169_v29, %v8172_v30  ;;  %v517_v54 = vrot.slane (!%p6131_p7), %v491_v25, %v8194_v39  ;;  %v524_v60 = vrot.slane (!%p6131_p7), %v492_v32, %v8194_v39 }
  0x20   : > { %386 = vst [vmem:[#allocation2 + $0x140] sm:$0xff] %v8004_v4  ;;  %395 = vst [vmem:[#allocation2 + $0x188] sm:$0xff] %v8004_v4  ;;  %v645_v17 = vld [vmem:[%s8099_s16 + $0x20] sm:$0xff]  ;;  %v646_v18 = vld [vmem:[%s8099_s16 + $0x28] sm:$0xff]  ;;  %v495_v27 = vcombine.low %v8139_v9, %v8142_v10  ;;  %v496_v34 = vcombine.high %v8139_v9, %v8142_v10  ;;  %v685_v46 = vcombine.low %v8175_v31, %v8184_v35 }
  0x21   : > { %396 = vst [vmem:[#allocation2 + $0x190] sm:$0xff] %v8004_v4  ;;  %405 = vst [vmem:[#allocation2 + $0x1d8] sm:$0xff] %v8004_v4  ;;  %v647_v19 = vld [vmem:[%s8099_s16 + $0x30] sm:$0xff]  ;;  %v648_v22 = vld [vmem:[%s8099_s16 + $0x38] sm:$0xff]  ;;  %v686_v48 = vcombine.high %v8175_v31, %v8184_v35  ;;  %v531_v55 = vrot.slane %v493_v26, %v8194_v39  ;;  %v538_v61 = vrot.slane %v494_v33, %v8194_v39 }
  0x22   : > { %406 = vst [vmem:[#allocation2 + $0x1e0] sm:$0xff] %v8004_v4  ;;  %415 = vst [vmem:[#allocation2 + $0x228] sm:$0xff] %v8004_v4  ;;  %v8187_v36 = vld [vmem:[%s8094_s13 + $0xc1] ss:$4 sm:$0xff]  ;;  %v545_v56 = vrot.slane %v495_v27, %v8194_v39  ;;  %v552_v62 = vrot.slane %v496_v34, %v8194_v39  ;;  %v553_v63 = vcombine.low %v503_v53, %v517_v54 }
  0x23   : > { %416 = vst [vmem:[#allocation2 + $0x230] sm:$0xff] %v8004_v4  ;;  %425 = vst [vmem:[#allocation2 + $0x278] sm:$0xff] %v8004_v4  ;;  %v8190_v37 = vld [vmem:[%s8094_s13 + $0xe1] ss:$4 sm:$0xff]  ;;  %v554_v1 = vcombine.high %v503_v53, %v517_v54  ;;  %v556_v5 = vcombine.high %v510_v59, %v524_v60 }
  0x24   : > { %426 = vst [vmem:[#allocation2 + $0x280] sm:$0xff] %v8004_v4  ;;  %435 = vst [vmem:[#allocation2 + $0x2c8] sm:$0xff] %v8004_v4  ;;  %v6147_v43 = vld [vmem:[%s8099_s16 + $0x40] sm:$0xff]  ;;  %v6148_v44 = vld [vmem:[%s8099_s16 + $0x48] sm:$0xff]  ;;  %v687_v47 = vcombine.low %v8187_v36, %v8190_v37  ;;  %v688_v49 = vcombine.high %v8187_v36, %v8190_v37  ;;  %v557_v0 = vcombine.low %v531_v55, %v545_v56 }
  0x25   : > { %436 = vst [vmem:[#allocation2 + $0x2d0] sm:$0xff] %v8004_v4  ;;  %445 = vst [vmem:[#allocation2 + $0x318] sm:$0xff] %v8004_v4  ;;  %v6149_v45 = vld [vmem:[%s8099_s16 + $0x50] sm:$0xff]  ;;  %v6150_v50 = vld [vmem:[%s8099_s16 + $0x58] sm:$0xff]  ;;  %v558_v2 = vcombine.high %v531_v55, %v545_v56  ;;  %v560_v6 = vcombine.high %v538_v61, %v552_v62  ;;  %v567_v9 = vrot.slane %v553_v63, %v8194_v39 }
  0x26   : > { %446 = vst [vmem:[#allocation2 + $0x320] sm:$0xff] %v8004_v4  ;;  %447 = vst [vmem:[#allocation2 + $0x328] sm:$0xff] %v8004_v4  ;;  %v6151_v51 = vld [vmem:[%s8099_s16 + $0x60] sm:$0xff]  ;;  %v6152_v52 = vld [vmem:[%s8099_s16 + $0x68] sm:$0xff]  ;;  %v595_v10 = vrot.slane %v557_v0, %v8194_v39 }
  0x27   : > { %448 = vst [vmem:[#allocation2 + $0x330] sm:$0xff] %v8004_v4  ;;  %449 = vst [vmem:[#allocation2 + $0x338] sm:$0xff] %v8004_v4  ;;  %v6153_v57 = vld [vmem:[%s8099_s16 + $0x70] sm:$0xff]  ;;  %v6154_v58 = vld [vmem:[%s8099_s16 + $0x78] sm:$0xff] }
  0x28   : > { %450 = vst [vmem:[#allocation2 + $0x340] sm:$0xff] %v8004_v4  ;;  %451 = vst [vmem:[#allocation2 + $0x348] sm:$0xff] %v8004_v4  ;;  %v6163_v7 = vld [vmem:[%s8099_s16 + $0x80] sm:$0xff]  ;;  %v6164_v8 = vld [vmem:[%s8099_s16 + $0x88] sm:$0xff]  ;;  %v617_v25 = vcombine.low %v567_v9, %v595_v10  ;;  %v618_v27 = vcombine.high %v567_v9, %v595_v10 }
  0x29   : > { %452 = vst [vmem:[#allocation2 + $0x350] sm:$0xff] %v8004_v4  ;;  %453 = vst [vmem:[#allocation2 + $0x358] sm:$0xff] %v8004_v4  ;;  %v6166_v14 = vld [vmem:[%s8099_s16 + $0x98] sm:$0xff]  ;;  %v6167_v15 = vld [vmem:[%s8099_s16 + $0xa0] sm:$0xff] }
  0x2a   : > { %454 = vst [vmem:[#allocation2 + $0x360] sm:$0xff] %v8004_v4  ;;  %455 = vst [vmem:[#allocation2 + $0x368] sm:$0xff] %v8004_v4  ;;  %v6168_v20 = vld [vmem:[%s8099_s16 + $0xa8] sm:$0xff]  ;;  %v6169_v21 = vld [vmem:[%s8099_s16 + $0xb0] sm:$0xff] }
  0x2b   : > { %456 = vst [vmem:[#allocation2 + $0x370] sm:$0xff] %v8004_v4  ;;  %457 = vst [vmem:[#allocation2 + $0x378] sm:$0xff] %v8004_v4  ;;  %v6180_v23 = vld [vmem:[%s8099_s16 + $0xc8] sm:$0xff]  ;;  %v6181_v24 = vld [vmem:[%s8099_s16 + $0xd0] sm:$0xff] }
  0x2c   : > { %458 = vst [vmem:[#allocation2 + $0x380] sm:$0xff] %v8004_v4  ;;  %459 = vst [vmem:[#allocation2 + $0x388] sm:$0xff] %v8004_v4  ;;  %v6183_v31 = vld [vmem:[%s8099_s16 + $0xe0] sm:$0xff]  ;;  %v6184_v35 = vld [vmem:[%s8099_s16 + $0xe8] sm:$0xff] }
  0x2d   : > { %460 = vst [vmem:[#allocation2 + $0x390] sm:$0xff] %v8004_v4  ;;  %461 = vst [vmem:[#allocation2 + $0x398] sm:$0xff] %v8004_v4  ;;  %v6155_v55 = vld [vmem:[%s8094_s13 + $0x2] ss:$4 sm:$0xff] }
  0x2e   : > { %462 = vst [vmem:[#allocation2 + $0x3a0] sm:$0xff] %v8004_v4  ;;  %463 = vst [vmem:[#allocation2 + $0x3a8] sm:$0xff] %v8004_v4  ;;  %v6156_v56 = vld [vmem:[%s8094_s13 + $0x22] ss:$4 sm:$0xff] }
  0x2f   : > { %464 = vst [vmem:[#allocation2 + $0x3b0] sm:$0xff] %v8004_v4  ;;  %465 = vst [vmem:[#allocation2 + $0x3b8] sm:$0xff] %v8004_v4  ;;  %v559_v4 = vcombine.low %v538_v61, %v552_v62  ;;  %v6157_v62 = vld [vmem:[%s8094_s13 + $0x42] ss:$4 sm:$0xff] }
  0x30   : > { %649 = vst [vmem:[#allocation2 + $0xf8] sm:$0xff] %v641_v3  ;;  %650 = vst [vmem:[#allocation2 + $0x100] sm:$0xff] %v642_v11  ;;  %v555_v3 = vcombine.low %v510_v59, %v524_v60  ;;  %v581_v11 = vrot.slane %v554_v1, %v8194_v39  ;;  %v6158_v63 = vld [vmem:[%s8094_s13 + $0x62] ss:$4 sm:$0xff] }
  0x31   : > { %651 = vst [vmem:[#allocation2 + $0x108] sm:$0xff] %v643_v12  ;;  %652 = vst [vmem:[#allocation2 + $0x110] sm:$0xff] %v644_v13  ;;  %v609_v12 = vrot.slane %v558_v2, %v8194_v39  ;;  %v6165_v13 = vld [vmem:[%s8099_s16 + $0x90] sm:$0xff] }
  0x32   : > { %653 = vst [vmem:[#allocation2 + $0x118] sm:$0xff] %v645_v17  ;;  %654 = vst [vmem:[#allocation2 + $0x120] sm:$0xff] %v646_v18  ;;  %v574_v16 = vrot.slane %v555_v3, %v8194_v39  ;;  %v602_v17 = vrot.slane %v559_v4, %v8194_v39  ;;  %v588_v18 = vrot.slane %v556_v5, %v8194_v39  ;;  %v6159_v0 = vld [vmem:[%s8094_s13 + $0x82] ss:$4 sm:$0xff] }
  0x33   : > { %655 = vst [vmem:[#allocation2 + $0x128] sm:$0xff] %v647_v19  ;;  %656 = vst [vmem:[#allocation2 + $0x130] sm:$0xff] %v648_v22  ;;  %v616_v19 = vrot.slane %v560_v6, %v8194_v39  ;;  %v6170_v22 = vld [vmem:[%s8099_s16 + $0xb8] sm:$0xff]  ;;  %v621_v26 = vcombine.low %v581_v11, %v609_v12  ;;  %v622_v28 = vcombine.high %v581_v11, %v609_v12 }
  0x34   : > { %842 = vst [vmem:[#allocation2 + $0x198] sm:$0xff] %v6147_v43  ;;  %843 = vst [vmem:[#allocation2 + $0x1a0] sm:$0xff] %v6148_v44  ;;  %v619_v32 = vcombine.low %v574_v16, %v602_v17  ;;  %v620_v34 = vcombine.high %v574_v16, %v602_v17  ;;  %v695_v44 = vrot.slane %v681_v38, %v8194_v39  ;;  %v6160_v5 = vld [vmem:[%s8094_s13 + $0xa2] ss:$4 sm:$0xff] }
  0x35   : > { %844 = vst [vmem:[#allocation2 + $0x1a8] sm:$0xff] %v6149_v45  ;;  %845 = vst [vmem:[#allocation2 + $0x1b0] sm:$0xff] %v6150_v50  ;;  %v623_v33 = vcombine.low %v588_v18, %v616_v19  ;;  %v624_v43 = vcombine.high %v588_v18, %v616_v19  ;;  %v709_v45 = vrot.slane %v683_v40, %v8194_v39  ;;  %v6161_v6 = vld [vmem:[%s8094_s13 + $0xc2] ss:$4 sm:$0xff] }
  0x36   : > { %846 = vst [vmem:[#allocation2 + $0x1b8] sm:$0xff] %v6151_v51  ;;  %847 = vst [vmem:[#allocation2 + $0x1c0] sm:$0xff] %v6152_v52  ;;  %v723_v50 = vrot.slane %v685_v46, %v8194_v39  ;;  %v737_v51 = vrot.slane %v687_v47, %v8194_v39  ;;  %v6179_v52 = vld [vmem:[%s8099_s16 + $0xc0] sm:$0xff]  ;;  %v702_v38 = vrot.slane %v682_v41, %v8194_v39  ;;  %v6182_v41 = vld [vmem:[%s8099_s16 + $0xd8] sm:$0xff] }
  0x37   : > { %848 = vst [vmem:[#allocation2 + $0x1c8] sm:$0xff] %v6153_v57  ;;  %849 = vst [vmem:[#allocation2 + $0x1d0] sm:$0xff] %v6154_v58  ;;  %v716_v40 = vrot.slane %v684_v42, %v8194_v39  ;;  %v730_v46 = vrot.slane %v686_v48, %v8194_v39  ;;  %v744_v47 = vrot.slane %v688_v49, %v8194_v39  ;;  %v6185_v48 = vld [vmem:[%s8099_s16 + $0xf0] sm:$0xff]  ;;  %v6186_v57 = vld [vmem:[%s8099_s16 + $0xf8] sm:$0xff] }
  0x38   : > { %1035 = vst [vmem:[#allocation2 + $0x238] sm:$0xff] %v6163_v7  ;;  %1036 = vst [vmem:[#allocation2 + $0x240] sm:$0xff] %v6164_v8  ;;  %v745_v29 = vcombine.low %v695_v44, %v709_v45  ;;  %v749_v30 = vcombine.low %v723_v50, %v737_v51  ;;  %v746_v42 = vcombine.high %v695_v44, %v709_v45  ;;  %v6162_v7 = vld [vmem:[%s8094_s13 + $0xe2] ss:$4 sm:$0xff] }
  0x39   : > { %1037 = vst [vmem:[#allocation2 + $0x248] sm:$0xff] %v6165_v13  ;;  %1038 = vst [vmem:[#allocation2 + $0x250] sm:$0xff] %v6166_v14  ;;  %v750_v53 = vcombine.high %v723_v50, %v737_v51  ;;  %v747_v36 = vcombine.low %v702_v38, %v716_v40  ;;  %v751_v37 = vcombine.low %v730_v46, %v744_v47 }
  0x3a   : > { %1039 = vst [vmem:[#allocation2 + $0x258] sm:$0xff] %v6167_v15  ;;  %1040 = vst [vmem:[#allocation2 + $0x260] sm:$0xff] %v6168_v20  ;;  %v748_v49 = vcombine.high %v702_v38, %v716_v40  ;;  %v752_v54 = vcombine.high %v730_v46, %v744_v47  ;;  %v759_v58 = vrot.slane %v745_v29, %v8194_v39 }
  0x3b   : > { %1041 = vst [vmem:[#allocation2 + $0x268] sm:$0xff] %v6169_v21  ;;  %1042 = vst [vmem:[#allocation2 + $0x270] sm:$0xff] %v6170_v22  ;;  %v787_v59 = vrot.slane %v749_v30, %v8194_v39  ;;  %v773_v60 = vrot.slane %v746_v42, %v8194_v39  ;;  %v801_v61 = vrot.slane %v750_v53, %v8194_v39  ;;  %v6173_v53 = vld [vmem:[%s8094_s13 + $0x43] ss:$4 sm:$0xff] }
  0x3c   : > { %633 = vst [vmem:[#allocation2 + $0xa8] sm:$0xff] %v617_v25  ;;  %634 = vst [vmem:[#allocation2 + $0xb0] sm:$0xff] %v621_v26  ;;  %v766_v1 = vrot.slane %v747_v36, %v8194_v39  ;;  %v794_v2 = vrot.slane %v751_v37, %v8194_v39  ;;  %v780_v3 = vrot.slane %v748_v49, %v8194_v39 }
  0x3d   : > { %635 = vst [vmem:[#allocation2 + $0xb8] sm:$0xff] %v618_v27  ;;  %636 = vst [vmem:[#allocation2 + $0xc0] sm:$0xff] %v622_v28  ;;  %v808_v4 = vrot.slane %v752_v54, %v8194_v39  ;;  %v809_v8 = vcombine.low %v759_v58, %v787_v59  ;;  %v813_v9 = vcombine.low %v773_v60, %v801_v61  ;;  %v6176_v54 = vld [vmem:[%s8094_s13 + $0xa3] ss:$4 sm:$0xff] }
  0x3e   : > { %637 = vst [vmem:[#allocation2 + $0xc8] sm:$0xff] %v619_v32  ;;  %638 = vst [vmem:[#allocation2 + $0xd0] sm:$0xff] %v623_v33  ;;  %v810_v10 = vcombine.high %v759_v58, %v787_v59  ;;  %v814_v11 = vcombine.high %v773_v60, %v801_v61  ;;  %v811_v12 = vcombine.low %v766_v1, %v794_v2 }
  0x3f   : > { %639 = vst [vmem:[#allocation2 + $0xd8] sm:$0xff] %v620_v34  ;;  %640 = vst [vmem:[#allocation2 + $0xe0] sm:$0xff] %v624_v43  ;;  %v815_v13 = vcombine.low %v780_v3, %v808_v4  ;;  %v812_v14 = vcombine.high %v766_v1, %v794_v2  ;;  %v816_v15 = vcombine.high %v780_v3, %v808_v4 }
  0x40   : > { %1228 = vst [vmem:[#allocation2 + $0x2d8] sm:$0xff] %v6179_v52  ;;  %1229 = vst [vmem:[#allocation2 + $0x2e0] sm:$0xff] %v6180_v23  ;;  %v874_v16 = vcombine.low %v6155_v55, %v6156_v56  ;;  %v876_v17 = vcombine.low %v6157_v62, %v6158_v63  ;;  %v878_v18 = vcombine.low %v6159_v0, %v6160_v5  ;;  %v6171_v23 = vld [vmem:[%s8094_s13 + $0x3] ss:$4 sm:$0xff] }
  0x41   : > { %1230 = vst [vmem:[#allocation2 + $0x2e8] sm:$0xff] %v6181_v24  ;;  %1231 = vst [vmem:[#allocation2 + $0x2f0] sm:$0xff] %v6182_v41  ;;  %v880_v19 = vcombine.low %v6161_v6, %v6162_v7  ;;  %v875_v20 = vcombine.high %v6155_v55, %v6156_v56  ;;  %v877_v21 = vcombine.high %v6157_v62, %v6158_v63  ;;  %v6172_v24 = vld [vmem:[%s8094_s13 + $0x23] ss:$4 sm:$0xff] }
  0x42   : > { %1232 = vst [vmem:[#allocation2 + $0x2f8] sm:$0xff] %v6183_v31  ;;  %1233 = vst [vmem:[#allocation2 + $0x300] sm:$0xff] %v6184_v35  ;;  %v879_v22 = vcombine.high %v6159_v0, %v6160_v5  ;;  %v881_v25 = vcombine.high %v6161_v6, %v6162_v7  ;;  %v888_v26 = vrot.slane %v874_v16, %v8194_v39  ;;  %v6174_v31 = vld [vmem:[%s8094_s13 + $0x63] ss:$4 sm:$0xff] }
  0x43   : > { %1234 = vst [vmem:[#allocation2 + $0x308] sm:$0xff] %v6185_v48  ;;  %1235 = vst [vmem:[#allocation2 + $0x310] sm:$0xff] %v6186_v57  ;;  %v902_v27 = vrot.slane %v876_v17, %v8194_v39  ;;  %v916_v28 = vrot.slane %v878_v18, %v8194_v39  ;;  %v930_v32 = vrot.slane %v880_v19, %v8194_v39  ;;  %v6175_v35 = vld [vmem:[%s8094_s13 + $0x83] ss:$4 sm:$0xff] }
  0x44   : > { %825 = vst [vmem:[#allocation2 + $0x148] sm:$0xff] %v809_v8  ;;  %826 = vst [vmem:[#allocation2 + $0x150] sm:$0xff] %v813_v9  ;;  %v895_v33 = vrot.slane %v875_v20, %v8194_v39  ;;  %v909_v34 = vrot.slane %v877_v21, %v8194_v39  ;;  %v923_v43 = vrot.slane %v879_v22, %v8194_v39  ;;  %v6177_v55 = vld [vmem:[%s8094_s13 + $0xc3] ss:$4 sm:$0xff] }
  0x45   : > { %827 = vst [vmem:[#allocation2 + $0x158] sm:$0xff] %v810_v10  ;;  %828 = vst [vmem:[#allocation2 + $0x160] sm:$0xff] %v814_v11  ;;  %v937_v44 = vrot.slane %v881_v25, %v8194_v39  ;;  %v938_v45 = vcombine.low %v888_v26, %v902_v27  ;;  %v942_v50 = vcombine.low %v916_v28, %v930_v32  ;;  %v6178_v56 = vld [vmem:[%s8094_s13 + $0xe3] ss:$4 sm:$0xff] }
  0x46   : > { %829 = vst [vmem:[#allocation2 + $0x168] sm:$0xff] %v811_v12  ;;  %830 = vst [vmem:[#allocation2 + $0x170] sm:$0xff] %v815_v13  ;;  %v939_v51 = vcombine.high %v888_v26, %v902_v27  ;;  %v943_v52 = vcombine.high %v916_v28, %v930_v32  ;;  %v940_v38 = vcombine.low %v895_v33, %v909_v34 }
  0x47   : > { %831 = vst [vmem:[#allocation2 + $0x178] sm:$0xff] %v812_v14  ;;  %832 = vst [vmem:[#allocation2 + $0x180] sm:$0xff] %v816_v15  ;;  %v944_v40 = vcombine.low %v923_v43, %v937_v44  ;;  %v941_v46 = vcombine.high %v895_v33, %v909_v34  ;;  %v945_v47 = vcombine.high %v923_v43, %v937_v44 }
  0x48   : > { %v952_v41 = vrot.slane %v938_v45, %v8194_v39  ;;  %v980_v29 = vrot.slane %v942_v50, %v8194_v39  ;;  %v966_v30 = vrot.slane %v939_v51, %v8194_v39  ;;  %v994_v42 = vrot.slane %v943_v52, %v8194_v39 }
  0x49   : > { %v959_v48 = vrot.slane %v940_v38, %v8194_v39  ;;  %v987_v36 = vrot.slane %v944_v40, %v8194_v39  ;;  %v973_v37 = vrot.slane %v941_v46, %v8194_v39  ;;  %v1001_v49 = vrot.slane %v945_v47, %v8194_v39 }
  0x4a   : > { %v1002_v57 = vcombine.low %v952_v41, %v980_v29  ;;  %v1006_v58 = vcombine.low %v966_v30, %v994_v42  ;;  %v1003_v59 = vcombine.high %v952_v41, %v980_v29  ;;  %v1007_v60 = vcombine.high %v966_v30, %v994_v42 }
  0x4b   : > { %v1004_v61 = vcombine.low %v959_v48, %v987_v36  ;;  %v1008_v62 = vcombine.low %v973_v37, %v1001_v49  ;;  %v1005_v63 = vcombine.high %v959_v48, %v987_v36  ;;  %v1009_v0 = vcombine.high %v973_v37, %v1001_v49 }
  0x4c   : > { %1018 = vst [vmem:[#allocation2 + $0x1e8] sm:$0xff] %v1002_v57  ;;  %1019 = vst [vmem:[#allocation2 + $0x1f0] sm:$0xff] %v1006_v58  ;;  %v1067_v1 = vcombine.low %v6171_v23, %v6172_v24  ;;  %v1069_v2 = vcombine.low %v6173_v53, %v6174_v31  ;;  %v1071_v3 = vcombine.low %v6175_v35, %v6176_v54 }
  0x4d   : > { %1020 = vst [vmem:[#allocation2 + $0x1f8] sm:$0xff] %v1003_v59  ;;  %1021 = vst [vmem:[#allocation2 + $0x200] sm:$0xff] %v1007_v60  ;;  %v1073_v4 = vcombine.low %v6177_v55, %v6178_v56  ;;  %v1068_v5 = vcombine.high %v6171_v23, %v6172_v24  ;;  %v1070_v6 = vcombine.high %v6173_v53, %v6174_v31 }
  0x4e   : > { %1022 = vst [vmem:[#allocation2 + $0x208] sm:$0xff] %v1004_v61  ;;  %1023 = vst [vmem:[#allocation2 + $0x210] sm:$0xff] %v1008_v62  ;;  %v1072_v7 = vcombine.high %v6175_v35, %v6176_v54  ;;  %v1074_v8 = vcombine.high %v6177_v55, %v6178_v56  ;;  %v1081_v9 = vrot.slane %v1067_v1, %v8194_v39 }
  0x4f   : > { %1024 = vst [vmem:[#allocation2 + $0x218] sm:$0xff] %v1005_v63  ;;  %1025 = vst [vmem:[#allocation2 + $0x220] sm:$0xff] %v1009_v0  ;;  %v1095_v10 = vrot.slane %v1069_v2, %v8194_v39  ;;  %v1109_v11 = vrot.slane %v1071_v3, %v8194_v39  ;;  %v1123_v12 = vrot.slane %v1073_v4, %v8194_v39 }
  0x50   : > { %v1088_v13 = vrot.slane %v1068_v5, %v8194_v39  ;;  %v1102_v14 = vrot.slane %v1070_v6, %v8194_v39  ;;  %v1116_v15 = vrot.slane %v1072_v7, %v8194_v39  ;;  %v1130_v16 = vrot.slane %v1074_v8, %v8194_v39 }
  0x51   : > { %v1131_v17 = vcombine.low %v1081_v9, %v1095_v10  ;;  %v1135_v18 = vcombine.low %v1109_v11, %v1123_v12  ;;  %v1132_v19 = vcombine.high %v1081_v9, %v1095_v10  ;;  %v1136_v20 = vcombine.high %v1109_v11, %v1123_v12 }
  0x52   : > { %v1133_v21 = vcombine.low %v1088_v13, %v1102_v14  ;;  %v1137_v22 = vcombine.low %v1116_v15, %v1130_v16  ;;  %v1134_v25 = vcombine.high %v1088_v13, %v1102_v14  ;;  %v1138_v26 = vcombine.high %v1116_v15, %v1130_v16 }
  0x53   : > { %v1145_v27 = vrot.slane %v1131_v17, %v8194_v39  ;;  %v1173_v28 = vrot.slane %v1135_v18, %v8194_v39  ;;  %v1159_v32 = vrot.slane %v1132_v19, %v8194_v39  ;;  %v1187_v33 = vrot.slane %v1136_v20, %v8194_v39 }
  0x54   : > { %v1152_v34 = vrot.slane %v1133_v21, %v8194_v39  ;;  %v1180_v43 = vrot.slane %v1137_v22, %v8194_v39  ;;  %v1166_v44 = vrot.slane %v1134_v25, %v8194_v39  ;;  %v1194_v45 = vrot.slane %v1138_v26, %v8194_v39 }
  0x55   : > { %v1195_v50 = vcombine.low %v1145_v27, %v1173_v28  ;;  %v1199_v51 = vcombine.low %v1159_v32, %v1187_v33  ;;  %v1196_v52 = vcombine.high %v1145_v27, %v1173_v28  ;;  %v1200_v38 = vcombine.high %v1159_v32, %v1187_v33 }
  0x56   : > { %v1197_v40 = vcombine.low %v1152_v34, %v1180_v43  ;;  %v1201_v46 = vcombine.low %v1166_v44, %v1194_v45  ;;  %v1198_v47 = vcombine.high %v1152_v34, %v1180_v43  ;;  %v1202_v23 = vcombine.high %v1166_v44, %v1194_v45 }
  0x57   : > { %1211 = vst [vmem:[#allocation2 + $0x288] sm:$0xff] %v1195_v50  ;;  %1212 = vst [vmem:[#allocation2 + $0x290] sm:$0xff] %v1199_v51 }
  0x58   : > { %1213 = vst [vmem:[#allocation2 + $0x298] sm:$0xff] %v1196_v52  ;;  %1214 = vst [vmem:[#allocation2 + $0x2a0] sm:$0xff] %v1200_v38 }
  0x59   : > { %1215 = vst [vmem:[#allocation2 + $0x2a8] sm:$0xff] %v1197_v40  ;;  %1216 = vst [vmem:[#allocation2 + $0x2b0] sm:$0xff] %v1201_v46 }
  0x5a   : > { %1217 = vst [vmem:[#allocation2 + $0x2b8] sm:$0xff] %v1198_v47  ;;  %1218 = vst [vmem:[#allocation2 + $0x2c0] sm:$0xff] %v1202_v23 }
  0x5b PF: > { %s6187_s1 = sshll.u32 %s7986_s24, 4  ;;  %s8006_s8 = smov 33   ;;  %vm1459_vm0 = vcmask 269312   ;;  %vm1556_vm1 = vcmask 392192   ;;  %vm2004_vm2 = vcmask 261120   ;;  %vm2506_vm3 = vcmask 252928  }
  0x5c   : > { %s1237_s25 = sshra.s32 %s6187_s1, 3  ;;  %s8008_s9 = smov 32   ;;  %vm3059_vm4 = vcmask 7168   ;;  %vm3974_vm5 = vcmask 1039360   ;;  %vm4484_vm6 = vcmask 793600   ;;  %vm4994_vm7 = vcmask 785408  }
  0x5d   : > { %s6239_s29 = smul.u32 80, %s1237_s25  ;;  %s8009_s10 = smov 31   ;;  %vm5496_vm8 = vcmask 777216  }
  0x5e   : > { %s8010_s13 = smov 1   ;;  %s8011_s17 = smov 127  }
  0x5f   : > { %s8339_s30 = scalar_lea.vmem [#allocation2], %s6239_s29  ;;  %s8012_s20 = smov 97  }
  0x60   : > { %s8013_s12 = smov 96  }
  0x61   : > { %v1246_v39 = vld [vmem:[%s8339_s30 + $0x20] sm:$0xff]  ;;  %v1247_v24 = vld [vmem:[%s8339_s30 + $0x28] sm:$0xff]  ;;  %v1248_v42 = vld [vmem:[%s8339_s30 + $0x30] sm:$0xff] }
  0x62   : > { %v1242_v41 = vld [vmem:[%s8339_s30] sm:$0xff]  ;;  %v8344_v29 = vpack.i.bf16 %v1247_v24, %v1246_v39  ;;  %v1243_v30 = vld [vmem:[%s8339_s30 + $0x8] sm:$0xff]  ;;  %v1249_v53 = vld [vmem:[%s8339_s30 + $0x38] sm:$0xff] }
  0x63   : > { %v8349_v31 = vpack.i.bf16 %v1243_v30, %v1242_v41  ;;  %v1244_v35 = vld [vmem:[%s8339_s30 + $0x10] sm:$0xff]  ;;  %v1245_v48 = vld [vmem:[%s8339_s30 + $0x18] sm:$0xff]  ;;  %v8355_v36 = vpack.i.bf16 %v1249_v53, %v1248_v42  ;;  %v1253_v54 = vld [vmem:[%s8339_s30 + $0x60] sm:$0xff] }
  0x64   : > { %6792 = vrot.lane.b32.xlu1 %v8344_v29, %s8006_s8  ;;  %v8359_v37 = vpack.i.bf16 %v1245_v48, %v1244_v35  ;;  %v1252_v49 = vld [vmem:[%s8339_s30 + $0x58] sm:$0xff]  ;;  %v1250_v55 = vld [vmem:[%s8339_s30 + $0x40] sm:$0xff]  ;;  %v1251_v56 = vld [vmem:[%s8339_s30 + $0x50] sm:$0xff] }
  0x65   : > { %6782 = vrot.lane.b32.xlu0 %v8349_v31, %s8006_s8  ;;  %v8367_v57 = vpack.i.bf16 %v1253_v54, %v1252_v49  ;;  %v8371_v58 = vpack.i.bf16 %v1251_v56, %v1250_v55  ;;  %v1256_v59 = vld [vmem:[%s8339_s30 + $0x78] sm:$0xff]  ;;  %v1257_v60 = vld [vmem:[%s8339_s30 + $0x80] sm:$0xff]  ;;  %v1254_v61 = vld [vmem:[%s8339_s30 + $0x68] sm:$0xff] }
  0x66   : > { %v1255_v62 = vld [vmem:[%s8339_s30 + $0x70] sm:$0xff]  ;;  %v8379_v63 = vpack.i.bf16 %v1257_v60, %v1256_v59  ;;  %v1260_v1 = vld [vmem:[%s8339_s30 + $0xa0] sm:$0xff]  ;;  %v1261_v2 = vld [vmem:[%s8339_s30 + $0xa8] sm:$0xff]  ;;  %v10883_v59 = vmov 0.0  }
  0x67   : > { %v8383_v0 = vpack.i.bf16 %v1255_v62, %v1254_v61  ;;  %v1258_v3 = vld [vmem:[%s8339_s30 + $0x88] sm:$0xff]  ;;  %v1259_v4 = vld [vmem:[%s8339_s30 + $0x90] sm:$0xff]  ;;  %v8391_v5 = vpack.i.bf16 %v1261_v2, %v1260_v1  ;;  %v1264_v7 = vld [vmem:[%s8339_s30 + $0xc0] sm:$0xff]  ;;  %1624 = vmatprep.mubr.f32.mxu0 %v10883_v59  ;;  %1695 = vmatprep.mubr.f32.mxu1 %v10883_v59 }
  0x68   : > { %6797 = vrot.lane.b32.xlu1 %v8355_v36, %s8006_s8  ;;  %v8395_v6 = vpack.i.bf16 %v1259_v4, %v1258_v3  ;;  %v1265_v8 = vld [vmem:[%s8339_s30 + $0xc8] sm:$0xff]  ;;  %v1262_v9 = vld [vmem:[%s8339_s30 + $0xb0] sm:$0xff]  ;;  %v1263_v10 = vld [vmem:[%s8339_s30 + $0xb8] sm:$0xff] }
  0x69   : > { %6787 = vrot.lane.b32.xlu0 %v8359_v37, %s8006_s8  ;;  %v8403_v11 = vpack.i.bf16 %v1265_v8, %v1264_v7  ;;  %v8407_v12 = vpack.i.bf16 %v1263_v10, %v1262_v9  ;;  %v1268_v13 = vld [vmem:[%s8339_s30 + $0xe0] sm:$0xff]  ;;  %v1269_v14 = vld [vmem:[%s8339_s30 + $0xf0] sm:$0xff]  ;;  %v1267_v16 = vld [vmem:[%s8339_s30 + $0xd8] sm:$0xff] }
  0x6a   : > { %v1266_v15 = vld [vmem:[%s8339_s30 + $0xd0] sm:$0xff]  ;;  %v8415_v17 = vpack.i.bf16 %v1269_v14, %v1268_v13  ;;  %v1272_v19 = vld [vmem:[%s8339_s30 + $0x108] sm:$0xff]  ;;  %v1270_v21 = vld [vmem:[%s8339_s30 + $0xf8] sm:$0xff] }
  0x6b   : > { %v8419_v18 = vpack.i.bf16 %v1267_v16, %v1266_v15  ;;  %v1273_v20 = vld [vmem:[%s8339_s30 + $0x110] sm:$0xff]  ;;  %v1271_v22 = vld [vmem:[%s8339_s30 + $0x100] sm:$0xff]  ;;  %v1276_v27 = vld [vmem:[%s8339_s30 + $0x128] sm:$0xff] }
  0x6c   : > { %6807 = vrot.lane.b32.xlu1 %v8367_v57, %s8006_s8  ;;  %v8427_v25 = vpack.i.bf16 %v1273_v20, %v1272_v19  ;;  %v8431_v26 = vpack.i.bf16 %v1271_v22, %v1270_v21  ;;  %v1277_v28 = vld [vmem:[%s8339_s30 + $0x130] sm:$0xff]  ;;  %v1274_v32 = vld [vmem:[%s8339_s30 + $0x118] sm:$0xff]  ;;  %v1275_v33 = vld [vmem:[%s8339_s30 + $0x120] sm:$0xff] }
  0x6d   : > { %6802 = vrot.lane.b32.xlu0 %v8371_v58, %s8006_s8  ;;  %v8439_v34 = vpack.i.bf16 %v1277_v28, %v1276_v27  ;;  %v8443_v43 = vpack.i.bf16 %v1275_v33, %v1274_v32  ;;  %v1280_v44 = vld [vmem:[%s8339_s30 + $0x150] sm:$0xff]  ;;  %v1281_v45 = vld [vmem:[%s8339_s30 + $0x158] sm:$0xff]  ;;  %v1278_v50 = vld [vmem:[%s8339_s30 + $0x140] sm:$0xff] }
  0x6e   : > { %v1279_v51 = vld [vmem:[%s8339_s30 + $0x148] sm:$0xff]  ;;  %v8451_v52 = vpack.i.bf16 %v1281_v45, %v1280_v44  ;;  %v1284_v40 = vld [vmem:[%s8339_s30 + $0x170] sm:$0xff]  ;;  %v1285_v46 = vld [vmem:[%s8339_s30 + $0x178] sm:$0xff] }
  0x6f   : > { %v8455_v38 = vpack.i.bf16 %v1279_v51, %v1278_v50  ;;  %v1282_v47 = vld [vmem:[%s8339_s30 + $0x160] sm:$0xff]  ;;  %v1283_v23 = vld [vmem:[%s8339_s30 + $0x168] sm:$0xff]  ;;  %v8463_v39 = vpack.i.bf16 %v1285_v46, %v1284_v40  ;;  %v1288_v41 = vld [vmem:[%s8339_s30 + $0x198] sm:$0xff] }
  0x70   : > { %6817 = vrot.lane.b32.xlu1 %v8379_v63, %s8006_s8  ;;  %v8467_v24 = vpack.i.bf16 %v1283_v23, %v1282_v47  ;;  %v1289_v30 = vld [vmem:[%s8339_s30 + $0x1a0] sm:$0xff]  ;;  %v1287_v53 = vld [vmem:[%s8339_s30 + $0x190] sm:$0xff]  ;;  %v1292_v49 = vld [vmem:[%s8339_s30 + $0x1b8] sm:$0xff] }
  0x71   : > { %6812 = vrot.lane.b32.xlu0 %v8383_v0, %s8006_s8  ;;  %v1286_v42 = vld [vmem:[%s8339_s30 + $0x180] sm:$0xff]  ;;  %v8475_v35 = vpack.i.bf16 %v1289_v30, %v1288_v41  ;;  %v1290_v55 = vld [vmem:[%s8339_s30 + $0x1a8] sm:$0xff]  ;;  %v1291_v56 = vld [vmem:[%s8339_s30 + $0x1b0] sm:$0xff] }
  0x72   : > { %v8479_v48 = vpack.i.bf16 %v1287_v53, %v1286_v42  ;;  %v1293_v54 = vld [vmem:[%s8339_s30 + $0x1c0] sm:$0xff]  ;;  %v8493_v61 = vpack.i.bf16 %v1291_v56, %v1290_v55  ;;  %v1294_v62 = vld [vmem:[%s8339_s30 + $0x1c8] sm:$0xff]  ;;  %v1295_v1 = vld [vmem:[%s8339_s30 + $0x1d0] sm:$0xff] }
  0x73   : > { %10938 = vst [vmem:[#allocation5_spill] sm:$0xff] %v8475_v35  ;;  %v8489_v60 = vpack.i.bf16 %v1293_v54, %v1292_v49  ;;  %v8501_v2 = vpack.i.bf16 %v1295_v1, %v1294_v62 }
  0x74   : > { %6827 = vrot.lane.b32.xlu1 %v8391_v5, %s8006_s8  ;;  %10940 = vst [vmem:[#allocation7_spill] sm:$0xff] %v8493_v61 }
  0x75   : > { %6822 = vrot.lane.b32.xlu0 %v8395_v6, %s8006_s8  ;;  %10939 = vst [vmem:[#allocation6_spill] sm:$0xff] %v8489_v60  ;;  %10941 = vst [vmem:[#allocation8_spill] sm:$0xff] %v8501_v2 }
  0x78   : > { %6837 = vrot.lane.b32.xlu1 %v8403_v11, %s8006_s8 }
  0x79   : > { %6832 = vrot.lane.b32.xlu0 %v8407_v12, %s8006_s8 }
  0x7c   : > { %6847 = vrot.lane.b32.xlu1 %v8415_v17, %s8006_s8 }
  0x7d   : > { %6842 = vrot.lane.b32.xlu0 %v8419_v18, %s8006_s8 }
  0x80   : > { %6857 = vrot.lane.b32.xlu1 %v8427_v25, %s8006_s8 }
  0x81   : > { %6852 = vrot.lane.b32.xlu0 %v8431_v26, %s8006_s8 }
  0x84   : > { %6867 = vrot.lane.b32.xlu1 %v8439_v34, %s8006_s8 }
  0x85   : > { %6862 = vrot.lane.b32.xlu0 %v8443_v43, %s8006_s8 }
  0x88   : > { %6877 = vrot.lane.b32.xlu1 %v8451_v52, %s8006_s8 }
  0x89   : > { %6872 = vrot.lane.b32.xlu0 %v8455_v38, %s8006_s8 }
  0x8c   : > { %6887 = vrot.lane.b32.xlu1 %v8463_v39, %s8006_s8 }
  0x8d   : > { %6882 = vrot.lane.b32.xlu0 %v8467_v24, %s8006_s8 }
  0x90   : > { %6897 = vrot.lane.b32.xlu1 %v8475_v35, %s8006_s8 }
  0x91   : > { %6892 = vrot.lane.b32.xlu0 %v8479_v48, %s8006_s8 }
  0x94   : > { %6907 = vrot.lane.b32.xlu1 %v8489_v60, %s8006_s8 }
  0x95   : > { %6902 = vrot.lane.b32.xlu0 %v8493_v61, %s8006_s8 }
  0x98   : > { %6917 = vrot.lane.b32.xlu1 %v8349_v31, %s8008_s9 }
  0x99   : > { %6912 = vrot.lane.b32.xlu0 %v8501_v2, %s8006_s8 }
  0x9c   : > { %6927 = vrot.lane.b32.xlu1 %v8344_v29, %s8008_s9 }
  0x9d   : > { %6922 = vrot.lane.b32.xlu0 %v8359_v37, %s8008_s9 }
  0xa0   : > { %6937 = vrot.lane.b32.xlu1 %v8371_v58, %s8008_s9 }
  0xa1   : > { %6932 = vrot.lane.b32.xlu0 %v8355_v36, %s8008_s9 }
  0xa4   : > { %6947 = vrot.lane.b32.xlu1 %v8383_v0, %s8008_s9 }
  0xa5   : > { %6942 = vrot.lane.b32.xlu0 %v8367_v57, %s8008_s9 }
  0xa8   : > { %6957 = vrot.lane.b32.xlu1 %v8395_v6, %s8008_s9 }
  0xa9   : > { %6952 = vrot.lane.b32.xlu0 %v8379_v63, %s8008_s9 }
  0xac   : > { %6967 = vrot.lane.b32.xlu1 %v8407_v12, %s8008_s9 }
  0xad   : > { %6962 = vrot.lane.b32.xlu0 %v8391_v5, %s8008_s9 }
  0xb0   : > { %6977 = vrot.lane.b32.xlu1 %v8419_v18, %s8008_s9 }
  0xb1   : > { %6972 = vrot.lane.b32.xlu0 %v8403_v11, %s8008_s9 }
  0xb4   : > { %6987 = vrot.lane.b32.xlu1 %v8431_v26, %s8008_s9 }
  0xb5   : > { %6982 = vrot.lane.b32.xlu0 %v8415_v17, %s8008_s9 }
  0xb8   : > { %6997 = vrot.lane.b32.xlu1 %v8443_v43, %s8008_s9 }
  0xb9   : > { %6992 = vrot.lane.b32.xlu0 %v8427_v25, %s8008_s9 }
  0xbc   : > { %7007 = vrot.lane.b32.xlu1 %v8455_v38, %s8008_s9 }
  0xbd   : > { %7002 = vrot.lane.b32.xlu0 %v8439_v34, %s8008_s9 }
  0xc0   : > { %7017 = vrot.lane.b32.xlu1 %v8467_v24, %s8008_s9 }
  0xc1   : > { %7012 = vrot.lane.b32.xlu0 %v8451_v52, %s8008_s9 }
  0xc4   : > { %7027 = vrot.lane.b32.xlu1 %v8479_v48, %s8008_s9 }
  0xc5   : > { %7022 = vrot.lane.b32.xlu0 %v8463_v39, %s8008_s9 }
  0xc8   : > { %7037 = vrot.lane.b32.xlu1 %v8493_v61, %s8008_s9 }
  0xc9   : > { %7032 = vrot.lane.b32.xlu0 %v8475_v35, %s8008_s9 }
  0xcc   : > { %7047 = vrot.lane.b32.xlu1 %v8501_v2, %s8008_s9 }
  0xcd   : > { %7042 = vrot.lane.b32.xlu0 %v8489_v60, %s8008_s9  ;;  %s8014_s9 = smov 95  }
  0xd0   : > { %7057 = vrot.lane.b32.xlu1 %v8359_v37, %s8009_s10 }
  0xd1   : > { %7052 = vrot.lane.b32.xlu0 %v8349_v31, %s8009_s10 }
  0xd4   : > { %7067 = vrot.lane.b32.xlu1 %v8355_v36, %s8009_s10 }
  0xd5   : > { %7062 = vrot.lane.b32.xlu0 %v8344_v29, %s8009_s10 }
  0xd6   : > { %v8540_v3 = vpop.permute.xlu1 %6792 }
  0xd7   : > { %v6783_v4 = vpop.permute.xlu0 %6782  ;;  %v6794_v51 = vunpack.i.l.bf16 %v8540_v3 }
  0xd8   : > { %7077 = vrot.lane.b32.xlu1 %v8367_v57, %s8009_s10  ;;  %v6785_v10 = vunpack.i.h.bf16 %v6783_v4  ;;  %v6784_v13 = vunpack.i.l.bf16 %v6783_v4 }
  0xd9   : > { %7072 = vrot.lane.b32.xlu0 %v8371_v58, %s8009_s10 }
  0xda   : > { %v8546_v7 = vpop.permute.xlu1 %6797  ;;  %v1460_v33 = vsel %vm1459_vm0, %v6784_v13, %v6785_v10 }
  0xdb   : > { %v6788_v8 = vpop.permute.xlu0 %6787 }
  0xdc   : > { %7087 = vrot.lane.b32.xlu1 %v8379_v63, %s8009_s10  ;;  %v6789_v9 = vunpack.i.l.bf16 %v6788_v8  ;;  %v6790_v27 = vunpack.i.h.bf16 %v6788_v8 }
  0xdd   : > { %7082 = vrot.lane.b32.xlu0 %v8383_v0, %s8009_s10 }
  0xde   : > { %v6808_v14 = vpop.permute.xlu1 %6807  ;;  %v1461_v21 = vsel %vm1459_vm0, %v6785_v10, %v6789_v9  ;;  %v1463_v23 = vsel %vm1459_vm0, %v6790_v27, %v6794_v51  ;;  %v1462_v30 = vsel %vm1459_vm0, %v6789_v9, %v6790_v27 }
  0xdf   : > { %v6810_v15 = vunpack.i.h.bf16 %v6808_v14  ;;  %v6809_v16 = vunpack.i.l.bf16 %v6808_v14  ;;  %v8552_v19 = vpop.permute.xlu0 %6802 }
  0xe0   : > { %v6805_v20 = vunpack.i.h.bf16 %v8552_v19  ;;  %7097 = vrot.lane.b32.xlu1 %v8391_v5, %s8009_s10 }
  0xe1   : > { %7092 = vrot.lane.b32.xlu0 %v8395_v6, %s8009_s10  ;;  %v1469_v22 = vsel %vm1459_vm0, %v6809_v16, %v6810_v15 }
  0xe2   : > { %v8561_v28 = vpop.permute.xlu1 %6817  ;;  %v6240_v32 = vpack.c.bf16 %v1469_v22, %v1461_v21  ;;  %v1468_v44 = vsel %vm1459_vm0, %v6805_v20, %v6809_v16 }
  0xe3   : > { %v8565_v45 = vpop.permute.xlu0 %6812  ;;  %v6242_v50 = vpack.c.bf16 %v1468_v44, %v1460_v33 }
  0xe4   : > { %v6815_v40 = vunpack.i.h.bf16 %v8565_v45  ;;  %v6814_v46 = vunpack.i.l.bf16 %v8565_v45  ;;  %7107 = vrot.lane.b32.xlu1 %v8403_v11, %s8009_s10  ;;  %6241 = vmatprep.subr.bf16.mxu0 %v6240_v32 }
  0xe5   : > { %7102 = vrot.lane.b32.xlu0 %v8407_v12, %s8009_s10  ;;  %6243 = vmatpush1.bf16.msra.mxu0 %v6242_v50 }
  0xe6   : > { %v6828_v47 = vpop.permute.xlu1 %6827  ;;  %v1471_v41 = vsel %vm1459_vm0, %v6814_v46, %v6815_v40  ;;  %v1470_v42 = vsel %vm1459_vm0, %v6810_v15, %v6814_v46 }
  0xe7   : > { %v8582_v53 = vpop.permute.xlu0 %6822  ;;  %v6252_v49 = vpack.c.bf16 %v1471_v41, %v1463_v23  ;;  %v6254_v54 = vpack.c.bf16 %v1470_v42, %v1462_v30  ;;  %v6830_v4 = vunpack.i.h.bf16 %v6828_v47  ;;  %v6829_v8 = vunpack.i.l.bf16 %v6828_v47 }
  0xe8   : > { %7117 = vrot.lane.b32.xlu1 %v8415_v17, %s8009_s10 }
  0xe9   : > { %7112 = vrot.lane.b32.xlu0 %v8419_v18, %s8009_s10  ;;  %6253 = vmatprep.subr.bf16.mxu1 %v6252_v49  ;;  %v1476_v50 = vsel %vm1459_vm0, %v6829_v8, %v6830_v4 }
  0xea   : > { %6255 = vmatpush1.bf16.msra.mxu1 %v6254_v54  ;;  %v8588_v55 = vpop.permute.xlu1 %6837 }
  0xeb   : > { %v6833_v56 = vpop.permute.xlu0 %6832  ;;  %v10885_v9 = vunpack.i.l.bf16 %v8588_v55 }
  0xec   : > { %7127 = vrot.lane.b32.xlu1 %v8427_v25, %s8009_s10  ;;  %v6835_v10 = vunpack.i.h.bf16 %v6833_v56  ;;  %v6834_v13 = vunpack.i.l.bf16 %v6833_v56 }
  0xed   : > { %7122 = vrot.lane.b32.xlu0 %v8431_v26, %s8009_s10 }
  0xee   : > { %v8594_v62 = vpop.permute.xlu1 %6847  ;;  %v1477_v32 = vsel %vm1459_vm0, %v6830_v4, %v6834_v13  ;;  %v1479_v33 = vsel %vm1459_vm0, %v6835_v10, %v10885_v9  ;;  %v1478_v56 = vsel %vm1459_vm0, %v6834_v13, %v6835_v10  ;;  %v6800_v10 = vunpack.i.h.bf16 %v8546_v7 }
  0xef   : > { %v8596_v1 = vpop.permute.xlu0 %6842  ;;  %v6850_v21 = vunpack.i.h.bf16 %v8594_v62  ;;  %v6799_v13 = vunpack.i.l.bf16 %v8546_v7 }
  0xf0   : > { %7137 = vrot.lane.b32.xlu1 %v8439_v34, %s8009_s10 }
  0xf1   : > { %7132 = vrot.lane.b32.xlu0 %v8443_v43, %s8009_s10 }
  0xf2   : > { %v8603_v14 = vpop.permute.xlu1 %6857 }
  0xf3   : > { %v10886_v15 = vunpack.i.h.bf16 %v8603_v14  ;;  %v6859_v16 = vunpack.i.l.bf16 %v8603_v14  ;;  %v6853_v20 = vpop.permute.xlu0 %6852 }
  0xf4   : > { %v6855_v22 = vunpack.i.h.bf16 %v6853_v20  ;;  %v6854_v27 = vunpack.i.l.bf16 %v6853_v20  ;;  %7147 = vrot.lane.b32.xlu1 %v8451_v52, %s8009_s10  ;;  %v6795_v20 = vunpack.i.h.bf16 %v8540_v3 }
  0xf5   : > { %7142 = vrot.lane.b32.xlu0 %v8455_v38, %s8009_s10  ;;  %v1487_v44 = vsel %vm1459_vm0, %v6859_v16, %v10886_v15 }
  0xf6   : > { %v8620_v46 = vpop.permute.xlu1 %6867  ;;  %v1485_v47 = vsel %vm1459_vm0, %v6854_v27, %v6855_v22  ;;  %v6256_v23 = vpack.c.bf16 %v1487_v44, %v1479_v33  ;;  %v1484_v41 = vsel %vm1459_vm0, %v6850_v21, %v6854_v27  ;;  %v1486_v30 = vsel %vm1459_vm0, %v6855_v22, %v6859_v16 }
  0xf7   : > { %v8625_v42 = vpop.permute.xlu0 %6862  ;;  %v6244_v49 = vpack.c.bf16 %v1485_v47, %v1477_v32  ;;  %v6246_v54 = vpack.c.bf16 %v1484_v41, %v1476_v50  ;;  %v6258_v4 = vpack.c.bf16 %v1486_v30, %v1478_v56  ;;  %v6804_v21 = vunpack.i.l.bf16 %v8552_v19 }
  0xf8   : > { %7157 = vrot.lane.b32.xlu1 %v8463_v39, %s8009_s10  ;;  %6257 = vmatprep.subr.bf16.mxu1 %v6256_v23  ;;  %v10887_v22 = vunpack.i.h.bf16 %v8561_v28  ;;  %v6819_v27 = vunpack.i.l.bf16 %v8561_v28  ;;  %v8653_v7 = vsel %vm1459_vm0, %v6794_v51, %v6795_v20  ;;  %v8656_v44 = vsel %vm1459_vm0, %v6799_v13, %v6800_v10 }
  0xf9   : > { %7152 = vrot.lane.b32.xlu0 %v8467_v24, %s8009_s10  ;;  %6245 = vmatprep.subr.bf16.mxu0 %v6244_v49  ;;  %v1465_v41 = vsel %vm1459_vm0, %v6795_v20, %v6799_v13  ;;  %v8666_v51 = vsel %vm1459_vm0, %v6800_v10, %v6804_v21  ;;  %v6825_v30 = vunpack.i.h.bf16 %v8582_v53  ;;  %v6824_v49 = vunpack.i.l.bf16 %v8582_v53 }
  0xfa   : > { %6247 = vmatpush1.bf16.msra.mxu0 %v6246_v54  ;;  %6259 = vmatpush1.bf16.msra.mxu1 %v6258_v4  ;;  %v8632_v8 = vpop.permute.xlu1 %6877  ;;  %v1473_v3 = vsel %vm1459_vm0, %v6819_v27, %v10887_v22  ;;  %v6864_v13 = vunpack.i.l.bf16 %v8625_v42 }
  0xfb   : > { %v6873_v16 = vpop.permute.xlu0 %6872  ;;  %v6879_v19 = vunpack.i.l.bf16 %v8632_v8  ;;  %v6880_v53 = vunpack.i.h.bf16 %v8632_v8  ;;  %v6264_v15 = vpack.c.bf16 %v1473_v3, %v1465_v41  ;;  %v1475_v10 = vsel %vm1459_vm0, %v6824_v49, %v6825_v30 }
  0xfc   : > { %7167 = vrot.lane.b32.xlu1 %v8475_v35, %s8009_s10  ;;  %v6875_v50 = vunpack.i.h.bf16 %v6873_v16  ;;  %v6874_v47 = vunpack.i.l.bf16 %v6873_v16  ;;  %v1472_v16 = vsel %vm1459_vm0, %v6815_v40, %v6819_v27 }
  0xfd   : > { %7162 = vrot.lane.b32.xlu0 %v8479_v48, %s8009_s10  ;;  %v6266_v20 = vpack.c.bf16 %v1472_v16, %v8653_v7  ;;  %v6845_v16 = vunpack.i.h.bf16 %v8596_v1 }
  0xfe   : > { %v8644_v32 = vpop.permute.xlu1 %6887  ;;  %v1493_v45 = vsel %vm1459_vm0, %v6875_v50, %v6879_v19 }
  0xff   : > { %v8646_v33 = vpop.permute.xlu0 %6882 }
 0x100   : > { %7177 = vrot.lane.b32.xlu1 %v8489_v60, %s8009_s10  ;;  %v6844_v60 = vunpack.i.l.bf16 %v8596_v1 }
 0x101   : > { %7172 = vrot.lane.b32.xlu0 %v8493_v61, %s8009_s10 }
 0x102   : > { %v6898_v23 = vpop.permute.xlu1 %6897 }
 0x103   : > { %v6900_v54 = vunpack.i.h.bf16 %v6898_v23  ;;  %v6899_v56 = vunpack.i.l.bf16 %v6898_v23  ;;  %v8670_v4 = vpop.permute.xlu0 %6892  ;;  %v1492_v23 = vsel %vm1459_vm0, %v6874_v47, %v6875_v50  ;;  %v8706_v50 = vld [vmem:[%s10878_s3] sm:$0xff]  ;;  %v1494_v47 = vsel %vm1459_vm0, %v6879_v19, %v6880_v53 }
 0x104   : > { %v6895_v59 = vunpack.i.h.bf16 %v8670_v4  ;;  %7187 = vrot.lane.b32.xlu1 %v8349_v31, %s8010_s13  ;;  %v6840_v31 = vunpack.i.h.bf16 %v8588_v55 }
 0x105   : > { %7182 = vrot.lane.b32.xlu0 %v8501_v2, %s8009_s10  ;;  %v1501_v40 = vsel %vm1459_vm0, %v6899_v56, %v6900_v54  ;;  %v6870_v2 = vunpack.i.h.bf16 %v8620_v46 }
 0x106   : > { %v8686_v21 = vpop.permute.xlu1 %6907  ;;  %v6248_v27 = vpack.c.bf16 %v1501_v40, %v1493_v45  ;;  %v1500_v9 = vsel %vm1459_vm0, %v6895_v59, %v6899_v56  ;;  %v6869_v59 = vunpack.i.l.bf16 %v8620_v46  ;;  %v6849_v56 = vunpack.i.l.bf16 %v8594_v62 }
 0x107   : > { %v6903_v8 = vpop.permute.xlu0 %6902  ;;  %v6250_v22 = vpack.c.bf16 %v1500_v9, %v1492_v23  ;;  %v10942_v9 = vunpack.i.l.bf16 %v8646_v33  ;;  %v6910_v46 = vunpack.i.h.bf16 %v8686_v21  ;;  %v10944_v40 = vunpack.i.h.bf16 %v8561_v28 }
 0x108   : > { %v6905_v35 = vunpack.i.h.bf16 %v6903_v8  ;;  %v6904_v61 = vunpack.i.l.bf16 %v6903_v8  ;;  %7197 = vrot.lane.b32.xlu1 %v8344_v29, %s8010_s13  ;;  %6249 = vmatprep.subr.bf16.mxu0 %v6248_v27  ;;  %v10943_v29 = vunpack.i.h.bf16 %v8625_v42  ;;  %v6885_v23 = vunpack.i.h.bf16 %v8646_v33 }
 0x109   : > { %7192 = vrot.lane.b32.xlu0 %v8359_v37, %s8010_s13  ;;  %6251 = vmatpush1.bf16.msra.mxu0 %v6250_v22  ;;  %v1495_v7 = vsel %vm1459_vm0, %v6880_v53, %v10942_v9  ;;  %v6909_v37 = vunpack.i.l.bf16 %v8686_v21  ;;  %v1474_v27 = vsel %vm1459_vm0, %v10944_v40, %v6824_v49  ;;  %v6889_v21 = vunpack.i.l.bf16 %v8644_v32 }
 0x10a   : > { %v1489_v41 = vsel %vm1459_vm0, %v6864_v13, %v10943_v29  ;;  %v8714_v22 = vpop.permute.xlu1 %6917  ;;  %6265 = vmatprep.subr.bf16.mxu0 %v6264_v15  ;;  %v1503_v3 = vsel %vm1459_vm0, %v6904_v61, %v6905_v35  ;;  %v1502_v30 = vsel %vm1459_vm0, %v6900_v54, %v6904_v61  ;;  %v1481_v61 = vsel %vm1459_vm0, %v6840_v31, %v6844_v60 }
 0x10b   : > { %v6913_v19 = vpop.permute.xlu0 %6912  ;;  %v6260_v53 = vpack.c.bf16 %v1503_v3, %v1495_v7  ;;  %v6262_v45 = vpack.c.bf16 %v1502_v30, %v1494_v47  ;;  %v10945_v62 = vunpack.i.h.bf16 %v8603_v14  ;;  %v6268_v28 = vpack.c.bf16 %v1489_v41, %v1481_v61 }
 0x10c   : > { %7207 = vrot.lane.b32.xlu1 %v8371_v58, %s8010_s13  ;;  %6189 = vmatmul.mubr.msk.f32.vlgmr.msra.gmra.mrb[0].mxu0 %vm1556_vm1, %v8706_v50  ;;  %v6276_v15 = vpack.c.bf16 %v1475_v10, %v8666_v51  ;;  %v6915_v49 = vunpack.i.h.bf16 %v6913_v19  ;;  %v6914_v54 = vunpack.i.l.bf16 %v6913_v19  ;;  %v1505_v8 = vsel %vm1459_vm0, %v6909_v37, %v6910_v46 }
 0x10d   : > { %v1488_v1 = vsel %vm1459_vm0, %v10945_v62, %v6864_v13  ;;  %7202 = vrot.lane.b32.xlu0 %v8355_v36, %s8010_s13  ;;  %6261 = vmatprep.subr.bf16.mxu1 %v6260_v53  ;;  %v1491_v9 = vsel %vm1459_vm0, %v6869_v59, %v6870_v2  ;;  %v10946_v14 = vunpack.i.l.bf16 %v8588_v55  ;;  %v6278_v36 = vpack.c.bf16 %v1474_v27, %v8656_v44 }
 0x10e   : > { %6263 = vmatpush1.bf16.msra.mxu1 %v6262_v45  ;;  %6267 = vmatpush1.bf16.msra.mxu0 %v6266_v20  ;;  %v8736_v58 = vpop.permute.xlu1 %6927  ;;  %v1483_v51 = vsel %vm1459_vm0, %v6845_v16, %v6849_v56  ;;  %v10947_v20 = vmov %v10943_v29  ;;  %v6894_v47 = vunpack.i.l.bf16 %v8670_v4  ;;  %v1497_v55 = vsel %vm1459_vm0, %v6885_v23, %v6889_v21 }
 0x10f   : > { %v1480_v13 = vsel %vm1459_vm0, %v10946_v14, %v6840_v31  ;;  %v8743_v7 = vpop.permute.xlu0 %6922  ;;  %6269 = vmatprep.subr.bf16.mxu0 %v6268_v28  ;;  %6277 = vmatprep.subr.bf16.mxu1 %v6276_v15  ;;  %v1490_v10 = vsel %vm1459_vm0, %v10947_v20, %v6869_v59  ;;  %v10948_v31 = vmov 0.0   ;;  %v1504_v29 = vsel %vm1459_vm0, %v6905_v35, %v6909_v37 }
 0x110   : > { %7217 = vrot.lane.b32.xlu1 %v8383_v0, %s8010_s13  ;;  %v6270_v2 = vpack.c.bf16 %v1488_v1, %v1480_v13  ;;  %1766 = vmatprep.mubr.f32.mxu0 %v10948_v31  ;;  %v6272_v42 = vpack.c.bf16 %v1505_v8, %v1497_v55  ;;  %v6280_v44 = vpack.c.bf16 %v1491_v9, %v1483_v51  ;;  %v6890_v59 = vunpack.i.h.bf16 %v8644_v32 }
 0x111   : > { %7212 = vrot.lane.b32.xlu0 %v8367_v57, %s8010_s13  ;;  %6190 = vmatmul.mubr.msk.f32.vlgmr.msra.gmra.mrb[0].mxu1 %vm1556_vm1, %v8706_v50  ;;  %v1482_v4 = vsel %vm1459_vm0, %v6844_v60, %v6845_v16  ;;  %v1507_v41 = vsel %vm1459_vm0, %v6914_v54, %v6915_v49  ;;  %v10949_v35 = vunpack.i.l.bf16 %v8646_v33  ;;  %v6920_v57 = vunpack.i.h.bf16 %v8714_v22 }
 0x112   : > { %6271 = vmatpush1.bf16.msra.mxu0 %v6270_v2  ;;  %6279 = vmatpush1.bf16.msra.mxu1 %v6278_v36  ;;  %v8762_v0 = vpop.permute.xlu1 %6937  ;;  %v6919_v3 = vunpack.i.l.bf16 %v8714_v22  ;;  %v6282_v60 = vpack.c.bf16 %v1490_v10, %v1482_v4  ;;  %v1506_v32 = vsel %vm1459_vm0, %v6910_v46, %v6914_v54  ;;  %v1499_v33 = vsel %vm1459_vm0, %v6890_v59, %v6894_v47 }
 0x113   : > { %v1496_v37 = vsel %vm1459_vm0, %v10949_v35, %v6885_v23  ;;  %v8770_v30 = vpop.permute.xlu0 %6932  ;;  %6273 = vmatprep.subr.bf16.mxu0 %v6272_v42  ;;  %6281 = vmatprep.subr.bf16.mxu1 %v6280_v44  ;;  %v6929_v16 = vunpack.i.l.bf16 %v8736_v58  ;;  %v6925_v22 = vunpack.i.h.bf16 %v8743_v7  ;;  %v6924_v19 = vunpack.i.l.bf16 %v8743_v7 }
 0x114   : > { %7227 = vrot.lane.b32.xlu1 %v8395_v6, %s8010_s13  ;;  %v6274_v56 = vpack.c.bf16 %v1504_v29, %v1496_v37  ;;  %1837 = vmatprep.mubr.f32.mxu1 %v10948_v31  ;;  %v6284_v53 = vpack.c.bf16 %v1507_v41, %v1499_v33  ;;  %v1498_v6 = vsel %vm1459_vm0, %v6889_v21, %v6890_v59  ;;  %v6940_v61 = vunpack.i.h.bf16 %v8762_v0 }
 0x115   : > { %7222 = vrot.lane.b32.xlu0 %v8379_v63, %s8010_s13  ;;  %v2005_v45 = vsel %vm2004_vm2, %v6919_v3, %v6920_v57  ;;  %v6286_v63 = vpack.c.bf16 %v1506_v32, %v1498_v6  ;;  %v2006_v21 = vsel %vm2004_vm2, %v6920_v57, %v6924_v19  ;;  %v2008_v28 = vsel %vm2004_vm2, %v6925_v22, %v6929_v16  ;;  %v8871_v6 = vld [vmem:[%s8339_s30 + $0x8] sm:$0xff] }
 0x116   : > { %6275 = vmatpush1.bf16.msra.mxu0 %v6274_v56  ;;  %6283 = vmatpush1.bf16.msra.mxu1 %v6282_v60  ;;  %v8782_v46 = vpop.permute.xlu1 %6947  ;;  %v2007_v9 = vsel %vm2004_vm2, %v6924_v19, %v6925_v22 }
 0x117   : > { %v6950_v40 = vunpack.i.h.bf16 %v8782_v46  ;;  %v6949_v27 = vunpack.i.l.bf16 %v8782_v46  ;;  %v6943_v23 = vpop.permute.xlu0 %6942  ;;  %6285 = vmatprep.subr.bf16.mxu1 %v6284_v53  ;;  %v8868_v53 = vld [vmem:[%s8339_s30 + $0x20] sm:$0xff] }
 0x118   : > { %v6945_v62 = vunpack.i.h.bf16 %v6943_v23  ;;  %v6944_v1 = vunpack.i.l.bf16 %v6943_v23  ;;  %7237 = vrot.lane.b32.xlu1 %v8407_v12, %s8010_s13  ;;  %v8882_v23 = vld [vmem:[%s8339_s30 + $0x40] sm:$0xff] }
 0x119   : > { %7232 = vrot.lane.b32.xlu0 %v8391_v5, %s8010_s13  ;;  %v2016_v15 = vsel %vm2004_vm2, %v6949_v27, %v6950_v40  ;;  %6191 = vmatmul.mubr.msk.f32.vlgmr.msra.gmra.mrb[2].mxu0 %vm1556_vm1, %v8706_v50 }
 0x11a   : > { %v2015_v49 = vsel %vm2004_vm2, %v6945_v62, %v6949_v27  ;;  %v2013_v12 = vsel %vm2004_vm2, %v6940_v61, %v6944_v1  ;;  %6287 = vmatpush1.bf16.msra.mxu1 %v6286_v63  ;;  %v8804_v54 = vpop.permute.xlu1 %6957  ;;  %v2014_v5 = vsel %vm2004_vm2, %v6944_v1, %v6945_v62  ;;  %v6300_v8 = vpack.c.bf16 %v2016_v15, %v2008_v28  ;;  %v8879_v27 = vld [vmem:[%s8339_s30 + $0x38] sm:$0xff]  ;;  %v8885_v61 = vld [vmem:[%s8339_s30 + $0x28] sm:$0xff]  ;;  %v8888_v62 = vld [vmem:[%s8339_s30 + $0x30] sm:$0xff] }
 0x11b   : > { %v8808_v14 = vpop.permute.xlu0 %6952  ;;  %v6288_v13 = vpack.c.bf16 %v2014_v5, %v2006_v21  ;;  %v6290_v7 = vpack.c.bf16 %v2013_v12, %v2005_v45  ;;  %2168 = vmatprep.mubr.f32.mxu0 %v10948_v31  ;;  %v6302_v36 = vpack.c.bf16 %v2015_v49, %v2007_v9  ;;  %v8874_v45 = vld [vmem:[%s8339_s30 + $0x10] sm:$0xff]  ;;  %v3766_v1 = vld [vmem:[%s8339_s30 + $0x60] sm:$0xff]  ;;  %v3767_v63 = vld [vmem:[%s8339_s30 + $0x68] sm:$0xff]  ;;  %v6930_v5 = vunpack.i.h.bf16 %v8736_v58 }
 0x11c   : > { %7247 = vrot.lane.b32.xlu1 %v8419_v18, %s8010_s13  ;;  %6301 = vmatprep.subr.bf16.mxu1 %v6300_v8  ;;  %v8895_v21 = vld [vmem:[%s8339_s30 + $0x48] sm:$0xff]  ;;  %v3770_v15 = vld [vmem:[%s8339_s30 + $0x80] sm:$0xff]  ;;  %v3768_v12 = vld [vmem:[%s8339_s30 + $0x70] sm:$0xff]  ;;  %v6934_v8 = vunpack.i.l.bf16 %v8770_v30 }
 0x11d   : > { %7242 = vrot.lane.b32.xlu0 %v8403_v11, %s8010_s13  ;;  %6289 = vmatprep.subr.bf16.mxu0 %v6288_v13  ;;  %v3771_v49 = vld [vmem:[%s8339_s30 + $0x88] sm:$0xff]  ;;  %v10953_v58 = vld [vmem:[#allocation8_spill] sm:$0xff] }
 0x11e   : > { %6192 = vmatmul.mubr.msk.f32.vlgmr.msra.gmra.mrb[2].mxu1 %vm1556_vm1, %v8706_v50  ;;  %6291 = vmatpush1.bf16.msra.mxu0 %v6290_v7  ;;  %v6968_v51 = vpop.permute.xlu1 %6967  ;;  %v3769_v7 = vld [vmem:[%s8339_s30 + $0x78] sm:$0xff] }
 0x11f   : > { %6303 = vmatpush1.bf16.msra.mxu1 %v6302_v36  ;;  %v6963_v20 = vpop.permute.xlu0 %6962  ;;  %2239 = vmatprep.mubr.f32.mxu1 %v10948_v31  ;;  %v6969_v11 = vunpack.i.l.bf16 %v6968_v51  ;;  %v6970_v42 = vunpack.i.h.bf16 %v6968_v51  ;;  %v8914_v36 = vld [vmem:[%s8339_s30 + $0xa8] sm:$0xff]  ;;  %v8917_v51 = vld [vmem:[%s8339_s30 + $0xb0] sm:$0xff] }
 0x120   : > { %7257 = vrot.lane.b32.xlu1 %v8431_v26, %s8010_s13  ;;  %v6965_v50 = vunpack.i.h.bf16 %v6963_v20  ;;  %v6964_v47 = vunpack.i.l.bf16 %v6963_v20  ;;  %v6960_v20 = vunpack.i.h.bf16 %v8804_v54 }
 0x121   : > { %7252 = vrot.lane.b32.xlu0 %v8415_v17, %s8010_s13  ;;  %v2023_v3 = vsel %vm2004_vm2, %v6969_v11, %v6970_v42 }
 0x122   : > { %v8822_v18 = vpop.permute.xlu1 %6977 }
 0x123   : > { %v8824_v10 = vpop.permute.xlu0 %6972 }
 0x124   : > { %7267 = vrot.lane.b32.xlu1 %v8443_v43, %s8010_s13  ;;  %v2022_v43 = vsel %vm2004_vm2, %v6965_v50, %v6969_v11  ;;  %v10892_v4 = vunpack.i.l.bf16 %v8824_v10  ;;  %v6959_v11 = vunpack.i.l.bf16 %v8804_v54  ;;  %v8934_v54 = vpack.i.bf16 %v3767_v63, %v3766_v1 }
 0x125   : > { %7262 = vrot.lane.b32.xlu0 %v8427_v25, %s8010_s13  ;;  %v2021_v25 = vsel %vm2004_vm2, %v6964_v47, %v6965_v50  ;;  %v6955_v50 = vunpack.i.h.bf16 %v8808_v14  ;;  %v10950_v47 = vld [vmem:[#allocation7_spill] sm:$0xff] }
 0x126   : > { %v6988_v2 = vpop.permute.xlu1 %6987 }
 0x127   : > { %v6990_v55 = vunpack.i.h.bf16 %v6988_v2  ;;  %v6989_v29 = vunpack.i.l.bf16 %v6988_v2  ;;  %v8830_v26 = vpop.permute.xlu0 %6982  ;;  %v7321_v2 = vpack.i.bf16 %v8874_v45, %v8871_v6 }
 0x128   : > { %v6985_v17 = vunpack.i.h.bf16 %v8830_v26  ;;  %7277 = vrot.lane.b32.xlu1 %v8455_v38, %s8010_s13 }
 0x129   : > { %7272 = vrot.lane.b32.xlu0 %v8439_v34, %s8010_s13  ;;  %v2030_v44 = vsel %vm2004_vm2, %v6989_v29, %v6990_v55 }
 0x12a   : > { %v2029_v59 = vsel %vm2004_vm2, %v6985_v17, %v6989_v29  ;;  %v8842_v41 = vpop.permute.xlu1 %6997  ;;  %v6292_v35 = vpack.c.bf16 %v2030_v44, %v2022_v43  ;;  %v3773_v29 = vld [vmem:[%s8339_s30 + $0x98] sm:$0xff]  ;;  %v10951_v17 = vld [vmem:[#allocation5_spill] sm:$0xff]  ;;  %v7331_v43 = vpack.i.bf16 %v8888_v62, %v8885_v61 }
 0x12b   : > { %v8844_v37 = vpop.permute.xlu0 %6992  ;;  %v6294_v38 = vpack.c.bf16 %v2029_v59, %v2021_v25  ;;  %v6954_v25 = vunpack.i.l.bf16 %v8808_v14 }
 0x12c   : > { %v10894_v34 = vunpack.i.h.bf16 %v8844_v37  ;;  %v6994_v57 = vunpack.i.l.bf16 %v8844_v37  ;;  %7287 = vrot.lane.b32.xlu1 %v8467_v24, %s8010_s13  ;;  %6293 = vmatprep.subr.bf16.mxu0 %v6292_v35  ;;  %v2024_v24 = vsel %vm2004_vm2, %v6970_v42, %v10892_v4  ;;  %v7336_v42 = vpack.i.bf16 %v8882_v23, %v8879_v27 }
 0x12d   : > { %7282 = vrot.lane.b32.xlu0 %v8451_v52, %s8010_s13  ;;  %6295 = vmatpush1.bf16.msra.mxu0 %v6294_v38  ;;  %v8863_v52 = vld [vmem:[%s8339_s30 + $0x18] sm:$0xff]  ;;  %v8941_v35 = vpack.i.bf16 %v3771_v49, %v3770_v15  ;;  %v8943_v38 = vpack.i.bf16 %v3769_v7, %v3768_v12  ;;  %v10954_v12 = vld [vmem:[#allocation6_spill] sm:$0xff]  ;;  %v8979_v7 = vsel %vm2004_vm2, %v6950_v40, %v6954_v25 }
 0x12e   : > { %v2031_v60 = vsel %vm2004_vm2, %v6990_v55, %v6994_v57  ;;  %v8854_v32 = vpop.permute.xlu1 %7007  ;;  %v2032_v56 = vsel %vm2004_vm2, %v6994_v57, %v10894_v34  ;;  %v7326_v13 = vpack.i.bf16 %v8868_v53, %v8863_v52  ;;  %v3772_v55 = vld [vmem:[%s8339_s30 + $0x90] sm:$0xff] }
 0x12f   : > { %v8865_v33 = vpop.permute.xlu0 %7002  ;;  %v6304_v22 = vpack.c.bf16 %v2032_v56, %v2024_v24  ;;  %v6306_v19 = vpack.c.bf16 %v2031_v60, %v2023_v3  ;;  %10952 = vst [vmem:[#allocation7_spill] sm:$0xff] %v8941_v35  ;;  %v8950_v3 = vsel %vm2004_vm2, %v6929_v16, %v6930_v5  ;;  %v6939_v60 = vunpack.i.l.bf16 %v8762_v0 }
 0x130   : > { %7297 = vrot.lane.b32.xlu1 %v8479_v48, %s8010_s13  ;;  %v8898_v48 = vld [vmem:[%s8339_s30 + $0x58] sm:$0xff]  ;;  %v8960_v56 = vpack.i.bf16 %v3773_v29, %v3772_v55  ;;  %v2010_v16 = vsel %vm2004_vm2, %v6930_v5, %v6934_v8  ;;  %v2020_v0 = vsel %vm2004_vm2, %v6959_v11, %v6960_v20  ;;  %v7009_v1 = vunpack.i.l.bf16 %v8854_v32 }
 0x131   : > { %7292 = vrot.lane.b32.xlu0 %v8463_v39, %s8010_s13  ;;  %6305 = vmatprep.subr.bf16.mxu1 %v6304_v22  ;;  %v6935_v39 = vunpack.i.h.bf16 %v8770_v30  ;;  %v8963_v22 = vsel %vm2004_vm2, %v6955_v50, %v6959_v11  ;;  %v6979_v5 = vunpack.i.l.bf16 %v8822_v18  ;;  %v7000_v11 = vunpack.i.h.bf16 %v8842_v41 }
 0x132   : > { %6307 = vmatpush1.bf16.msra.mxu1 %v6306_v19  ;;  %v8900_v28 = vpop.permute.xlu1 %7017  ;;  %v7010_v19 = vunpack.i.h.bf16 %v8854_v32  ;;  %v2018_v32 = vsel %vm2004_vm2, %v6954_v25, %v6955_v50  ;;  %v7005_v40 = vunpack.i.h.bf16 %v8865_v33 }
 0x133   : > { %v8908_v9 = vpop.permute.xlu0 %7012  ;;  %v8956_v14 = vsel %vm2004_vm2, %v6934_v8, %v6935_v39  ;;  %v10893_v63 = vunpack.i.l.bf16 %v8900_v28  ;;  %v6975_v8 = vunpack.i.h.bf16 %v8824_v10 }
 0x134   : > { %7307 = vrot.lane.b32.xlu1 %v10950_v47, %s8010_s13  ;;  %v7015_v15 = vunpack.i.h.bf16 %v8908_v9  ;;  %v7014_v49 = vunpack.i.l.bf16 %v8908_v9  ;;  %v6999_v9 = vunpack.i.l.bf16 %v8842_v41  ;;  %v2037_v50 = vsel %vm2004_vm2, %v7009_v1, %v7010_v19 }
 0x135   : > { %7302 = vrot.lane.b32.xlu0 %v10951_v17, %s8010_s13 }
 0x136   : > { %v8939_v59 = vpop.permute.xlu1 %7027  ;;  %v2038_v41 = vsel %vm2004_vm2, %v7010_v19, %v7014_v49  ;;  %v2040_v25 = vsel %vm2004_vm2, %v7015_v15, %v10893_v63  ;;  %v2039_v19 = vsel %vm2004_vm2, %v7014_v49, %v7015_v15  ;;  %v6314_v15 = vpack.c.bf16 %v8979_v7, %v8950_v3 }
 0x137   : > { %v8958_v24 = vpop.permute.xlu0 %7022  ;;  %v7030_v29 = vunpack.i.h.bf16 %v8939_v59  ;;  %v6326_v49 = vpack.c.bf16 %v8963_v22, %v8956_v14  ;;  %v10955_v22 = vunpack.i.h.bf16 %v8844_v37 }
 0x138   : > { %7317 = vrot.lane.b32.xlu1 %v10953_v58, %s8010_s13 }
 0x139   : > { %7312 = vrot.lane.b32.xlu0 %v10954_v12, %s8010_s13 }
 0x13a   : > { %v8983_v20 = vpop.permute.xlu1 %7037 }
 0x13b   : > { %v10895_v47 = vunpack.i.h.bf16 %v8983_v20  ;;  %v7039_v55 = vunpack.i.l.bf16 %v8983_v20  ;;  %v7033_v46 = vpop.permute.xlu0 %7032 }
 0x13c   : > { %v7035_v17 = vunpack.i.h.bf16 %v7033_v46  ;;  %v7034_v58 = vunpack.i.l.bf16 %v7033_v46  ;;  %7327 = vrot.lane.b32.xlu1 %v7326_v13, %s8011_s17 }
 0x13d   : > { %7322 = vrot.lane.b32.xlu0 %v7321_v2, %s8011_s17  ;;  %v2048_v12 = vsel %vm2004_vm2, %v7039_v55, %v10895_v47  ;;  %v7004_v2 = vunpack.i.l.bf16 %v8865_v33 }
 0x13e   : > { %v2047_v57 = vsel %vm2004_vm2, %v7035_v17, %v7039_v55  ;;  %v2045_v46 = vsel %vm2004_vm2, %v7030_v29, %v7034_v58  ;;  %v9004_v4 = vpop.permute.xlu1 %7047  ;;  %v2046_v13 = vsel %vm2004_vm2, %v7034_v58, %v7035_v17  ;;  %v6308_v1 = vpack.c.bf16 %v2048_v12, %v2040_v25 }
 0x13f   : > { %v9009_v44 = vpop.permute.xlu0 %7042  ;;  %v6296_v63 = vpack.c.bf16 %v2046_v13, %v2038_v41  ;;  %v6298_v34 = vpack.c.bf16 %v2045_v46, %v2037_v50  ;;  %v6310_v47 = vpack.c.bf16 %v2047_v57, %v2039_v19  ;;  %v6312_v55 = vpack.c.bf16 %v2018_v32, %v2010_v16  ;;  %v9080_v46 = vld [vmem:[%s8339_s30 + $0xc8] sm:$0xff] }
 0x140   : > { %7337 = vrot.lane.b32.xlu1 %v7336_v42, %s8011_s17  ;;  %6309 = vmatprep.subr.bf16.mxu1 %v6308_v1  ;;  %v2012_v29 = vsel %vm2004_vm2, %v6935_v39, %v6939_v60  ;;  %v6984_v17 = vunpack.i.l.bf16 %v8830_v26  ;;  %v6980_v42 = vunpack.i.h.bf16 %v8822_v18  ;;  %v7045_v57 = vunpack.i.h.bf16 %v9009_v44  ;;  %v9029_v26 = vld [vmem:[%s10878_s3 + $0x8] sm:$0xff] }
 0x141   : > { %7332 = vrot.lane.b32.xlu0 %v7331_v43, %s8011_s17  ;;  %6297 = vmatprep.subr.bf16.mxu0 %v6296_v63  ;;  %v6324_v33 = vpack.c.bf16 %v2020_v0, %v2012_v29  ;;  %v7044_v30 = vunpack.i.l.bf16 %v9009_v44  ;;  %v2034_v43 = vsel %vm2004_vm2, %v6999_v9, %v7000_v11  ;;  %v7050_v3 = vunpack.i.h.bf16 %v9004_v4  ;;  %v9093_v29 = vld [vmem:[%s8339_s30 + $0xb8] sm:$0xff] }
 0x142   : > { %6299 = vmatpush1.bf16.msra.mxu0 %v6298_v34  ;;  %6311 = vmatpush1.bf16.msra.mxu1 %v6310_v47  ;;  %v9024_v39 = vpop.permute.xlu1 %7057  ;;  %v7049_v60 = vunpack.i.l.bf16 %v9004_v4  ;;  %v2026_v34 = vsel %vm2004_vm2, %v6975_v8, %v6979_v5  ;;  %v2036_v44 = vsel %vm2004_vm2, %v7004_v2, %v7005_v40  ;;  %v2033_v16 = vsel %vm2004_vm2, %v10955_v22, %v6999_v9 }
 0x143   : > { %v9034_v14 = vpop.permute.xlu0 %7052  ;;  %6313 = vmatprep.subr.bf16.mxu0 %v6312_v55  ;;  %6325 = vmatprep.subr.bf16.mxu1 %v6324_v33  ;;  %v7029_v0 = vunpack.i.l.bf16 %v8939_v59  ;;  %v7025_v4 = vunpack.i.h.bf16 %v8958_v24  ;;  %v7024_v63 = vunpack.i.l.bf16 %v8958_v24  ;;  %v2035_v7 = vsel %vm2004_vm2, %v7000_v11, %v7004_v2 }
 0x144   : > { %7347 = vrot.lane.b32.xlu1 %v8934_v54, %s8011_s17  ;;  %v10956_v32 = vpack.i.bf16 %v8898_v48, %v8895_v21  ;;  %v6316_v37 = vpack.c.bf16 %v2034_v43, %v2026_v34  ;;  %v2028_v59 = vsel %vm2004_vm2, %v6980_v42, %v6984_v17  ;;  %v10957_v24 = vunpack.i.l.bf16 %v8824_v10  ;;  %v9096_v17 = vld [vmem:[%s8339_s30 + $0xc0] sm:$0xff] }
 0x145   : > { %6194 = vmatmul.mubr.msk.f32.vlgmr.msra.gmra.mrb[4].mxu0 %vm1556_vm1, %v9029_v26  ;;  %v7020_v47 = vunpack.i.h.bf16 %v8900_v28  ;;  %6195 = vmatmul.mubr.msk.f32.vlgmr.msra.gmra.mrb[4].mxu1 %vm1556_vm1, %v9029_v26  ;;  %v6328_v40 = vpack.c.bf16 %v2036_v44, %v2028_v59  ;;  %v2050_v58 = vsel %vm2004_vm2, %v7044_v30, %v7045_v57  ;;  %v2027_v50 = vsel %vm2004_vm2, %v6979_v5, %v6980_v42  ;;  %v9083_v5 = vld [vmem:[%s8339_s30 + $0xd0] sm:$0xff] }
 0x146   : > { %7342 = vrot.lane.b32.xlu0 %v10956_v32, %s8011_s17  ;;  %v2025_v9 = vsel %vm2004_vm2, %v10957_v24, %v6975_v8  ;;  %6315 = vmatpush1.bf16.msra.mxu0 %v6314_v15  ;;  %v9066_v11 = vpop.permute.xlu1 %7067  ;;  %v2052_v41 = vsel %vm2004_vm2, %v7049_v60, %v7050_v3  ;;  %v6330_v25 = vpack.c.bf16 %v2035_v7, %v2027_v50  ;;  %v10959_v13 = vunpack.i.h.bf16 %v8983_v20  ;;  %v9123_v7 = vld [vmem:[%s8339_s30 + $0xe8] sm:$0xff]  ;;  %v9126_v32 = vld [vmem:[%s8339_s30 + $0xf8] sm:$0xff] }
 0x147   : > { %6327 = vmatpush1.bf16.msra.mxu1 %v6326_v49  ;;  %v9072_v10 = vpop.permute.xlu0 %7062  ;;  %6317 = vmatprep.subr.bf16.mxu0 %v6316_v37  ;;  %v6318_v8 = vpack.c.bf16 %v2033_v16, %v2025_v9  ;;  %v2042_v12 = vsel %vm2004_vm2, %v7020_v47, %v7024_v63  ;;  %v2044_v18 = vsel %vm2004_vm2, %v7025_v4, %v7029_v0  ;;  %v7059_v2 = vunpack.i.l.bf16 %v9024_v39 }
 0x148   : > { %6329 = vmatprep.subr.bf16.mxu1 %v6328_v40  ;;  %7357 = vrot.lane.b32.xlu1 %v8941_v35, %s8011_s17  ;;  %10958 = vst [vmem:[#allocation5_spill] sm:$0xff] %v9083_v5  ;;  %v2049_v1 = vsel %vm2004_vm2, %v10959_v13, %v7044_v30  ;;  %v7055_v19 = vunpack.i.h.bf16 %v9034_v14  ;;  %v6320_v55 = vpack.c.bf16 %v2050_v58, %v2042_v12  ;;  %v7054_v20 = vunpack.i.l.bf16 %v9034_v14  ;;  %v9137_v40 = vld [vmem:[%s8339_s30 + $0xe0] sm:$0xff]  ;;  %v3786_v13 = vld [vmem:[%s8339_s30 + $0x110] sm:$0xff] }
 0x149   : > { %2310 = vmatprep.mubr.f32.mxu0 %v10948_v31  ;;  %v2051_v33 = vsel %vm2004_vm2, %v7045_v57, %v7049_v60  ;;  %v6332_v49 = vpack.c.bf16 %v2052_v41, %v2044_v18  ;;  %2381 = vmatprep.mubr.f32.mxu1 %v10948_v31  ;;  %v10960_v42 = vunpack.i.l.bf16 %v8900_v28  ;;  %v7376_v57 = vpack.i.bf16 %v9083_v5, %v9080_v46 }
 0x14a   : > { %7352 = vrot.lane.b32.xlu0 %v8943_v38, %s8011_s17  ;;  %6319 = vmatpush1.bf16.msra.mxu0 %v6318_v8  ;;  %v7078_v15 = vpop.permute.xlu1 %7077  ;;  %v2043_v60 = vsel %vm2004_vm2, %v7024_v63, %v7025_v4  ;;  %v10961_v28 = vpack.i.bf16 %v8917_v51, %v8914_v36  ;;  %v7371_v22 = vpack.i.bf16 %v9096_v17, %v9093_v29  ;;  %v7060_v16 = vunpack.i.h.bf16 %v9024_v39 }
 0x14b   : > { %v2041_v30 = vsel %vm2004_vm2, %v10960_v42, %v7020_v47  ;;  %6331 = vmatpush1.bf16.msra.mxu1 %v6330_v25  ;;  %v7080_v43 = vunpack.i.h.bf16 %v7078_v15  ;;  %v7079_v3 = vunpack.i.l.bf16 %v7078_v15  ;;  %v9105_v34 = vpop.permute.xlu0 %7072  ;;  %6321 = vmatprep.subr.bf16.mxu0 %v6320_v55  ;;  %v6334_v0 = vpack.c.bf16 %v2051_v33, %v2043_v60  ;;  %10962 = vst [vmem:[#allocation8_spill] sm:$0xff] %v9123_v7  ;;  %v9134_v47 = vld [vmem:[%s8339_s30 + $0xd8] sm:$0xff]  ;;  %v3785_v15 = vld [vmem:[%s8339_s30 + $0x108] sm:$0xff] }
 0x14c   : > { %v7075_v14 = vunpack.i.h.bf16 %v9105_v34  ;;  %6333 = vmatprep.subr.bf16.mxu1 %v6332_v49  ;;  %7367 = vrot.lane.b32.xlu1 %v10961_v28, %s8011_s17  ;;  %v6322_v44 = vpack.c.bf16 %v2049_v1, %v2041_v30  ;;  %v2508_v4 = vsel %vm2506_vm3, %v7055_v19, %v7059_v2  ;;  %v2507_v37 = vsel %vm2506_vm3, %v7054_v20, %v7055_v19  ;;  %v3787_v1 = vld [vmem:[%s8339_s30 + $0x118] sm:$0xff]  ;;  %v3784_v20 = vld [vmem:[%s8339_s30 + $0x100] sm:$0xff]  ;;  %v3789_v28 = vld [vmem:[%s8339_s30 + $0x128] sm:$0xff] }
 0x14d   : > { %v2516_v63 = vsel %vm2506_vm3, %v7079_v3, %v7080_v43  ;;  %v10898_v59 = vunpack.i.l.bf16 %v9072_v10  ;;  %10963 = vst [vmem:[#allocation6_spill] sm:$0xff] %v9134_v47  ;;  %10964 = vst [vmem:[#allocation9_spill] sm:$0xff] %v9137_v40  ;;  %v7386_v25 = vpack.i.bf16 %v9126_v32, %v9123_v7  ;;  %v2509_v12 = vsel %vm2506_vm3, %v7059_v2, %v7060_v16 }
 0x14e   : > { %7362 = vrot.lane.b32.xlu0 %v8960_v56, %s8011_s17  ;;  %v2515_v24 = vsel %vm2506_vm3, %v7075_v14, %v7079_v3  ;;  %6323 = vmatpush1.bf16.msra.mxu0 %v6322_v44  ;;  %v9131_v39 = vpop.permute.xlu1 %7087  ;;  %v6336_v9 = vpack.c.bf16 %v2516_v63, %v2508_v4  ;;  %v7381_v18 = vpack.i.bf16 %v9137_v40, %v9134_v47  ;;  %v3793_v3 = vld [vmem:[%s8339_s30 + $0x150] sm:$0xff]  ;;  %v3788_v14 = vld [vmem:[%s8339_s30 + $0x120] sm:$0xff]  ;;  %v3803_v4 = vld [vmem:[%s8339_s30 + $0x1a8] sm:$0xff] }
 0x14f   : > { %6335 = vmatpush1.bf16.msra.mxu1 %v6334_v0  ;;  %v9139_v58 = vpop.permute.xlu0 %7082  ;;  %v6338_v50 = vpack.c.bf16 %v2515_v24, %v2507_v37  ;;  %v2510_v33 = vsel %vm2506_vm3, %v7060_v16, %v10898_v59  ;;  %v3802_v16 = vld [vmem:[%s8339_s30 + $0x1a0] sm:$0xff]  ;;  %v9188_v0 = vpack.i.bf16 %v3789_v28, %v3788_v14  ;;  %v3796_v37 = vld [vmem:[%s8339_s30 + $0x168] sm:$0xff] }
 0x150   : > { %v10896_v8 = vunpack.i.h.bf16 %v9139_v58  ;;  %v7084_v41 = vunpack.i.l.bf16 %v9139_v58  ;;  %7377 = vrot.lane.b32.xlu1 %v7376_v57, %s8011_s17  ;;  %6337 = vmatprep.subr.bf16.mxu0 %v6336_v9  ;;  %v3794_v57 = vld [vmem:[%s8339_s30 + $0x158] sm:$0xff]  ;;  %v3795_v63 = vld [vmem:[%s8339_s30 + $0x160] sm:$0xff] }
 0x151   : > { %6196 = vmatmul.mubr.msk.f32.vlgmr.msra.gmra.mrb[6].mxu0 %vm1556_vm1, %v9029_v26  ;;  %10965 = vst [vmem:[#allocation10_spill] sm:$0xff] %v9188_v0 }
 0x152   : > { %7372 = vrot.lane.b32.xlu0 %v7371_v22, %s8011_s17  ;;  %v2517_v19 = vsel %vm2506_vm3, %v7080_v43, %v7084_v41  ;;  %6339 = vmatpush1.bf16.msra.mxu0 %v6338_v50  ;;  %v7098_v55 = vpop.permute.xlu1 %7097  ;;  %v2518_v2 = vsel %vm2506_vm3, %v7084_v41, %v10896_v8  ;;  %v9170_v43 = vpack.i.bf16 %v3787_v1, %v3786_v13  ;;  %v3790_v8 = vld [vmem:[%s8339_s30 + $0x130] sm:$0xff] }
 0x153   : > { %6197 = vmatmul.mubr.msk.f32.vlgmr.msra.gmra.mrb[6].mxu1 %vm1556_vm1, %v9029_v26  ;;  %v9165_v49 = vpop.permute.xlu0 %7092  ;;  %v6348_v42 = vpack.c.bf16 %v2518_v2, %v2510_v33  ;;  %v6350_v30 = vpack.c.bf16 %v2517_v19, %v2509_v12  ;;  %2670 = vmatprep.mubr.f32.mxu0 %v10948_v31  ;;  %v9173_v26 = vpack.i.bf16 %v3785_v15, %v3784_v20  ;;  %v7100_v50 = vunpack.i.h.bf16 %v7098_v55  ;;  %v3792_v12 = vld [vmem:[%s8339_s30 + $0x148] sm:$0xff]  ;;  %v3804_v2 = vld [vmem:[%s8339_s30 + $0x1b0] sm:$0xff]  ;;  %v3805_v20 = vld [vmem:[%s8339_s30 + $0x1b8] sm:$0xff] }
 0x154   : > { %2741 = vmatprep.mubr.f32.mxu1 %v10948_v31  ;;  %7387 = vrot.lane.b32.xlu1 %v7386_v25, %s8011_s17  ;;  %v9183_v22 = vpack.i.bf16 %v3794_v57, %v3793_v3  ;;  %v9199_v41 = vpack.i.bf16 %v3803_v4, %v3802_v16  ;;  %v9201_v25 = vpack.i.bf16 %v3796_v37, %v3795_v63  ;;  %v7099_v13 = vunpack.i.l.bf16 %v7098_v55 }
 0x155   : > { %6349 = vmatprep.subr.bf16.mxu1 %v6348_v42 }
 0x156   : > { %7382 = vrot.lane.b32.xlu0 %v7381_v18, %s8011_s17  ;;  %6351 = vmatpush1.bf16.msra.mxu1 %v6350_v30  ;;  %v9177_v60 = vpop.permute.xlu1 %7107  ;;  %v3801_v18 = vld [vmem:[%s8339_s30 + $0x198] sm:$0xff]  ;;  %v2523_v16 = vsel %vm2506_vm3, %v7099_v13, %v7100_v50 }
 0x157   : > { %v7103_v44 = vpop.permute.xlu0 %7102  ;;  %v10897_v1 = vunpack.i.l.bf16 %v9177_v60  ;;  %v9214_v57 = vpack.i.bf16 %v3801_v18, %v3792_v12  ;;  %v3797_v12 = vld [vmem:[%s8339_s30 + $0x170] sm:$0xff]  ;;  %v3798_v18 = vld [vmem:[%s8339_s30 + $0x178] sm:$0xff] }
 0x158   : > { %7397 = vrot.lane.b32.xlu1 %v9170_v43, %s8011_s17  ;;  %v7105_v19 = vunpack.i.h.bf16 %v7103_v44  ;;  %v7104_v33 = vunpack.i.l.bf16 %v7103_v44  ;;  %v9219_v44 = vpack.i.bf16 %v3805_v20, %v3804_v2 }
 0x15a   : > { %7392 = vrot.lane.b32.xlu0 %v9173_v26, %s8011_s17  ;;  %v9193_v24 = vpop.permute.xlu1 %7117  ;;  %v2524_v4 = vsel %vm2506_vm3, %v7100_v50, %v7104_v33  ;;  %v2526_v63 = vsel %vm2506_vm3, %v7105_v19, %v10897_v1  ;;  %v3791_v1 = vld [vmem:[%s8339_s30 + $0x138] sm:$0xff]  ;;  %v2525_v59 = vsel %vm2506_vm3, %v7104_v33, %v7105_v19  ;;  %v3807_v19 = vld [vmem:[%s8339_s30 + $0x1c8] sm:$0xff]  ;;  %v3799_v33 = vld [vmem:[%s8339_s30 + $0x180] sm:$0xff] }
 0x15b   : > { %v9195_v9 = vpop.permute.xlu0 %7112  ;;  %v7120_v55 = vunpack.i.h.bf16 %v9193_v24 }
 0x15c   : > { %7407 = vrot.lane.b32.xlu1 %v9183_v22, %s8011_s17  ;;  %v7114_v35 = vunpack.i.l.bf16 %v9195_v9 }
 0x15e   : > { %7402 = vrot.lane.b32.xlu0 %v9188_v0, %s8011_s17  ;;  %v9210_v15 = vpop.permute.xlu1 %7127 }
 0x15f   : > { %v10899_v42 = vunpack.i.h.bf16 %v9210_v15  ;;  %v7129_v30 = vunpack.i.l.bf16 %v9210_v15  ;;  %v7123_v3 = vpop.permute.xlu0 %7122 }
 0x160   : > { %v7125_v14 = vunpack.i.h.bf16 %v7123_v3  ;;  %v7124_v28 = vunpack.i.l.bf16 %v7123_v3  ;;  %7417 = vrot.lane.b32.xlu1 %v9199_v41, %s8011_s17 }
 0x161   : > { %v2534_v37 = vsel %vm2506_vm3, %v7129_v30, %v10899_v42 }
 0x162   : > { %7412 = vrot.lane.b32.xlu0 %v9201_v25, %s8011_s17  ;;  %v2533_v2 = vsel %vm2506_vm3, %v7125_v14, %v7129_v30  ;;  %v2531_v13 = vsel %vm2506_vm3, %v7120_v55, %v7124_v28  ;;  %v9235_v20 = vpop.permute.xlu1 %7137  ;;  %v2532_v3 = vsel %vm2506_vm3, %v7124_v28, %v7125_v14  ;;  %v6352_v50 = vpack.c.bf16 %v2534_v37, %v2526_v63  ;;  %v3806_v14 = vld [vmem:[%s8339_s30 + $0x1c0] sm:$0xff]  ;;  %v3808_v63 = vld [vmem:[%s8339_s30 + $0x1d0] sm:$0xff]  ;;  %v3809_v37 = vld [vmem:[%s8339_s30 + $0x1d8] sm:$0xff] }
 0x163   : > { %v9241_v42 = vpop.permute.xlu0 %7132  ;;  %v6340_v0 = vpack.c.bf16 %v2532_v3, %v2524_v4  ;;  %v6342_v47 = vpack.c.bf16 %v2531_v13, %v2523_v16  ;;  %v6354_v30 = vpack.c.bf16 %v2533_v2, %v2525_v59  ;;  %v9245_v55 = vpack.i.bf16 %v3798_v18, %v3797_v12  ;;  %v3800_v4 = vld [vmem:[%s8339_s30 + $0x188] sm:$0xff] }
 0x164   : > { %7427 = vrot.lane.b32.xlu1 %v9214_v57, %s8011_s17  ;;  %6353 = vmatprep.subr.bf16.mxu1 %v6352_v50  ;;  %v9250_v28 = vpack.i.bf16 %v3791_v1, %v3790_v8  ;;  %v9261_v59 = vpack.i.bf16 %v3807_v19, %v3806_v14  ;;  %v9263_v12 = vpack.i.bf16 %v3800_v4, %v3799_v33  ;;  %v7065_v1 = vunpack.i.h.bf16 %v9072_v10 }
 0x165   : > { %10966 = vst [vmem:[#allocation11_spill] sm:$0xff] %v9245_v55  ;;  %6341 = vmatprep.subr.bf16.mxu0 %v6340_v0  ;;  %6355 = vmatpush1.bf16.msra.mxu1 %v6354_v30  ;;  %v7456_v8 = vpack.i.bf16 %v8863_v52, %v8874_v45  ;;  %v7070_v0 = vunpack.i.h.bf16 %v9066_v11  ;;  %v9272_v18 = vpack.i.bf16 %v3809_v37, %v3808_v63  ;;  %v7074_v2 = vunpack.i.l.bf16 %v9105_v34 }
 0x166   : > { %7422 = vrot.lane.b32.xlu0 %v9219_v44, %s8011_s17  ;;  %10967 = vst [vmem:[#allocation12_spill] sm:$0xff] %v9250_v28  ;;  %6343 = vmatpush1.bf16.msra.mxu0 %v6342_v47  ;;  %v9255_v16 = vpop.permute.xlu1 %7147  ;;  %10968 = vst [vmem:[#allocation13_spill] sm:$0xff] %v9261_v59  ;;  %v7069_v47 = vunpack.i.l.bf16 %v9066_v11  ;;  %v10909_v3 = vunpack.i.h.bf16 %v9131_v39  ;;  %v7089_v50 = vunpack.i.l.bf16 %v9131_v39  ;;  %v7461_v45 = vpack.i.bf16 %v8885_v61, %v8868_v53 }
 0x167   : > { %v7143_v13 = vpop.permute.xlu0 %7142  ;;  %10969 = vst [vmem:[#allocation14_spill] sm:$0xff] %v9263_v12  ;;  %10970 = vst [vmem:[#allocation15_spill] sm:$0xff] %v9272_v18  ;;  %v9287_v14 = vpack.i.bf16 %v9080_v46, %v9096_v17  ;;  %v10971_v33 = vunpack.i.l.bf16 %v9072_v10  ;;  %v7149_v61 = vunpack.i.l.bf16 %v9255_v16  ;;  %v9309_v34 = vsel %vm2506_vm3, %v7070_v0, %v7074_v2 }
 0x168   : > { %7437 = vrot.lane.b32.xlu1 %v9245_v55, %s8011_s17  ;;  %v9294_v19 = vsel %vm2506_vm3, %v7069_v47, %v7070_v0  ;;  %v7145_v4 = vunpack.i.h.bf16 %v7143_v13  ;;  %v7144_v46 = vunpack.i.l.bf16 %v7143_v13  ;;  %v2512_v63 = vsel %vm2506_vm3, %v7065_v1, %v7069_v47 }
 0x169   : > { %v9299_v53 = vsel %vm2506_vm3, %v10971_v33, %v7065_v1  ;;  %v2520_v37 = vsel %vm2506_vm3, %v7089_v50, %v10909_v3  ;;  %v7095_v10 = vunpack.i.h.bf16 %v9165_v49  ;;  %v7094_v33 = vunpack.i.l.bf16 %v9165_v49 }
 0x16a   : > { %7432 = vrot.lane.b32.xlu0 %v9250_v28, %s8011_s17  ;;  %v9277_v30 = vpop.permute.xlu1 %7157  ;;  %v10972_v13 = vunpack.i.h.bf16 %v9139_v58  ;;  %v7134_v1 = vunpack.i.l.bf16 %v9241_v42  ;;  %v7150_v0 = vunpack.i.h.bf16 %v9255_v16  ;;  %v2540_v58 = vsel %vm2506_vm3, %v7145_v4, %v7149_v61 }
 0x16b   : > { %v9279_v52 = vpop.permute.xlu0 %7152  ;;  %v6360_v28 = vpack.c.bf16 %v2520_v37, %v2512_v63  ;;  %v7140_v7 = vunpack.i.h.bf16 %v9235_v20  ;;  %v10974_v63 = vunpack.i.h.bf16 %v9241_v42  ;;  %v10980_v42 = vpack.i.bf16 %v9093_v29, %v8917_v51 }
 0x16c   : > { %7447 = vrot.lane.b32.xlu1 %v9261_v59, %s8011_s17  ;;  %v10981_v51 = vunpack.i.l.bf16 %v9279_v52 }
 0x16e   : > { %7442 = vrot.lane.b32.xlu0 %v9263_v12, %s8011_s17  ;;  %v7168_v17 = vpop.permute.xlu1 %7167  ;;  %v2519_v12 = vsel %vm2506_vm3, %v10972_v13, %v7089_v50  ;;  %v2539_v50 = vsel %vm2506_vm3, %v7144_v46, %v7145_v4  ;;  %v9348_v46 = vld [vmem:[%s10878_s3 + $0x10] sm:$0xff] }
 0x16f   : > { %v7170_v11 = vunpack.i.h.bf16 %v7168_v17  ;;  %v7169_v59 = vunpack.i.l.bf16 %v7168_v17  ;;  %v9313_v55 = vpop.permute.xlu0 %7162  ;;  %v6362_v49 = vpack.c.bf16 %v2519_v12, %v9299_v53  ;;  %v10973_v12 = vunpack.i.l.bf16 %v9279_v52 }
 0x170   : > { %v7165_v3 = vunpack.i.h.bf16 %v9313_v55  ;;  %7457 = vrot.lane.b32.xlu1 %v7456_v8, %s8012_s20  ;;  %v7110_v8 = vunpack.i.h.bf16 %v9177_v60 }
 0x171   : > { %v2548_v2 = vsel %vm2506_vm3, %v7169_v59, %v7170_v11  ;;  %v2542_v53 = vsel %vm2506_vm3, %v7150_v0, %v10973_v12 }
 0x172   : > { %7452 = vrot.lane.b32.xlu0 %v9272_v18, %s8011_s17  ;;  %v2547_v17 = vsel %vm2506_vm3, %v7165_v3, %v7169_v59  ;;  %v9330_v13 = vpop.permute.xlu1 %7177  ;;  %v6344_v47 = vpack.c.bf16 %v2548_v2, %v2540_v58  ;;  %v2522_v18 = vsel %vm2506_vm3, %v7094_v33, %v7095_v10  ;;  %v7139_v59 = vunpack.i.l.bf16 %v9235_v20 }
 0x173   : > { %v7173_v16 = vpop.permute.xlu0 %7172  ;;  %v6346_v5 = vpack.c.bf16 %v2547_v17, %v2539_v50  ;;  %v2541_v3 = vsel %vm2506_vm3, %v7149_v61, %v7150_v0  ;;  %v7180_v20 = vunpack.i.h.bf16 %v9330_v13  ;;  %v7179_v61 = vunpack.i.l.bf16 %v9330_v13 }
 0x174   : > { %v7175_v40 = vunpack.i.h.bf16 %v7173_v16  ;;  %v7174_v4 = vunpack.i.l.bf16 %v7173_v16  ;;  %7467 = vrot.lane.b32.xlu1 %v8934_v54, %s8012_s20  ;;  %6345 = vmatprep.subr.bf16.mxu0 %v6344_v47  ;;  %v2536_v54 = vsel %vm2506_vm3, %v7134_v1, %v10974_v63  ;;  %v7119_v10 = vunpack.i.l.bf16 %v9193_v24 }
 0x175   : > { %6347 = vmatpush1.bf16.msra.mxu0 %v6346_v5  ;;  %v7115_v47 = vunpack.i.h.bf16 %v9195_v9  ;;  %v10975_v50 = vunpack.i.h.bf16 %v9131_v39  ;;  %v7159_v13 = vunpack.i.l.bf16 %v9277_v30  ;;  %v2528_v24 = vsel %vm2506_vm3, %v7110_v8, %v7114_v35 }
 0x176   : > { %7462 = vrot.lane.b32.xlu0 %v7461_v45, %s8012_s20  ;;  %v2549_v45 = vsel %vm2506_vm3, %v7170_v11, %v7174_v4  ;;  %v9356_v5 = vpop.permute.xlu1 %7187  ;;  %6361 = vmatprep.subr.bf16.mxu0 %v6360_v28  ;;  %v2550_v37 = vsel %vm2506_vm3, %v7174_v4, %v7175_v40  ;;  %v7155_v11 = vunpack.i.h.bf16 %v9279_v52  ;;  %v10976_v28 = vpack.i.bf16 %v8898_v48, %v8871_v6 }
 0x177   : > { %v7183_v0 = vpop.permute.xlu0 %7182  ;;  %v6356_v58 = vpack.c.bf16 %v2550_v37, %v2542_v53  ;;  %v6358_v2 = vpack.c.bf16 %v2549_v45, %v2541_v3  ;;  %v2521_v17 = vsel %vm2506_vm3, %v10975_v50, %v7094_v33  ;;  %v10977_v9 = vunpack.i.h.bf16 %v9210_v15 }
 0x178   : > { %7477 = vrot.lane.b32.xlu1 %v10976_v28, %s8012_s20  ;;  %6199 = vmatmul.mubr.msk.f32.vlgmr.msra.gmra.mrb[8].mxu0 %vm1556_vm1, %v9348_v46  ;;  %v6364_v33 = vpack.c.bf16 %v2536_v54, %v2528_v24  ;;  %v6372_v16 = vpack.c.bf16 %v2522_v18, %v9309_v34  ;;  %v7185_v4 = vunpack.i.h.bf16 %v7183_v0  ;;  %v7184_v3 = vunpack.i.l.bf16 %v7183_v0 }
 0x179   : > { %v2535_v39 = vsel %vm2506_vm3, %v10977_v9, %v7134_v1  ;;  %6357 = vmatprep.subr.bf16.mxu1 %v6356_v58  ;;  %6363 = vmatpush1.bf16.msra.mxu0 %v6362_v49  ;;  %v2552_v48 = vsel %vm2506_vm3, %v7179_v61, %v7180_v20  ;;  %v2538_v12 = vsel %vm2506_vm3, %v7139_v59, %v7140_v7  ;;  %v10978_v15 = vunpack.i.l.bf16 %v9177_v60 }
 0x17a   : > { %7472 = vrot.lane.b32.xlu0 %v8943_v38, %s8012_s20  ;;  %6359 = vmatpush1.bf16.msra.mxu1 %v6358_v2  ;;  %v9379_v6 = vpop.permute.xlu1 %7197  ;;  %v6374_v38 = vpack.c.bf16 %v2521_v17, %v9294_v19  ;;  %v2530_v18 = vsel %vm2506_vm3, %v7115_v47, %v7119_v10  ;;  %v10979_v34 = vmov %v10974_v63  ;;  %v7164_v63 = vunpack.i.l.bf16 %v9313_v55 }
 0x17b   : > { %v2527_v1 = vsel %vm2506_vm3, %v10978_v15, %v7110_v8  ;;  %v9386_v53 = vpop.permute.xlu0 %7192  ;;  %6365 = vmatprep.subr.bf16.mxu0 %v6364_v33  ;;  %6373 = vmatprep.subr.bf16.mxu1 %v6372_v16  ;;  %v2537_v49 = vsel %vm2506_vm3, %v10979_v34, %v7139_v59  ;;  %v2544_v60 = vsel %vm2506_vm3, %v7155_v11, %v7159_v13  ;;  %v7160_v54 = vunpack.i.h.bf16 %v9277_v30 }
 0x17c   : > { %7487 = vrot.lane.b32.xlu1 %v9287_v14, %s8012_s20  ;;  %v6366_v7 = vpack.c.bf16 %v2535_v39, %v2527_v1  ;;  %2812 = vmatprep.mubr.f32.mxu0 %v10948_v31  ;;  %v2551_v19 = vsel %vm2506_vm3, %v7175_v40, %v7179_v61  ;;  %v6368_v55 = vpack.c.bf16 %v2552_v48, %v2544_v60  ;;  %v7190_v10 = vunpack.i.h.bf16 %v9356_v5 }
 0x17d   : > { %6200 = vmatmul.mubr.msk.f32.vlgmr.msra.gmra.mrb[8].mxu1 %vm1556_vm1, %v9348_v46  ;;  %v6376_v8 = vpack.c.bf16 %v2538_v12, %v2530_v18  ;;  %v2529_v59 = vsel %vm2506_vm3, %v7114_v35, %v7115_v47  ;;  %v2554_v40 = vsel %vm2506_vm3, %v7184_v3, %v7185_v4  ;;  %v7501_v61 = vpack.i.bf16 %v9126_v32, %v8914_v36 }
 0x17e   : > { %7482 = vrot.lane.b32.xlu0 %v10980_v42, %s8012_s20  ;;  %6367 = vmatpush1.bf16.msra.mxu0 %v6366_v7  ;;  %v9409_v45 = vpop.permute.xlu1 %7207  ;;  %v2543_v37 = vsel %vm2506_vm3, %v10981_v51, %v7155_v11  ;;  %v7189_v0 = vunpack.i.l.bf16 %v9356_v5  ;;  %v6378_v47 = vpack.c.bf16 %v2537_v49, %v2529_v59  ;;  %v2553_v58 = vsel %vm2506_vm3, %v7180_v20, %v7184_v3 }
 0x17f   : > { %6375 = vmatpush1.bf16.msra.mxu1 %v6374_v38  ;;  %v9419_v35 = vpop.permute.xlu0 %7202  ;;  %6369 = vmatprep.subr.bf16.mxu0 %v6368_v55  ;;  %v6370_v36 = vpack.c.bf16 %v2551_v19, %v2543_v37  ;;  %v2546_v52 = vsel %vm2506_vm3, %v7160_v54, %v7164_v63  ;;  %v7199_v2 = vunpack.i.l.bf16 %v9379_v6  ;;  %v7195_v5 = vunpack.i.h.bf16 %v9386_v53 }
 0x180   : > { %6377 = vmatprep.subr.bf16.mxu1 %v6376_v8  ;;  %7497 = vrot.lane.b32.xlu1 %v9170_v43, %s8012_s20  ;;  %v7194_v50 = vunpack.i.l.bf16 %v9386_v53  ;;  %v6380_v17 = vpack.c.bf16 %v2554_v40, %v2546_v52  ;;  %v2545_v11 = vsel %vm2506_vm3, %v7159_v13, %v7160_v54  ;;  %v3060_v28 = vsel %vm3059_vm4, %v7189_v0, %v7190_v10 }
 0x181   : > { %2883 = vmatprep.mubr.f32.mxu1 %v10948_v31  ;;  %v7210_v33 = vunpack.i.h.bf16 %v9409_v45  ;;  %v6382_v3 = vpack.c.bf16 %v2553_v58, %v2545_v11  ;;  %v3063_v13 = vsel %vm3059_vm4, %v7195_v5, %v7199_v2  ;;  %v7536_v42 = vpack.i.bf16 %v8895_v21, %v8882_v23  ;;  %v10985_v58 = vld [vmem:[#allocation5_spill] sm:$0xff] }
 0x182   : > { %7492 = vrot.lane.b32.xlu0 %v9173_v26, %s8012_s20  ;;  %6371 = vmatpush1.bf16.msra.mxu0 %v6370_v36  ;;  %v9431_v20 = vpop.permute.xlu1 %7217  ;;  %v3061_v30 = vsel %vm3059_vm4, %v7190_v10, %v7194_v50  ;;  %v3062_v18 = vsel %vm3059_vm4, %v7194_v50, %v7195_v5  ;;  %v7531_v55 = vpack.i.bf16 %v8879_v27, %v8888_v62  ;;  %v10982_v27 = vld [vmem:[#allocation9_spill] sm:$0xff]  ;;  %v10983_v62 = vld [vmem:[#allocation8_spill] sm:$0xff]  ;;  %v10986_v36 = vld [vmem:[#allocation6_spill] sm:$0xff] }
 0x183   : > { %6379 = vmatpush1.bf16.msra.mxu1 %v6378_v47  ;;  %v7220_v24 = vunpack.i.h.bf16 %v9431_v20  ;;  %v7219_v9 = vunpack.i.l.bf16 %v9431_v20  ;;  %v7213_v39 = vpop.permute.xlu0 %7212  ;;  %v7556_v10 = vpack.i.bf16 %v10983_v62, %v10982_v27  ;;  %v10984_v47 = vld [vmem:[#allocation7_spill] sm:$0xff]  ;;  %v7551_v52 = vpack.i.bf16 %v10986_v36, %v10985_v58  ;;  %v7869_v27 = vld [vmem:[%s8339_s30 + $0x68] sm:$0xff] }
 0x184   : > { %6381 = vmatprep.subr.bf16.mxu1 %v6380_v17  ;;  %v7215_v16 = vunpack.i.h.bf16 %v7213_v39  ;;  %v7214_v4 = vunpack.i.l.bf16 %v7213_v39  ;;  %7507 = vrot.lane.b32.xlu1 %v9183_v22, %s8012_s20  ;;  %v10993_v58 = vld [vmem:[#allocation14_spill] sm:$0xff]  ;;  %v9549_v36 = vld [vmem:[%s8339_s30 + $0xb0] sm:$0xff] }
 0x185   : > { %v3071_v48 = vsel %vm3059_vm4, %v7219_v9, %v7220_v24  ;;  %6201 = vmatmul.mubr.msk.f32.vlgmr.msra.gmra.mrb[10].mxu0 %vm1556_vm1, %v9348_v46  ;;  %10994 = vst [vmem:[#allocation6_spill] sm:$0xff] %v9549_v36 }
 0x186   : > { %7502 = vrot.lane.b32.xlu0 %v7501_v61, %s8012_s20  ;;  %v3070_v12 = vsel %vm3059_vm4, %v7215_v16, %v7219_v9  ;;  %v3068_v15 = vsel %vm3059_vm4, %v7210_v33, %v7214_v4  ;;  %v9454_v1 = vpop.permute.xlu1 %7227  ;;  %v3069_v53 = vsel %vm3059_vm4, %v7214_v4, %v7215_v16  ;;  %v6396_v38 = vpack.c.bf16 %v3071_v48, %v3063_v13 }
 0x187   : > { %6383 = vmatpush1.bf16.msra.mxu1 %v6382_v3  ;;  %v9458_v34 = vpop.permute.xlu0 %7222  ;;  %v6384_v49 = vpack.c.bf16 %v3069_v53, %v3061_v30  ;;  %v6386_v63 = vpack.c.bf16 %v3068_v15, %v3060_v28  ;;  %3223 = vmatprep.mubr.f32.mxu0 %v10948_v31  ;;  %v6398_v7 = vpack.c.bf16 %v3070_v12, %v3062_v18  ;;  %v10987_v18 = vld [vmem:[#allocation12_spill] sm:$0xff] }
 0x188   : > { %7517 = vrot.lane.b32.xlu1 %v9199_v41, %s8012_s20  ;;  %6397 = vmatprep.subr.bf16.mxu1 %v6396_v38 }
 0x189   : > { %6385 = vmatprep.subr.bf16.mxu0 %v6384_v49  ;;  %v10988_v49 = vld [vmem:[#allocation10_spill] sm:$0xff] }
 0x18a   : > { %7512 = vrot.lane.b32.xlu0 %v9201_v25, %s8012_s20  ;;  %6202 = vmatmul.mubr.msk.f32.vlgmr.msra.gmra.mrb[10].mxu1 %vm1556_vm1, %v9348_v46  ;;  %v7238_v60 = vpop.permute.xlu1 %7237 }
 0x18b   : > { %6387 = vmatpush1.bf16.msra.mxu0 %v6386_v63  ;;  %6399 = vmatpush1.bf16.msra.mxu1 %v6398_v7  ;;  %v7233_v19 = vpop.permute.xlu0 %7232  ;;  %v7239_v59 = vunpack.i.l.bf16 %v7238_v60  ;;  %v7240_v0 = vunpack.i.h.bf16 %v7238_v60  ;;  %v7862_v7 = vld [vmem:[%s8339_s30 + $0x20] sm:$0xff]  ;;  %v7863_v60 = vld [vmem:[%s8339_s30 + $0x28] sm:$0xff] }
 0x18c   : > { %3294 = vmatprep.mubr.f32.mxu1 %v10948_v31  ;;  %7527 = vrot.lane.b32.xlu1 %v9214_v57, %s8012_s20  ;;  %v7235_v54 = vunpack.i.h.bf16 %v7233_v19  ;;  %v7234_v40 = vunpack.i.l.bf16 %v7233_v19  ;;  %v9526_v19 = vpack.i.bf16 %v7863_v60, %v7862_v7 }
 0x18d   : > { %v3078_v3 = vsel %vm3059_vm4, %v7239_v59, %v7240_v0 }
 0x18e   : > { %7522 = vrot.lane.b32.xlu0 %v9219_v44, %s8012_s20  ;;  %v9476_v8 = vpop.permute.xlu1 %7247  ;;  %v3077_v5 = vsel %vm3059_vm4, %v7235_v54, %v7239_v59  ;;  %v3076_v17 = vsel %vm3059_vm4, %v7234_v40, %v7235_v54  ;;  %10989 = vst [vmem:[#allocation9_spill] sm:$0xff] %v9526_v19  ;;  %v7864_v59 = vld [vmem:[%s8339_s30 + $0x18] sm:$0xff]  ;;  %v7865_v54 = vld [vmem:[%s8339_s30 + $0x10] sm:$0xff] }
 0x18f   : > { %v9478_v46 = vpop.permute.xlu0 %7242  ;;  %v9533_v40 = vpack.i.bf16 %v7864_v59, %v7865_v54  ;;  %v10999_v54 = vld [vmem:[#allocation13_spill] sm:$0xff] }
 0x190   : > { %7537 = vrot.lane.b32.xlu1 %v7536_v42, %s8012_s20  ;;  %v10918_v11 = vunpack.i.l.bf16 %v9478_v46  ;;  %v7200_v42 = vunpack.i.h.bf16 %v9379_v6 }
 0x191   : > { %10990 = vst [vmem:[#allocation8_spill] sm:$0xff] %v9533_v40 }
 0x192   : > { %7532 = vrot.lane.b32.xlu0 %v7531_v55, %s8012_s20  ;;  %v7258_v61 = vpop.permute.xlu1 %7257  ;;  %v3079_v48 = vsel %vm3059_vm4, %v7240_v0, %v10918_v11  ;;  %v7205_v0 = vunpack.i.h.bf16 %v9419_v35 }
 0x193   : > { %v7260_v51 = vunpack.i.h.bf16 %v7258_v61  ;;  %v7259_v23 = vunpack.i.l.bf16 %v7258_v61  ;;  %v9482_v21 = vpop.permute.xlu0 %7252  ;;  %v7866_v61 = vld [vmem:[%s8339_s30 + $0x70] sm:$0xff] }
 0x194   : > { %v7255_v37 = vunpack.i.h.bf16 %v9482_v21  ;;  %7547 = vrot.lane.b32.xlu1 %v8960_v56, %s8012_s20 }
 0x195   : > { %v3085_v50 = vsel %vm3059_vm4, %v7259_v23, %v7260_v51 }
 0x196   : > { %7542 = vrot.lane.b32.xlu0 %v10984_v47, %s8012_s20  ;;  %v3084_v56 = vsel %vm3059_vm4, %v7255_v37, %v7259_v23  ;;  %v9498_v28 = vpop.permute.xlu1 %7267  ;;  %v6388_v9 = vpack.c.bf16 %v3085_v50, %v3077_v5  ;;  %v7868_v37 = vld [vmem:[%s8339_s30 + $0x60] sm:$0xff]  ;;  %v7204_v47 = vunpack.i.l.bf16 %v9419_v35  ;;  %v10995_v5 = vld [vmem:[#allocation11_spill] sm:$0xff]  ;;  %v7871_v50 = vld [vmem:[%s8339_s30 + $0x8] sm:$0xff] }
 0x197   : > { %v9500_v39 = vpop.permute.xlu0 %7262  ;;  %v6390_v33 = vpack.c.bf16 %v3084_v56, %v3076_v17  ;;  %v9541_v62 = vpack.i.bf16 %v7869_v27, %v7868_v37  ;;  %v7872_v17 = vld [vmem:[%s8339_s30 + $0x58] sm:$0xff]  ;;  %v7270_v27 = vunpack.i.h.bf16 %v9498_v28 }
 0x198   : > { %v10919_v16 = vunpack.i.h.bf16 %v9500_v39  ;;  %v7264_v4 = vunpack.i.l.bf16 %v9500_v39  ;;  %7557 = vrot.lane.b32.xlu1 %v7556_v10, %s8012_s20  ;;  %6389 = vmatprep.subr.bf16.mxu0 %v6388_v9  ;;  %v7209_v10 = vunpack.i.l.bf16 %v9409_v45  ;;  %v9557_v56 = vpack.i.bf16 %v7872_v17, %v7871_v50  ;;  %v9560_v45 = vld [vmem:[%s8339_s30 + $0xa8] sm:$0xff] }
 0x199   : > { %6391 = vmatpush1.bf16.msra.mxu0 %v6390_v33  ;;  %10992 = vst [vmem:[#allocation5_spill] sm:$0xff] %v9541_v62  ;;  %10997 = vst [vmem:[#allocation10_spill] sm:$0xff] %v9560_v45  ;;  %v7230_v9 = vunpack.i.h.bf16 %v9454_v1  ;;  %v7229_v33 = vunpack.i.l.bf16 %v9454_v1  ;;  %v10998_v1 = vld [vmem:[#allocation15_spill] sm:$0xff]  ;;  %v3065_v7 = vsel %vm3059_vm4, %v7200_v42, %v7204_v47 }
 0x19a   : > { %7552 = vrot.lane.b32.xlu0 %v7551_v52, %s8012_s20  ;;  %v3086_v30 = vsel %vm3059_vm4, %v7260_v51, %v7264_v4  ;;  %v9508_v13 = vpop.permute.xlu1 %7277  ;;  %v3087_v12 = vsel %vm3059_vm4, %v7264_v4, %v10919_v16  ;;  %v7867_v51 = vld [vmem:[%s8339_s30 + $0x78] sm:$0xff]  ;;  %10996 = vst [vmem:[#allocation12_spill] sm:$0xff] %v9557_v56  ;;  %v7225_v4 = vunpack.i.h.bf16 %v9458_v34 }
 0x19b   : > { %v9516_v15 = vpop.permute.xlu0 %7272  ;;  %v6400_v53 = vpack.c.bf16 %v3087_v12, %v3079_v48  ;;  %v6402_v38 = vpack.c.bf16 %v3086_v30, %v3078_v3  ;;  %v9537_v23 = vpack.i.bf16 %v7867_v51, %v7866_v61  ;;  %v7224_v3 = vunpack.i.l.bf16 %v9458_v34 }
 0x19c   : > { %7567 = vrot.lane.b32.xlu1 %v10987_v18, %s8012_s20  ;;  %v9573_v48 = vsel %vm3059_vm4, %v7199_v2, %v7200_v42  ;;  %v3067_v34 = vsel %vm3059_vm4, %v7205_v0, %v7209_v10  ;;  %v7279_v60 = vunpack.i.l.bf16 %v9508_v13  ;;  %v9592_v61 = vsel %vm3059_vm4, %v7225_v4, %v7229_v33 }
 0x19d   : > { %6401 = vmatprep.subr.bf16.mxu1 %v6400_v53  ;;  %10991 = vst [vmem:[#allocation7_spill] sm:$0xff] %v9537_v23  ;;  %v9578_v53 = vsel %vm3059_vm4, %v7204_v47, %v7205_v0  ;;  %v9597_v42 = vsel %vm3059_vm4, %v7220_v24, %v7224_v3  ;;  %v3075_v37 = vsel %vm3059_vm4, %v7229_v33, %v7230_v9  ;;  %v7275_v20 = vunpack.i.h.bf16 %v9516_v15 }
 0x19e   : > { %7562 = vrot.lane.b32.xlu0 %v10988_v49, %s8012_s20  ;;  %6403 = vmatpush1.bf16.msra.mxu1 %v6402_v38  ;;  %v9522_v63 = vpop.permute.xlu1 %7287  ;;  %v7280_v38 = vunpack.i.h.bf16 %v9508_v13  ;;  %v3073_v13 = vsel %vm3059_vm4, %v7224_v3, %v7225_v4  ;;  %v7274_v52 = vunpack.i.l.bf16 %v9516_v15 }
 0x19f   : > { %v9529_v55 = vpop.permute.xlu0 %7282  ;;  %v10920_v6 = vunpack.i.l.bf16 %v9522_v63  ;;  %v6408_v15 = vpack.c.bf16 %v3073_v13, %v3065_v7 }
 0x1a0   : > { %7577 = vrot.lane.b32.xlu1 %v10993_v58, %s8012_s20  ;;  %v7285_v2 = vunpack.i.h.bf16 %v9529_v55  ;;  %v7284_v59 = vunpack.i.l.bf16 %v9529_v55  ;;  %v7269_v55 = vunpack.i.l.bf16 %v9498_v28  ;;  %v3092_v9 = vsel %vm3059_vm4, %v7279_v60, %v7280_v38 }
 0x1a2   : > { %7572 = vrot.lane.b32.xlu0 %v10995_v5, %s8012_s20  ;;  %v9568_v30 = vpop.permute.xlu1 %7297  ;;  %v3093_v28 = vsel %vm3059_vm4, %v7280_v38, %v7284_v59  ;;  %v3095_v33 = vsel %vm3059_vm4, %v7285_v2, %v10920_v6  ;;  %v3094_v38 = vsel %vm3059_vm4, %v7284_v59, %v7285_v2  ;;  %v6420_v2 = vpack.c.bf16 %v3075_v37, %v3067_v34 }
 0x1a3   : > { %v9575_v12 = vpop.permute.xlu0 %7292  ;;  %v7300_v24 = vunpack.i.h.bf16 %v9568_v30  ;;  %v6410_v59 = vpack.c.bf16 %v9597_v42, %v9573_v48  ;;  %v3089_v7 = vsel %vm3059_vm4, %v7269_v55, %v7270_v27  ;;  %v11001_v37 = vpack.i.bf16 %v9093_v29, %v9549_v36 }
 0x1a4   : > { %7587 = vrot.lane.b32.xlu1 %v10998_v1, %s8012_s20  ;;  %v7249_v1 = vunpack.i.l.bf16 %v9476_v8  ;;  %v7294_v13 = vunpack.i.l.bf16 %v9575_v12 }
 0x1a6   : > { %7582 = vrot.lane.b32.xlu0 %v10999_v54, %s8012_s20  ;;  %v9599_v51 = vpop.permute.xlu1 %7307 }
 0x1a7   : > { %v10922_v10 = vunpack.i.h.bf16 %v9599_v51  ;;  %v7309_v0 = vunpack.i.l.bf16 %v9599_v51  ;;  %v7303_v47 = vpop.permute.xlu0 %7302 }
 0x1a8   : > { %v7305_v50 = vunpack.i.h.bf16 %v7303_v47  ;;  %v7304_v17 = vunpack.i.l.bf16 %v7303_v47  ;;  %7597 = vrot.lane.b32.xlu1 %v9526_v19, %s8013_s12 }
 0x1a9   : > { %v3103_v4 = vsel %vm3059_vm4, %v7309_v0, %v10922_v10  ;;  %v7245_v10 = vunpack.i.h.bf16 %v9478_v46 }
 0x1aa   : > { %7592 = vrot.lane.b32.xlu0 %v9533_v40, %s8013_s12  ;;  %v3102_v3 = vsel %vm3059_vm4, %v7305_v50, %v7309_v0  ;;  %v3100_v47 = vsel %vm3059_vm4, %v7300_v24, %v7304_v17  ;;  %v9623_v35 = vpop.permute.xlu1 %7317  ;;  %v3101_v60 = vsel %vm3059_vm4, %v7304_v17, %v7305_v50  ;;  %v6404_v11 = vpack.c.bf16 %v3103_v4, %v3095_v33  ;;  %v9946_v40 = vld [vmem:[%s8339_s30 + $0x1c8] sm:$0xff] }
 0x1ab   : > { %v9628_v16 = vpop.permute.xlu0 %7312  ;;  %v6392_v6 = vpack.c.bf16 %v3101_v60, %v3093_v28  ;;  %v6394_v19 = vpack.c.bf16 %v3100_v47, %v3092_v9  ;;  %v7254_v0 = vunpack.i.l.bf16 %v9482_v21  ;;  %v6406_v24 = vpack.c.bf16 %v3102_v3, %v3094_v38 }
 0x1ac   : > { %7607 = vrot.lane.b32.xlu1 %v9537_v23, %s8013_s12  ;;  %6405 = vmatprep.subr.bf16.mxu1 %v6404_v11  ;;  %v7250_v50 = vunpack.i.h.bf16 %v9476_v8  ;;  %v7315_v17 = vunpack.i.h.bf16 %v9628_v16  ;;  %v7314_v21 = vunpack.i.l.bf16 %v9628_v16  ;;  %v9647_v11 = vld [vmem:[%s10878_s3 + $0x18] sm:$0xff]  ;;  %v7320_v34 = vunpack.i.h.bf16 %v9623_v35 }
 0x1ad   : > { %6393 = vmatprep.subr.bf16.mxu0 %v6392_v6  ;;  %6407 = vmatpush1.bf16.msra.mxu1 %v6406_v24  ;;  %v7319_v48 = vunpack.i.l.bf16 %v9623_v35  ;;  %v6422_v16 = vpack.c.bf16 %v9592_v61, %v9578_v53  ;;  %v11000_v6 = vunpack.i.h.bf16 %v9500_v39  ;;  %v3081_v35 = vsel %vm3059_vm4, %v7245_v10, %v7249_v1  ;;  %v9932_v23 = vld [vmem:[%s8339_s30 + $0x1b8] sm:$0xff] }
 0x1ae   : > { %7602 = vrot.lane.b32.xlu0 %v9541_v62, %s8013_s12  ;;  %6395 = vmatpush1.bf16.msra.mxu0 %v6394_v19  ;;  %v9642_v9 = vpop.permute.xlu1 %7327  ;;  %v3091_v19 = vsel %vm3059_vm4, %v7274_v52, %v7275_v20  ;;  %v3083_v28 = vsel %vm3059_vm4, %v7250_v50, %v7254_v0  ;;  %v3090_v53 = vsel %vm3059_vm4, %v7270_v27, %v7274_v52  ;;  %v7299_v61 = vunpack.i.l.bf16 %v9568_v30  ;;  %v7874_v27 = vld [vmem:[%s8339_s30 + $0x10] sm:$0xff] }
 0x1af   : > { %v9652_v8 = vpop.permute.xlu0 %7322  ;;  %6409 = vmatprep.subr.bf16.mxu0 %v6408_v15  ;;  %6421 = vmatprep.subr.bf16.mxu1 %v6420_v2  ;;  %v3088_v42 = vsel %vm3059_vm4, %v11000_v6, %v7269_v55  ;;  %v7295_v39 = vunpack.i.h.bf16 %v9575_v12  ;;  %v6412_v29 = vpack.c.bf16 %v3089_v7, %v3081_v35  ;;  %v7290_v55 = vunpack.i.h.bf16 %v9522_v63  ;;  %v7875_v12 = vld [vmem:[%s8339_s30 + $0x60] sm:$0xff]  ;;  %v9719_v6 = vld [vmem:[%s8339_s30 + $0x18] sm:$0xff] }
 0x1b0   : > { %7617 = vrot.lane.b32.xlu1 %v11001_v37, %s8013_s12  ;;  %6206 = vmatmul.mubr.msk.f32.vlgmr.msra.gmra.mrb[12].mxu1 %vm1556_vm1, %v9647_v11  ;;  %v6424_v52 = vpack.c.bf16 %v3091_v19, %v3083_v28  ;;  %v3105_v30 = vsel %vm3059_vm4, %v7314_v21, %v7315_v17  ;;  %v6432_v33 = vpack.c.bf16 %v7875_v12, %v7874_v27  ;;  %v11002_v3 = vunpack.i.l.bf16 %v9478_v46  ;;  %v9760_v12 = vld [vmem:[%s8339_s30 + $0xb8] sm:$0xff]  ;;  %v7924_v27 = vld [vmem:[%s8339_s30 + $0xe8] sm:$0xff] }
 0x1b1   : > { %6205 = vmatmul.mubr.msk.f32.vlgmr.msra.gmra.mrb[12].mxu0 %vm1556_vm1, %v9647_v11  ;;  %v3082_v4 = vsel %vm3059_vm4, %v7249_v1, %v7250_v50  ;;  %6423 = vmatpush1.bf16.msra.mxu1 %v6422_v16  ;;  %v3107_v38 = vsel %vm3059_vm4, %v7319_v48, %v7320_v34  ;;  %v3097_v1 = vsel %vm3059_vm4, %v7290_v55, %v7294_v13  ;;  %v11003_v46 = vunpack.i.h.bf16 %v9599_v51  ;;  %v7876_v50 = vld [vmem:[%s8339_s30 + $0x20] sm:$0xff] }
 0x1b2   : > { %7612 = vrot.lane.b32.xlu0 %v9557_v56, %s8013_s12  ;;  %6411 = vmatpush1.bf16.msra.mxu0 %v6410_v59  ;;  %v9677_v20 = vpop.permute.xlu1 %7337  ;;  %v3080_v47 = vsel %vm3059_vm4, %v11002_v3, %v7245_v10  ;;  %v6426_v24 = vpack.c.bf16 %v3090_v53, %v3082_v4  ;;  %v6416_v15 = vpack.c.bf16 %v3105_v30, %v3097_v1  ;;  %v11004_v7 = vunpack.i.l.bf16 %v9522_v63  ;;  %v9722_v63 = vld [vmem:[%s8339_s30 + $0x68] sm:$0xff]  ;;  %v9755_v30 = vld [vmem:[%s8339_s30 + $0xf8] sm:$0xff]  ;;  %v9774_v1 = vld [vmem:[%s8339_s30 + $0x150] sm:$0xff] }
 0x1b3   : > { %v9686_v60 = vpop.permute.xlu0 %7332  ;;  %6413 = vmatprep.subr.bf16.mxu0 %v6412_v29  ;;  %6425 = vmatprep.subr.bf16.mxu1 %v6424_v52  ;;  %v6414_v0 = vpack.c.bf16 %v3088_v42, %v3080_v47  ;;  %v3104_v10 = vsel %vm3059_vm4, %v11003_v46, %v7314_v21  ;;  %v3099_v2 = vsel %vm3059_vm4, %v7295_v39, %v7299_v61  ;;  %v7877_v21 = vld [vmem:[%s8339_s30 + $0x70] sm:$0xff]  ;;  %v9737_v29 = vld [vmem:[%s8339_s30 + $0x100] sm:$0xff]  ;;  %v9752_v52 = vld [vmem:[%s8339_s30 + $0xa8] sm:$0xff] }
 0x1b4   : > { %7627 = vrot.lane.b32.xlu1 %v9173_v26, %s8013_s12  ;;  %3365 = vmatprep.mubr.f32.mxu0 %v10948_v31  ;;  %v3106_v26 = vsel %vm3059_vm4, %v7315_v17, %v7319_v48  ;;  %v6428_v51 = vpack.c.bf16 %v3107_v38, %v3099_v2  ;;  %v3096_v34 = vsel %vm3059_vm4, %v11004_v7, %v7290_v55  ;;  %v9711_v17 = vld [vmem:[%s8339_s30 + $0x8] sm:$0xff]  ;;  %v9714_v48 = vld [vmem:[%s8339_s30 + $0x58] sm:$0xff]  ;;  %v9734_v61 = vld [vmem:[%s8339_s30 + $0xb0] sm:$0xff] }
 0x1b5   : > { %3436 = vmatprep.mubr.f32.mxu1 %v10948_v31  ;;  %6427 = vmatpush1.bf16.msra.mxu1 %v6426_v24  ;;  %v6434_v19 = vpack.c.bf16 %v9714_v48, %v9711_v17  ;;  %v6446_v42 = vpack.c.bf16 %v9722_v63, %v9719_v6  ;;  %v3098_v37 = vsel %vm3059_vm4, %v7294_v13, %v7295_v39  ;;  %v9742_v39 = vld [vmem:[%s8339_s30 + $0xc0] sm:$0xff]  ;;  %v9763_v4 = vld [vmem:[%s8339_s30 + $0x108] sm:$0xff]  ;;  %v7890_v47 = vld [vmem:[%s8339_s30 + $0x38] sm:$0xff] }
 0x1b6   : > { %7622 = vrot.lane.b32.xlu0 %v9287_v14, %s8013_s12  ;;  %6415 = vmatpush1.bf16.msra.mxu0 %v6414_v0  ;;  %v9700_v59 = vpop.permute.xlu1 %7347  ;;  %v6444_v14 = vpack.c.bf16 %v7877_v21, %v7876_v50  ;;  %v11005_v35 = vpack.i.bf16 %v9126_v32, %v9560_v45  ;;  %v6418_v28 = vpack.c.bf16 %v3104_v10, %v3096_v34  ;;  %v9745_v32 = vld [vmem:[%s8339_s30 + $0x110] sm:$0xff]  ;;  %v9777_v46 = vld [vmem:[%s8339_s30 + $0x1a0] sm:$0xff]  ;;  %v9800_v21 = vld [vmem:[%s8339_s30 + $0x158] sm:$0xff] }
 0x1b7   : > { %6417 = vmatprep.subr.bf16.mxu0 %v6416_v15  ;;  %6429 = vmatprep.subr.bf16.mxu1 %v6428_v51  ;;  %v6430_v53 = vpack.c.bf16 %v3106_v26, %v3098_v37  ;;  %v6436_v13 = vpack.c.bf16 %v9737_v29, %v9734_v61  ;;  %v6448_v55 = vpack.c.bf16 %v9745_v32, %v9742_v39  ;;  %v7891_v38 = vld [vmem:[%s8339_s30 + $0x30] sm:$0xff]  ;;  %v9782_v15 = vld [vmem:[%s8339_s30 + $0x160] sm:$0xff]  ;;  %v9790_v51 = vld [vmem:[%s8339_s30 + $0x148] sm:$0xff] }
 0x1b8   : > { %v9708_v16 = vpop.permute.xlu0 %7342  ;;  %7637 = vrot.lane.b32.xlu1 %v11005_v35, %s8013_s12  ;;  %v9769_v0 = vpack.i.bf16 %v7890_v47, %v7891_v38  ;;  %v9785_v2 = vld [vmem:[%s8339_s30 + $0x1b0] sm:$0xff]  ;;  %v9803_v7 = vld [vmem:[%s8339_s30 + $0x1a8] sm:$0xff]  ;;  %v7900_v17 = vld [vmem:[%s8339_s30 + $0x80] sm:$0xff]  ;;  %v11009_v56 = vpack.c.bf16 %v9755_v30, %v9752_v52  ;;  %v11010_v58 = vpack.c.bf16 %v9763_v4, %v9760_v12  ;;  %v7330_v52 = vunpack.i.h.bf16 %v9642_v9 }
 0x1b9   : > { %6431 = vmatpush1.bf16.msra.mxu1 %v6430_v53  ;;  %v7901_v48 = vld [vmem:[%s8339_s30 + $0x88] sm:$0xff]  ;;  %v7902_v35 = vld [vmem:[%s8339_s30 + $0x40] sm:$0xff]  ;;  %v9831_v47 = vld [vmem:[%s8339_s30 + $0x90] sm:$0xff]  ;;  %v7329_v30 = vunpack.i.l.bf16 %v9642_v9  ;;  %v7325_v12 = vunpack.i.h.bf16 %v9652_v8  ;;  %v7350_v4 = vunpack.i.h.bf16 %v9700_v59  ;;  %v7340_v9 = vunpack.i.h.bf16 %v9677_v20 }
 0x1ba   : > { %7632 = vrot.lane.b32.xlu0 %v9170_v43, %s8013_s12  ;;  %6419 = vmatpush1.bf16.msra.mxu0 %v6418_v28  ;;  %v9749_v43 = vpop.permute.xlu1 %7357  ;;  %11006 = vst [vmem:[#allocation11_spill] sm:$0xff] %v9769_v0  ;;  %v9809_v37 = vpack.i.bf16 %v7901_v48, %v7900_v17  ;;  %v7903_v28 = vld [vmem:[%s8339_s30 + $0x48] sm:$0xff]  ;;  %v9823_v53 = vld [vmem:[%s8339_s30 + $0x80] sm:$0xff]  ;;  %v9839_v17 = vld [vmem:[%s8339_s30 + $0x78] sm:$0xff] }
 0x1bb   : > { %6433 = vmatprep.subr.bf16.mxu0 %v6432_v33  ;;  %v9793_v33 = vld [vmem:[%s8339_s30 + $0x198] sm:$0xff]  ;;  %6445 = vmatprep.subr.bf16.mxu1 %v6444_v14  ;;  %v9820_v14 = vld [vmem:[%s8339_s30 + $0x30] sm:$0xff]  ;;  %v9828_v29 = vld [vmem:[%s8339_s30 + $0x40] sm:$0xff] }
 0x1bc   : > { %v9771_v24 = vpop.permute.xlu0 %7352  ;;  %7647 = vrot.lane.b32.xlu1 %v9201_v25, %s8013_s12  ;;  %11007 = vst [vmem:[#allocation13_spill] sm:$0xff] %v9809_v37  ;;  %v9813_v25 = vpack.i.bf16 %v7903_v28, %v7902_v35  ;;  %v9836_v38 = vld [vmem:[%s8339_s30 + $0x28] sm:$0xff]  ;;  %6208 = vmatmul.mubr.msk.f32.vlgmr.msra.gmra.mrb[14].mxu1 %vm1556_vm1, %v9647_v11  ;;  %v9848_v28 = vld [vmem:[%s8339_s30 + $0x38] sm:$0xff]  ;;  %v7912_v34 = vld [vmem:[%s8339_s30 + $0xd0] sm:$0xff] }
 0x1bd   : > { %6207 = vmatmul.mubr.msk.f32.vlgmr.msra.gmra.mrb[14].mxu0 %vm1556_vm1, %v9647_v11  ;;  %v7913_v48 = vld [vmem:[%s8339_s30 + $0xd8] sm:$0xff]  ;;  %v7914_v11 = vld [vmem:[%s8339_s30 + $0x90] sm:$0xff]  ;;  %6447 = vmatpush1.bf16.msra.mxu1 %v6446_v42  ;;  %v9872_v3 = vld [vmem:[%s8339_s30 + $0x120] sm:$0xff] }
 0x1be   : > { %11008 = vst [vmem:[#allocation16_spill] sm:$0xff] %v9813_v25  ;;  %7642 = vrot.lane.b32.xlu0 %v9183_v22, %s8013_s12  ;;  %6435 = vmatpush1.bf16.msra.mxu0 %v6434_v19  ;;  %v9845_v35 = vpop.permute.xlu1 %7367  ;;  %v9851_v22 = vld [vmem:[%s8339_s30 + $0x88] sm:$0xff]  ;;  %v9857_v50 = vpack.i.bf16 %v7913_v48, %v7912_v34  ;;  %v7915_v26 = vld [vmem:[%s8339_s30 + $0x98] sm:$0xff]  ;;  %v9869_v61 = vld [vmem:[%s8339_s30 + $0xd0] sm:$0xff] }
 0x1bf   : > { %v9861_v19 = vpack.i.bf16 %v7915_v26, %v7914_v11  ;;  %6437 = vmatprep.subr.bf16.mxu0 %v6436_v13  ;;  %v9877_v48 = vld [vmem:[%s8339_s30 + $0xe0] sm:$0xff]  ;;  %v9880_v26 = vld [vmem:[%s8339_s30 + $0x130] sm:$0xff]  ;;  %v9885_v63 = vld [vmem:[%s8339_s30 + $0xc8] sm:$0xff]  ;;  %6449 = vmatprep.subr.bf16.mxu1 %v6448_v55  ;;  %v11020_v36 = vpack.c.bf16 %v9851_v22, %v9848_v28 }
 0x1c0   : > { %v9866_v10 = vpop.permute.xlu0 %7362  ;;  %v9888_v42 = vld [vmem:[%s8339_s30 + $0x118] sm:$0xff]  ;;  %7657 = vrot.lane.b32.xlu1 %v9219_v44, %s8013_s12  ;;  %v9901_v6 = vld [vmem:[%s8339_s30 + $0x128] sm:$0xff]  ;;  %v7925_v45 = vld [vmem:[%s8339_s30 + $0xe0] sm:$0xff]  ;;  %3528 = vmatprep.mubr.f32.mxu0 %v10948_v31 }
 0x1c1   : > { %v9898_v11 = vld [vmem:[%s8339_s30 + $0xd8] sm:$0xff]  ;;  %v9907_v13 = vpack.i.bf16 %v7924_v27, %v7925_v45  ;;  %v9913_v44 = vld [vmem:[%s8339_s30 + $0x170] sm:$0xff]  ;;  %v9916_v39 = vld [vmem:[%s8339_s30 + $0x1c0] sm:$0xff]  ;;  %3599 = vmatprep.mubr.f32.mxu1 %v10948_v31  ;;  %6451 = vmatpush1.bf16.msra.mxu1 %v11010_v58  ;;  %v11012_v45 = vpack.c.bf16 %v9785_v2, %v9782_v15  ;;  %v7324_v58 = vunpack.i.l.bf16 %v9652_v8  ;;  %v7335_v15 = vunpack.i.h.bf16 %v9686_v60 }
 0x1c2   : > { %7652 = vrot.lane.b32.xlu0 %v9199_v41, %s8013_s12  ;;  %v9921_v55 = vld [vmem:[%s8339_s30 + $0x180] sm:$0xff]  ;;  %v9924_v34 = vld [vmem:[%s8339_s30 + $0x1d0] sm:$0xff]  ;;  %v9929_v27 = vld [vmem:[%s8339_s30 + $0x168] sm:$0xff]  ;;  %6439 = vmatpush1.bf16.msra.mxu0 %v11009_v56  ;;  %v9939_v62 = vpop.permute.xlu1 %7377  ;;  %v11011_v56 = vpack.c.bf16 %v9777_v46, %v9774_v1  ;;  %v7349_v1 = vunpack.i.l.bf16 %v9700_v59  ;;  %v7339_v46 = vunpack.i.l.bf16 %v9677_v20  ;;  %v7334_v2 = vunpack.i.l.bf16 %v9686_v60 }
 0x1c3   : > { %v9943_v32 = vld [vmem:[%s8339_s30 + $0x178] sm:$0xff]  ;;  %6453 = vmatprep.subr.bf16.mxu1 %v11012_v45  ;;  %v11013_v8 = vpack.c.bf16 %v9793_v33, %v9790_v51  ;;  %v11014_v59 = vpack.c.bf16 %v9803_v7, %v9800_v21  ;;  %v11015_v60 = vpack.c.bf16 %v9823_v53, %v9820_v14  ;;  %v9994_v51 = vsel %vm3974_vm5, %v7329_v30, %v7330_v52  ;;  %v10003_v21 = vld [vmem:[%s8339_s30 + $0xc8] sm:$0xff]  ;;  %v10006_v7 = vld [vmem:[%s8339_s30 + $0xc0] sm:$0xff] }
 0x1c4   : > { %v9953_v41 = vpop.permute.xlu0 %7372  ;;  %6441 = vmatprep.subr.bf16.mxu0 %v11011_v56  ;;  %7667 = vrot.lane.b32.xlu1 %v9769_v0, %s8013_s12  ;;  %v7345_v33 = vunpack.i.h.bf16 %v9708_v16  ;;  %v11016_v56 = vpack.c.bf16 %v9831_v47, %v9828_v29  ;;  %11017 = vst [vmem:[#allocation17_spill] sm:$0xff] %v10006_v7  ;;  %v10011_v53 = vld [vmem:[%s8339_s30 + $0xb8] sm:$0xff]  ;;  %v7354_v29 = vunpack.i.l.bf16 %v9771_v24  ;;  %v3984_v47 = vsel %vm3974_vm5, %v7349_v1, %v7350_v4 }
 0x1c5   : > { %6455 = vmatpush1.bf16.msra.mxu1 %v11014_v59  ;;  %11018 = vst [vmem:[#allocation18_spill] sm:$0xff] %v10011_v53  ;;  %v10016_v59 = vsel %vm3974_vm5, %v7324_v58, %v7325_v12  ;;  %v3976_v14 = vsel %vm3974_vm5, %v7325_v12, %v7329_v30  ;;  %v7360_v0 = vunpack.i.h.bf16 %v9749_v43  ;;  %v11021_v7 = vpack.c.bf16 %v9872_v3, %v9869_v61 }
 0x1c6   : > { %7662 = vrot.lane.b32.xlu0 %v9214_v57, %s8013_s12  ;;  %6443 = vmatpush1.bf16.msra.mxu0 %v11013_v8  ;;  %v9978_v45 = vpop.permute.xlu1 %7387  ;;  %v9983_v57 = vld [vmem:[%s10878_s3 + $0x20] sm:$0xff]  ;;  %v10029_v8 = vsel %vm3974_vm5, %v7334_v2, %v7335_v15  ;;  %v10061_v22 = vsel %vm3974_vm5, %v7350_v4, %v7354_v29  ;;  %v7370_v3 = vunpack.i.h.bf16 %v9845_v35  ;;  %v7369_v61 = vunpack.i.l.bf16 %v9845_v35 }
 0x1c7   : > { %6457 = vmatprep.subr.bf16.mxu0 %v11015_v60  ;;  %6469 = vmatprep.subr.bf16.mxu1 %v11016_v56  ;;  %v7355_v60 = vunpack.i.h.bf16 %v9771_v24  ;;  %v10026_v56 = vsel %vm3974_vm5, %v7339_v46, %v7340_v9  ;;  %v11019_v24 = vpack.c.bf16 %v9839_v17, %v9836_v38  ;;  %v3978_v38 = vsel %vm3974_vm5, %v7330_v52, %v7334_v2 }
 0x1c8   : > { %v9988_v20 = vpop.permute.xlu0 %7382  ;;  %7677 = vrot.lane.b32.xlu1 %v9809_v37, %s8013_s12  ;;  %6211 = vmatmul.mubr.msk.f32.vlgmr.msra.gmra.mrb[4].mxu1 %vm1556_vm1, %v9983_v57  ;;  %v7344_v37 = vunpack.i.l.bf16 %v9708_v16  ;;  %v10050_v17 = vsel %vm3974_vm5, %v7345_v33, %v7349_v1  ;;  %v11022_v16 = vpack.c.bf16 %v9880_v26, %v9877_v48  ;;  %v11023_v12 = vpack.c.bf16 %v9888_v42, %v9885_v63 }
 0x1c9   : > { %6210 = vmatmul.mubr.msk.f32.vlgmr.msra.gmra.mrb[4].mxu0 %vm1556_vm1, %v9983_v57  ;;  %6471 = vmatpush1.bf16.msra.mxu1 %v11020_v36  ;;  %v10058_v36 = vsel %vm3974_vm5, %v7335_v15, %v7339_v46  ;;  %v3986_v28 = vsel %vm3974_vm5, %v7354_v29, %v7355_v60  ;;  %v11024_v35 = vpack.c.bf16 %v9901_v6, %v9898_v11  ;;  %v7364_v6 = vunpack.i.l.bf16 %v9866_v10 }
 0x1ca   : > { %7672 = vrot.lane.b32.xlu0 %v9813_v25, %s8013_s12  ;;  %6459 = vmatpush1.bf16.msra.mxu0 %v11019_v24  ;;  %v10036_v58 = vpop.permute.xlu1 %7397  ;;  %v7359_v25 = vunpack.i.l.bf16 %v9749_v43  ;;  %v6480_v43 = vpack.c.bf16 %v3984_v47, %v3976_v14  ;;  %v11025_v46 = vpack.c.bf16 %v9916_v39, %v9913_v44  ;;  %v6482_v15 = vpack.c.bf16 %v10050_v17, %v10016_v59 }
 0x1cb   : > { %6461 = vmatprep.subr.bf16.mxu0 %v11021_v7  ;;  %6473 = vmatprep.subr.bf16.mxu1 %v11022_v16  ;;  %v7400_v48 = vunpack.i.h.bf16 %v10036_v58  ;;  %v7399_v26 = vunpack.i.l.bf16 %v10036_v58  ;;  %v10091_v42 = vsel %vm3974_vm5, %v7340_v9, %v7344_v37  ;;  %v7374_v11 = vunpack.i.l.bf16 %v9953_v41 }
 0x1cc   : > { %v7393_v53 = vpop.permute.xlu0 %7392  ;;  %7687 = vrot.lane.b32.xlu1 %v9857_v50, %s8013_s12  ;;  %3670 = vmatprep.mubr.f32.mxu0 %v10948_v31  ;;  %v10088_v63 = vsel %vm3974_vm5, %v7359_v25, %v7360_v0  ;;  %v10094_v2 = vsel %vm3974_vm5, %v7355_v60, %v7359_v25  ;;  %v7390_v33 = vunpack.i.h.bf16 %v9978_v45  ;;  %v11026_v44 = vpack.c.bf16 %v9924_v34, %v9921_v55 }
 0x1cd   : > { %v7395_v52 = vunpack.i.h.bf16 %v7393_v53  ;;  %v7394_v30 = vunpack.i.l.bf16 %v7393_v53  ;;  %3741 = vmatprep.mubr.f32.mxu1 %v10948_v31  ;;  %6475 = vmatpush1.bf16.msra.mxu1 %v11024_v35  ;;  %v7379_v39 = vunpack.i.l.bf16 %v9939_v62  ;;  %v7375_v37 = vunpack.i.h.bf16 %v9953_v41 }
 0x1ce   : > { %7682 = vrot.lane.b32.xlu0 %v9861_v19, %s8013_s12  ;;  %6463 = vmatpush1.bf16.msra.mxu0 %v11023_v12  ;;  %v10074_v4 = vpop.permute.xlu1 %7407  ;;  %v6492_v25 = vpack.c.bf16 %v3986_v28, %v3978_v38  ;;  %v6494_v9 = vpack.c.bf16 %v10061_v22, %v9994_v51  ;;  %v3991_v7 = vsel %vm3974_vm5, %v7369_v61, %v7370_v3  ;;  %v7365_v16 = vunpack.i.h.bf16 %v9866_v10 }
 0x1cf   : > { %6465 = vmatprep.subr.bf16.mxu0 %v11025_v46  ;;  %6477 = vmatprep.subr.bf16.mxu1 %v11026_v44  ;;  %v3999_v14 = vsel %vm3974_vm5, %v7390_v33, %v7394_v30  ;;  %v4000_v55 = vsel %vm3974_vm5, %v7394_v30, %v7395_v52  ;;  %v4002_v41 = vsel %vm3974_vm5, %v7399_v26, %v7400_v48  ;;  %v7410_v53 = vunpack.i.h.bf16 %v10074_v4 }
 0x1d0   : > { %v10080_v1 = vpop.permute.xlu0 %7402  ;;  %7697 = vrot.lane.b32.xlu1 %v10988_v49, %s8013_s12  ;;  %v11027_v49 = vpack.c.bf16 %v9932_v23, %v9929_v27  ;;  %v7409_v59 = vunpack.i.l.bf16 %v10074_v4  ;;  %v11028_v51 = vpack.c.bf16 %v9946_v40, %v9943_v32  ;;  %v10129_v23 = vsel %vm3974_vm5, %v7360_v0, %v7364_v6 }
 0x1d1   : > { %v4001_v27 = vsel %vm3974_vm5, %v7395_v52, %v7399_v26  ;;  %v3992_v40 = vsel %vm3974_vm5, %v7370_v3, %v7374_v11  ;;  %v3994_v38 = vsel %vm3974_vm5, %v7375_v37, %v7379_v39  ;;  %v7405_v35 = vunpack.i.h.bf16 %v10080_v1 }
 0x1d2   : > { %7692 = vrot.lane.b32.xlu0 %v9907_v13, %s8013_s12  ;;  %6467 = vmatpush1.bf16.msra.mxu0 %v11027_v49  ;;  %v7418_v34 = vpop.permute.xlu1 %7417  ;;  %v6484_v0 = vpack.c.bf16 %v4000_v55, %v3992_v40  ;;  %v6496_v22 = vpack.c.bf16 %v4002_v41, %v3994_v38  ;;  %v4008_v52 = vsel %vm3974_vm5, %v7409_v59, %v7410_v53  ;;  %v7404_v44 = vunpack.i.l.bf16 %v10080_v1 }
 0x1d3   : > { %6479 = vmatpush1.bf16.msra.mxu1 %v11028_v51  ;;  %v7420_v60 = vunpack.i.h.bf16 %v7418_v34  ;;  %v7419_v29 = vunpack.i.l.bf16 %v7418_v34  ;;  %6481 = vmatprep.subr.bf16.mxu0 %v6480_v43  ;;  %v6486_v43 = vpack.c.bf16 %v3999_v14, %v3991_v7  ;;  %v3990_v1 = vsel %vm3974_vm5, %v7364_v6, %v7365_v16 }
 0x1d4   : > { %v10124_v47 = vpop.permute.xlu0 %7412  ;;  %6493 = vmatprep.subr.bf16.mxu1 %v6492_v25  ;;  %7707 = vrot.lane.b32.xlu1 %v10995_v5, %s8013_s12  ;;  %v3993_v5 = vsel %vm3974_vm5, %v7374_v11, %v7375_v37  ;;  %v11029_v11 = vld [vmem:[#allocation14_spill] sm:$0xff]  ;;  %v7380_v34 = vunpack.i.h.bf16 %v9939_v62  ;;  %v7384_v55 = vunpack.i.l.bf16 %v9988_v20  ;;  %v7389_v51 = vunpack.i.l.bf16 %v9978_v45 }
 0x1d5   : > { %v7414_v24 = vunpack.i.l.bf16 %v10124_v47  ;;  %v7415_v32 = vunpack.i.h.bf16 %v10124_v47  ;;  %6212 = vmatmul.mubr.msk.f32.vlgmr.msra.gmra.mrb[6].mxu0 %vm1556_vm1, %v9983_v57  ;;  %v4016_v17 = vsel %vm3974_vm5, %v7419_v29, %v7420_v60  ;;  %v6498_v3 = vpack.c.bf16 %v4001_v27, %v3993_v5  ;;  %v10194_v45 = vld [vmem:[%s10878_s3 + $0x28] sm:$0xff] }
 0x1d6   : > { %7702 = vrot.lane.b32.xlu0 %v10987_v18, %s8013_s12  ;;  %6213 = vmatmul.mubr.msk.f32.vlgmr.msra.gmra.mrb[6].mxu1 %vm1556_vm1, %v9983_v57  ;;  %v7428_v18 = vpop.permute.xlu1 %7427  ;;  %v6488_v57 = vpack.c.bf16 %v4016_v17, %v4008_v52  ;;  %v6504_v10 = vpack.c.bf16 %v10088_v63, %v10058_v36  ;;  %v6506_v6 = vpack.c.bf16 %v10094_v2, %v10029_v8 }
 0x1d7   : > { %6483 = vmatpush1.bf16.msra.mxu0 %v6482_v15  ;;  %6495 = vmatpush1.bf16.msra.mxu1 %v6494_v9  ;;  %v7430_v61 = vunpack.i.h.bf16 %v7428_v18  ;;  %v7429_v28 = vunpack.i.l.bf16 %v7428_v18  ;;  %v4009_v30 = vsel %vm3974_vm5, %v7410_v53, %v7414_v24  ;;  %v4010_v33 = vsel %vm3974_vm5, %v7414_v24, %v7415_v32 }
 0x1d8   : > { %v10149_v26 = vpop.permute.xlu0 %7422  ;;  %6485 = vmatprep.subr.bf16.mxu0 %v6484_v0  ;;  %6497 = vmatprep.subr.bf16.mxu1 %v6496_v22  ;;  %v6516_v40 = vpack.c.bf16 %v3990_v1, %v10091_v42  ;;  %v4004_v0 = vsel %vm3974_vm5, %v7404_v44, %v7405_v35  ;;  %v3995_v42 = vsel %vm3974_vm5, %v7379_v39, %v7380_v34 }
 0x1d9   : > { %v7425_v12 = vunpack.i.h.bf16 %v10149_v26  ;;  %v7424_v4 = vunpack.i.l.bf16 %v10149_v26  ;;  %7717 = vrot.lane.b32.xlu1 %v10999_v54, %s8013_s12  ;;  %v4007_v46 = vsel %vm3974_vm5, %v7429_v28, %v7409_v59  ;;  %v4015_v15 = vsel %vm3974_vm5, %v7430_v61, %v7419_v29  ;;  %4138 = vmatprep.mubr.f32.mxu0 %v10948_v31  ;;  %v11030_v59 = vld [vmem:[#allocation8_spill] sm:$0xff]  ;;  %v11031_v29 = vld [vmem:[#allocation15_spill] sm:$0xff] }
 0x1da   : > { %7712 = vrot.lane.b32.xlu0 %v11029_v11, %s8013_s12  ;;  %v6490_v37 = vpack.c.bf16 %v4015_v15, %v4007_v46  ;;  %v10168_v25 = vpop.permute.xlu1 %7437  ;;  %4209 = vmatprep.mubr.f32.mxu1 %v10948_v31  ;;  %v4003_v17 = vsel %vm3974_vm5, %v7400_v48, %v7404_v44  ;;  %v11034_v15 = vld [vmem:[#allocation12_spill] sm:$0xff] }
 0x1db   : > { %v4017_v54 = vsel %vm3974_vm5, %v7420_v60, %v7424_v4  ;;  %6487 = vmatpush1.bf16.msra.mxu0 %v6486_v43  ;;  %v4018_v9 = vsel %vm3974_vm5, %v7424_v4, %v7425_v12  ;;  %6499 = vmatpush1.bf16.msra.mxu1 %v6498_v3  ;;  %v7385_v60 = vunpack.i.h.bf16 %v9988_v20  ;;  %v7440_v27 = vunpack.i.h.bf16 %v10168_v25  ;;  %v11033_v43 = vld [vmem:[#allocation9_spill] sm:$0xff] }
 0x1dc   : > { %v6502_v7 = vpack.c.bf16 %v4017_v54, %v4009_v30  ;;  %v7433_v14 = vpop.permute.xlu0 %7432  ;;  %6489 = vmatprep.subr.bf16.mxu0 %v6488_v57  ;;  %v6500_v49 = vpack.c.bf16 %v4018_v9, %v4010_v33  ;;  %v6518_v20 = vpack.c.bf16 %v10129_v23, %v10026_v56  ;;  %v7439_v36 = vunpack.i.l.bf16 %v10168_v25  ;;  %v11032_v56 = vld [vmem:[#allocation5_spill] sm:$0xff]  ;;  %v11035_v33 = vld [vmem:[#allocation7_spill] sm:$0xff] }
 0x1dd   : > { %v7435_v41 = vunpack.i.h.bf16 %v7433_v14  ;;  %v7434_v53 = vunpack.i.l.bf16 %v7433_v14  ;;  %7727 = vrot.lane.b32.xlu1 %v11030_v59, %s8014_s9  ;;  %v3996_v23 = vsel %vm3974_vm5, %v7380_v34, %v7384_v55  ;;  %v3998_v58 = vsel %vm3974_vm5, %v7385_v60, %v7389_v51  ;;  %v7938_v59 = vld [vmem:[%s8339_s30 + $0x118] sm:$0xff] }
 0x1de   : > { %7722 = vrot.lane.b32.xlu0 %v11031_v29, %s8013_s12  ;;  %6501 = vmatprep.subr.bf16.mxu1 %v6500_v49  ;;  %v7448_v24 = vpop.permute.xlu1 %7447  ;;  %v6508_v62 = vpack.c.bf16 %v4004_v0, %v3996_v23  ;;  %v3997_v48 = vsel %vm3974_vm5, %v7384_v55, %v7385_v60  ;;  %v6510_v61 = vpack.c.bf16 %v4003_v17, %v3995_v42  ;;  %v11036_v55 = vld [vmem:[#allocation17_spill] sm:$0xff]  ;;  %v11038_v29 = vld [vmem:[#allocation18_spill] sm:$0xff]  ;;  %v7942_v42 = vld [vmem:[%s8339_s30 + $0x158] sm:$0xff] }
 0x1df   : > { %6491 = vmatpush1.bf16.msra.mxu0 %v6490_v37  ;;  %6503 = vmatpush1.bf16.msra.mxu1 %v6502_v7  ;;  %v7450_v8 = vunpack.i.h.bf16 %v7448_v24  ;;  %v7449_v63 = vunpack.i.l.bf16 %v7448_v24  ;;  %v4006_v38 = vsel %vm3974_vm5, %v7434_v53, %v7435_v41  ;;  %v4005_v16 = vsel %vm3974_vm5, %v7405_v35, %v7434_v53  ;;  %v7937_v53 = vld [vmem:[%s8339_s30 + $0x110] sm:$0xff]  ;;  %v7940_v24 = vld [vmem:[%s8339_s30 + $0x108] sm:$0xff] }
 0x1e0   : > { %v7443_v2 = vpop.permute.xlu0 %7442  ;;  %6505 = vmatprep.subr.bf16.mxu0 %v6504_v10  ;;  %6517 = vmatprep.subr.bf16.mxu1 %v6516_v40  ;;  %v6520_v22 = vpack.c.bf16 %v4006_v38, %v3998_v58  ;;  %v4011_v28 = vsel %vm3974_vm5, %v7415_v32, %v7439_v36  ;;  %v4012_v30 = vsel %vm3974_vm5, %v7439_v36, %v7440_v27  ;;  %v11039_v10 = vld [vmem:[#allocation6_spill] sm:$0xff]  ;;  %v7941_v38 = vld [vmem:[%s8339_s30 + $0x150] sm:$0xff] }
 0x1e1   : > { %7737 = vrot.lane.b32.xlu1 %v11032_v56, %s8014_s9  ;;  %v7444_v5 = vunpack.i.l.bf16 %v7443_v2  ;;  %v7445_v39 = vunpack.i.h.bf16 %v7443_v2  ;;  %v4020_v3 = vsel %vm3974_vm5, %v7449_v63, %v7450_v8  ;;  %v6522_v4 = vpack.c.bf16 %v4005_v16, %v3997_v48 }
 0x1e2   : > { %7732 = vrot.lane.b32.xlu0 %v11033_v43, %s8014_s9  ;;  %6215 = vmatmul.mubr.msk.f32.vlgmr.msra.gmra.mrb[16].mxu0 %vm1556_vm1, %v10194_v45  ;;  %v10219_v18 = vpop.permute.xlu1 %7457  ;;  %v4019_v57 = vsel %vm3974_vm5, %v7425_v12, %v7449_v63  ;;  %v6512_v44 = vpack.c.bf16 %v4020_v3, %v4012_v30  ;;  %v11037_v41 = vpack.i.bf16 %v10003_v21, %v11036_v55  ;;  %v11041_v43 = vld [vmem:[#allocation10_spill] sm:$0xff]  ;;  %v7951_v55 = vld [vmem:[%s8339_s30 + $0x1b8] sm:$0xff] }
 0x1e3   : > { %6216 = vmatmul.mubr.msk.f32.vlgmr.msra.gmra.mrb[16].mxu1 %vm1556_vm1, %v10194_v45  ;;  %6507 = vmatpush1.bf16.msra.mxu0 %v6506_v6  ;;  %v4013_v47 = vsel %vm3974_vm5, %v7440_v27, %v7444_v5  ;;  %v7460_v32 = vunpack.i.h.bf16 %v10219_v18  ;;  %v7459_v11 = vunpack.i.l.bf16 %v10219_v18  ;;  %v4014_v37 = vsel %vm3974_vm5, %v7444_v5, %v7445_v39  ;;  %v7939_v27 = vld [vmem:[%s8339_s30 + $0x100] sm:$0xff]  ;;  %v7943_v5 = vld [vmem:[%s8339_s30 + $0xf8] sm:$0xff] }
 0x1e4   : > { %6519 = vmatpush1.bf16.msra.mxu1 %v6518_v20  ;;  %v7453_v52 = vpop.permute.xlu0 %7452  ;;  %6509 = vmatprep.subr.bf16.mxu0 %v6508_v62  ;;  %v6514_v1 = vpack.c.bf16 %v4019_v57, %v4011_v28  ;;  %v7766_v51 = vpack.i.bf16 %v7938_v59, %v7937_v53  ;;  %v11040_v6 = vpack.i.bf16 %v11038_v29, %v11039_v10 }
 0x1e5   : > { %v7455_v35 = vunpack.i.h.bf16 %v7453_v52  ;;  %v7454_v46 = vunpack.i.l.bf16 %v7453_v52  ;;  %6521 = vmatprep.subr.bf16.mxu1 %v6520_v22  ;;  %7747 = vrot.lane.b32.xlu1 %v11034_v15, %s8014_s9  ;;  %v7761_v40 = vpack.i.bf16 %v7940_v24, %v7939_v27  ;;  %v4486_v20 = vsel %vm4484_vm6, %v7459_v11, %v7460_v32 }
 0x1e6   : > { %7742 = vrot.lane.b32.xlu0 %v11035_v33, %s8014_s9  ;;  %4280 = vmatprep.mubr.f32.mxu0 %v10948_v31  ;;  %v7468_v12 = vpop.permute.xlu1 %7467  ;;  %v7776_v17 = vpack.i.bf16 %v7942_v42, %v7941_v38  ;;  %v7771_v62 = vpack.i.bf16 %v7943_v5, %v11041_v43  ;;  %v11042_v43 = vld [vmem:[#allocation16_spill] sm:$0xff] }
 0x1e7   : > { %v4021_v26 = vsel %vm3974_vm5, %v7450_v8, %v7454_v46  ;;  %6511 = vmatpush1.bf16.msra.mxu0 %v6510_v61  ;;  %v4022_v54 = vsel %vm3974_vm5, %v7454_v46, %v7455_v35  ;;  %4351 = vmatprep.mubr.f32.mxu1 %v10948_v31  ;;  %v7470_v9 = vunpack.i.h.bf16 %v7468_v12  ;;  %v7469_v7 = vunpack.i.l.bf16 %v7468_v12 }
 0x1e8   : > { %v6526_v25 = vpack.c.bf16 %v4021_v26, %v4013_v47  ;;  %6523 = vmatpush1.bf16.msra.mxu1 %v6522_v4  ;;  %v10241_v14 = vpop.permute.xlu0 %7462  ;;  %6513 = vmatprep.subr.bf16.mxu0 %v6512_v44  ;;  %v6524_v49 = vpack.c.bf16 %v4022_v54, %v4014_v37  ;;  %v7944_v4 = vld [vmem:[%s8339_s30 + $0x1a0] sm:$0xff] }
 0x1e9   : > { %v7464_v34 = vunpack.i.l.bf16 %v10241_v14  ;;  %7757 = vrot.lane.b32.xlu1 %v11037_v41, %s8014_s9  ;;  %v7465_v60 = vunpack.i.h.bf16 %v10241_v14  ;;  %v4494_v21 = vsel %vm4484_vm6, %v7469_v7, %v7470_v9  ;;  %v7946_v47 = vld [vmem:[%s8339_s30 + $0x160] sm:$0xff] }
 0x1ea   : > { %7752 = vrot.lane.b32.xlu0 %v11040_v6, %s8014_s9  ;;  %6525 = vmatprep.subr.bf16.mxu1 %v6524_v49  ;;  %v7478_v0 = vpop.permute.xlu1 %7477  ;;  %v6528_v36 = vpack.c.bf16 %v4494_v21, %v4486_v20 }
 0x1eb   : > { %6515 = vmatpush1.bf16.msra.mxu0 %v6514_v1  ;;  %v7480_v8 = vunpack.i.h.bf16 %v7478_v0  ;;  %v7479_v63 = vunpack.i.l.bf16 %v7478_v0  ;;  %v4487_v56 = vsel %vm4484_vm6, %v7460_v32, %v7464_v34  ;;  %v4488_v39 = vsel %vm4484_vm6, %v7464_v34, %v7465_v60  ;;  %v7947_v32 = vld [vmem:[%s8339_s30 + $0x168] sm:$0xff]  ;;  %v7950_v34 = vld [vmem:[%s8339_s30 + $0x1b0] sm:$0xff] }
 0x1ec   : > { %6527 = vmatpush1.bf16.msra.mxu1 %v6526_v25  ;;  %v10259_v2 = vpop.permute.xlu0 %7472  ;;  %6529 = vmatprep.subr.bf16.mxu0 %v6528_v36  ;;  %v7791_v41 = vpack.i.bf16 %v7951_v55, %v7950_v34  ;;  %v7953_v34 = vld [vmem:[%s8339_s30 + $0x138] sm:$0xff] }
 0x1ed   : > { %v7475_v23 = vunpack.i.h.bf16 %v10259_v2  ;;  %v7474_v16 = vunpack.i.l.bf16 %v10259_v2  ;;  %7767 = vrot.lane.b32.xlu1 %v7766_v51, %s8014_s9  ;;  %v4485_v58 = vsel %vm4484_vm6, %v7479_v63, %v7459_v11  ;;  %v4493_v48 = vsel %vm4484_vm6, %v7480_v8, %v7469_v7  ;;  %v7949_v7 = vld [vmem:[%s8339_s30 + $0x198] sm:$0xff]  ;;  %v7960_v2 = vld [vmem:[%s8339_s30 + $0x1d0] sm:$0xff] }
 0x1ee   : > { %7762 = vrot.lane.b32.xlu0 %v7761_v40, %s8014_s9  ;;  %6217 = vmatmul.mubr.msk.f32.vlgmr.msra.gmra.mrb[18].mxu0 %vm1556_vm1, %v10194_v45  ;;  %v6530_v18 = vpack.c.bf16 %v4493_v48, %v4485_v58  ;;  %v10280_v3 = vpop.permute.xlu1 %7487  ;;  %v7781_v11 = vpack.i.bf16 %v7947_v32, %v7946_v47  ;;  %v11043_v58 = vld [vmem:[#allocation11_spill] sm:$0xff]  ;;  %v11044_v47 = vld [vmem:[#allocation13_spill] sm:$0xff] }
 0x1ef   : > { %v4495_v22 = vsel %vm4484_vm6, %v7470_v9, %v7474_v16  ;;  %6218 = vmatmul.mubr.msk.f32.vlgmr.msra.gmra.mrb[18].mxu1 %vm1556_vm1, %v10194_v45  ;;  %v4496_v61 = vsel %vm4484_vm6, %v7474_v16, %v7475_v23  ;;  %4648 = vmatprep.mubr.f32.mxu0 %v10948_v31  ;;  %v7945_v45 = vld [vmem:[%s8339_s30 + $0x1a8] sm:$0xff]  ;;  %v7490_v35 = vunpack.i.h.bf16 %v10280_v3  ;;  %v7489_v46 = vunpack.i.l.bf16 %v10280_v3 }
 0x1f0   : > { %v6542_v28 = vpack.c.bf16 %v4495_v22, %v4487_v56  ;;  %v7483_v52 = vpop.permute.xlu0 %7482  ;;  %v6540_v30 = vpack.c.bf16 %v4496_v61, %v4488_v39  ;;  %4719 = vmatprep.mubr.f32.mxu1 %v10948_v31  ;;  %6531 = vmatpush1.bf16.msra.mxu0 %v6530_v18  ;;  %v7786_v57 = vpack.i.bf16 %v7945_v45, %v7944_v4  ;;  %v7948_v9 = vld [vmem:[%s8339_s30 + $0x148] sm:$0xff] }
 0x1f1   : > { %7777 = vrot.lane.b32.xlu1 %v7776_v17, %s8014_s9  ;;  %v7485_v15 = vunpack.i.h.bf16 %v7483_v52  ;;  %v7484_v33 = vunpack.i.l.bf16 %v7483_v52  ;;  %v7796_v49 = vpack.i.bf16 %v7949_v7, %v7948_v9  ;;  %v4504_v53 = vsel %vm4484_vm6, %v7489_v46, %v7490_v35 }
 0x1f2   : > { %7772 = vrot.lane.b32.xlu0 %v7771_v62, %s8014_s9  ;;  %6541 = vmatprep.subr.bf16.mxu1 %v6540_v30  ;;  %v10295_v44 = vpop.permute.xlu1 %7497 }
 0x1f3   : > { %6543 = vmatpush1.bf16.msra.mxu1 %v6542_v28  ;;  %v7500_v26 = vunpack.i.h.bf16 %v10295_v44  ;;  %v7499_v12 = vunpack.i.l.bf16 %v10295_v44  ;;  %v4503_v1 = vsel %vm4484_vm6, %v7485_v15, %v7489_v46  ;;  %v4502_v10 = vsel %vm4484_vm6, %v7484_v33, %v7485_v15 }
 0x1f4   : > { %v7493_v37 = vpop.permute.xlu0 %7492 }
 0x1f5   : > { %v7495_v54 = vunpack.i.h.bf16 %v7493_v37  ;;  %v7494_v25 = vunpack.i.l.bf16 %v7493_v37  ;;  %7787 = vrot.lane.b32.xlu1 %v7786_v57, %s8014_s9  ;;  %v4512_v59 = vsel %vm4484_vm6, %v7499_v12, %v7500_v26 }
 0x1f6   : > { %7782 = vrot.lane.b32.xlu0 %v7781_v11, %s8014_s9  ;;  %v7508_v29 = vpop.permute.xlu1 %7507  ;;  %v6544_v27 = vpack.c.bf16 %v4512_v59, %v4504_v53  ;;  %v7954_v59 = vld [vmem:[%s8339_s30 + $0x120] sm:$0xff] }
 0x1f7   : > { %v4511_v51 = vsel %vm4484_vm6, %v7495_v54, %v7499_v12  ;;  %v4510_v6 = vsel %vm4484_vm6, %v7494_v25, %v7495_v54  ;;  %v7510_v36 = vunpack.i.h.bf16 %v7508_v29  ;;  %v7509_v8 = vunpack.i.l.bf16 %v7508_v29 }
 0x1f8   : > { %v6546_v24 = vpack.c.bf16 %v4511_v51, %v4503_v1  ;;  %v7503_v40 = vpop.permute.xlu0 %7502  ;;  %v6532_v20 = vpack.c.bf16 %v4510_v6, %v4502_v10  ;;  %6545 = vmatprep.subr.bf16.mxu1 %v6544_v27  ;;  %v7952_v1 = vld [vmem:[%s8339_s30 + $0x130] sm:$0xff] }
 0x1f9   : > { %v7505_v21 = vunpack.i.h.bf16 %v7503_v40  ;;  %v7504_v0 = vunpack.i.l.bf16 %v7503_v40  ;;  %7797 = vrot.lane.b32.xlu1 %v7796_v49, %s8014_s9  ;;  %v4518_v48 = vsel %vm4484_vm6, %v7509_v8, %v7510_v36  ;;  %v10352_v49 = vld [vmem:[%s10878_s3 + $0x30] sm:$0xff]  ;;  %v7836_v55 = vpack.i.bf16 %v7953_v34, %v7952_v1  ;;  %v7957_v40 = vld [vmem:[%s8339_s30 + $0x188] sm:$0xff] }
 0x1fa   : > { %7792 = vrot.lane.b32.xlu0 %v7791_v41, %s8014_s9  ;;  %6533 = vmatprep.subr.bf16.mxu0 %v6532_v20  ;;  %v7518_v42 = vpop.permute.xlu1 %7517 }
 0x1fb   : > { %v4501_v63 = vsel %vm4484_vm6, %v7504_v0, %v7484_v33  ;;  %v4509_v38 = vsel %vm4484_vm6, %v7505_v21, %v7494_v25  ;;  %6547 = vmatpush1.bf16.msra.mxu1 %v6546_v24  ;;  %v7520_v56 = vunpack.i.h.bf16 %v7518_v42  ;;  %v7519_v16 = vunpack.i.l.bf16 %v7518_v42  ;;  %v7956_v24 = vld [vmem:[%s8339_s30 + $0x180] sm:$0xff] }
 0x1fc   : > { %v6534_v17 = vpack.c.bf16 %v4509_v38, %v4501_v63  ;;  %v10319_v5 = vpop.permute.xlu0 %7512  ;;  %v7846_v20 = vpack.i.bf16 %v7957_v40, %v7956_v24 }
 0x1fd   : > { %7807 = vrot.lane.b32.xlu1 %v11042_v43, %s8014_s9  ;;  %v7514_v62 = vunpack.i.l.bf16 %v10319_v5  ;;  %v4526_v39 = vsel %vm4484_vm6, %v7519_v16, %v7520_v56  ;;  %v7515_v18 = vunpack.i.h.bf16 %v10319_v5 }
 0x1fe   : > { %7802 = vrot.lane.b32.xlu0 %v11043_v58, %s8014_s9  ;;  %6535 = vmatpush1.bf16.msra.mxu0 %v6534_v17  ;;  %v7528_v22 = vpop.permute.xlu1 %7527  ;;  %v6536_v61 = vpack.c.bf16 %v4526_v39, %v4518_v48 }
 0x1ff   : > { %v7530_v28 = vunpack.i.h.bf16 %v7528_v22  ;;  %v7529_v52 = vunpack.i.l.bf16 %v7528_v22  ;;  %v4519_v57 = vsel %vm4484_vm6, %v7510_v36, %v7514_v62  ;;  %v7959_v36 = vld [vmem:[%s8339_s30 + $0x178] sm:$0xff] }
 0x200   : > { %v10329_v30 = vpop.permute.xlu0 %7522  ;;  %6537 = vmatprep.subr.bf16.mxu0 %v6536_v61  ;;  %v7961_v61 = vld [vmem:[%s8339_s30 + $0x1d8] sm:$0xff] }
 0x201   : > { %v7525_v4 = vunpack.i.h.bf16 %v10329_v30  ;;  %v7524_v45 = vunpack.i.l.bf16 %v10329_v30  ;;  %7817 = vrot.lane.b32.xlu1 %v9861_v19, %s8014_s9  ;;  %v4517_v46 = vsel %vm4484_vm6, %v7529_v52, %v7509_v8  ;;  %v4525_v15 = vsel %vm4484_vm6, %v7530_v28, %v7519_v16  ;;  %v7963_v52 = vld [vmem:[%s8339_s30 + $0x1c8] sm:$0xff] }
 0x202   : > { %7812 = vrot.lane.b32.xlu0 %v11044_v47, %s8014_s9  ;;  %v6538_v32 = vpack.c.bf16 %v4525_v15, %v4517_v46  ;;  %v7538_v33 = vpop.permute.xlu1 %7537  ;;  %v4520_v19 = vsel %vm4484_vm6, %v7514_v62, %v7515_v18  ;;  %v7856_v28 = vpack.i.bf16 %v7961_v61, %v7960_v2 }
 0x203   : > { %v4527_v11 = vsel %vm4484_vm6, %v7520_v56, %v7524_v45  ;;  %v4528_v12 = vsel %vm4484_vm6, %v7524_v45, %v7525_v4  ;;  %v7540_v9 = vunpack.i.h.bf16 %v7538_v33  ;;  %v7539_v7 = vunpack.i.l.bf16 %v7538_v33 }
 0x204   : > { %v6550_v37 = vpack.c.bf16 %v4527_v11, %v4519_v57  ;;  %v7533_v54 = vpop.permute.xlu0 %7532  ;;  %v6548_v25 = vpack.c.bf16 %v4528_v12, %v4520_v19  ;;  %6539 = vmatpush1.bf16.msra.mxu0 %v6538_v32  ;;  %v10390_v32 = vpop.f32.mrb[0].mxu0 }
 0x205   : > { %7827 = vrot.lane.b32.xlu1 %v9907_v13, %s8014_s9  ;;  %v7535_v41 = vunpack.i.h.bf16 %v7533_v54  ;;  %v7534_v53 = vunpack.i.l.bf16 %v7533_v54  ;;  %v7955_v13 = vld [vmem:[%s8339_s30 + $0x128] sm:$0xff]  ;;  %v4492_v63 = vsel %vm4484_vm6, %v7539_v7, %v7540_v9  ;;  %v10392_v11 = vpop.f32.mrb[0].mxu1  ;;  %v10394_v19 = vpop.f32.mrb[1].mxu0 }
 0x206   : > { %7822 = vrot.lane.b32.xlu0 %v9857_v50, %s8014_s9  ;;  %6549 = vmatprep.subr.bf16.mxu1 %v6548_v25  ;;  %v7831_v51 = vpack.i.bf16 %v7955_v13, %v7954_v59  ;;  %v7548_v29 = vpop.permute.xlu1 %7547  ;;  %v7958_v50 = vld [vmem:[%s8339_s30 + $0x170] sm:$0xff]  ;;  %v10396_v25 = vpop.f32.mrb[1].mxu1 }
 0x207   : > { %6551 = vmatpush1.bf16.msra.mxu1 %v6550_v37  ;;  %v7550_v10 = vunpack.i.h.bf16 %v7548_v29  ;;  %v7549_v6 = vunpack.i.l.bf16 %v7548_v29  ;;  %6220 = vmatmul.mubr.msk.f32.vlgmr.msra.gmra.mrb[20].mxu0 %vm1556_vm1, %v10352_v49  ;;  %v7841_v8 = vpack.i.bf16 %v7959_v36, %v7958_v50  ;;  %v4491_v38 = vsel %vm4484_vm6, %v7535_v41, %v7539_v7  ;;  %v10399_v1 = vpop.f32.mrb[2].mxu0  ;;  %v10401_v34 = vpop.f32.mrb[2].mxu1 }
 0x208   : > { %v7543_v27 = vpop.permute.xlu0 %7542  ;;  %4790 = vmatprep.mubr.f32.mxu0 %v10948_v31  ;;  %v4489_v42 = vsel %vm4484_vm6, %v7465_v60, %v7534_v53  ;;  %v4490_v39 = vsel %vm4484_vm6, %v7534_v53, %v7535_v41  ;;  %v10410_v13 = vpop.f32.mrb[3].mxu0 }
 0x209   : > { %v7545_v21 = vunpack.i.h.bf16 %v7543_v27  ;;  %v7544_v0 = vunpack.i.l.bf16 %v7543_v27  ;;  %7837 = vrot.lane.b32.xlu1 %v7836_v55, %s8014_s9  ;;  %v4500_v17 = vsel %vm4484_vm6, %v7549_v6, %v7550_v10 }
 0x20a   : > { %7832 = vrot.lane.b32.xlu0 %v7831_v51, %s8014_s9  ;;  %6221 = vmatmul.mubr.msk.f32.vlgmr.msra.gmra.mrb[20].mxu1 %vm1556_vm1, %v10352_v49  ;;  %v7558_v14 = vpop.permute.xlu1 %7557  ;;  %v6564_v43 = vpack.c.bf16 %v4500_v17, %v4492_v63  ;;  %v10412_v51 = vpop.f32.mrb[3].mxu1 }
 0x20b   : > { %v4499_v56 = vsel %vm4484_vm6, %v7545_v21, %v7549_v6  ;;  %v4497_v16 = vsel %vm4484_vm6, %v7475_v23, %v7544_v0  ;;  %v4498_v60 = vsel %vm4484_vm6, %v7544_v0, %v7545_v21  ;;  %4861 = vmatprep.mubr.f32.mxu1 %v10948_v31  ;;  %v7962_v23 = vld [vmem:[%s8339_s30 + $0x1c0] sm:$0xff]  ;;  %v7560_v57 = vunpack.i.h.bf16 %v7558_v14 }
 0x20c   : > { %v6554_v62 = vpack.c.bf16 %v4497_v16, %v4489_v42  ;;  %v6566_v58 = vpack.c.bf16 %v4499_v56, %v4491_v38  ;;  %v7553_v48 = vpop.permute.xlu0 %7552  ;;  %v6552_v22 = vpack.c.bf16 %v4498_v60, %v4490_v39  ;;  %6565 = vmatprep.subr.bf16.mxu1 %v6564_v43  ;;  %v7851_v45 = vpack.i.bf16 %v7963_v52, %v7962_v23 }
 0x20d   : > { %7847 = vrot.lane.b32.xlu1 %v7846_v20, %s8014_s9  ;;  %v7559_v46 = vunpack.i.l.bf16 %v7558_v14  ;;  %v7555_v15 = vunpack.i.h.bf16 %v7553_v48  ;;  %v7554_v47 = vunpack.i.l.bf16 %v7553_v48 }
 0x20e   : > { %7842 = vrot.lane.b32.xlu0 %v7841_v8, %s8014_s9  ;;  %6567 = vmatpush1.bf16.msra.mxu1 %v6566_v58  ;;  %v7568_v33 = vpop.permute.xlu1 %7567 }
 0x20f   : > { %6553 = vmatprep.subr.bf16.mxu0 %v6552_v22  ;;  %v7570_v12 = vunpack.i.h.bf16 %v7568_v33  ;;  %v7569_v37 = vunpack.i.l.bf16 %v7568_v33  ;;  %v4507_v55 = vsel %vm4484_vm6, %v7555_v15, %v7559_v46  ;;  %v4505_v41 = vsel %vm4484_vm6, %v7490_v35, %v7554_v47 }
 0x210   : > { %6555 = vmatpush1.bf16.msra.mxu0 %v6554_v62  ;;  %v7563_v54 = vpop.permute.xlu0 %7562  ;;  %v4508_v53 = vsel %vm4484_vm6, %v7559_v46, %v7560_v57  ;;  %v4506_v20 = vsel %vm4484_vm6, %v7554_v47, %v7555_v15 }
 0x211   : > { %v7565_v9 = vunpack.i.h.bf16 %v7563_v54  ;;  %v7564_v7 = vunpack.i.l.bf16 %v7563_v54  ;;  %7857 = vrot.lane.b32.xlu1 %v7856_v28, %s8014_s9  ;;  %v4516_v59 = vsel %vm4484_vm6, %v7569_v37, %v7570_v12 }
 0x212   : > { %7852 = vrot.lane.b32.xlu0 %v7851_v45, %s8014_s9  ;;  %v7578_v6 = vpop.permute.xlu1 %7577  ;;  %v6568_v35 = vpack.c.bf16 %v4516_v59, %v4508_v53 }
 0x213   : > { %v4515_v29 = vsel %vm4484_vm6, %v7565_v9, %v7569_v37  ;;  %v4513_v10 = vsel %vm4484_vm6, %v7500_v26, %v7564_v7  ;;  %v4514_v3 = vsel %vm4484_vm6, %v7564_v7, %v7565_v9  ;;  %v7580_v0 = vunpack.i.h.bf16 %v7578_v6 }
 0x214   : > { %v6558_v27 = vpack.c.bf16 %v4513_v10, %v4505_v41  ;;  %v6570_v24 = vpack.c.bf16 %v4515_v29, %v4507_v55  ;;  %v7573_v40 = vpop.permute.xlu0 %7572  ;;  %v6556_v21 = vpack.c.bf16 %v4514_v3, %v4506_v20  ;;  %6569 = vmatprep.subr.bf16.mxu1 %v6568_v35  ;;  %v7579_v50 = vunpack.i.l.bf16 %v7578_v6 }
 0x215   : > { %v7575_v36 = vunpack.i.h.bf16 %v7573_v40  ;;  %v7574_v8 = vunpack.i.l.bf16 %v7573_v40 }
 0x216   : > { %6571 = vmatpush1.bf16.msra.mxu1 %v6570_v24  ;;  %6557 = vmatprep.subr.bf16.mxu0 %v6556_v21  ;;  %v7588_v44 = vpop.permute.xlu1 %7587  ;;  %v4524_v14 = vsel %vm4484_vm6, %v7579_v50, %v7580_v0 }
 0x217   : > { %6559 = vmatpush1.bf16.msra.mxu0 %v6558_v27  ;;  %v7590_v26 = vunpack.i.h.bf16 %v7588_v44  ;;  %v7589_v63 = vunpack.i.l.bf16 %v7588_v44  ;;  %v4523_v56 = vsel %vm4484_vm6, %v7575_v36, %v7579_v50  ;;  %v4521_v16 = vsel %vm4484_vm6, %v7515_v18, %v7574_v8 }
 0x218   : > { %v7583_v38 = vpop.permute.xlu0 %7582  ;;  %v4522_v18 = vsel %vm4484_vm6, %v7574_v8, %v7575_v36 }
 0x219   : > { %v7585_v42 = vunpack.i.h.bf16 %v7583_v38  ;;  %v7584_v17 = vunpack.i.l.bf16 %v7583_v38  ;;  %v4532_v60 = vsel %vm4484_vm6, %v7589_v63, %v7590_v26 }
 0x21a   : > { %v10430_v58 = vpop.permute.xlu1 %7597  ;;  %v6572_v39 = vpack.c.bf16 %v4532_v60, %v4524_v14 }
 0x21b   : > { %v4531_v43 = vsel %vm4484_vm6, %v7585_v42, %v7589_v63  ;;  %v4529_v62 = vsel %vm4484_vm6, %v7525_v4, %v7584_v17  ;;  %v4530_v48 = vsel %vm4484_vm6, %v7584_v17, %v7585_v42  ;;  %v7600_v28 = vunpack.i.h.bf16 %v10430_v58 }
 0x21c   : > { %v6562_v22 = vpack.c.bf16 %v4529_v62, %v4521_v16  ;;  %v6574_v2 = vpack.c.bf16 %v4531_v43, %v4523_v56  ;;  %v7593_v5 = vpop.permute.xlu0 %7592  ;;  %v6560_v61 = vpack.c.bf16 %v4530_v48, %v4522_v18  ;;  %6573 = vmatprep.subr.bf16.mxu1 %v6572_v39  ;;  %v7599_v23 = vunpack.i.l.bf16 %v10430_v58  ;;  %v10521_v58 = vld [vmem:[%s10875_s0] ss:$2 sm:$0xff] }
 0x21d   : > { %v7595_v52 = vunpack.i.h.bf16 %v7593_v5  ;;  %v7594_v30 = vunpack.i.l.bf16 %v7593_v5 }
 0x21e   : > { %6575 = vmatpush1.bf16.msra.mxu1 %v6574_v2  ;;  %6561 = vmatprep.subr.bf16.mxu0 %v6560_v61  ;;  %v10436_v4 = vpop.permute.xlu1 %7607  ;;  %v4998_v12 = vsel %vm4994_vm7, %v7599_v23, %v7600_v28 }
 0x21f   : > { %6563 = vmatpush1.bf16.msra.mxu0 %v6562_v22  ;;  %v7610_v45 = vunpack.i.h.bf16 %v10436_v4  ;;  %v7609_v57 = vunpack.i.l.bf16 %v10436_v4  ;;  %v4997_v33 = vsel %vm4994_vm7, %v7595_v52, %v7599_v23  ;;  %v4996_v7 = vsel %vm4994_vm7, %v7594_v30, %v7595_v52 }
 0x220   : > { %v7603_v46 = vpop.permute.xlu0 %7602 }
 0x221   : > { %v7605_v15 = vunpack.i.h.bf16 %v7603_v46  ;;  %v7604_v47 = vunpack.i.l.bf16 %v7603_v46  ;;  %6223 = vmatmul.mubr.msk.f32.vlgmr.msra.gmra.mrb[22].mxu1 %vm1556_vm1, %v10352_v49  ;;  %v5006_v37 = vsel %vm4994_vm7, %v7609_v57, %v7610_v45 }
 0x222   : > { %5229 = vmatprep.mubr.f32.mxu1 %v10948_v31  ;;  %6222 = vmatmul.mubr.msk.f32.vlgmr.msra.gmra.mrb[22].mxu0 %vm1556_vm1, %v10352_v49  ;;  %v7618_v9 = vpop.permute.xlu1 %7617  ;;  %v6588_v41 = vpack.c.bf16 %v5006_v37, %v4998_v12 }
 0x223   : > { %v5005_v54 = vsel %vm4994_vm7, %v7605_v15, %v7609_v57  ;;  %v5004_v55 = vsel %vm4994_vm7, %v7604_v47, %v7605_v15  ;;  %5158 = vmatprep.mubr.f32.mxu0 %v10948_v31  ;;  %v7620_v3 = vunpack.i.h.bf16 %v7618_v9  ;;  %v7619_v35 = vunpack.i.l.bf16 %v7618_v9 }
 0x224   : > { %v6590_v53 = vpack.c.bf16 %v5005_v54, %v4997_v33  ;;  %v7613_v59 = vpop.permute.xlu0 %7612  ;;  %v6576_v29 = vpack.c.bf16 %v5004_v55, %v4996_v7  ;;  %6589 = vmatprep.subr.bf16.mxu1 %v6588_v41  ;;  %v1846_v54 = vlaneseq }
 0x225   : > { %v7615_v10 = vunpack.i.h.bf16 %v7613_v59  ;;  %v7614_v6 = vunpack.i.l.bf16 %v7613_v59  ;;  %v5012_v36 = vsel %vm4994_vm7, %v7619_v35, %v7620_v3 }
 0x226   : > { %6577 = vmatprep.subr.bf16.mxu0 %v6576_v29  ;;  %6591 = vmatpush1.bf16.msra.mxu1 %v6590_v53  ;;  %v7628_v24 = vpop.permute.xlu1 %7627 }
 0x227   : > { %v4995_v49 = vsel %vm4994_vm7, %v7614_v6, %v7594_v30  ;;  %v5003_v27 = vsel %vm4994_vm7, %v7615_v10, %v7604_v47  ;;  %v7630_v20 = vunpack.i.h.bf16 %v7628_v24  ;;  %v7629_v21 = vunpack.i.l.bf16 %v7628_v24 }
 0x228   : > { %v6578_v40 = vpack.c.bf16 %v5003_v27, %v4995_v49  ;;  %v10458_v0 = vpop.permute.xlu0 %7622 }
 0x229   : > { %v7624_v50 = vunpack.i.l.bf16 %v10458_v0  ;;  %v5020_v8 = vsel %vm4994_vm7, %v7629_v21, %v7630_v20  ;;  %v7625_v44 = vunpack.i.h.bf16 %v10458_v0  ;;  %v5896_v0 = vld [vmem:[%s10879_s4] sm:$0xff] }
 0x22a   : > { %6579 = vmatpush1.bf16.msra.mxu0 %v6578_v40  ;;  %v7638_v26 = vpop.permute.xlu1 %7637  ;;  %v6580_v63 = vpack.c.bf16 %v5020_v8, %v5012_v36  ;;  %v10496_v40 = vshrl.u32 %v1846_v54, 7 }
 0x22b   : > { %v7640_v38 = vunpack.i.h.bf16 %v7638_v26  ;;  %v7639_v42 = vunpack.i.l.bf16 %v7638_v26  ;;  %v5013_v14 = vsel %vm4994_vm7, %v7620_v3, %v7624_v50  ;;  %v5014_v22 = vsel %vm4994_vm7, %v7624_v50, %v7625_v44 }
 0x22c   : > { %v10464_v17 = vpop.permute.xlu0 %7632  ;;  %6581 = vmatprep.subr.bf16.mxu0 %v6580_v63 }
 0x22d   : > { %v7635_v56 = vunpack.i.h.bf16 %v10464_v17  ;;  %v7634_v16 = vunpack.i.l.bf16 %v10464_v17  ;;  %v5011_v60 = vsel %vm4994_vm7, %v7639_v42, %v7619_v35  ;;  %v5019_v43 = vsel %vm4994_vm7, %v7640_v38, %v7629_v21  ;;  %v10501_v21 = vld [vmem:[%s10878_s3 + $0x38] sm:$0xff] }
 0x22e   : > { %v6582_v62 = vpack.c.bf16 %v5019_v43, %v5011_v60  ;;  %v10472_v39 = vpop.permute.xlu1 %7647  ;;  %v1856_v60 = vsub.s32 2, %v10496_v40 }
 0x22f   : > { %v5021_v48 = vsel %vm4994_vm7, %v7630_v20, %v7634_v16  ;;  %v5022_v2 = vsel %vm4994_vm7, %v7634_v16, %v7635_v56  ;;  %v7650_v23 = vunpack.i.h.bf16 %v10472_v39  ;;  %v7649_v52 = vunpack.i.l.bf16 %v10472_v39 }
 0x230   : > { %v6594_v5 = vpack.c.bf16 %v5021_v48, %v5013_v14  ;;  %v7643_v18 = vpop.permute.xlu0 %7642  ;;  %v6592_v61 = vpack.c.bf16 %v5022_v2, %v5014_v22  ;;  %6583 = vmatpush1.bf16.msra.mxu0 %v6582_v62  ;;  %v1848_v14 = vsub.s32 0, %v10496_v40 }
 0x231   : > { %v7645_v30 = vunpack.i.h.bf16 %v7643_v18  ;;  %v7644_v57 = vunpack.i.l.bf16 %v7643_v18  ;;  %v5030_v7 = vsel %vm4994_vm7, %v7649_v52, %v7650_v23 }
 0x232   : > { %6593 = vmatprep.subr.bf16.mxu1 %v6592_v61  ;;  %v10482_v46 = vpop.permute.xlu1 %7657 }
 0x233   : > { %6595 = vmatpush1.bf16.msra.mxu1 %v6594_v5  ;;  %v7660_v15 = vunpack.i.h.bf16 %v10482_v46  ;;  %v7659_v47 = vunpack.i.l.bf16 %v10482_v46  ;;  %v5029_v9 = vsel %vm4994_vm7, %v7645_v30, %v7649_v52  ;;  %v5028_v59 = vsel %vm4994_vm7, %v7644_v57, %v7645_v30 }
 0x234   : > { %v7653_v33 = vpop.permute.xlu0 %7652 }
 0x235   : > { %v7655_v12 = vunpack.i.h.bf16 %v7653_v33  ;;  %v7654_v37 = vunpack.i.l.bf16 %v7653_v33  ;;  %v5038_v55 = vsel %vm4994_vm7, %v7659_v47, %v7660_v15  ;;  %v10533_v33 = vrot.slane %v10521_v58, %v1856_v60 }
 0x236   : > { %v7668_v53 = vpop.permute.xlu1 %7667  ;;  %v6596_v10 = vpack.c.bf16 %v5038_v55, %v5030_v7 }
 0x237   : > { %v5037_v41 = vsel %vm4994_vm7, %v7655_v12, %v7659_v47  ;;  %v5036_v29 = vsel %vm4994_vm7, %v7654_v37, %v7655_v12  ;;  %v7669_v49 = vunpack.i.l.bf16 %v7668_v53  ;;  %v7670_v20 = vunpack.i.h.bf16 %v7668_v53 }
 0x238   : > { %v6598_v6 = vpack.c.bf16 %v5037_v41, %v5029_v9  ;;  %v7663_v3 = vpop.permute.xlu0 %7662  ;;  %v6584_v35 = vpack.c.bf16 %v5036_v29, %v5028_v59  ;;  %6597 = vmatprep.subr.bf16.mxu1 %v6596_v10  ;;  %v10563_v17 = vmul.f32 %v10533_v33, %v10392_v11  ;;  %v1864_v11 = vsub.s32 4, %v10496_v40 }
 0x239   : > { %v7665_v27 = vunpack.i.h.bf16 %v7663_v3  ;;  %v7664_v24 = vunpack.i.l.bf16 %v7663_v3  ;;  %v4999_v16 = vsel %vm4994_vm7, %v7600_v28, %v7669_v49  ;;  %v5000_v62 = vsel %vm4994_vm7, %v7669_v49, %v7670_v20  ;;  %v10551_v49 = vld [vmem:[%s10875_s0 + $0x1] ss:$2 sm:$0xff] }
 0x23a   : > { %6585 = vmatprep.subr.bf16.mxu0 %v6584_v35  ;;  %6599 = vmatpush1.bf16.msra.mxu1 %v6598_v6  ;;  %v7678_v8 = vpop.permute.xlu1 %7677  ;;  %v1852_v28 = vsub.s32 1, %v10496_v40 }
 0x23b   : > { %v5027_v50 = vsel %vm4994_vm7, %v7664_v24, %v7644_v57  ;;  %v5035_v36 = vsel %vm4994_vm7, %v7665_v27, %v7654_v37  ;;  %v7680_v63 = vunpack.i.h.bf16 %v7678_v8  ;;  %v7679_v38 = vunpack.i.l.bf16 %v7678_v8 }
 0x23c   : > { %v6586_v26 = vpack.c.bf16 %v5035_v36, %v5027_v50  ;;  %v7673_v42 = vpop.permute.xlu0 %7672  ;;  %v10527_v57 = vrot.slane %v10521_v58, %v1848_v14  ;;  %v10536_v12 = vrot.slane %v10521_v58, %v1852_v28  ;;  %v1860_v37 = vsub.s32 3, %v10496_v40 }
 0x23d   : > { %6226 = vmatmul.mubr.msk.f32.vlgmr.msra.gmra.mrb[4].mxu1 %vm1556_vm1, %v10501_v21  ;;  %v5007_v43 = vsel %vm4994_vm7, %v7610_v45, %v7679_v38  ;;  %v5008_v48 = vsel %vm4994_vm7, %v7679_v38, %v7680_v63  ;;  %v7675_v2 = vunpack.i.h.bf16 %v7673_v42  ;;  %v7674_v5 = vunpack.i.l.bf16 %v7673_v42 }
 0x23e   : > { %6587 = vmatpush1.bf16.msra.mxu0 %v6586_v26  ;;  %5371 = vmatprep.mubr.f32.mxu1 %v10948_v31  ;;  %v6602_v22 = vpack.c.bf16 %v5007_v43, %v4999_v16  ;;  %v7688_v4 = vpop.permute.xlu1 %7687  ;;  %v6600_v18 = vpack.c.bf16 %v5008_v48, %v5000_v62  ;;  %v1886_v35 = vmul.f32 %v10527_v57, %v10390_v32  ;;  %v8015_v42 = vmov 0  }
 0x23f   : > { %v7689_v61 = vunpack.i.l.bf16 %v7688_v4  ;;  %v7690_v47 = vunpack.i.h.bf16 %v7688_v4  ;;  %v5001_v54 = vsel %vm4994_vm7, %v7670_v20, %v7674_v5  ;;  %v5002_v55 = vsel %vm4994_vm7, %v7674_v5, %v7675_v2  ;;  %7861 = vset.pattern.permute.xlu0 %v8015_v42 }
 0x240   : > { %v7683_v45 = vpop.permute.xlu0 %7682  ;;  %6601 = vmatprep.subr.bf16.mxu0 %v6600_v18  ;;  %v10573_v38 = vrot.slane %v10551_v49, %v1848_v14  ;;  %5899 = vperm.xlu0 %7861, %v5896_v0   ;;  %v10579_v2 = vrot.slane %v10551_v49, %v1852_v28 }
 0x241   : > { %v7685_v52 = vunpack.i.h.bf16 %v7683_v45  ;;  %v7684_v30 = vunpack.i.l.bf16 %v7683_v45  ;;  %6225 = vmatmul.mubr.msk.f32.vlgmr.msra.gmra.mrb[4].mxu0 %vm1556_vm1, %v10501_v21  ;;  %v5015_v3 = vsel %vm4994_vm7, %v7625_v44, %v7689_v61  ;;  %v5016_v24 = vsel %vm4994_vm7, %v7689_v61, %v7690_v47 }
 0x242   : > { %6603 = vmatpush1.bf16.msra.mxu0 %v6602_v22  ;;  %5300 = vmatprep.mubr.f32.mxu0 %v10948_v31  ;;  %v7698_v7 = vpop.permute.xlu1 %7697  ;;  %v1868_v22 = vsub.s32 5, %v10496_v40 }
 0x243   : > { %v5009_v9 = vsel %vm4994_vm7, %v7680_v63, %v7684_v30  ;;  %v5010_v41 = vsel %vm4994_vm7, %v7684_v30, %v7685_v52  ;;  %v7700_v59 = vunpack.i.h.bf16 %v7698_v7  ;;  %v7699_v29 = vunpack.i.l.bf16 %v7698_v7 }
 0x244   : > { %v6614_v53 = vpack.c.bf16 %v5009_v9, %v5001_v54  ;;  %v7693_v10 = vpop.permute.xlu0 %7692  ;;  %v6612_v6 = vpack.c.bf16 %v5010_v41, %v5002_v55  ;;  %v10570_v63 = vrot.slane %v10521_v58, %v1860_v37  ;;  %v10593_v41 = vrot.slane %v10551_v49, %v1856_v60 }
 0x245   : > { %v5023_v27 = vsel %vm4994_vm7, %v7635_v56, %v7699_v29  ;;  %v5024_v20 = vsel %vm4994_vm7, %v7699_v29, %v7700_v59  ;;  %v7695_v32 = vunpack.i.h.bf16 %v7693_v10  ;;  %v7694_v50 = vunpack.i.l.bf16 %v7693_v10 }
 0x246   : > { %6613 = vmatprep.subr.bf16.mxu1 %v6612_v6  ;;  %v6606_v44 = vpack.c.bf16 %v5023_v27, %v5015_v3  ;;  %v7708_v36 = vpop.permute.xlu1 %7707  ;;  %v6604_v8 = vpack.c.bf16 %v5024_v20, %v5016_v24  ;;  %v1887_v56 = vmul.f32 %v10536_v12, %v10394_v19  ;;  %v1872_v19 = vsub.s32 6, %v10496_v40 }
 0x247   : > { %6615 = vmatpush1.bf16.msra.mxu1 %v6614_v53  ;;  %v7710_v16 = vunpack.i.h.bf16 %v7708_v36  ;;  %v7709_v43 = vunpack.i.l.bf16 %v7708_v36  ;;  %v5017_v14 = vsel %vm4994_vm7, %v7690_v47, %v7694_v50  ;;  %v5018_v18 = vsel %vm4994_vm7, %v7694_v50, %v7695_v32 }
 0x248   : > { %v7703_v26 = vpop.permute.xlu0 %7702  ;;  %6605 = vmatprep.subr.bf16.mxu0 %v6604_v8  ;;  %v10603_v60 = vrot.slane %v10551_v49, %v1860_v37  ;;  %v1889_v46 = vmul.f32 %v10570_v63, %v10396_v25  ;;  %v10615_v50 = vrot.slane %v10521_v58, %v1864_v11  ;;  %v10620_v37 = vrot.slane %v10521_v58, %v1868_v22 }
 0x249   : > { %v7705_v62 = vunpack.i.h.bf16 %v7703_v26  ;;  %v7704_v48 = vunpack.i.l.bf16 %v7703_v26  ;;  %6607 = vmatpush1.bf16.msra.mxu0 %v6606_v44  ;;  %v5031_v28 = vsel %vm4994_vm7, %v7650_v23, %v7709_v43  ;;  %v5032_v47 = vsel %vm4994_vm7, %v7709_v43, %v7710_v16 }
 0x24b   : > { %v5025_v5 = vsel %vm4994_vm7, %v7700_v59, %v7704_v48  ;;  %v7718_v4 = vpop.permute.xlu1 %7717  ;;  %v5026_v45 = vsel %vm4994_vm7, %v7704_v48, %v7705_v62  ;;  %v2672_v7 = vpop.f32.mrb[8].mxu0 }
 0x24c   : > { %v6618_v61 = vpack.c.bf16 %v5025_v5, %v5017_v14  ;;  %v7720_v52 = vunpack.i.h.bf16 %v7718_v4  ;;  %v7719_v30 = vunpack.i.l.bf16 %v7718_v4  ;;  %v7713_v54 = vpop.permute.xlu0 %7712  ;;  %v6616_v9 = vpack.c.bf16 %v5026_v45, %v5018_v18  ;;  %v2674_v53 = vpop.f32.mrb[9].mxu0 }
 0x24d   : > { %v2933_v55 = vmul.f32 %v10573_v38, %v2672_v7  ;;  %v7714_v29 = vunpack.i.l.bf16 %v7713_v54  ;;  %v2934_v23 = vmul.f32 %v10579_v2, %v2674_v53  ;;  %v7715_v6 = vunpack.i.h.bf16 %v7713_v54 }
 0x24e   : > { %v5039_v59 = vsel %vm4994_vm7, %v7660_v15, %v7719_v30  ;;  %6617 = vmatprep.subr.bf16.mxu1 %v6616_v9  ;;  %v5040_v39 = vsel %vm4994_vm7, %v7719_v30, %v7720_v52  ;;  %v1876_v15 = vsub.s32 7, %v10496_v40 }
 0x24f   : > { %v6610_v10 = vpack.c.bf16 %v5039_v59, %v5031_v28  ;;  %6619 = vmatpush1.bf16.msra.mxu1 %v6618_v61  ;;  %v7728_v3 = vpop.permute.xlu1 %7727  ;;  %v6608_v27 = vpack.c.bf16 %v5040_v39, %v5032_v47  ;;  %v10608_v20 = vadd.f32 %v2933_v55, %v1886_v35  ;;  %v10610_v0 = vadd.f32 %v2934_v23, %v1887_v56 }
 0x250   : > { %v7723_v24 = vpop.permute.xlu0 %7722  ;;  %v2743_v25 = vpop.f32.mrb[8].mxu1  ;;  %v5033_v36 = vsel %vm4994_vm7, %v7710_v16, %v7714_v29  ;;  %v7730_v35 = vunpack.i.h.bf16 %v7728_v3  ;;  %v7729_v8 = vunpack.i.l.bf16 %v7728_v3  ;;  %v5034_v62 = vsel %vm4994_vm7, %v7714_v29, %v7715_v6 }
 0x251   : > { %v7725_v44 = vunpack.i.h.bf16 %v7723_v24  ;;  %v7724_v32 = vunpack.i.l.bf16 %v7723_v24  ;;  %6609 = vmatprep.subr.bf16.mxu0 %v6608_v27  ;;  %v2935_v26 = vmul.f32 %v10593_v41, %v2743_v25  ;;  %v2745_v56 = vpop.f32.mrb[9].mxu1  ;;  %v10645_v28 = vrot.slane %v10551_v49, %v1864_v11 }
 0x252   : > { %6611 = vmatpush1.bf16.msra.mxu0 %v6610_v10  ;;  %v2936_v14 = vmul.f32 %v10603_v60, %v2745_v56  ;;  %v5498_v9 = vsel %vm5496_vm8, %v7729_v8, %v7730_v35  ;;  %v10650_v55 = vrot.slane %v10521_v58, %v1872_v19  ;;  %v10655_v53 = vrot.slane %v10521_v58, %v1876_v15 }
 0x253   : > { %v5041_v42 = vsel %vm4994_vm7, %v7720_v52, %v7724_v32  ;;  %v7738_v43 = vpop.permute.xlu1 %7737  ;;  %v5042_v48 = vsel %vm4994_vm7, %v7724_v32, %v7725_v44  ;;  %v10634_v52 = vadd.f32 %v2935_v26, %v10563_v17  ;;  %v10660_v59 = vrot.slane %v10551_v49, %v1868_v22 }
 0x254   : > { %v6622_v5 = vpack.c.bf16 %v5041_v42, %v5033_v36  ;;  %v7740_v4 = vunpack.i.h.bf16 %v7738_v43  ;;  %v7739_v18 = vunpack.i.l.bf16 %v7738_v43  ;;  %v10628_v45 = vpop.permute.xlu0 %7732  ;;  %v6620_v16 = vpack.c.bf16 %v5042_v48, %v5034_v62 }
 0x255   : > { %v7734_v61 = vunpack.i.l.bf16 %v10628_v45  ;;  %6227 = vmatmul.mubr.msk.f32.vlgmr.msra.gmra.mrb[6].mxu0 %vm1556_vm1, %v10501_v21  ;;  %v10636_v30 = vadd.f32 %v2936_v14, %v1889_v46  ;;  %v7735_v54 = vunpack.i.h.bf16 %v10628_v45  ;;  %v1890_v23 = vmul.f32 %v10615_v50, %v10399_v1 }
 0x256   : > { %6621 = vmatprep.subr.bf16.mxu1 %v6620_v16  ;;  %v5506_v7 = vsel %vm5496_vm8, %v7739_v18, %v7740_v4  ;;  %5660 = vmatprep.mubr.f32.mxu0 %v10948_v31  ;;  %v1891_v10 = vmul.f32 %v10620_v37, %v10410_v13  ;;  %v10674_v22 = vrot.slane %v10551_v49, %v1872_v19 }
 0x257   : > { %6623 = vmatpush1.bf16.msra.mxu1 %v6622_v5  ;;  %v7748_v47 = vpop.permute.xlu1 %7747  ;;  %v6624_v17 = vpack.c.bf16 %v5506_v7, %v5498_v9  ;;  %v5499_v6 = vsel %vm5496_vm8, %v7730_v35, %v7734_v61  ;;  %v5500_v13 = vsel %vm5496_vm8, %v7734_v61, %v7735_v54  ;;  %v10695_v56 = vrot.slane %v10551_v49, %v1876_v15 }
 0x258   : > { %v7750_v11 = vunpack.i.h.bf16 %v7748_v47  ;;  %v7749_v29 = vunpack.i.l.bf16 %v7748_v47  ;;  %v10662_v39 = vpop.permute.xlu0 %7742  ;;  %v2814_v27 = vpop.f32.mrb[10].mxu0  ;;  %v1892_v42 = vmul.f32 %v10650_v55, %v10401_v34  ;;  %v1893_v40 = vmul.f32 %v10655_v53, %v10412_v51 }
 0x259   : > { %v7745_v58 = vunpack.i.h.bf16 %v10662_v39  ;;  %v7744_v3 = vunpack.i.l.bf16 %v10662_v39  ;;  %6625 = vmatprep.subr.bf16.mxu0 %v6624_v17  ;;  %v2937_v46 = vmul.f32 %v10645_v28, %v2814_v27  ;;  %v2816_v44 = vpop.f32.mrb[11].mxu0 }
 0x25a   : > { %v5497_v24 = vsel %vm5496_vm8, %v7749_v29, %v7729_v8  ;;  %v5505_v1 = vsel %vm5496_vm8, %v7750_v11, %v7739_v18  ;;  %6228 = vmatmul.mubr.msk.f32.vlgmr.msra.gmra.mrb[6].mxu1 %vm1556_vm1, %v10501_v21  ;;  %v2938_v21 = vmul.f32 %v10660_v59, %v2816_v44 }
 0x25b   : > { %v6626_v32 = vpack.c.bf16 %v5505_v1, %v5497_v24  ;;  %v5507_v25 = vsel %vm5496_vm8, %v7740_v4, %v7744_v3  ;;  %v10685_v36 = vpop.permute.xlu1 %7757  ;;  %v5508_v19 = vsel %vm5496_vm8, %v7744_v3, %v7745_v58  ;;  %5731 = vmatprep.mubr.f32.mxu1 %v10948_v31  ;;  %v10699_v43 = vadd.f32 %v2937_v46, %v1890_v23 }
 0x25c   : > { %v6638_v35 = vpack.c.bf16 %v5507_v25, %v5499_v6  ;;  %v7753_v8 = vpop.permute.xlu0 %7752  ;;  %v6636_v26 = vpack.c.bf16 %v5508_v19, %v5500_v13  ;;  %v10701_v62 = vadd.f32 %v2938_v21, %v1891_v10  ;;  %v7760_v48 = vunpack.i.h.bf16 %v10685_v36 }
 0x25d   : > { %6627 = vmatpush1.bf16.msra.mxu0 %v6626_v32  ;;  %v7759_v14 = vunpack.i.l.bf16 %v10685_v36  ;;  %v7755_v5 = vunpack.i.h.bf16 %v7753_v8  ;;  %v2885_v4 = vpop.f32.mrb[10].mxu1  ;;  %v7754_v49 = vunpack.i.l.bf16 %v7753_v8 }
 0x25e   : > { %6637 = vmatprep.subr.bf16.mxu1 %v6636_v26  ;;  %v2939_v34 = vmul.f32 %v10674_v22, %v2885_v4  ;;  %v2887_v18 = vpop.f32.mrb[11].mxu1 }
 0x25f   : > { %6639 = vmatpush1.bf16.msra.mxu1 %v6638_v35  ;;  %v10707_v15 = vpop.permute.xlu1 %7767  ;;  %v2940_v7 = vmul.f32 %v10695_v56, %v2887_v18  ;;  %v5515_v51 = vsel %vm5496_vm8, %v7755_v5, %v7759_v14  ;;  %v5516_v29 = vsel %vm5496_vm8, %v7759_v14, %v7760_v48  ;;  %v5514_v27 = vsel %vm5496_vm8, %v7754_v49, %v7755_v5 }
 0x260   : > { %v7770_v16 = vunpack.i.h.bf16 %v10707_v15  ;;  %v7769_v61 = vunpack.i.l.bf16 %v10707_v15  ;;  %v7763_v9 = vpop.permute.xlu0 %7762  ;;  %v10713_v11 = vadd.f32 %v2939_v34, %v1892_v42 }
 0x261   : > { %v7765_v47 = vunpack.i.h.bf16 %v7763_v9  ;;  %v7764_v17 = vunpack.i.l.bf16 %v7763_v9  ;;  %v10722_v10 = vadd.f32 %v2940_v7, %v1893_v40 }
 0x262   : > { %v5524_v23 = vsel %vm5496_vm8, %v7769_v61, %v7770_v16 }
 0x263   : > { %v5523_v6 = vsel %vm5496_vm8, %v7765_v47, %v7769_v61  ;;  %v7778_v3 = vpop.permute.xlu1 %7777  ;;  %v5522_v24 = vsel %vm5496_vm8, %v7764_v17, %v7765_v47  ;;  %v6640_v1 = vpack.c.bf16 %v5524_v23, %v5516_v29 }
 0x264   : > { %v6642_v13 = vpack.c.bf16 %v5523_v6, %v5515_v51  ;;  %v7773_v46 = vpop.permute.xlu0 %7772  ;;  %v6628_v44 = vpack.c.bf16 %v5522_v24, %v5514_v27  ;;  %v7780_v19 = vunpack.i.h.bf16 %v7778_v3  ;;  %v7779_v21 = vunpack.i.l.bf16 %v7778_v3 }
 0x265   : > { %v7775_v32 = vunpack.i.h.bf16 %v7773_v46  ;;  %v7774_v25 = vunpack.i.l.bf16 %v7773_v46  ;;  %6641 = vmatprep.subr.bf16.mxu1 %v6640_v1 }
 0x266   : > { %6629 = vmatprep.subr.bf16.mxu0 %v6628_v44  ;;  %6643 = vmatpush1.bf16.msra.mxu1 %v6642_v13  ;;  %v5530_v34 = vsel %vm5496_vm8, %v7779_v21, %v7780_v19 }
 0x267   : > { %v5513_v35 = vsel %vm5496_vm8, %v7774_v25, %v7754_v49  ;;  %v5521_v8 = vsel %vm5496_vm8, %v7775_v32, %v7764_v17  ;;  %v7788_v26 = vpop.permute.xlu1 %7787 }
 0x268   : > { %v6630_v42 = vpack.c.bf16 %v5521_v8, %v5513_v35  ;;  %v7790_v14 = vunpack.i.h.bf16 %v7788_v26  ;;  %v7789_v5 = vunpack.i.l.bf16 %v7788_v26  ;;  %v10729_v40 = vpop.permute.xlu0 %7782 }
 0x269   : > { %v7784_v4 = vunpack.i.l.bf16 %v10729_v40  ;;  %v7785_v61 = vunpack.i.h.bf16 %v10729_v40 }
 0x26a   : > { %6631 = vmatpush1.bf16.msra.mxu0 %v6630_v42  ;;  %v5538_v18 = vsel %vm5496_vm8, %v7789_v5, %v7790_v14 }
 0x26b   : > { %v7798_v9 = vpop.permute.xlu1 %7797  ;;  %v6632_v7 = vpack.c.bf16 %v5538_v18, %v5530_v34  ;;  %v5531_v23 = vsel %vm5496_vm8, %v7780_v19, %v7784_v4  ;;  %v5532_v13 = vsel %vm5496_vm8, %v7784_v4, %v7785_v61  ;;  %v10752_v19 = vld [vmem:[%s10878_s3 + $0x40] sm:$0xff] }
 0x26c   : > { %v7800_v49 = vunpack.i.h.bf16 %v7798_v9  ;;  %v7799_v47 = vunpack.i.l.bf16 %v7798_v9  ;;  %v10735_v17 = vpop.permute.xlu0 %7792 }
 0x26d   : > { %v7795_v51 = vunpack.i.h.bf16 %v10735_v17  ;;  %v7794_v29 = vunpack.i.l.bf16 %v10735_v17  ;;  %6633 = vmatprep.subr.bf16.mxu0 %v6632_v7 }
 0x26e   : > { %v5529_v6 = vsel %vm5496_vm8, %v7799_v47, %v7779_v21  ;;  %v5537_v3 = vsel %vm5496_vm8, %v7800_v49, %v7789_v5 }
 0x26f   : > { %v6634_v27 = vpack.c.bf16 %v5537_v3, %v5529_v6  ;;  %v5539_v24 = vsel %vm5496_vm8, %v7790_v14, %v7794_v29  ;;  %v7808_v1 = vpop.permute.xlu1 %7807  ;;  %v5540_v46 = vsel %vm5496_vm8, %v7794_v29, %v7795_v51 }
 0x270   : > { %v6646_v44 = vpack.c.bf16 %v5539_v24, %v5531_v23  ;;  %v7803_v32 = vpop.permute.xlu0 %7802  ;;  %v6644_v25 = vpack.c.bf16 %v5540_v46, %v5532_v13  ;;  %v7810_v21 = vunpack.i.h.bf16 %v7808_v1  ;;  %v7809_v35 = vunpack.i.l.bf16 %v7808_v1 }
 0x271   : > { %6635 = vmatpush1.bf16.msra.mxu0 %v6634_v27  ;;  %v7805_v8 = vunpack.i.h.bf16 %v7803_v32  ;;  %v7804_v26 = vunpack.i.l.bf16 %v7803_v32 }
 0x272   : > { %6645 = vmatprep.subr.bf16.mxu1 %v6644_v25  ;;  %v5504_v49 = vsel %vm5496_vm8, %v7809_v35, %v7810_v21 }
 0x273   : > { %6647 = vmatpush1.bf16.msra.mxu1 %v6646_v44  ;;  %v7818_v42 = vpop.permute.xlu1 %7817  ;;  %v5503_v9 = vsel %vm5496_vm8, %v7805_v8, %v7809_v35  ;;  %v5501_v7 = vsel %vm5496_vm8, %v7735_v54, %v7804_v26  ;;  %v5502_v1 = vsel %vm5496_vm8, %v7804_v26, %v7805_v8 }
 0x274   : > { %v7820_v14 = vunpack.i.h.bf16 %v7818_v42  ;;  %v7819_v5 = vunpack.i.l.bf16 %v7818_v42  ;;  %v7813_v4 = vpop.permute.xlu0 %7812  ;;  %6230 = vmatmul.mubr.msk.f32.vlgmr.msra.gmra.mrb[24].mxu0 %vm1556_vm1, %v10752_v19 }
 0x275   : > { %v7815_v34 = vunpack.i.h.bf16 %v7813_v4  ;;  %v7814_v18 = vunpack.i.l.bf16 %v7813_v4  ;;  %5802 = vmatprep.mubr.f32.mxu0 %v10948_v31 }
 0x276   : > { %6231 = vmatmul.mubr.msk.f32.vlgmr.msra.gmra.mrb[24].mxu1 %vm1556_vm1, %v10752_v19  ;;  %v5512_v47 = vsel %vm5496_vm8, %v7819_v5, %v7820_v14 }
 0x277   : > { %v5511_v29 = vsel %vm5496_vm8, %v7815_v34, %v7819_v5  ;;  %v5509_v23 = vsel %vm5496_vm8, %v7745_v58, %v7814_v18  ;;  %v7828_v6 = vpop.permute.xlu1 %7827  ;;  %v5510_v3 = vsel %vm5496_vm8, %v7814_v18, %v7815_v34  ;;  %v6660_v27 = vpack.c.bf16 %v5512_v47, %v5504_v49  ;;  %5873 = vmatprep.mubr.f32.mxu1 %v10948_v31 }
 0x278   : > { %v6650_v45 = vpack.c.bf16 %v5509_v23, %v5501_v7  ;;  %v6662_v54 = vpack.c.bf16 %v5511_v29, %v5503_v9  ;;  %v7823_v24 = vpop.permute.xlu0 %7822  ;;  %v6648_v13 = vpack.c.bf16 %v5510_v3, %v5502_v1  ;;  %v7830_v46 = vunpack.i.h.bf16 %v7828_v6 }
 0x279   : > { %6661 = vmatprep.subr.bf16.mxu1 %v6660_v27  ;;  %v7829_v44 = vunpack.i.l.bf16 %v7828_v6  ;;  %v7825_v32 = vunpack.i.h.bf16 %v7823_v24  ;;  %v7824_v25 = vunpack.i.l.bf16 %v7823_v24 }
 0x27a   : > { %6663 = vmatpush1.bf16.msra.mxu1 %v6662_v54  ;;  %6649 = vmatprep.subr.bf16.mxu0 %v6648_v13 }
 0x27b   : > { %v7838_v39 = vpop.permute.xlu1 %7837  ;;  %6651 = vmatpush1.bf16.msra.mxu0 %v6650_v45  ;;  %v5519_v14 = vsel %vm5496_vm8, %v7825_v32, %v7829_v44  ;;  %v5517_v8 = vsel %vm5496_vm8, %v7760_v48, %v7824_v25  ;;  %v5520_v26 = vsel %vm5496_vm8, %v7829_v44, %v7830_v46  ;;  %v5518_v36 = vsel %vm5496_vm8, %v7824_v25, %v7825_v32 }
 0x27c   : > { %v7840_v58 = vunpack.i.h.bf16 %v7838_v39  ;;  %v7839_v21 = vunpack.i.l.bf16 %v7838_v39  ;;  %v7833_v35 = vpop.permute.xlu0 %7832 }
 0x27d   : > { %v7835_v42 = vunpack.i.h.bf16 %v7833_v35  ;;  %v7834_v31 = vunpack.i.l.bf16 %v7833_v35 }
 0x27e   : > { %v5528_v5 = vsel %vm5496_vm8, %v7839_v21, %v7840_v58 }
 0x27f   : > { %v5527_v4 = vsel %vm5496_vm8, %v7835_v42, %v7839_v21  ;;  %v5525_v34 = vsel %vm5496_vm8, %v7770_v16, %v7834_v31  ;;  %v7848_v18 = vpop.permute.xlu1 %7847  ;;  %v5526_v9 = vsel %vm5496_vm8, %v7834_v31, %v7835_v42  ;;  %v6664_v7 = vpack.c.bf16 %v5528_v5, %v5520_v26 }
 0x280   : > { %v6654_v49 = vpack.c.bf16 %v5525_v34, %v5517_v8  ;;  %v6666_v47 = vpack.c.bf16 %v5527_v4, %v5519_v14  ;;  %v7843_v29 = vpop.permute.xlu0 %7842  ;;  %v7850_v48 = vunpack.i.h.bf16 %v7848_v18  ;;  %v7849_v23 = vunpack.i.l.bf16 %v7848_v18 }
 0x281   : > { %v7845_v6 = vunpack.i.h.bf16 %v7843_v29  ;;  %v6652_v3 = vpack.c.bf16 %v5526_v9, %v5518_v36  ;;  %6665 = vmatprep.subr.bf16.mxu1 %v6664_v7  ;;  %v7844_v27 = vunpack.i.l.bf16 %v7843_v29 }
 0x282   : > { %6667 = vmatpush1.bf16.msra.mxu1 %v6666_v47  ;;  %v5536_v46 = vsel %vm5496_vm8, %v7849_v23, %v7850_v48 }
 0x283   : > { %6653 = vmatprep.subr.bf16.mxu0 %v6652_v3  ;;  %v7858_v15 = vpop.permute.xlu1 %7857  ;;  %v5535_v24 = vsel %vm5496_vm8, %v7845_v6, %v7849_v23  ;;  %v5533_v32 = vsel %vm5496_vm8, %v7785_v61, %v7844_v27  ;;  %v5534_v25 = vsel %vm5496_vm8, %v7844_v27, %v7845_v6  ;;  %v3296_v21 = vpop.f32.mrb[12].mxu1 }
 0x284   : > { %6655 = vmatpush1.bf16.msra.mxu0 %v6654_v49  ;;  %v7860_v16 = vunpack.i.h.bf16 %v7858_v15  ;;  %v7859_v45 = vunpack.i.l.bf16 %v7858_v15  ;;  %v7853_v54 = vpop.permute.xlu0 %7852  ;;  %v3225_v44 = vpop.f32.mrb[12].mxu0  ;;  %v3445_v34 = vmul.f32 %v3296_v21, %v10533_v33 }
 0x285   : > { %v7855_v1 = vunpack.i.h.bf16 %v7853_v54  ;;  %v7854_v13 = vunpack.i.l.bf16 %v7853_v54  ;;  %v3443_v58 = vmul.f32 %v3225_v44, %v10527_v57  ;;  %v3227_v35 = vpop.f32.mrb[13].mxu0  ;;  %v3298_v40 = vpop.f32.mrb[13].mxu1 }
 0x286   : > { %v5544_v39 = vsel %vm5496_vm8, %v7859_v45, %v7860_v16  ;;  %v3444_v18 = vmul.f32 %v3227_v35, %v10536_v12  ;;  %v3446_v9 = vmul.f32 %v3298_v40, %v10570_v63  ;;  %v6683_v17 = vadd.f32 %v10634_v52, %v3445_v34 }
 0x287   : > { %v5543_v42 = vsel %vm5496_vm8, %v7855_v1, %v7859_v45  ;;  %v5541_v31 = vsel %vm5496_vm8, %v7795_v51, %v7854_v13  ;;  %v5542_v14 = vsel %vm5496_vm8, %v7854_v13, %v7855_v1  ;;  %v6668_v8 = vpack.c.bf16 %v5544_v39, %v5536_v46 }
 0x288   : > { %v6658_v26 = vpack.c.bf16 %v5541_v31, %v5533_v32  ;;  %v6670_v61 = vpack.c.bf16 %v5543_v42, %v5535_v24  ;;  %v6656_v5 = vpack.c.bf16 %v5542_v14, %v5534_v25  ;;  %v6673_v4 = vadd.f32 %v10608_v20, %v3443_v58 }
 0x289   : > { %6669 = vmatprep.subr.bf16.mxu1 %v6668_v8  ;;  %v6678_v51 = vadd.f32 %v10610_v0, %v3444_v18  ;;  %v6688_v7 = vadd.f32 %v10636_v30, %v3446_v9 }
 0x28a   : > { %6657 = vmatprep.subr.bf16.mxu0 %v6656_v5  ;;  %6671 = vmatpush1.bf16.msra.mxu1 %v6670_v61 }
 0x28b   : > { %6659 = vmatpush1.bf16.msra.mxu0 %v6658_v26 }
 0x28d   : > { %6233 = vmatmul.mubr.msk.f32.vlgmr.msra.gmra.mrb[26].mxu1 %vm1556_vm1, %v10752_v19 }
 0x28e   : > { %6232 = vmatmul.mubr.msk.f32.vlgmr.msra.gmra.mrb[26].mxu0 %vm1556_vm1, %v10752_v19 }
 0x28f   : > { %v3438_v47 = vpop.f32.mrb[14].mxu1 }
 0x290   : > { %v3367_v20 = vpop.f32.mrb[14].mxu0  ;;  %v3449_v36 = vmul.f32 %v3438_v47, %v10650_v55  ;;  %v3440_v52 = vpop.f32.mrb[15].mxu1 }
 0x291   : > { %v3447_v49 = vmul.f32 %v3367_v20, %v10615_v50  ;;  %v3369_v29 = vpop.f32.mrb[15].mxu0  ;;  %v3450_v30 = vmul.f32 %v3440_v52, %v10655_v53 }
 0x292   : > { %v3448_v48 = vmul.f32 %v3369_v29, %v10620_v37  ;;  %v6703_v23 = vadd.f32 %v10713_v11, %v3449_v36 }
 0x293   : > { %v6693_v0 = vadd.f32 %v10699_v43, %v3447_v49  ;;  %v6708_v19 = vadd.f32 %v10722_v10, %v3450_v30 }
 0x294   : > { %v6698_v6 = vadd.f32 %v10701_v62, %v3448_v48 }
 0x2b5   : > { %v4140_v3 = vpop.f32.mrb[16].mxu0 }
 0x2b6   : > { %v4358_v27 = vmul.f32 %v4140_v3, %v10573_v38  ;;  %v4211_v15 = vpop.f32.mrb[16].mxu1  ;;  %v4142_v16 = vpop.f32.mrb[17].mxu0 }
 0x2b7   : > { %v4360_v45 = vmul.f32 %v4211_v15, %v10593_v41  ;;  %v4359_v54 = vmul.f32 %v4142_v16, %v10579_v2  ;;  %v4213_v24 = vpop.f32.mrb[17].mxu1 }
 0x2b8   : > { %v6674_v1 = vadd.f32 %v6673_v4, %v4358_v27  ;;  %v4361_v43 = vmul.f32 %v4213_v24, %v10603_v60 }
 0x2b9   : > { %v6684_v13 = vadd.f32 %v6683_v17, %v4360_v45  ;;  %v6679_v46 = vadd.f32 %v6678_v51, %v4359_v54 }
 0x2ba   : > { %v6689_v11 = vadd.f32 %v6688_v7, %v4361_v43 }
 0x2c1   : > { %v4282_v44 = vpop.f32.mrb[18].mxu0 }
 0x2c2   : > { %v4362_v62 = vmul.f32 %v4282_v44, %v10645_v28  ;;  %v4353_v10 = vpop.f32.mrb[18].mxu1  ;;  %v4284_v32 = vpop.f32.mrb[19].mxu0 }
 0x2c3   : > { %v4364_v25 = vmul.f32 %v4353_v10, %v10674_v22  ;;  %v4363_v39 = vmul.f32 %v4284_v32, %v10660_v59  ;;  %v4355_v58 = vpop.f32.mrb[19].mxu1 }
 0x2c4   : > { %v6694_v21 = vadd.f32 %v6693_v0, %v4362_v62  ;;  %v4365_v35 = vmul.f32 %v4355_v58, %v10695_v56  ;;  %v5900_v62 = vpop.permute.xlu0 %5899 }
 0x2c5   : > { %v6704_v42 = vadd.f32 %v6703_v23, %v4364_v25  ;;  %v6699_v31 = vadd.f32 %v6698_v6, %v4363_v39 }
 0x2c6   : > { %v6709_v14 = vadd.f32 %v6708_v19, %v4365_v35 }
 0x2da   : > { %v4650_v8 = vpop.f32.mrb[20].mxu0 }
 0x2db   : > { %v4868_v40 = vmul.f32 %v4650_v8, %v10527_v57  ;;  %v4652_v26 = vpop.f32.mrb[21].mxu0 }
 0x2dc   : > { %v4869_v61 = vmul.f32 %v4652_v26, %v10536_v12 }
 0x2dd   : > { %v4721_v5 = vpop.f32.mrb[20].mxu1  ;;  %v6675_v18 = vadd.f32 %v6674_v1, %v4868_v40 }
 0x2de   : > { %v4870_v4 = vmul.f32 %v4721_v5, %v10533_v33  ;;  %v4723_v34 = vpop.f32.mrb[21].mxu1  ;;  %v6680_v17 = vadd.f32 %v6679_v46, %v4869_v61 }
 0x2df   : > { %v4871_v9 = vmul.f32 %v4723_v34, %v10570_v63 }
 0x2e0   : > { %v6685_v51 = vadd.f32 %v6684_v13, %v4870_v4 }
 0x2e1   : > { %v6690_v7 = vadd.f32 %v6689_v11, %v4871_v9 }
 0x2f4   : > { %v4863_v20 = vpop.f32.mrb[22].mxu1 }
 0x2f5   : > { %v4874_v49 = vmul.f32 %v4863_v20, %v10650_v55  ;;  %v4865_v47 = vpop.f32.mrb[23].mxu1  ;;  %v4792_v29 = vpop.f32.mrb[22].mxu0 }
 0x2f6   : > { %v4875_v57 = vmul.f32 %v4865_v47, %v10655_v53  ;;  %v4872_v36 = vmul.f32 %v4792_v29, %v10615_v50  ;;  %v4794_v12 = vpop.f32.mrb[23].mxu0 }
 0x2f7   : > { %v6705_v48 = vadd.f32 %v6704_v42, %v4874_v49  ;;  %v4873_v33 = vmul.f32 %v4794_v12, %v10620_v37 }
 0x2f8   : > { %v6710_v52 = vadd.f32 %v6709_v14, %v4875_v57  ;;  %v6695_v0 = vadd.f32 %v6694_v21, %v4872_v36 }
 0x2f9   : > { %v6700_v30 = vadd.f32 %v6699_v31, %v4873_v33 }
 0x310   : > { %v5231_v63 = vpop.f32.mrb[4].mxu1 }
 0x311   : > { %v6686_v23 = vadd.f32 %v6685_v51, %v5231_v63  ;;  %v5233_v6 = vpop.f32.mrb[5].mxu1 }
 0x312   : > { %v6691_v19 = vadd.f32 %v6690_v7, %v5233_v6 }
 0x314   : > { %v5160_v3 = vpop.f32.mrb[4].mxu0 }
 0x315   : > { %v6676_v27 = vadd.f32 %v6675_v18, %v5160_v3  ;;  %v5162_v55 = vpop.f32.mrb[5].mxu0 }
 0x316   : > { %v6681_v15 = vadd.f32 %v6680_v17, %v5162_v55 }
 0x328   : > { %v5302_v16 = vpop.f32.mrb[6].mxu0 }
 0x329   : > { %v6696_v45 = vadd.f32 %v6695_v0, %v5302_v16  ;;  %v5304_v53 = vpop.f32.mrb[7].mxu0 }
 0x32a   : > { %v6701_v54 = vadd.f32 %v6700_v30, %v5304_v53 }
 0x32d   : > { %v5373_v50 = vpop.f32.mrb[6].mxu1 }
 0x32e   : > { %v6706_v24 = vadd.f32 %v6705_v48, %v5373_v50  ;;  %v5375_v1 = vpop.f32.mrb[7].mxu1 }
 0x32f   : > { %v6711_v43 = vadd.f32 %v6710_v52, %v5375_v1 }
 0x347   : > { %v5662_v37 = vpop.f32.mrb[24].mxu0 }
 0x348   : > { %v5880_v13 = vmul.f32 %v5662_v37, %v10573_v38  ;;  %v5664_v46 = vpop.f32.mrb[25].mxu0 }
 0x349   : > { %v5881_v11 = vmul.f32 %v5664_v46, %v10579_v2  ;;  %v5733_v44 = vpop.f32.mrb[24].mxu1 }
 0x34a   : > { %v5888_v10 = vadd.f32 %v6676_v27, %v5880_v13  ;;  %v5882_v32 = vmul.f32 %v5733_v44, %v10593_v41  ;;  %v5735_v25 = vpop.f32.mrb[25].mxu1 }
 0x34b   : > { %v5889_v39 = vadd.f32 %v6681_v15, %v5881_v11  ;;  %v5883_v58 = vmul.f32 %v5735_v25, %v10603_v60 }
 0x34c   : > { %v5890_v21 = vadd.f32 %v6686_v23, %v5882_v32  ;;  %v5902_v35 = vadd.f32 %v5900_v62, %v5888_v10 }
 0x34d   : > { %v5891_v42 = vadd.f32 %v6691_v19, %v5883_v58  ;;  %v5903_v31 = vadd.f32 %v5900_v62, %v5889_v39 }
 0x34e   : > { %v5904_v38 = vadd.f32 %v5900_v62, %v5890_v21  ;;  %5910 = vst [vmem:[%s8114_s14] sm:$0xff] %v5902_v35 }
 0x34f   : > { %v5905_v14 = vadd.f32 %v5900_v62, %v5891_v42  ;;  %5911 = vst [vmem:[%s8114_s14 + $0x8] sm:$0xff] %v5903_v31 }
 0x350   : > { %5912 = vst [vmem:[%s8114_s14 + $0x10] sm:$0xff] %v5904_v38 }
 0x351   : > { %5913 = vst [vmem:[%s8114_s14 + $0x18] sm:$0xff] %v5905_v14 }
 0x360   : > { %v5875_v2 = vpop.f32.mrb[26].mxu1 }
 0x361   : > { %v5804_v8 = vpop.f32.mrb[26].mxu0  ;;  %v5886_v41 = vmul.f32 %v5875_v2, %v10674_v22  ;;  %v5877_v40 = vpop.f32.mrb[27].mxu1 }
 0x362   : > { %v5884_v60 = vmul.f32 %v5804_v8, %v10645_v28  ;;  %v5806_v26 = vpop.f32.mrb[27].mxu0  ;;  %v5887_v61 = vmul.f32 %v5877_v40, %v10695_v56  ;;  %v8016_v28 = vmov (!%p6131_p7), 0.0  }
 0x363   : > { %v5894_v5 = vadd.f32 %v6706_v24, %v5886_v41  ;;  %v5885_v4 = vmul.f32 %v5806_v26, %v10660_v59  ;;  %5920 = sbr.rel (%p6131_p7) target bundleno = 874 (0x36a), region = 48  ;;  %5921 = vst.msk [vmem:[%s8104_s22] sm:$0xff] (!%p6131_p7), %vm3059_vm4, %v8016_v28  ;;  %5922 = vst.msk [vmem:[%s8109_s11] sm:$0xff] (!%p6131_p7), %vm3059_vm4, %v8016_v28 }
 0x364   : > { %v5892_v34 = vadd.f32 %v6696_v45, %v5884_v60  ;;  %v5895_v18 = vadd.f32 %v6711_v43, %v5887_v61 }
 0x365   : > { %v5908_v9 = vadd.f32 %v5900_v62, %v5894_v5  ;;  %v5893_v17 = vadd.f32 %v6701_v54, %v5885_v4 }
 0x366   : > { %v5906_v51 = vadd.f32 %v5900_v62, %v5892_v34  ;;  %v5909_v7 = vadd.f32 %v5900_v62, %v5895_v18 }
 0x367   : > { %5916 = vst [vmem:[%s8114_s14 + $0x30] sm:$0xff] %v5908_v9  ;;  %v5907_v20 = vadd.f32 %v5900_v62, %v5893_v17 }
 0x368   : > { %5914 = vst [vmem:[%s8114_s14 + $0x20] sm:$0xff] %v5906_v51  ;;  %5917 = vst [vmem:[%s8114_s14 + $0x38] sm:$0xff] %v5909_v7 }
 0x369   : > { %5915 = vst [vmem:[%s8114_s14 + $0x28] sm:$0xff] %v5907_v20 }
 0x36a PF: > { %v5924_v59 = vadd.f32 %v5903_v31, %v5902_v35  ;;  %v5936_v22 = vmul.f32 %v5902_v35, %v5902_v35  ;;  %v5937_v56 = vmul.f32 %v5903_v31, %v5903_v31  ;;  %v5938_v49 = vmul.f32 %v5904_v38, %v5904_v38  ;;  %v5923_v16 = vld [vmem:[%s8104_s22] sm:$0xff] }
 0x36b   : > { %v5939_v29 = vmul.f32 %v5905_v14, %v5905_v14  ;;  %v5940_v12 = vmul.f32 %v5906_v51, %v5906_v51  ;;  %v5941_v52 = vmul.f32 %v5907_v20, %v5907_v20  ;;  %v5942_v63 = vmul.f32 %v5908_v9, %v5908_v9  ;;  %v5935_v54 = vld [vmem:[%s8109_s11] sm:$0xff] }
 0x36c   : > { %v5925_v47 = vadd.f32 %v5924_v59, %v5904_v38  ;;  %v5944_v57 = vadd.f32 %v5937_v56, %v5936_v22  ;;  %v5943_v19 = vmul.f32 %v5909_v7, %v5909_v7 }
 0x36e   : > { %v5926_v36 = vadd.f32 %v5925_v47, %v5905_v14  ;;  %v5945_v48 = vadd.f32 %v5944_v57, %v5938_v49 }
 0x370   : > { %v5927_v33 = vadd.f32 %v5926_v36, %v5906_v51  ;;  %v5946_v0 = vadd.f32 %v5945_v48, %v5939_v29 }
 0x372   : > { %v5928_v30 = vadd.f32 %v5927_v33, %v5907_v20  ;;  %v5947_v23 = vadd.f32 %v5946_v0, %v5940_v12 }
 0x374   : > { %v5929_v6 = vadd.f32 %v5928_v30, %v5908_v9  ;;  %v5948_v3 = vadd.f32 %v5947_v23, %v5941_v52 }
 0x376   : > { %v5930_v27 = vadd.f32 %v5929_v6, %v5909_v7  ;;  %v5949_v55 = vadd.f32 %v5948_v3, %v5942_v63 }
 0x378   : > { %5931 = vadd.xlane.f32.xlu0 %v5930_v27  ;;  %v5950_v15 = vadd.f32 %v5949_v55, %v5943_v19 }
 0x37c   : > { %5951 = vadd.xlane.f32.xlu0 %v5950_v15 }
 0x405   : > { %v5932_v45 = vpop.xlane.xlu0 %5931 }
 0x406   : > { %v5933_v53 = vadd.f32 %v5932_v45, %v5923_v16 }
 0x408   : > { %5934 = vst.msk [vmem:[%s8104_s22] sm:$0xff] %vm3059_vm4, %v5933_v53 }
 0x409   : > { %v5952_v50 = vpop.xlane.xlu0 %5951 }
 0x40a   : > { %v5953_v24 = vadd.f32 %v5952_v50, %v5935_v54 }
 0x40c   : > { %5954 = vst.msk [vmem:[%s8109_s11] sm:$0xff] %vm3059_vm4, %v5953_v24 }
 0x40d PF: > { %s18_s28 = sadd.s32 1, %s8002_s28   ;;  %s11045_s14 = sld [smem:[#allocation3_spill]] }
 0x40e   : > { %p15_p8 = scmp.ge.s32.totalorder %s18_s28, 10   ;;  %s11046_s29 = sld [smem:[#allocation4_spill]] }
 0x40f   : > { %s11047_s24 = smov %s7994_s26  ;;  %s11048_s25 = smov %s7998_s27 }
 0x410   :  { %17 = sbr.rel (!%p15_p8) target bundleno = 3 (0x3), region = 149 }
 0x413   : > { %s11049_s26 = smov %s11045_s14 }
 0x414   : > { %s11050_s27 = smov %s11046_s29 }

// kernel: up_block3d_forward.6
= control target key start
LH: loop header
LB: loop body
LE: loop exit
PB: predicated region body
PF: predicated region fallthrough
CT: control target
= control target key end

     0   :  { %s5396_s27 = smov 0   ;;  %s5398_s28 = smov 0   ;;  %s6463_s0 = inlined_call_operand.vmem [shape: f32[2,1024], index: 0, kind: input, shape index: {}]   ;;  %s6464_s1 = inlined_call_operand.vmem [shape: f32[2,4,8,1024], index: 1, kind: input, shape index: {}]   ;;  %s6465_s2 = inlined_call_operand.vmem [shape: f32[1,8,1], index: 2, kind: input, shape index: {}]   ;;  %s6466_s3 = inlined_call_operand.vmem [shape: f32[1,8,1], index: 3, kind: input, shape index: {}]   ;;  %s6467_s4 = inlined_call_operand.vmem [shape: f32[9,8,24], index: 4, kind: input, shape index: {}]   ;;  %s6468_s5 = inlined_call_operand.vmem [shape: f32[8,1], index: 5, kind: input, shape index: {}]   ;;  %s6469_s6 = inlined_call_operand.vmem [shape: f32[2,4,8,1024], index: 6, kind: output, shape index: {0}]   ;;  %s6470_s7 = inlined_call_operand.vmem [shape: f32[2,8,1], index: 7, kind: output, shape index: {1}]   ;;  %s6471_s8 = inlined_call_operand.vmem [shape: f32[2,8,1], index: 8, kind: output, shape index: {2}]  }
   0x1   :  { %s5400_s29 = smov 0   ;;  %s5402_s30 = smov 0  }
   0x2   :  { %s5404_s9 = smov 0  }
   0x3 LB: > { %6473 = sst [smem:[#allocation3_spill]] %s5332_s30  ;;  %s28_s10 = sadd.s32 1, %s5328_s29  ;;  %s5336_s9 = sphi %s5404_s9, %s19_s9   ;;  %s5332_s30 = sphi %s5402_s30, %s6478_s30   ;;  %s5328_s29 = sphi %s5400_s29, %s6480_s29   ;;  %s5324_s28 = sphi %s5398_s28, %s6476_s28   ;;  %s5320_s27 = sphi %s5396_s27, %s6479_s27  }
   0x4   : > { %s31_s11 = sadd.s32 1, %s5332_s30  ;;  %p29_p0 = scmp.ge.s32.totalorder %s28_s10, 4 }
   0x5   : > { %p4573_p1 = scmp.ge.s32.totalorder %s5336_s9, 1  ;;  %p281_p2 = scmp.lt.s32.totalorder %s5336_s9, 9 }
   0x6   : > { %s6482_s10 = smov (%p29_p0, %s28_s10), 0  ;;  %s6484_s11 = smov (!%p29_p0, %s31_s11), %s5332_s30 }
   0x7   : > { %6474 = sst [smem:[#allocation4_spill]] %s6482_s10  ;;  %p282_p3 = pnand %p4573_p1, %p281_p2 }
   0x8   : > { %p33_p4 = scmp.ge.s32.totalorder %s6484_s11, 2  ;;  %p327_p5 = scmp.lt.s32.totalorder (!%p282_p3), %s5324_s28, 1 }
   0x9   : > { %285 = sbr.rel (%p282_p3) target bundleno = 976 (0x3d0), region = 44  ;;  %p334_p6 = scmp.lt.s32.totalorder (!%p282_p3), %s5320_s27, 3 }
   0xa   : > { %s6486_s11 = smov (%p33_p4, %s6484_s11), 0  ;;  %p4581_p7 = scmp.ne.s32.totalorder (!%p282_p3), %s5320_s27, 0 }
   0xb   : > { %6475 = sst [smem:[#allocation5_spill]] %s6486_s11 }
  0x10   : > { %s6488_s28 = smov (!%p327_p5, %s5324_s28), 1  ;;  %352 = sbr.rel (%p4581_p7) target bundleno = 177 (0xb1), region = 48 }
  0x11   : > { %s335_s12 = scalar_select %p334_p6, %s5320_s27, 3 }
  0x12   : > { %s4656_s13 = sshll.u32 %s6488_s28, 8  ;;  %s4577_s14 = sshll.u32 %s6488_s28, 5  ;;  %v527_v0 = vld [vmem:[%s6465_s2] sm:$0xff] (!%p4581_p7)  ;;  %v5338_v1 = vmov (!%p4581_p7), 0   ;;  %v5339_v3 = vmov (!%p4581_p7), 0.0  }
  0x13   : > { %s5433_s17 = scalar_lea.vmem %s6464_s1, %s4656_s13  ;;  %s4576_s18 = sshll.u32 %s335_s12, 3  ;;  %4912 = vset.pattern.permute.xlu1 (!%p4581_p7), %v5338_v1  ;;  %4911 = vset.pattern.permute.xlu0 (!%p4581_p7), %v5338_v1  ;;  %v488_v2 = vld [vmem:[%s6466_s3] sm:$0xff] (!%p4581_p7)  ;;  %353 = vst [vmem:[#allocation2] sm:$0xff] (!%p4581_p7), %v5339_v3  ;;  %354 = vst [vmem:[#allocation2 + $0x8] sm:$0xff] (!%p4581_p7), %v5339_v3 }
  0x14   : > { %s338_s19 = sadd.s32 %s4577_s14, %s4576_s18  ;;  %s4579_s20 = sshll.u32 %s6488_s28, 3  ;;  %530 = vperm.xlu1 (!%p4581_p7), %4912, %v527_v0   ;;  %424 = vperm.xlu0 (!%p4581_p7), %4911, %v527_v0   ;;  %355 = vst [vmem:[#allocation2 + $0x10] sm:$0xff] (!%p4581_p7), %v5339_v3  ;;  %356 = vst [vmem:[#allocation2 + $0x18] sm:$0xff] (!%p4581_p7), %v5339_v3  ;;  %v413_v4 = vld [vmem:[%s5433_s17] sm:$0xff] (!%p4581_p7)  ;;  %v414_v5 = vld [vmem:[%s5433_s17 + $0x8] sm:$0xff] (!%p4581_p7) }
  0x15   : > { %s4578_s21 = sshll.u32 %s338_s19, 3  ;;  %s5438_s24 = scalar_lea.vmem %s6470_s7, %s4579_s20  ;;  %357 = vst [vmem:[#allocation2 + $0x20] sm:$0xff] (!%p4581_p7), %v5339_v3  ;;  %358 = vst [vmem:[#allocation2 + $0x28] sm:$0xff] (!%p4581_p7), %v5339_v3  ;;  %v415_v6 = vld [vmem:[%s5433_s17 + $0x10] sm:$0xff] (!%p4581_p7)  ;;  %v416_v7 = vld [vmem:[%s5433_s17 + $0x18] sm:$0xff] (!%p4581_p7) }
  0x16   : > { %s5443_s11 = scalar_lea.vmem %s6469_s6, %s4578_s21  ;;  %s5448_s15 = scalar_lea.vmem %s6471_s8, %s4579_s20  ;;  %359 = vst [vmem:[#allocation2 + $0x30] sm:$0xff] (!%p4581_p7), %v5339_v3  ;;  %360 = vst [vmem:[#allocation2 + $0x38] sm:$0xff] (!%p4581_p7), %v5339_v3  ;;  %v417_v8 = vld [vmem:[%s5433_s17 + $0x20] sm:$0xff] (!%p4581_p7)  ;;  %v418_v9 = vld [vmem:[%s5433_s17 + $0x28] sm:$0xff] (!%p4581_p7) }
  0x17   : > { %361 = vst [vmem:[#allocation2 + $0x40] sm:$0xff] %v5339_v3  ;;  %362 = vst [vmem:[#allocation2 + $0x48] sm:$0xff] %v5339_v3  ;;  %v419_v10 = vld [vmem:[%s5433_s17 + $0x30] sm:$0xff]  ;;  %v420_v11 = vld [vmem:[%s5433_s17 + $0x38] sm:$0xff] }
  0x18   : > { %583 = vperm.xlu1 %4912, %v527_v0   ;;  %477 = vperm.xlu0 %4911, %v527_v0   ;;  %363 = vst [vmem:[#allocation2 + $0x50] sm:$0xff] %v5339_v3  ;;  %372 = vst [vmem:[#allocation2 + $0x98] sm:$0xff] %v5339_v3  ;;  %v4590_v12 = vld [vmem:[%s5433_s17 + $0x80] sm:$0xff]  ;;  %v4591_v13 = vld [vmem:[%s5433_s17 + $0x88] sm:$0xff] }
  0x19   : > { %373 = vst [vmem:[#allocation2 + $0xa0] sm:$0xff] %v5339_v3  ;;  %382 = vst [vmem:[#allocation2 + $0xe8] sm:$0xff] %v5339_v3  ;;  %v4582_v16 = vld [vmem:[%s5433_s17 + $0x40] sm:$0xff]  ;;  %v4583_v17 = vld [vmem:[%s5433_s17 + $0x48] sm:$0xff] }
  0x1a   : > { %383 = vst [vmem:[#allocation2 + $0xf0] sm:$0xff] %v5339_v3  ;;  %392 = vst [vmem:[#allocation2 + $0x138] sm:$0xff] %v5339_v3  ;;  %v4584_v18 = vld [vmem:[%s5433_s17 + $0x50] sm:$0xff]  ;;  %v4585_v19 = vld [vmem:[%s5433_s17 + $0x58] sm:$0xff] }
  0x1b   : > { %393 = vst [vmem:[#allocation2 + $0x140] sm:$0xff] %v5339_v3  ;;  %402 = vst [vmem:[#allocation2 + $0x188] sm:$0xff] %v5339_v3  ;;  %v4592_v20 = vld [vmem:[%s5433_s17 + $0x90] sm:$0xff]  ;;  %v4593_v21 = vld [vmem:[%s5433_s17 + $0x98] sm:$0xff] }
  0x1c   : > { %491 = vperm.xlu1 %4912, %v488_v2   ;;  %438 = vperm.xlu0 %4911, %v488_v2   ;;  %403 = vst [vmem:[#allocation2 + $0x190] sm:$0xff] %v5339_v3  ;;  %404 = vst [vmem:[#allocation2 + $0x198] sm:$0xff] %v5339_v3  ;;  %v4594_v22 = vld [vmem:[%s5433_s17 + $0xa0] sm:$0xff]  ;;  %v4595_v27 = vld [vmem:[%s5433_s17 + $0xa8] sm:$0xff] }
  0x1d   : > { %405 = vst [vmem:[#allocation2 + $0x1a0] sm:$0xff] %v5339_v3  ;;  %406 = vst [vmem:[#allocation2 + $0x1a8] sm:$0xff] %v5339_v3  ;;  %v4596_v28 = vld [vmem:[%s5433_s17 + $0xb0] sm:$0xff]  ;;  %v4597_v29 = vld [vmem:[%s5433_s17 + $0xb8] sm:$0xff] }
  0x1e   : > { %407 = vst [vmem:[#allocation2 + $0x1b0] sm:$0xff] %v5339_v3  ;;  %408 = vst [vmem:[#allocation2 + $0x1b8] sm:$0xff] %v5339_v3  ;;  %v4586_v34 = vld [vmem:[%s5433_s17 + $0x60] sm:$0xff]  ;;  %v4587_v35 = vld [vmem:[%s5433_s17 + $0x68] sm:$0xff] }
  0x1f   : > { %409 = vst [vmem:[#allocation2 + $0x1c0] sm:$0xff] %v5339_v3  ;;  %410 = vst [vmem:[#allocation2 + $0x1c8] sm:$0xff] %v5339_v3  ;;  %v4588_v36 = vld [vmem:[%s5433_s17 + $0x70] sm:$0xff]  ;;  %v4589_v37 = vld [vmem:[%s5433_s17 + $0x78] sm:$0xff] }
  0x20   : > { %411 = vst [vmem:[#allocation2 + $0x1d0] sm:$0xff] %v5339_v3  ;;  %412 = vst [vmem:[#allocation2 + $0x1d8] sm:$0xff] %v5339_v3  ;;  %597 = vperm.xlu1 %4912, %v488_v2   ;;  %544 = vperm.xlu0 %4911, %v488_v2   ;;  %v4598_v38 = vld [vmem:[%s5433_s17 + $0xc0] sm:$0xff]  ;;  %v4599_v39 = vld [vmem:[%s5433_s17 + $0xc8] sm:$0xff] }
  0x21   : > { %v4600_v46 = vld [vmem:[%s5433_s17 + $0xd0] sm:$0xff]  ;;  %v4601_v47 = vld [vmem:[%s5433_s17 + $0xd8] sm:$0xff]  ;;  %v4602_v48 = vld [vmem:[%s5433_s17 + $0xe0] sm:$0xff] }
  0x22   : > { %v4603_v57 = vld [vmem:[%s5433_s17 + $0xe8] sm:$0xff]  ;;  %v4604_v58 = vld [vmem:[%s5433_s17 + $0xf0] sm:$0xff]  ;;  %v4605_v59 = vld [vmem:[%s5433_s17 + $0xf8] sm:$0xff] }
  0x93   : > { %v531_v14 = vpop.permute.xlu1 %530  ;;  %v425_v15 = vpop.permute.xlu0 %424 }
  0x94   : > { %v5476_v23 = vmul.f32 %v425_v15, %v413_v4  ;;  %v5478_v24 = vmul.f32 %v425_v15, %v414_v5  ;;  %v5480_v25 = vmul.f32 %v425_v15, %v415_v6  ;;  %v5482_v26 = vmul.f32 %v425_v15, %v416_v7 }
  0x95   : > { %v5487_v30 = vmul.f32 %v425_v15, %v417_v8  ;;  %v5489_v31 = vmul.f32 %v425_v15, %v418_v9  ;;  %v5491_v32 = vmul.f32 %v425_v15, %v419_v10  ;;  %v5493_v33 = vmul.f32 %v425_v15, %v420_v11 }
  0x96   : > { %v5501_v40 = vmul.f32 %v4590_v12, %v531_v14  ;;  %v5503_v41 = vmul.f32 %v4591_v13, %v531_v14  ;;  %v5505_v42 = vmul.f32 %v4592_v20, %v531_v14  ;;  %v5507_v43 = vmul.f32 %v4593_v21, %v531_v14 }
  0x97   : > { %v584_v44 = vpop.permute.xlu1 %583  ;;  %v478_v45 = vpop.permute.xlu0 %477  ;;  %v5512_v49 = vmul.f32 %v4594_v22, %v531_v14  ;;  %v5514_v50 = vmul.f32 %v4595_v27, %v531_v14  ;;  %v5516_v51 = vmul.f32 %v4596_v28, %v531_v14  ;;  %v5518_v52 = vmul.f32 %v4597_v29, %v531_v14 }
  0x98   : > { %v480_v53 = vmul.f32 %v4582_v16, %v478_v45  ;;  %v481_v54 = vmul.f32 %v4583_v17, %v478_v45  ;;  %v482_v55 = vmul.f32 %v4584_v18, %v478_v45  ;;  %v483_v56 = vmul.f32 %v4585_v19, %v478_v45 }
  0x99   : > { %v484_v60 = vmul.f32 %v4586_v34, %v478_v45  ;;  %v485_v61 = vmul.f32 %v4587_v35, %v478_v45  ;;  %v486_v62 = vmul.f32 %v4588_v36, %v478_v45  ;;  %v487_v63 = vmul.f32 %v4589_v37, %v478_v45 }
  0x9a   : > { %v586_v0 = vmul.f32 %v4598_v38, %v584_v44  ;;  %v587_v1 = vmul.f32 %v4599_v39, %v584_v44  ;;  %v588_v2 = vmul.f32 %v4600_v46, %v584_v44  ;;  %v589_v3 = vmul.f32 %v4601_v47, %v584_v44 }
  0x9b   : > { %v492_v4 = vpop.permute.xlu1 %491  ;;  %v590_v5 = vmul.f32 %v4602_v48, %v584_v44  ;;  %v591_v6 = vmul.f32 %v4603_v57, %v584_v44  ;;  %v592_v7 = vmul.f32 %v4604_v58, %v584_v44  ;;  %v593_v8 = vmul.f32 %v4605_v59, %v584_v44  ;;  %v439_v17 = vpop.permute.xlu0 %438 }
  0x9c   : > { %v494_v9 = vadd.f32 %v492_v4, %v480_v53  ;;  %v495_v10 = vadd.f32 %v492_v4, %v481_v54  ;;  %v496_v11 = vadd.f32 %v492_v4, %v482_v55  ;;  %v497_v12 = vadd.f32 %v492_v4, %v483_v56 }
  0x9d   : > { %v498_v13 = vadd.f32 %v492_v4, %v484_v60  ;;  %v499_v14 = vadd.f32 %v492_v4, %v485_v61  ;;  %v500_v15 = vadd.f32 %v492_v4, %v486_v62  ;;  %v501_v16 = vadd.f32 %v492_v4, %v487_v63 }
  0x9e   : > { %v502_v18 = vmax.f32 %v494_v9, 0.0  ;;  %v503_v19 = vmax.f32 %v495_v10, 0.0  ;;  %v504_v20 = vmax.f32 %v496_v11, 0.0  ;;  %v505_v21 = vmax.f32 %v497_v12, 0.0 }
  0x9f   : > { %v506_v22 = vmax.f32 %v498_v13, 0.0  ;;  %v507_v27 = vmax.f32 %v499_v14, 0.0  ;;  %v508_v28 = vmax.f32 %v500_v15, 0.0  ;;  %v509_v29 = vmax.f32 %v501_v16, 0.0  ;;  %v598_v46 = vpop.permute.xlu1 %597  ;;  %v545_v59 = vpop.permute.xlu0 %544 }
  0xa0   : > { %510 = vst [vmem:[#allocation2 + $0xa8] sm:$0xff] %v502_v18  ;;  %511 = vst [vmem:[#allocation2 + $0xb0] sm:$0xff] %v503_v19  ;;  %v441_v34 = vadd.f32 %v439_v17, %v5476_v23  ;;  %v442_v35 = vadd.f32 %v439_v17, %v5478_v24  ;;  %v443_v36 = vadd.f32 %v439_v17, %v5480_v25 }
  0xa1   : > { %512 = vst [vmem:[#allocation2 + $0xb8] sm:$0xff] %v504_v20  ;;  %513 = vst [vmem:[#allocation2 + $0xc0] sm:$0xff] %v505_v21  ;;  %v444_v37 = vadd.f32 %v439_v17, %v5482_v26  ;;  %v445_v38 = vadd.f32 %v439_v17, %v5487_v30  ;;  %v446_v39 = vadd.f32 %v439_v17, %v5489_v31 }
  0xa2   : > { %514 = vst [vmem:[#allocation2 + $0xc8] sm:$0xff] %v506_v22  ;;  %515 = vst [vmem:[#allocation2 + $0xd0] sm:$0xff] %v507_v27  ;;  %v447_v44 = vadd.f32 %v439_v17, %v5491_v32  ;;  %v448_v45 = vadd.f32 %v439_v17, %v5493_v33  ;;  %v449_v23 = vmax.f32 %v441_v34, 0.0  ;;  %v450_v47 = vmax.f32 %v442_v35, 0.0 }
  0xa3   : > { %516 = vst [vmem:[#allocation2 + $0xd8] sm:$0xff] %v508_v28  ;;  %517 = vst [vmem:[#allocation2 + $0xe0] sm:$0xff] %v509_v29  ;;  %v451_v24 = vmax.f32 %v443_v36, 0.0  ;;  %v452_v48 = vmax.f32 %v444_v37, 0.0  ;;  %v453_v25 = vmax.f32 %v445_v38, 0.0  ;;  %v454_v53 = vmax.f32 %v446_v39, 0.0 }
  0xa4   : > { %v455_v26 = vmax.f32 %v447_v44, 0.0  ;;  %v456_v54 = vmax.f32 %v448_v45, 0.0  ;;  %457 = vst [vmem:[#allocation2 + $0x58] sm:$0xff] %v449_v23  ;;  %458 = vst [vmem:[#allocation2 + $0x60] sm:$0xff] %v450_v47  ;;  %v600_v30 = vadd.f32 %v598_v46, %v586_v0  ;;  %v601_v55 = vadd.f32 %v598_v46, %v587_v1 }
  0xa5   : > { %459 = vst [vmem:[#allocation2 + $0x68] sm:$0xff] %v451_v24  ;;  %460 = vst [vmem:[#allocation2 + $0x70] sm:$0xff] %v452_v48  ;;  %v602_v31 = vadd.f32 %v598_v46, %v588_v2  ;;  %v603_v56 = vadd.f32 %v598_v46, %v589_v3  ;;  %v604_v32 = vadd.f32 %v598_v46, %v590_v5 }
  0xa6   : > { %461 = vst [vmem:[#allocation2 + $0x78] sm:$0xff] %v453_v25  ;;  %462 = vst [vmem:[#allocation2 + $0x80] sm:$0xff] %v454_v53  ;;  %v605_v33 = vadd.f32 %v598_v46, %v591_v6  ;;  %v606_v57 = vadd.f32 %v598_v46, %v592_v7  ;;  %v607_v58 = vadd.f32 %v598_v46, %v593_v8  ;;  %v608_v60 = vmax.f32 %v600_v30, 0.0 }
  0xa7   : > { %463 = vst [vmem:[#allocation2 + $0x88] sm:$0xff] %v455_v26  ;;  %464 = vst [vmem:[#allocation2 + $0x90] sm:$0xff] %v456_v54  ;;  %v609_v61 = vmax.f32 %v601_v55, 0.0  ;;  %v610_v62 = vmax.f32 %v602_v31, 0.0  ;;  %v611_v63 = vmax.f32 %v603_v56, 0.0  ;;  %v612_v4 = vmax.f32 %v604_v32, 0.0 }
  0xa8   : > { %v613_v9 = vmax.f32 %v605_v33, 0.0  ;;  %v614_v10 = vmax.f32 %v606_v57, 0.0  ;;  %v615_v0 = vmax.f32 %v607_v58, 0.0  ;;  %616 = vst [vmem:[#allocation2 + $0x148] sm:$0xff] %v608_v60  ;;  %v547_v1 = vadd.f32 %v545_v59, %v5501_v40 }
  0xa9   : > { %617 = vst [vmem:[#allocation2 + $0x150] sm:$0xff] %v609_v61  ;;  %618 = vst [vmem:[#allocation2 + $0x158] sm:$0xff] %v610_v62  ;;  %v548_v2 = vadd.f32 %v545_v59, %v5503_v41  ;;  %v549_v3 = vadd.f32 %v545_v59, %v5505_v42  ;;  %v550_v5 = vadd.f32 %v545_v59, %v5507_v43 }
  0xaa   : > { %619 = vst [vmem:[#allocation2 + $0x160] sm:$0xff] %v611_v63  ;;  %620 = vst [vmem:[#allocation2 + $0x168] sm:$0xff] %v612_v4  ;;  %v551_v6 = vadd.f32 %v545_v59, %v5512_v49  ;;  %v552_v7 = vadd.f32 %v545_v59, %v5514_v50  ;;  %v553_v8 = vadd.f32 %v545_v59, %v5516_v51  ;;  %v555_v12 = vmax.f32 %v547_v1, 0.0 }
  0xab   : > { %621 = vst [vmem:[#allocation2 + $0x170] sm:$0xff] %v613_v9  ;;  %622 = vst [vmem:[#allocation2 + $0x178] sm:$0xff] %v614_v10  ;;  %v554_v11 = vadd.f32 %v545_v59, %v5518_v52  ;;  %v556_v40 = vmax.f32 %v548_v2, 0.0  ;;  %v557_v13 = vmax.f32 %v549_v3, 0.0  ;;  %v558_v41 = vmax.f32 %v550_v5, 0.0 }
  0xac   : > { %623 = vst [vmem:[#allocation2 + $0x180] sm:$0xff] %v615_v0  ;;  %v559_v14 = vmax.f32 %v551_v6, 0.0  ;;  %v560_v42 = vmax.f32 %v552_v7, 0.0  ;;  %v561_v15 = vmax.f32 %v553_v8, 0.0  ;;  %563 = vst [vmem:[#allocation2 + $0xf8] sm:$0xff] %v555_v12 }
  0xad   : > { %v562_v43 = vmax.f32 %v554_v11, 0.0  ;;  %564 = vst [vmem:[#allocation2 + $0x100] sm:$0xff] %v556_v40  ;;  %565 = vst [vmem:[#allocation2 + $0x108] sm:$0xff] %v557_v13 }
  0xae   : > { %566 = vst [vmem:[#allocation2 + $0x110] sm:$0xff] %v558_v41  ;;  %567 = vst [vmem:[#allocation2 + $0x118] sm:$0xff] %v559_v14 }
  0xaf   : > { %568 = vst [vmem:[#allocation2 + $0x120] sm:$0xff] %v560_v42  ;;  %569 = vst [vmem:[#allocation2 + $0x128] sm:$0xff] %v561_v15 }
  0xb0   : > { %570 = vst [vmem:[#allocation2 + $0x130] sm:$0xff] %v562_v43 }
  0xb1 PF: > { %s4606_s10 = sshll.u32 %s5320_s27, 3  ;;  %s5340_s18 = smov 33   ;;  %v5341_v25 = vmov 0.0   ;;  %vm739_vm0 = vcmask 269312   ;;  %vm788_vm1 = vcmask 195584   ;;  %vm1182_vm2 = vcmask 261120  }
  0xb2   : > { %s625_s14 = sshra.s32 %s4606_s10, 3  ;;  %856 = vmatprep.mubr.f32.mxu0 %v5341_v25  ;;  %927 = vmatprep.mubr.f32.mxu1 %v5341_v25  ;;  %s5342_s19 = smov 32   ;;  %vm1582_vm3 = vcmask 252928   ;;  %vm2033_vm4 = vcmask 7168   ;;  %vm2792_vm5 = vcmask 1039360   ;;  %vm3200_vm6 = vcmask 793600  }
  0xb3   : > { %s4657_s16 = smul.u32 80, %s625_s14  ;;  %s5343_s20 = smov 31   ;;  %vm3608_vm7 = vcmask 785408   ;;  %vm4008_vm8 = vcmask 777216  }
  0xb4   : > { %s5344_s21 = smov 1   ;;  %s5345_s25 = smov 127  }
  0xb5   : > { %s5540_s17 = scalar_lea.vmem [#allocation2], %s4657_s16  ;;  %s5346_s12 = smov 97  }
  0xb6   : > { %s5347_s10 = smov 96  }
  0xb7   : > { %v5543_v49 = vld [vmem:[%s5540_s17 + $0x20] sm:$0xff]  ;;  %v5546_v50 = vld [vmem:[%s5540_s17 + $0x28] sm:$0xff]  ;;  %v636_v17 = vld [vmem:[%s5540_s17 + $0x30] sm:$0xff] }
  0xb8   : > { %v630_v51 = vld [vmem:[%s5540_s17] sm:$0xff]  ;;  %v5551_v52 = vpack.i.bf16 %v5546_v50, %v5543_v49  ;;  %v5554_v16 = vld [vmem:[%s5540_s17 + $0x8] sm:$0xff]  ;;  %v5558_v18 = vld [vmem:[%s5540_s17 + $0x38] sm:$0xff]  ;;  %v4983_v60 = vpack.i.bf16 %v636_v17, %v5546_v50 }
  0xb9   : > { %v4913_v19 = vpack.i.bf16 %v5554_v16, %v630_v51  ;;  %v5562_v20 = vld [vmem:[%s5540_s17 + $0x10] sm:$0xff]  ;;  %v5565_v21 = vld [vmem:[%s5540_s17 + $0x18] sm:$0xff]  ;;  %v5570_v22 = vpack.i.bf16 %v5558_v18, %v636_v17  ;;  %v641_v34 = vld [vmem:[%s5540_s17 + $0x60] sm:$0xff] }
  0xba   : > { %4924 = vrot.lane.b32.xlu1 %v5551_v52, %s5340_s18  ;;  %v639_v27 = vld [vmem:[%s5540_s17 + $0x50] sm:$0xff]  ;;  %v5576_v28 = vpack.i.bf16 %v5565_v21, %v5562_v20  ;;  %v5579_v29 = vld [vmem:[%s5540_s17 + $0x58] sm:$0xff]  ;;  %v5585_v36 = vld [vmem:[%s5540_s17 + $0x40] sm:$0xff]  ;;  %v5008_v63 = vpack.i.bf16 %v5543_v49, %v5565_v21  ;;  %v5003_v4 = vpack.i.bf16 %v5562_v20, %v5554_v16 }
  0xbb   : > { %4914 = vrot.lane.b32.xlu0 %v4913_v19, %s5340_s18  ;;  %v5582_v35 = vpack.i.bf16 %v639_v27, %v630_v51  ;;  %v5590_v37 = vpack.i.bf16 %v641_v34, %v5579_v29  ;;  %v4933_v38 = vpack.i.bf16 %v639_v27, %v5585_v36  ;;  %v5596_v39 = vld [vmem:[%s5540_s17 + $0x78] sm:$0xff]  ;;  %v5599_v44 = vld [vmem:[%s5540_s17 + $0x80] sm:$0xff]  ;;  %v642_v45 = vld [vmem:[%s5540_s17 + $0x68] sm:$0xff]  ;;  %v4968_v59 = vpack.i.bf16 %v5579_v29, %v5543_v49 }
  0xbc   : > { %v5603_v46 = vld [vmem:[%s5540_s17 + $0x70] sm:$0xff]  ;;  %v5609_v23 = vpack.i.bf16 %v5599_v44, %v5596_v39  ;;  %v5616_v24 = vld [vmem:[%s5540_s17 + $0x88] sm:$0xff]  ;;  %v5628_v53 = vld [vmem:[%s5540_s17 + $0xa0] sm:$0xff]  ;;  %v5679_v58 = vpack.i.bf16 %v642_v45, %v641_v34  ;;  %v4988_v62 = vpack.i.bf16 %v5585_v36, %v5558_v18 }
  0xbd   : > { %v5613_v47 = vpack.i.bf16 %v5603_v46, %v642_v45  ;;  %v5619_v48 = vld [vmem:[%s5540_s17 + $0x90] sm:$0xff]  ;;  %v5642_v30 = vld [vmem:[%s5540_s17 + $0xa8] sm:$0xff]  ;;  %v5649_v55 = vld [vmem:[%s5540_s17 + $0xc0] sm:$0xff]  ;;  %v4978_v61 = vpack.i.bf16 %v639_v27, %v5603_v46 }
  0xbe   : > { %4929 = vrot.lane.b32.xlu1 %v5570_v22, %s5340_s18  ;;  %v5632_v26 = vpack.i.bf16 %v5619_v48, %v5616_v24  ;;  %v5639_v54 = vld [vmem:[%s5540_s17 + $0xb0] sm:$0xff]  ;;  %v5652_v31 = vld [vmem:[%s5540_s17 + $0xb8] sm:$0xff]  ;;  %v5662_v32 = vld [vmem:[%s5540_s17 + $0xc8] sm:$0xff] }
  0xbf   : > { %4919 = vrot.lane.b32.xlu0 %v5576_v28, %s5340_s18  ;;  %v5659_v56 = vld [vmem:[%s5540_s17 + $0xd0] sm:$0xff]  ;;  %v5669_v33 = vld [vmem:[%s5540_s17 + $0xe0] sm:$0xff]  ;;  %v5672_v57 = vld [vmem:[%s5540_s17 + $0xd8] sm:$0xff] }
  0xc2   : > { %4939 = vrot.lane.b32.xlu1 %v5590_v37, %s5340_s18 }
  0xc3   : > { %4934 = vrot.lane.b32.xlu0 %v4933_v38, %s5340_s18 }
  0xc6   : > { %4949 = vrot.lane.b32.xlu1 %v5609_v23, %s5340_s18 }
  0xc7   : > { %4944 = vrot.lane.b32.xlu0 %v5613_v47, %s5340_s18 }
  0xca   : > { %721 = vrot.lane.b32.xlu1 %v5628_v53, %s5340_s18 }
  0xcb   : > { %4954 = vrot.lane.b32.xlu0 %v5632_v26, %s5340_s18 }
  0xce   : > { %725 = vrot.lane.b32.xlu1 %v5639_v54, %s5340_s18 }
  0xcf   : > { %723 = vrot.lane.b32.xlu0 %v5642_v30, %s5340_s18 }
  0xd2   : > { %729 = vrot.lane.b32.xlu1 %v5649_v55, %s5340_s18 }
  0xd3   : > { %727 = vrot.lane.b32.xlu0 %v5652_v31, %s5340_s18 }
  0xd6   : > { %733 = vrot.lane.b32.xlu1 %v5659_v56, %s5340_s18 }
  0xd7   : > { %731 = vrot.lane.b32.xlu0 %v5662_v32, %s5340_s18 }
  0xda   : > { %737 = vrot.lane.b32.xlu1 %v5669_v33, %s5340_s18 }
  0xdb   : > { %735 = vrot.lane.b32.xlu0 %v5672_v57, %s5340_s18  ;;  %s5348_s18 = smov 95  }
  0xde   : > { %4964 = vrot.lane.b32.xlu1 %v5576_v28, %s5342_s19 }
  0xdf   : > { %4959 = vrot.lane.b32.xlu0 %v4913_v19, %s5342_s19 }
  0xe2   : > { %4974 = vrot.lane.b32.xlu1 %v5679_v58, %s5342_s19 }
  0xe3   : > { %4969 = vrot.lane.b32.xlu0 %v4968_v59, %s5342_s19 }
  0xe6   : > { %4984 = vrot.lane.b32.xlu1 %v4983_v60, %s5342_s19 }
  0xe7   : > { %4979 = vrot.lane.b32.xlu0 %v4978_v61, %s5342_s19 }
  0xea   : > { %4994 = vrot.lane.b32.xlu1 %v5609_v23, %s5342_s19 }
  0xeb   : > { %4989 = vrot.lane.b32.xlu0 %v4988_v62, %s5342_s19 }
  0xee   : > { %1166 = vrot.lane.b32.xlu1 %v5642_v30, %s5342_s19 }
  0xef   : > { %4999 = vrot.lane.b32.xlu0 %v5632_v26, %s5342_s19 }
  0xf2   : > { %1170 = vrot.lane.b32.xlu1 %v5652_v31, %s5342_s19 }
  0xf3   : > { %1168 = vrot.lane.b32.xlu0 %v5639_v54, %s5342_s19 }
  0xf6   : > { %1164 = vrot.lane.b32.xlu1 %v5628_v53, %s5342_s19 }
  0xf7   : > { %1172 = vrot.lane.b32.xlu0 %v5649_v55, %s5342_s19 }
  0xfa   : > { %1176 = vrot.lane.b32.xlu1 %v5659_v56, %s5342_s19 }
  0xfb   : > { %1174 = vrot.lane.b32.xlu0 %v5662_v32, %s5342_s19 }
  0xfe   : > { %1180 = vrot.lane.b32.xlu1 %v5669_v33, %s5342_s19 }
  0xff   : > { %1178 = vrot.lane.b32.xlu0 %v5672_v57, %s5342_s19 }
 0x102   : > { %5009 = vrot.lane.b32.xlu1 %v5008_v63, %s5343_s20 }
 0x103   : > { %5004 = vrot.lane.b32.xlu0 %v5003_v4, %s5343_s20 }
 0x106   : > { %5019 = vrot.lane.b32.xlu1 %v5613_v47, %s5343_s20 }
 0x107   : > { %5014 = vrot.lane.b32.xlu0 %v5590_v37, %s5343_s20 }
 0x10a   : > { %5029 = vrot.lane.b32.xlu1 %v4983_v60, %s5343_s20 }
 0x10b   : > { %5024 = vrot.lane.b32.xlu0 %v5582_v35, %s5343_s20 }
 0x10e   : > { %5039 = vrot.lane.b32.xlu1 %v5609_v23, %s5343_s20 }
 0x10f   : > { %5034 = vrot.lane.b32.xlu0 %v4988_v62, %s5343_s20 }
 0x112   : > { %1566 = vrot.lane.b32.xlu1 %v5642_v30, %s5343_s20 }
 0x113   : > { %5044 = vrot.lane.b32.xlu0 %v5632_v26, %s5343_s20 }
 0x116   : > { %1570 = vrot.lane.b32.xlu1 %v5652_v31, %s5343_s20 }
 0x117   : > { %1568 = vrot.lane.b32.xlu0 %v5639_v54, %s5343_s20 }
 0x11a   : > { %1564 = vrot.lane.b32.xlu1 %v5628_v53, %s5343_s20 }
 0x11b   : > { %1572 = vrot.lane.b32.xlu0 %v5649_v55, %s5343_s20 }
 0x11e   : > { %1576 = vrot.lane.b32.xlu1 %v5659_v56, %s5343_s20 }
 0x11f   : > { %1574 = vrot.lane.b32.xlu0 %v5662_v32, %s5343_s20 }
 0x122   : > { %1580 = vrot.lane.b32.xlu1 %v5669_v33, %s5343_s20 }
 0x123   : > { %1578 = vrot.lane.b32.xlu0 %v5672_v57, %s5343_s20 }
 0x126   : > { %5054 = vrot.lane.b32.xlu1 %v5008_v63, %s5344_s21 }
 0x127   : > { %5049 = vrot.lane.b32.xlu0 %v5003_v4, %s5344_s21 }
 0x12a   : > { %5064 = vrot.lane.b32.xlu1 %v5613_v47, %s5344_s21 }
 0x12b   : > { %5059 = vrot.lane.b32.xlu0 %v5590_v37, %s5344_s21 }
 0x12c   : > { %v5723_v9 = vpop.permute.xlu1 %4924 }
 0x12d   : > { %v4915_v10 = vpop.permute.xlu0 %4914  ;;  %v4926_v49 = vunpack.i.l.bf16 %v5723_v9 }
 0x12e   : > { %5074 = vrot.lane.b32.xlu1 %v4983_v60, %s5344_s21  ;;  %v4917_v3 = vunpack.i.h.bf16 %v4915_v10  ;;  %v4916_v5 = vunpack.i.l.bf16 %v4915_v10 }
 0x12f   : > { %5069 = vrot.lane.b32.xlu0 %v5582_v35, %s5344_s21 }
 0x130   : > { %v5728_v0 = vpop.permute.xlu1 %4929  ;;  %v740_v15 = vsel %vm739_vm0, %v4916_v5, %v4917_v3 }
 0x131   : > { %v4920_v1 = vpop.permute.xlu0 %4919  ;;  %v4931_v47 = vunpack.i.l.bf16 %v5728_v0  ;;  %v4932_v5 = vunpack.i.h.bf16 %v5728_v0 }
 0x132   : > { %5084 = vrot.lane.b32.xlu1 %v5609_v23, %s5344_s21  ;;  %v4921_v2 = vunpack.i.l.bf16 %v4920_v1  ;;  %v4922_v40 = vunpack.i.h.bf16 %v4920_v1 }
 0x133   : > { %5079 = vrot.lane.b32.xlu0 %v4988_v62, %s5344_s21 }
 0x134   : > { %v4940_v6 = vpop.permute.xlu1 %4939  ;;  %v741_v13 = vsel %vm739_vm0, %v4917_v3, %v4921_v2  ;;  %v743_v19 = vsel %vm739_vm0, %v4922_v40, %v4926_v49  ;;  %v742_v20 = vsel %vm739_vm0, %v4921_v2, %v4922_v40  ;;  %v657_v2 = vld [vmem:[%s6467_s4] sm:$0xff] }
 0x135   : > { %v4942_v7 = vunpack.i.h.bf16 %v4940_v6  ;;  %v4941_v8 = vunpack.i.l.bf16 %v4940_v6  ;;  %v5733_v11 = vpop.permute.xlu0 %4934 }
 0x136   : > { %v4937_v12 = vunpack.i.h.bf16 %v5733_v11  ;;  %2017 = vrot.lane.b32.xlu1 %v5642_v30, %s5344_s21  ;;  %v4936_v10 = vunpack.i.l.bf16 %v5733_v11 }
 0x137   : > { %5089 = vrot.lane.b32.xlu0 %v5632_v26, %s5344_s21  ;;  %v749_v41 = vsel %vm739_vm0, %v4941_v8, %v4942_v7  ;;  %v4927_v26 = vunpack.i.h.bf16 %v5723_v9 }
 0x138   : > { %v4950_v14 = vpop.permute.xlu1 %4949  ;;  %v4658_v42 = vpack.c.bf16 %v749_v41, %v741_v13  ;;  %v748_v43 = vsel %vm739_vm0, %v4937_v12, %v4941_v8  ;;  %v747_v41 = vsel %vm739_vm0, %v4932_v5, %v4936_v10 }
 0x139   : > { %v4945_v50 = vpop.permute.xlu0 %4944  ;;  %v4660_v51 = vpack.c.bf16 %v748_v43, %v740_v15  ;;  %v4952_v21 = vunpack.i.h.bf16 %v4950_v14  ;;  %v4951_v27 = vunpack.i.l.bf16 %v4950_v14  ;;  %v745_v1 = vsel %vm739_vm0, %v4927_v26, %v4931_v47 }
 0x13a   : > { %v4947_v17 = vunpack.i.h.bf16 %v4945_v50  ;;  %v4946_v18 = vunpack.i.l.bf16 %v4945_v50  ;;  %2021 = vrot.lane.b32.xlu1 %v5652_v31, %s5344_s21  ;;  %4659 = vmatprep.subr.bf16.mxu0 %v4658_v42  ;;  %v744_v3 = vsel %vm739_vm0, %v4926_v49, %v4927_v26  ;;  %v746_v14 = vsel %vm739_vm0, %v4931_v47, %v4932_v5 }
 0x13b   : > { %2019 = vrot.lane.b32.xlu0 %v5639_v54, %s5344_s21  ;;  %4661 = vmatpush1.bf16.msra.mxu0 %v4660_v51  ;;  %v753_v62 = vsel %vm739_vm0, %v4951_v27, %v4952_v21 }
 0x13c   : > { %v722_v34 = vpop.permute.xlu1 %721  ;;  %v751_v35 = vsel %vm739_vm0, %v4946_v18, %v4947_v17  ;;  %v750_v37 = vsel %vm739_vm0, %v4942_v7, %v4946_v18  ;;  %v752_v63 = vsel %vm739_vm0, %v4947_v17, %v4951_v27  ;;  %v4666_v6 = vpack.c.bf16 %v753_v62, %v745_v1  ;;  %v2690_v27 = vld [vmem:[%s5540_s17 + $0x48] sm:$0xff] }
 0x13d   : > { %v4955_v38 = vpop.permute.xlu0 %4954  ;;  %v4662_v45 = vpack.c.bf16 %v751_v35, %v743_v19  ;;  %v4664_v23 = vpack.c.bf16 %v750_v37, %v742_v20  ;;  %v4668_v8 = vpack.c.bf16 %v752_v63, %v744_v3  ;;  %v5793_v17 = vpack.i.bf16 %v5596_v39, %v5603_v46 }
 0x13e   : > { %2015 = vrot.lane.b32.xlu1 %v5628_v53, %s5344_s21  ;;  %v4957_v59 = vunpack.i.h.bf16 %v4955_v38  ;;  %v4956_v60 = vunpack.i.l.bf16 %v4955_v38  ;;  %v5808_v46 = vpack.i.bf16 %v5579_v29, %v5554_v16  ;;  %v5816_v35 = vpack.i.bf16 %v5616_v24, %v5599_v44 }
 0x13f   : > { %2023 = vrot.lane.b32.xlu0 %v5649_v55, %s5344_s21  ;;  %4663 = vmatprep.subr.bf16.mxu1 %v4662_v45  ;;  %v5822_v16 = vpack.i.bf16 %v2690_v27, %v5585_v36  ;;  %v2699_v45 = vld [vmem:[%s5540_s17 + $0x98] sm:$0xff] }
 0x140   : > { %4665 = vmatpush1.bf16.msra.mxu1 %v4664_v23  ;;  %v726_v61 = vpop.permute.xlu1 %725  ;;  %v755_v11 = vsel %vm739_vm0, %v4956_v60, %v4957_v59  ;;  %v754_v12 = vsel %vm739_vm0, %v4952_v21, %v4956_v60  ;;  %v5833_v36 = vpack.i.bf16 %v2699_v45, %v5619_v48 }
 0x141   : > { %v724_v4 = vpop.permute.xlu0 %723  ;;  %v4670_v42 = vpack.c.bf16 %v755_v11, %v747_v41  ;;  %v4672_v43 = vpack.c.bf16 %v754_v12, %v746_v14 }
 0x142   : > { %2027 = vrot.lane.b32.xlu1 %v5659_v56, %s5344_s21  ;;  %v757_v53 = vsel %vm739_vm0, %v724_v4, %v726_v61  ;;  %v756_v9 = vsel %vm739_vm0, %v722_v34, %v724_v4 }
 0x143   : > { %2025 = vrot.lane.b32.xlu0 %v5662_v32, %s5344_s21  ;;  %796 = vmatprep.subr.mxu0 %v757_v53 }
 0x144   : > { %797 = vmatpush1.msra.mxu0 %v756_v9  ;;  %v730_v7 = vpop.permute.xlu1 %729 }
 0x145   : > { %v728_v40 = vpop.permute.xlu0 %727  ;;  %4667 = vmatprep.subr.bf16.mxu0 %v4666_v6  ;;  %4608 = vmatmul.mubr.msk.f32.vlgmr.msra.gmra.mrb[0].mxu0 %vm788_vm1, %v657_v2 }
 0x146   : > { %4669 = vmatpush1.bf16.msra.mxu0 %v4668_v8  ;;  %2031 = vrot.lane.b32.xlu1 %v5669_v33, %s5344_s21  ;;  %v759_v0 = vsel %vm739_vm0, %v728_v40, %v730_v7  ;;  %v758_v13 = vsel %vm739_vm0, %v726_v61, %v728_v40 }
 0x147   : > { %2029 = vrot.lane.b32.xlu0 %v5672_v57, %s5344_s21  ;;  %867 = vmatprep.subr.mxu1 %v759_v0 }
 0x148   : > { %868 = vmatpush1.msra.mxu1 %v758_v13  ;;  %v734_v15 = vpop.permute.xlu1 %733  ;;  %998 = vmatprep.mubr.f32.mxu0 %v5341_v25 }
 0x149   : > { %v732_v49 = vpop.permute.xlu0 %731  ;;  %4671 = vmatprep.subr.bf16.mxu1 %v4670_v42  ;;  %4609 = vmatmul.mubr.msk.f32.vlgmr.msra.gmra.mrb[0].mxu1 %vm788_vm1, %v657_v2 }
 0x14a   : > { %4673 = vmatpush1.bf16.msra.mxu1 %v4672_v43  ;;  %5099 = vrot.lane.b32.xlu1 %v5551_v52, %s5345_s25  ;;  %v761_v50 = vsel %vm739_vm0, %v732_v49, %v734_v15  ;;  %v760_v51 = vsel %vm739_vm0, %v730_v7, %v732_v49 }
 0x14b   : > { %5094 = vrot.lane.b32.xlu0 %v5576_v28, %s5345_s25  ;;  %938 = vmatprep.subr.mxu0 %v761_v50 }
 0x14c   : > { %939 = vmatpush1.msra.mxu0 %v760_v51  ;;  %v738_v18 = vpop.permute.xlu1 %737  ;;  %1069 = vmatprep.mubr.f32.mxu1 %v5341_v25 }
 0x14d   : > { %v736_v19 = vpop.permute.xlu0 %735  ;;  %4610 = vmatmul.mubr.msk.f32.vlgmr.msra.gmra.mrb[2].mxu0 %vm788_vm1, %v657_v2 }
 0x14e   : > { %5109 = vrot.lane.b32.xlu1 %v5793_v17, %s5345_s25  ;;  %v763_v20 = vsel %vm739_vm0, %v736_v19, %v738_v18  ;;  %v762_v39 = vsel %vm739_vm0, %v734_v15, %v736_v19  ;;  %1298 = vmatprep.mubr.f32.mxu0 %v5341_v25 }
 0x14f   : > { %5104 = vrot.lane.b32.xlu0 %v5679_v58, %s5345_s25  ;;  %1009 = vmatprep.subr.mxu1 %v763_v20 }
 0x150   : > { %1010 = vmatpush1.msra.mxu1 %v762_v39  ;;  %v4965_v21 = vpop.permute.xlu1 %4964 }
 0x151   : > { %v4960_v34 = vpop.permute.xlu0 %4959  ;;  %4611 = vmatmul.mubr.msk.f32.vlgmr.msra.gmra.mrb[2].mxu1 %vm788_vm1, %v657_v2  ;;  %v4966_v29 = vunpack.i.l.bf16 %v4965_v21  ;;  %v4967_v10 = vunpack.i.h.bf16 %v4965_v21  ;;  %v5867_v21 = vld [vmem:[%s5540_s17 + $0xe8] sm:$0xff] }
 0x152   : > { %5119 = vrot.lane.b32.xlu1 %v5570_v22, %s5345_s25  ;;  %1369 = vmatprep.mubr.f32.mxu1 %v5341_v25  ;;  %v4962_v37 = vunpack.i.h.bf16 %v4960_v34  ;;  %v4961_v44 = vunpack.i.l.bf16 %v4960_v34 }
 0x153   : > { %5114 = vrot.lane.b32.xlu0 %v5808_v46, %s5345_s25  ;;  %v1185_v12 = vsel %vm1182_vm2, %v4966_v29, %v4967_v10 }
 0x154   : > { %v4975_v38 = vpop.permute.xlu1 %4974  ;;  %v1184_v61 = vsel %vm1182_vm2, %v4962_v37, %v4966_v29  ;;  %v1183_v48 = vsel %vm1182_vm2, %v4961_v44, %v4962_v37  ;;  %v4612_v44 = vld [vmem:[%s6467_s4 + $0x8] sm:$0xff] }
 0x155   : > { %v4976_v23 = vunpack.i.l.bf16 %v4975_v38  ;;  %v5825_v47 = vpop.permute.xlu0 %4969  ;;  %v4977_v24 = vunpack.i.h.bf16 %v4975_v38 }
 0x156   : > { %v4972_v26 = vunpack.i.h.bf16 %v5825_v47  ;;  %5129 = vrot.lane.b32.xlu1 %v5816_v35, %s5345_s25  ;;  %v4971_v59 = vunpack.i.l.bf16 %v5825_v47 }
 0x157   : > { %5124 = vrot.lane.b32.xlu0 %v5822_v16, %s5345_s25  ;;  %v1193_v1 = vsel %vm1182_vm2, %v4976_v23, %v4977_v24 }
 0x158   : > { %v5836_v60 = vpop.permute.xlu1 %4984  ;;  %v1192_v62 = vsel %vm1182_vm2, %v4972_v26, %v4976_v23  ;;  %v1186_v5 = vsel %vm1182_vm2, %v4967_v10, %v4971_v59  ;;  %v4680_v40 = vpack.c.bf16 %v1193_v1, %v1185_v12 }
 0x159   : > { %v4980_v63 = vpop.permute.xlu0 %4979  ;;  %v4674_v4 = vpack.c.bf16 %v1192_v62, %v1184_v61  ;;  %v4987_v42 = vunpack.i.h.bf16 %v5836_v60  ;;  %v4986_v15 = vunpack.i.l.bf16 %v5836_v60 }
 0x15a   : > { %v4982_v53 = vunpack.i.h.bf16 %v4980_v63  ;;  %v4981_v9 = vunpack.i.l.bf16 %v4980_v63  ;;  %2776 = vrot.lane.b32.xlu1 %v5639_v54, %s5345_s25 }
 0x15b   : > { %5134 = vrot.lane.b32.xlu0 %v5833_v36, %s5345_s25  ;;  %4675 = vmatprep.subr.bf16.mxu0 %v4674_v4  ;;  %v1188_v34 = vsel %vm1182_vm2, %v4986_v15, %v4987_v42  ;;  %v1187_v60 = vsel %vm1182_vm2, %v4971_v59, %v4986_v15 }
 0x15c   : > { %v1191_v2 = vsel %vm1182_vm2, %v4982_v53, %v4972_v26  ;;  %v4995_v3 = vpop.permute.xlu1 %4994  ;;  %v1194_v6 = vsel %vm1182_vm2, %v4977_v24, %v4981_v9 }
 0x15d   : > { %v4990_v7 = vpop.permute.xlu0 %4989  ;;  %v4676_v8 = vpack.c.bf16 %v1191_v2, %v1183_v48  ;;  %v4678_v11 = vpack.c.bf16 %v1194_v6, %v1186_v5  ;;  %v4997_v41 = vunpack.i.h.bf16 %v4995_v3  ;;  %v4996_v14 = vunpack.i.l.bf16 %v4995_v3 }
 0x15e   : > { %2780 = vrot.lane.b32.xlu1 %v5649_v55, %s5345_s25  ;;  %v4992_v18 = vunpack.i.h.bf16 %v4990_v7  ;;  %v4991_v19 = vunpack.i.l.bf16 %v4990_v7 }
 0x15f   : > { %2778 = vrot.lane.b32.xlu0 %v5652_v31, %s5345_s25  ;;  %4677 = vmatpush1.bf16.msra.mxu0 %v4676_v8  ;;  %v1196_v39 = vsel %vm1182_vm2, %v4996_v14, %v4997_v41  ;;  %v1195_v37 = vsel %vm1182_vm2, %v4981_v9, %v4996_v14 }
 0x160   : > { %4679 = vmatprep.subr.bf16.mxu1 %v4678_v11  ;;  %v1167_v0 = vpop.permute.xlu1 %1166  ;;  %v4682_v23 = vpack.c.bf16 %v1196_v39, %v1188_v34  ;;  %v1190_v24 = vsel %vm1182_vm2, %v4991_v19, %v4992_v18  ;;  %v1189_v63 = vsel %vm1182_vm2, %v4987_v42, %v4991_v19  ;;  %v4684_v10 = vpack.c.bf16 %v1195_v37, %v1187_v60 }
 0x161   : > { %4681 = vmatpush1.bf16.msra.mxu1 %v4680_v40  ;;  %v5000_v13 = vpop.permute.xlu0 %4999 }
 0x162   : > { %2774 = vrot.lane.b32.xlu1 %v5642_v30, %s5345_s25  ;;  %v5002_v43 = vunpack.i.h.bf16 %v5000_v13  ;;  %v5001_v49 = vunpack.i.l.bf16 %v5000_v13 }
 0x163   : > { %2782 = vrot.lane.b32.xlu0 %v5662_v32, %s5345_s25 }
 0x164   : > { %v1171_v50 = vpop.permute.xlu1 %1170  ;;  %v1198_v29 = vsel %vm1182_vm2, %v5001_v49, %v5002_v43  ;;  %v1197_v47 = vsel %vm1182_vm2, %v4997_v41, %v5001_v49 }
 0x165   : > { %v1169_v51 = vpop.permute.xlu0 %1168  ;;  %v4686_v62 = vpack.c.bf16 %v1198_v29, %v1190_v24  ;;  %v4688_v9 = vpack.c.bf16 %v1197_v47, %v1189_v63 }
 0x166   : > { %2786 = vrot.lane.b32.xlu1 %v5672_v57, %s5345_s25  ;;  %v1200_v20 = vsel %vm1182_vm2, %v1167_v0, %v1169_v51  ;;  %v1201_v61 = vsel %vm1182_vm2, %v1169_v51, %v1171_v50 }
 0x167   : > { %2784 = vrot.lane.b32.xlu0 %v5659_v56, %s5345_s25  ;;  %1238 = vmatprep.subr.mxu0 %v1200_v20 }
 0x168   : > { %v1165_v27 = vpop.permute.xlu1 %1164 }
 0x169   : > { %v1199_v38 = vsel %vm1182_vm2, %v1165_v27, %v1167_v0  ;;  %v1173_v45 = vpop.permute.xlu0 %1172 }
 0x16a   : > { %2790 = vrot.lane.b32.xlu1 %v5867_v21, %s5345_s25  ;;  %1239 = vmatpush1.msra.mxu0 %v1199_v38  ;;  %v1202_v26 = vsel %vm1182_vm2, %v1171_v50, %v1173_v45 }
 0x16b   : > { %2788 = vrot.lane.b32.xlu0 %v5669_v33, %s5345_s25  ;;  %1309 = vmatprep.subr.mxu1 %v1202_v26 }
 0x16c   : > { %1310 = vmatpush1.msra.mxu1 %v1201_v61  ;;  %4683 = vmatprep.subr.bf16.mxu0 %v4682_v23  ;;  %v1177_v4 = vpop.permute.xlu1 %1176 }
 0x16d   : > { %v1175_v53 = vpop.permute.xlu0 %1174  ;;  %4613 = vmatmul.mubr.msk.f32.vlgmr.msra.gmra.mrb[4].mxu0 %vm788_vm1, %v4612_v44  ;;  %4687 = vmatprep.subr.bf16.mxu1 %v4686_v62 }
 0x16e   : > { %4685 = vmatpush1.bf16.msra.mxu0 %v4684_v10  ;;  %4614 = vmatmul.mubr.msk.f32.vlgmr.msra.gmra.mrb[4].mxu1 %vm788_vm1, %v4612_v44  ;;  %v1204_v59 = vsel %vm1182_vm2, %v1175_v53, %v1177_v4  ;;  %v1203_v2 = vsel %vm1182_vm2, %v1173_v45, %v1175_v53 }
 0x16f   : > { %4689 = vmatpush1.bf16.msra.mxu1 %v4688_v9  ;;  %5144 = vrot.lane.b32.xlu1 %v5551_v52, %s5346_s12 }
 0x170   : > { %5139 = vrot.lane.b32.xlu0 %v5576_v28, %s5346_s12  ;;  %1380 = vmatprep.subr.mxu0 %v1204_v59  ;;  %v1181_v48 = vpop.permute.xlu1 %1180 }
 0x171   : > { %v1179_v1 = vpop.permute.xlu0 %1178  ;;  %1511 = vmatprep.mubr.f32.mxu1 %v5341_v25  ;;  %1440 = vmatprep.mubr.f32.mxu0 %v5341_v25 }
 0x172   : > { %1381 = vmatpush1.msra.mxu0 %v1203_v2  ;;  %v1206_v3 = vsel %vm1182_vm2, %v1179_v1, %v1181_v48  ;;  %v1205_v5 = vsel %vm1182_vm2, %v1177_v4, %v1179_v1 }
 0x173   : > { %5154 = vrot.lane.b32.xlu1 %v5793_v17, %s5346_s12  ;;  %1451 = vmatprep.subr.mxu1 %v1206_v3 }
 0x174   : > { %5149 = vrot.lane.b32.xlu0 %v5679_v58, %s5346_s12  ;;  %1452 = vmatpush1.msra.mxu1 %v1205_v5  ;;  %v5902_v6 = vpop.permute.xlu1 %5009 }
 0x175   : > { %v5005_v7 = vpop.permute.xlu0 %5004  ;;  %4616 = vmatmul.mubr.msk.f32.vlgmr.msra.gmra.mrb[6].mxu1 %vm788_vm1, %v4612_v44  ;;  %4615 = vmatmul.mubr.msk.f32.vlgmr.msra.gmra.mrb[6].mxu0 %vm788_vm1, %v4612_v44  ;;  %v5012_v8 = vunpack.i.h.bf16 %v5902_v6  ;;  %v5011_v11 = vunpack.i.l.bf16 %v5902_v6 }
 0x176   : > { %1698 = vmatprep.mubr.f32.mxu0 %v5341_v25  ;;  %1769 = vmatprep.mubr.f32.mxu1 %v5341_v25  ;;  %v5007_v12 = vunpack.i.h.bf16 %v5005_v7  ;;  %v5006_v40 = vunpack.i.l.bf16 %v5005_v7 }
 0x177   : > { %5164 = vrot.lane.b32.xlu1 %v5570_v22, %s5346_s12  ;;  %v1586_v49 = vsel %vm1582_vm3, %v5011_v11, %v5012_v8 }
 0x178   : > { %5159 = vrot.lane.b32.xlu0 %v5808_v46, %s5346_s12  ;;  %v5020_v0 = vpop.permute.xlu1 %5019  ;;  %v1585_v43 = vsel %vm1582_vm3, %v5007_v12, %v5011_v11  ;;  %v1584_v19 = vsel %vm1582_vm3, %v5006_v40, %v5007_v12 }
 0x179   : > { %v5022_v13 = vunpack.i.h.bf16 %v5020_v0  ;;  %v5021_v41 = vunpack.i.l.bf16 %v5020_v0  ;;  %v5015_v14 = vpop.permute.xlu0 %5014 }
 0x17a   : > { %v5017_v42 = vunpack.i.h.bf16 %v5015_v14  ;;  %v5016_v15 = vunpack.i.l.bf16 %v5015_v14 }
 0x17b   : > { %5174 = vrot.lane.b32.xlu1 %v5816_v35, %s5346_s12  ;;  %v1594_v50 = vsel %vm1582_vm3, %v5021_v41, %v5022_v13 }
 0x17c   : > { %v1593_v51 = vsel %vm1582_vm3, %v5017_v42, %v5021_v41  ;;  %5169 = vrot.lane.b32.xlu0 %v5822_v16, %s5346_s12  ;;  %v5924_v18 = vpop.permute.xlu1 %5029  ;;  %v1592_v20 = vsel %vm1582_vm3, %v5016_v15, %v5017_v42  ;;  %v4694_v39 = vpack.c.bf16 %v1594_v50, %v1586_v49 }
 0x17d   : > { %v5025_v27 = vpop.permute.xlu0 %5024  ;;  %v4690_v34 = vpack.c.bf16 %v1592_v20, %v1584_v19  ;;  %v4696_v29 = vpack.c.bf16 %v1593_v51, %v1585_v43  ;;  %v5032_v4 = vunpack.i.h.bf16 %v5924_v18  ;;  %v5031_v10 = vunpack.i.l.bf16 %v5924_v18 }
 0x17e   : > { %v5027_v37 = vunpack.i.h.bf16 %v5025_v27  ;;  %v5026_v38 = vunpack.i.l.bf16 %v5025_v27  ;;  %4695 = vmatprep.subr.bf16.mxu1 %v4694_v39 }
 0x17f   : > { %3184 = vrot.lane.b32.xlu1 %v5639_v54, %s5346_s12  ;;  %4691 = vmatprep.subr.bf16.mxu0 %v4690_v34  ;;  %v1587_v41 = vsel %vm1582_vm3, %v5012_v8, %v5031_v10 }
 0x180   : > { %v1583_v45 = vsel %vm1582_vm3, %v5026_v38, %v5006_v40  ;;  %v1591_v23 = vsel %vm1582_vm3, %v5027_v37, %v5016_v15  ;;  %5179 = vrot.lane.b32.xlu0 %v5833_v36, %s5346_s12  ;;  %4697 = vmatpush1.bf16.msra.mxu1 %v4696_v29  ;;  %v5040_v47 = vpop.permute.xlu1 %5039  ;;  %v1588_v40 = vsel %vm1582_vm3, %v5031_v10, %v5032_v4  ;;  %v4617_v15 = vld [vmem:[%s6467_s4 + $0x10] sm:$0xff] }
 0x181   : > { %v5035_v26 = vpop.permute.xlu0 %5034  ;;  %v4692_v44 = vpack.c.bf16 %v1591_v23, %v1583_v45  ;;  %v5042_v61 = vunpack.i.h.bf16 %v5040_v47  ;;  %v5041_v62 = vunpack.i.l.bf16 %v5040_v47 }
 0x182   : > { %v5037_v1 = vunpack.i.h.bf16 %v5035_v26  ;;  %v5036_v2 = vunpack.i.l.bf16 %v5035_v26 }
 0x183   : > { %3188 = vrot.lane.b32.xlu1 %v5649_v55, %s5346_s12  ;;  %4693 = vmatpush1.bf16.msra.mxu0 %v4692_v44  ;;  %v1596_v3 = vsel %vm1582_vm3, %v5041_v62, %v5042_v61  ;;  %v1595_v7 = vsel %vm1582_vm3, %v5022_v13, %v5041_v62 }
 0x184   : > { %3186 = vrot.lane.b32.xlu0 %v5652_v31, %s5346_s12  ;;  %v1567_v24 = vpop.permute.xlu1 %1566  ;;  %v4698_v42 = vpack.c.bf16 %v1596_v3, %v1588_v40  ;;  %v1590_v6 = vsel %vm1582_vm3, %v5036_v2, %v5037_v1  ;;  %v4700_v49 = vpack.c.bf16 %v1595_v7, %v1587_v41  ;;  %v1589_v51 = vsel %vm1582_vm3, %v5032_v4, %v5036_v2 }
 0x185   : > { %v5045_v60 = vpop.permute.xlu0 %5044 }
 0x186   : > { %v5047_v53 = vunpack.i.h.bf16 %v5045_v60  ;;  %v5046_v9 = vunpack.i.l.bf16 %v5045_v60 }
 0x187   : > { %3182 = vrot.lane.b32.xlu1 %v5642_v30, %s5346_s12 }
 0x188   : > { %3190 = vrot.lane.b32.xlu0 %v5662_v32, %s5346_s12  ;;  %v1571_v63 = vpop.permute.xlu1 %1570  ;;  %v1598_v0 = vsel %vm1582_vm3, %v5046_v9, %v5047_v53  ;;  %v1597_v13 = vsel %vm1582_vm3, %v5042_v61, %v5046_v9 }
 0x189   : > { %v1569_v59 = vpop.permute.xlu0 %1568  ;;  %v4702_v50 = vpack.c.bf16 %v1598_v0, %v1590_v6  ;;  %v4704_v19 = vpack.c.bf16 %v1597_v13, %v1589_v51 }
 0x18a   : > { %v1600_v48 = vsel %vm1582_vm3, %v1567_v24, %v1569_v59  ;;  %v1601_v43 = vsel %vm1582_vm3, %v1569_v59, %v1571_v63 }
 0x18b   : > { %3194 = vrot.lane.b32.xlu1 %v5672_v57, %s5346_s12  ;;  %1638 = vmatprep.subr.mxu0 %v1600_v48 }
 0x18c   : > { %3192 = vrot.lane.b32.xlu0 %v5659_v56, %s5346_s12  ;;  %v1565_v5 = vpop.permute.xlu1 %1564 }
 0x18d   : > { %v1599_v11 = vsel %vm1582_vm3, %v1565_v5, %v1567_v24  ;;  %v1573_v12 = vpop.permute.xlu0 %1572 }
 0x18e   : > { %1639 = vmatpush1.msra.mxu0 %v1599_v11  ;;  %v1602_v14 = vsel %vm1582_vm3, %v1571_v63, %v1573_v12 }
 0x18f   : > { %3198 = vrot.lane.b32.xlu1 %v5867_v21, %s5346_s12  ;;  %1709 = vmatprep.subr.mxu1 %v1602_v14 }
 0x190   : > { %3196 = vrot.lane.b32.xlu0 %v5669_v33, %s5346_s12  ;;  %1710 = vmatpush1.msra.mxu1 %v1601_v43  ;;  %v1577_v8 = vpop.permute.xlu1 %1576 }
 0x191   : > { %4699 = vmatprep.subr.bf16.mxu0 %v4698_v42  ;;  %v1575_v18 = vpop.permute.xlu0 %1574  ;;  %4618 = vmatmul.mubr.msk.f32.vlgmr.msra.gmra.mrb[8].mxu0 %vm788_vm1, %v4617_v15 }
 0x192   : > { %4701 = vmatpush1.bf16.msra.mxu0 %v4700_v49  ;;  %4703 = vmatprep.subr.bf16.mxu1 %v4702_v50  ;;  %v1604_v20 = vsel %vm1582_vm3, %v1575_v18, %v1577_v8  ;;  %v1603_v27 = vsel %vm1582_vm3, %v1573_v12, %v1575_v18 }
 0x193   : > { %4619 = vmatmul.mubr.msk.f32.vlgmr.msra.gmra.mrb[8].mxu1 %vm788_vm1, %v4617_v15  ;;  %5189 = vrot.lane.b32.xlu1 %v5551_v52, %s5347_s10 }
 0x194   : > { %4705 = vmatpush1.bf16.msra.mxu1 %v4704_v19  ;;  %5184 = vrot.lane.b32.xlu0 %v5576_v28, %s5347_s10  ;;  %v1581_v39 = vpop.permute.xlu1 %1580 }
 0x195   : > { %1780 = vmatprep.subr.mxu0 %v1604_v20  ;;  %v1579_v34 = vpop.permute.xlu0 %1578  ;;  %1911 = vmatprep.mubr.f32.mxu1 %v5341_v25 }
 0x196   : > { %v1605_v29 = vsel %vm1582_vm3, %v1577_v8, %v1579_v34  ;;  %1781 = vmatpush1.msra.mxu0 %v1603_v27  ;;  %v1606_v37 = vsel %vm1582_vm3, %v1579_v34, %v1581_v39  ;;  %1840 = vmatprep.mubr.f32.mxu0 %v5341_v25 }
 0x197   : > { %5199 = vrot.lane.b32.xlu1 %v5793_v17, %s5347_s10  ;;  %1851 = vmatprep.subr.mxu1 %v1606_v37  ;;  %v6046_v37 = vld [vmem:[%s5540_s17 + $0x28] sm:$0xff] }
 0x198   : > { %5194 = vrot.lane.b32.xlu0 %v5679_v58, %s5347_s10  ;;  %1852 = vmatpush1.msra.mxu1 %v1605_v29  ;;  %v5985_v52 = vpop.permute.xlu1 %5054  ;;  %v5274_v29 = vld [vmem:[%s5540_s17 + $0x20] sm:$0xff] }
 0x199   : > { %v5050_v28 = vpop.permute.xlu0 %5049  ;;  %4621 = vmatmul.mubr.msk.f32.vlgmr.msra.gmra.mrb[10].mxu1 %vm788_vm1, %v4617_v15  ;;  %4620 = vmatmul.mubr.msk.f32.vlgmr.msra.gmra.mrb[10].mxu0 %vm788_vm1, %v4617_v15  ;;  %v5057_v38 = vunpack.i.h.bf16 %v5985_v52  ;;  %v5056_v45 = vunpack.i.l.bf16 %v5985_v52 }
 0x19a   : > { %2149 = vmatprep.mubr.f32.mxu0 %v5341_v25  ;;  %2220 = vmatprep.mubr.f32.mxu1 %v5341_v25  ;;  %v5052_v23 = vunpack.i.h.bf16 %v5050_v28  ;;  %v5051_v58 = vunpack.i.l.bf16 %v5050_v28  ;;  %v5233_v28 = vpack.i.bf16 %v6046_v37, %v5274_v29 }
 0x19b   : > { %5209 = vrot.lane.b32.xlu1 %v5570_v22, %s5347_s10  ;;  %v2037_v22 = vsel %vm2033_vm4, %v5056_v45, %v5057_v38 }
 0x19c   : > { %5204 = vrot.lane.b32.xlu0 %v5808_v46, %s5347_s10  ;;  %v5065_v47 = vpop.permute.xlu1 %5064  ;;  %v2036_v62 = vsel %vm2033_vm4, %v5052_v23, %v5056_v45  ;;  %v2035_v53 = vsel %vm2033_vm4, %v5051_v58, %v5052_v23 }
 0x19d   : > { %v5067_v26 = vunpack.i.h.bf16 %v5065_v47  ;;  %v5066_v44 = vunpack.i.l.bf16 %v5065_v47  ;;  %v5060_v24 = vpop.permute.xlu0 %5059 }
 0x19e   : > { %v5062_v60 = vunpack.i.h.bf16 %v5060_v24  ;;  %v5061_v61 = vunpack.i.l.bf16 %v5060_v24 }
 0x19f   : > { %5219 = vrot.lane.b32.xlu1 %v5816_v35, %s5347_s10  ;;  %v2045_v63 = vsel %vm2033_vm4, %v5066_v44, %v5067_v26 }
 0x1a0   : > { %v2044_v4 = vsel %vm2033_vm4, %v5062_v60, %v5066_v44  ;;  %5214 = vrot.lane.b32.xlu0 %v5822_v16, %s5347_s10  ;;  %v6007_v10 = vpop.permute.xlu1 %5074  ;;  %v2043_v9 = vsel %vm2033_vm4, %v5061_v61, %v5062_v60  ;;  %v4710_v59 = vpack.c.bf16 %v2045_v63, %v2037_v22  ;;  %v5277_v44 = vld [vmem:[%s5540_s17 + $0x18] sm:$0xff]  ;;  %v5278_v63 = vld [vmem:[%s5540_s17 + $0x60] sm:$0xff] }
 0x1a1   : > { %v4712_v48 = vpack.c.bf16 %v2044_v4, %v2036_v62  ;;  %v5070_v1 = vpop.permute.xlu0 %5069  ;;  %v4706_v2 = vpack.c.bf16 %v2043_v9, %v2035_v53  ;;  %v5077_v13 = vunpack.i.h.bf16 %v6007_v10  ;;  %v5076_v43 = vunpack.i.l.bf16 %v6007_v10  ;;  %v5279_v4 = vld [vmem:[%s5540_s17 + $0x68] sm:$0xff] }
 0x1a2   : > { %v5072_v3 = vunpack.i.h.bf16 %v5070_v1  ;;  %v5071_v5 = vunpack.i.l.bf16 %v5070_v1  ;;  %4711 = vmatprep.subr.bf16.mxu1 %v4710_v59  ;;  %v5238_v10 = vpack.i.bf16 %v5279_v4, %v5278_v63  ;;  %v5281_v1 = vld [vmem:[%s5540_s17 + $0x58] sm:$0xff] }
 0x1a3   : > { %3592 = vrot.lane.b32.xlu1 %v5639_v54, %s5347_s10  ;;  %4707 = vmatprep.subr.bf16.mxu0 %v4706_v2  ;;  %v2039_v20 = vsel %vm2033_vm4, %v5076_v43, %v5077_v13 }
 0x1a4   : > { %v2034_v7 = vsel %vm2033_vm4, %v5071_v5, %v5051_v58  ;;  %v2042_v11 = vsel %vm2033_vm4, %v5072_v3, %v5061_v61  ;;  %5224 = vrot.lane.b32.xlu0 %v5833_v36, %s5347_s10  ;;  %4713 = vmatpush1.bf16.msra.mxu1 %v4712_v48  ;;  %v5085_v12 = vpop.permute.xlu1 %5084  ;;  %v5280_v48 = vld [vmem:[%s5540_s17 + $0x8] sm:$0xff] }
 0x1a5   : > { %v4708_v40 = vpack.c.bf16 %v2042_v11, %v2034_v7  ;;  %v5080_v0 = vpop.permute.xlu0 %5079  ;;  %v5087_v14 = vunpack.i.h.bf16 %v5085_v12  ;;  %v5086_v42 = vunpack.i.l.bf16 %v5085_v12  ;;  %v4724_v2 = vpack.c.bf16 %v5281_v1, %v5280_v48  ;;  %v5282_v7 = vld [vmem:[%s5540_s17 + $0x70] sm:$0xff] }
 0x1a6   : > { %v5082_v49 = vunpack.i.h.bf16 %v5080_v0  ;;  %v5081_v50 = vunpack.i.l.bf16 %v5080_v0  ;;  %v4726_v11 = vpack.c.bf16 %v5282_v7, %v5274_v29  ;;  %v5283_v12 = vld [vmem:[%s5540_s17 + $0x30] sm:$0xff] }
 0x1a7   : > { %3596 = vrot.lane.b32.xlu1 %v5649_v55, %s5347_s10  ;;  %4709 = vmatpush1.bf16.msra.mxu0 %v4708_v40  ;;  %v2046_v51 = vsel %vm2033_vm4, %v5067_v26, %v5086_v42  ;;  %v5276_v26 = vld [vmem:[%s5540_s17 + $0x10] sm:$0xff]  ;;  %v5284_v40 = vld [vmem:[%s5540_s17 + $0x38] sm:$0xff] }
 0x1a8   : > { %3594 = vrot.lane.b32.xlu0 %v5652_v31, %s5347_s10  ;;  %v2018_v54 = vpop.permute.xlu1 %2017  ;;  %v5228_v24 = vpack.i.bf16 %v5277_v44, %v5276_v26  ;;  %v2040_v60 = vsel %vm2033_vm4, %v5077_v13, %v5081_v50  ;;  %v4722_v53 = vpack.c.bf16 %v5278_v63, %v5276_v26  ;;  %v5253_v0 = vpack.i.bf16 %v5284_v40, %v5283_v12  ;;  %v6094_v13 = vld [vmem:[%s6467_s4 + $0x20] sm:$0xff]  ;;  %v5295_v26 = vld [vmem:[%s5540_s17 + $0xc8] sm:$0xff] }
 0x1a9   : > { %v5090_v41 = vpop.permute.xlu0 %5089 }
 0x1aa   : > { %v5092_v55 = vunpack.i.h.bf16 %v5090_v41  ;;  %v5091_v6 = vunpack.i.l.bf16 %v5090_v41  ;;  %v4728_v41 = vpack.c.bf16 %v5279_v4, %v5277_v44 }
 0x1ab   : > { %3590 = vrot.lane.b32.xlu1 %v5642_v30, %s5347_s10  ;;  %v2047_v30 = vsel %vm2033_vm4, %v5086_v42, %v5087_v14 }
 0x1ac   : > { %3598 = vrot.lane.b32.xlu0 %v5662_v32, %s5347_s10  ;;  %v2022_v15 = vpop.permute.xlu1 %2021  ;;  %v2049_v39 = vsel %vm2033_vm4, %v5091_v6, %v5092_v55  ;;  %v4714_v34 = vpack.c.bf16 %v2047_v30, %v2039_v20  ;;  %v2048_v45 = vsel %vm2033_vm4, %v5087_v14, %v5091_v6 }
 0x1ad   : > { %v2020_v8 = vpop.permute.xlu0 %2019  ;;  %v4720_v62 = vpack.c.bf16 %v2048_v45, %v2040_v60 }
 0x1ae   : > { %v2051_v31 = vsel %vm2033_vm4, %v2018_v54, %v2020_v8  ;;  %v2052_v52 = vsel %vm2033_vm4, %v2020_v8, %v2022_v15 }
 0x1af   : > { %3602 = vrot.lane.b32.xlu1 %v5672_v57, %s5347_s10  ;;  %2089 = vmatprep.subr.mxu0 %v2051_v31  ;;  %v2038_v57 = vsel %vm2033_vm4, %v5057_v38, %v5076_v43  ;;  %v2041_v38 = vsel %vm2033_vm4, %v5081_v50, %v5082_v49  ;;  %v5286_v43 = vld [vmem:[%s5540_s17 + $0x78] sm:$0xff]  ;;  %v5287_v31 = vld [vmem:[%s5540_s17 + $0xb0] sm:$0xff]  ;;  %v6103_v49 = vld [vmem:[%s5540_s17 + $0xa8] sm:$0xff] }
 0x1b0   : > { %3600 = vrot.lane.b32.xlu0 %v5659_v56, %s5347_s10  ;;  %v2016_v32 = vpop.permute.xlu1 %2015  ;;  %v4623_v56 = vld [vmem:[%s6467_s4 + $0x18] sm:$0xff]  ;;  %v4716_v23 = vpack.c.bf16 %v2046_v51, %v2038_v57  ;;  %v4718_v47 = vpack.c.bf16 %v2049_v39, %v2041_v38  ;;  %v4732_v55 = vpack.c.bf16 %v5286_v43, %v6046_v37  ;;  %v5290_v51 = vld [vmem:[%s5540_s17 + $0x40] sm:$0xff] }
 0x1b1   : > { %v2050_v18 = vsel %vm2033_vm4, %v2016_v32, %v2018_v54  ;;  %v2024_v19 = vpop.permute.xlu0 %2023  ;;  %v5289_v32 = vld [vmem:[%s5540_s17 + $0xc0] sm:$0xff]  ;;  %v5292_v57 = vld [vmem:[%s5540_s17 + $0xb8] sm:$0xff] }
 0x1b2   : > { %2090 = vmatpush1.msra.mxu0 %v2050_v18  ;;  %v2053_v27 = vsel %vm2033_vm4, %v2022_v15, %v2024_v19  ;;  %v5291_v18 = vld [vmem:[%s5540_s17 + $0x90] sm:$0xff] }
 0x1b3   : > { %3606 = vrot.lane.b32.xlu1 %v5867_v21, %s5347_s10  ;;  %2160 = vmatprep.subr.mxu1 %v2053_v27  ;;  %v5293_v27 = vld [vmem:[%s5540_s17 + $0x88] sm:$0xff] }
 0x1b4   : > { %3604 = vrot.lane.b32.xlu0 %v5669_v33, %s5347_s10  ;;  %2161 = vmatpush1.msra.mxu1 %v2052_v52  ;;  %v2028_v58 = vpop.permute.xlu1 %2027 }
 0x1b5   : > { %4715 = vmatprep.subr.bf16.mxu0 %v4714_v34  ;;  %v2026_v61 = vpop.permute.xlu0 %2025  ;;  %4624 = vmatmul.mubr.msk.f32.vlgmr.msra.gmra.mrb[12].mxu0 %vm788_vm1, %v4623_v56  ;;  %v4736_v34 = vpack.c.bf16 %v5293_v27, %v5284_v40 }
 0x1b6   : > { %4717 = vmatpush1.bf16.msra.mxu0 %v4716_v23  ;;  %4719 = vmatprep.subr.bf16.mxu1 %v4718_v47  ;;  %v2055_v33 = vsel %vm2033_vm4, %v2026_v61, %v2028_v58  ;;  %v2054_v9 = vsel %vm2033_vm4, %v2024_v19, %v2026_v61  ;;  %v4734_v19 = vpack.c.bf16 %v5291_v18, %v5290_v51 }
 0x1b7   : > { %4625 = vmatmul.mubr.msk.f32.vlgmr.msra.gmra.mrb[12].mxu1 %vm788_vm1, %v4623_v56  ;;  %5234 = vrot.lane.b32.xlu1 %v5233_v28, %s5348_s18 }
 0x1b8   : > { %4721 = vmatpush1.bf16.msra.mxu1 %v4720_v62  ;;  %5229 = vrot.lane.b32.xlu0 %v5228_v24, %s5348_s18  ;;  %v2032_v22 = vpop.permute.xlu1 %2031  ;;  %v6145_v62 = vld [vmem:[%s5540_s17 + $0xe0] sm:$0xff] }
 0x1b9   : > { %2231 = vmatprep.subr.mxu0 %v2055_v33  ;;  %v2030_v59 = vpop.permute.xlu0 %2029  ;;  %2291 = vmatprep.mubr.f32.mxu0 %v5341_v25 }
 0x1ba   : > { %v2056_v3 = vsel %vm2033_vm4, %v2028_v58, %v2030_v59  ;;  %2232 = vmatpush1.msra.mxu0 %v2054_v9  ;;  %v2057_v5 = vsel %vm2033_vm4, %v2030_v59, %v2032_v22  ;;  %2362 = vmatprep.mubr.f32.mxu1 %v5341_v25 }
 0x1bb   : > { %5244 = vrot.lane.b32.xlu1 %v5793_v17, %s5348_s18  ;;  %2302 = vmatprep.subr.mxu1 %v2057_v5  ;;  %v5285_v17 = vld [vmem:[%s5540_s17 + $0x80] sm:$0xff] }
 0x1bc   : > { %5239 = vrot.lane.b32.xlu0 %v5238_v10, %s5348_s18  ;;  %4723 = vmatprep.subr.bf16.mxu0 %v4722_v53  ;;  %v6079_v54 = vpop.permute.xlu1 %5099  ;;  %v4730_v42 = vpack.c.bf16 %v5285_v17, %v5283_v12  ;;  %v5297_v10 = vld [vmem:[%s5540_s17 + $0xd8] sm:$0xff] }
 0x1bd   : > { %4626 = vmatmul.mubr.msk.f32.vlgmr.msra.gmra.mrb[14].mxu0 %vm788_vm1, %v4623_v56  ;;  %2303 = vmatpush1.msra.mxu1 %v2056_v3  ;;  %v6082_v14 = vpop.permute.xlu0 %5094  ;;  %v5102_v37 = vunpack.i.h.bf16 %v6079_v54  ;;  %v5101_v52 = vunpack.i.l.bf16 %v6079_v54  ;;  %v4633_v54 = vld [vmem:[%s6467_s4 + $0x28] sm:$0xff] }
 0x1be   : > { %4725 = vmatpush1.bf16.msra.mxu0 %v4724_v2  ;;  %4727 = vmatprep.subr.bf16.mxu1 %v4726_v11  ;;  %v5097_v6 = vunpack.i.h.bf16 %v6082_v14  ;;  %v5096_v8 = vunpack.i.l.bf16 %v6082_v14 }
 0x1bf   : > { %4627 = vmatmul.mubr.msk.f32.vlgmr.msra.gmra.mrb[14].mxu1 %vm788_vm1, %v4623_v56  ;;  %5254 = vrot.lane.b32.xlu1 %v5253_v0, %s5348_s18  ;;  %v2796_v33 = vsel %vm2792_vm5, %v5101_v52, %v5102_v37 }
 0x1c0   : > { %4729 = vmatpush1.bf16.msra.mxu1 %v4728_v41  ;;  %5249 = vrot.lane.b32.xlu0 %v5808_v46, %s5348_s18  ;;  %v6089_v15 = vpop.permute.xlu1 %5109  ;;  %v2794_v45 = vsel %vm2792_vm5, %v5096_v8, %v5097_v6  ;;  %v2795_v22 = vsel %vm2792_vm5, %v5097_v6, %v5101_v52  ;;  %v5349_v41 = vmov 0  }
 0x1c1   : > { %2394 = vmatprep.subr.mxu0 %v5287_v31  ;;  %v5105_v46 = vpop.permute.xlu0 %5104  ;;  %2454 = vmatprep.mubr.f32.mxu0 %v5341_v25  ;;  %v5112_v20 = vunpack.i.h.bf16 %v6089_v15  ;;  %v5111_v39 = vunpack.i.l.bf16 %v6089_v15 }
 0x1c2   : > { %2395 = vmatpush1.msra.mxu0 %v6103_v49  ;;  %v5107_v50 = vunpack.i.h.bf16 %v5105_v46  ;;  %v5106_v30 = vunpack.i.l.bf16 %v5105_v46  ;;  %2465 = vmatprep.subr.mxu1 %v5289_v32 }
 0x1c3   : > { %4731 = vmatprep.subr.bf16.mxu0 %v4730_v42  ;;  %4629 = vmatmul.mubr.msk.f32.vlgmr.msra.gmra.mrb[4].mxu0 %vm788_vm1, %v6094_v13  ;;  %v2804_v24 = vsel %vm2792_vm5, %v5111_v39, %v5112_v20 }
 0x1c4   : > { %2466 = vmatpush1.msra.mxu1 %v5292_v57  ;;  %4733 = vmatpush1.bf16.msra.mxu0 %v4732_v55  ;;  %v6115_v56 = vpop.permute.xlu1 %5119  ;;  %v2802_v29 = vsel %vm2792_vm5, %v5106_v30, %v5107_v50  ;;  %v2803_v60 = vsel %vm2792_vm5, %v5107_v50, %v5111_v39  ;;  %v4742_v4 = vpack.c.bf16 %v2804_v24, %v2796_v33 }
 0x1c5   : > { %5264 = vrot.lane.b32.xlu1 %v5816_v35, %s5348_s18  ;;  %5259 = vrot.lane.b32.xlu0 %v5822_v16, %s5348_s18  ;;  %v5115_v28 = vpop.permute.xlu0 %5114  ;;  %v4738_v58 = vpack.c.bf16 %v2802_v29, %v2794_v45  ;;  %v6129_v35 = vld [vmem:[%s5540_s17 + $0xd0] sm:$0xff]  ;;  %v5122_v5 = vunpack.i.h.bf16 %v6115_v56  ;;  %v5121_v7 = vunpack.i.l.bf16 %v6115_v56  ;;  %v4360_v29 = vld [vmem:[%s6468_s5] sm:$0xff] }
 0x1c6   : > { %2525 = vmatprep.mubr.f32.mxu1 %v5341_v25  ;;  %4735 = vmatprep.subr.bf16.mxu1 %v4734_v19  ;;  %v5117_v38 = vunpack.i.h.bf16 %v5115_v28  ;;  %v5116_v23 = vunpack.i.l.bf16 %v5115_v28 }
 0x1c7   : > { %4630 = vmatmul.mubr.msk.f32.vlgmr.msra.gmra.mrb[4].mxu1 %vm788_vm1, %v6094_v13  ;;  %2536 = vmatprep.subr.mxu0 %v6129_v35 }
 0x1c8   : > { %4737 = vmatpush1.bf16.msra.mxu1 %v4736_v34  ;;  %v2793_v16 = vsel %vm2792_vm5, %v5116_v23, %v5096_v8  ;;  %v2801_v47 = vsel %vm2792_vm5, %v5117_v38, %v5106_v30  ;;  %2537 = vmatpush1.msra.mxu0 %v5295_v26  ;;  %v5130_v44 = vpop.permute.xlu1 %5129  ;;  %v2798_v8 = vsel %vm2792_vm5, %v5121_v7, %v5122_v5 }
 0x1c9   : > { %3992 = vrot.lane.b32.xlu1 %v5287_v31, %s5348_s18  ;;  %5269 = vrot.lane.b32.xlu0 %v5833_v36, %s5348_s18  ;;  %v6142_v61 = vpop.permute.xlu0 %5124  ;;  %v4740_v63 = vpack.c.bf16 %v2801_v47, %v2793_v16  ;;  %v4744_v36 = vpack.c.bf16 %v2803_v60, %v2795_v22  ;;  %v5132_v59 = vunpack.i.h.bf16 %v5130_v44  ;;  %v5131_v48 = vunpack.i.l.bf16 %v5130_v44 }
 0x1ca   : > { %2607 = vmatprep.subr.mxu1 %v6145_v62  ;;  %4739 = vmatprep.subr.bf16.mxu0 %v4738_v58  ;;  %v5127_v12 = vunpack.i.h.bf16 %v6142_v61  ;;  %v5126_v40 = vunpack.i.l.bf16 %v6142_v61 }
 0x1cb   : > { %2667 = vmatprep.mubr.f32.mxu1 %v5341_v25  ;;  %2596 = vmatprep.mubr.f32.mxu0 %v5341_v25  ;;  %v2806_v14 = vsel %vm2792_vm5, %v5131_v48, %v5132_v59  ;;  %v2805_v43 = vsel %vm2792_vm5, %v5112_v20, %v5131_v48 }
 0x1cc   : > { %2608 = vmatpush1.msra.mxu1 %v5297_v10  ;;  %4631 = vmatmul.mubr.msk.f32.vlgmr.msra.gmra.mrb[6].mxu0 %vm788_vm1, %v6094_v13  ;;  %v2777_v53 = vpop.permute.xlu1 %2776  ;;  %v4746_v46 = vpack.c.bf16 %v2806_v14, %v2798_v8  ;;  %v2799_v18 = vsel %vm2792_vm5, %v5122_v5, %v5126_v40 }
 0x1cd   : > { %4743 = vmatprep.subr.bf16.mxu1 %v4742_v4  ;;  %4632 = vmatmul.mubr.msk.f32.vlgmr.msra.gmra.mrb[6].mxu1 %vm788_vm1, %v6094_v13  ;;  %v5135_v9 = vpop.permute.xlu0 %5134  ;;  %v2797_v13 = vsel %vm2792_vm5, %v5102_v37, %v5121_v7 }
 0x1ce   : > { %4745 = vmatpush1.bf16.msra.mxu1 %v4744_v36  ;;  %3996 = vrot.lane.b32.xlu1 %v5289_v32, %s5348_s18  ;;  %v5137_v1 = vunpack.i.h.bf16 %v5135_v9  ;;  %v5136_v2 = vunpack.i.l.bf16 %v5135_v9  ;;  %v4748_v32 = vpack.c.bf16 %v2805_v43, %v2797_v13 }
 0x1cf   : > { %3994 = vrot.lane.b32.xlu0 %v5292_v57, %s5348_s18  ;;  %4741 = vmatpush1.bf16.msra.mxu0 %v4740_v63 }
 0x1d0   : > { %v2781_v3 = vpop.permute.xlu1 %2780  ;;  %2908 = vmatprep.mubr.f32.mxu0 %v5341_v25  ;;  %2979 = vmatprep.mubr.f32.mxu1 %v5341_v25  ;;  %v2808_v42 = vsel %vm2792_vm5, %v5136_v2, %v5137_v1  ;;  %v2807_v15 = vsel %vm2792_vm5, %v5132_v59, %v5136_v2 }
 0x1d1   : > { %v2779_v11 = vpop.permute.xlu0 %2778  ;;  %5273 = vset.pattern.permute.xlu0 %v5349_v41  ;;  %v4752_v20 = vpack.c.bf16 %v2807_v15, %v2799_v18 }
 0x1d2   : > { %3990 = vrot.lane.b32.xlu1 %v6103_v49, %s5348_s18  ;;  %v2810_v0 = vsel %vm2792_vm5, %v2777_v53, %v2779_v11  ;;  %v2800_v49 = vsel %vm2792_vm5, %v5126_v40, %v5127_v12  ;;  %v2811_v50 = vsel %vm2792_vm5, %v2779_v11, %v2781_v3 }
 0x1d3   : > { %3998 = vrot.lane.b32.xlu0 %v5295_v26, %s5348_s18  ;;  %2848 = vmatprep.subr.mxu0 %v2810_v0  ;;  %v4750_v30 = vpack.c.bf16 %v2808_v42, %v2800_v49 }
 0x1d4   : > { %v2775_v17 = vpop.permute.xlu1 %2774 }
 0x1d5   : > { %v2809_v55 = vsel %vm2792_vm5, %v2775_v17, %v2777_v53  ;;  %v2783_v6 = vpop.permute.xlu0 %2782 }
 0x1d6   : > { %4002 = vrot.lane.b32.xlu1 %v5297_v10, %s5348_s18  ;;  %2849 = vmatpush1.msra.mxu0 %v2809_v55  ;;  %v2812_v31 = vsel %vm2792_vm5, %v2781_v3, %v2783_v6 }
 0x1d7   : > { %4000 = vrot.lane.b32.xlu0 %v6129_v35, %s5348_s18  ;;  %2919 = vmatprep.subr.mxu1 %v2812_v31 }
 0x1d8   : > { %2920 = vmatpush1.msra.mxu1 %v2811_v50  ;;  %4747 = vmatprep.subr.bf16.mxu0 %v4746_v46  ;;  %v2787_v51 = vpop.permute.xlu1 %2786 }
 0x1d9   : > { %v2785_v19 = vpop.permute.xlu0 %2784  ;;  %4634 = vmatmul.mubr.msk.f32.vlgmr.msra.gmra.mrb[16].mxu0 %vm788_vm1, %v4633_v54  ;;  %4751 = vmatprep.subr.bf16.mxu1 %v4750_v30 }
 0x1da   : > { %4006 = vrot.lane.b32.xlu1 %v5867_v21, %s5348_s18  ;;  %4749 = vmatpush1.bf16.msra.mxu0 %v4748_v32  ;;  %v2814_v39 = vsel %vm2792_vm5, %v2785_v19, %v2787_v51  ;;  %v2813_v27 = vsel %vm2792_vm5, %v2783_v6, %v2785_v19 }
 0x1db   : > { %4004 = vrot.lane.b32.xlu0 %v6145_v62, %s5348_s18  ;;  %4635 = vmatmul.mubr.msk.f32.vlgmr.msra.gmra.mrb[16].mxu1 %vm788_vm1, %v4633_v54 }
 0x1dc   : > { %4753 = vmatpush1.bf16.msra.mxu1 %v4752_v20  ;;  %2990 = vmatprep.subr.mxu0 %v2814_v39  ;;  %v2791_v57 = vpop.permute.xlu1 %2790 }
 0x1dd   : > { %v2789_v34 = vpop.permute.xlu0 %2788  ;;  %3121 = vmatprep.mubr.f32.mxu1 %v5341_v25  ;;  %3050 = vmatprep.mubr.f32.mxu0 %v5341_v25 }
 0x1de   : > { %v2815_v21 = vsel %vm2792_vm5, %v2787_v51, %v2789_v34  ;;  %2991 = vmatpush1.msra.mxu0 %v2813_v27  ;;  %v2816_v56 = vsel %vm2792_vm5, %v2789_v34, %v2791_v57 }
 0x1df   : > { %3061 = vmatprep.subr.mxu1 %v2816_v56  ;;  %4636 = vmatmul.mubr.msk.f32.vlgmr.msra.gmra.mrb[18].mxu0 %vm788_vm1, %v4633_v54 }
 0x1e0   : > { %3062 = vmatpush1.msra.mxu1 %v2815_v21  ;;  %3316 = vmatprep.mubr.f32.mxu0 %v5341_v25 }
 0x1e1   : > { %v5145_v37 = vpop.permute.xlu1 %5144  ;;  %4637 = vmatmul.mubr.msk.f32.vlgmr.msra.gmra.mrb[18].mxu1 %vm788_vm1, %v4633_v54  ;;  %4363 = vperm.xlu0 %5273, %v4360_v29   ;;  %v4638_v54 = vld [vmem:[%s6467_s4 + $0x30] sm:$0xff] }
 0x1e2   : > { %v5140_v28 = vpop.permute.xlu0 %5139  ;;  %3387 = vmatprep.mubr.f32.mxu1 %v5341_v25  ;;  %v5147_v45 = vunpack.i.h.bf16 %v5145_v37  ;;  %v5146_v52 = vunpack.i.l.bf16 %v5145_v37 }
 0x1e3   : > { %v5142_v38 = vunpack.i.h.bf16 %v5140_v28  ;;  %v5141_v23 = vunpack.i.l.bf16 %v5140_v28 }
 0x1e4   : > { %v3204_v60 = vsel %vm3200_vm6, %v5146_v52, %v5147_v45 }
 0x1e5   : > { %v5155_v58 = vpop.permute.xlu1 %5154  ;;  %v3203_v24 = vsel %vm3200_vm6, %v5142_v38, %v5146_v52  ;;  %v3202_v22 = vsel %vm3200_vm6, %v5141_v23, %v5142_v38 }
 0x1e6   : > { %v5157_v35 = vunpack.i.h.bf16 %v5155_v58  ;;  %v5156_v16 = vunpack.i.l.bf16 %v5155_v58  ;;  %v5150_v47 = vpop.permute.xlu0 %5149 }
 0x1e7   : > { %v5152_v26 = vunpack.i.h.bf16 %v5150_v47  ;;  %v5151_v44 = vunpack.i.l.bf16 %v5150_v47 }
 0x1e8   : > { %v3212_v61 = vsel %vm3200_vm6, %v5156_v16, %v5157_v35 }
 0x1e9   : > { %v3211_v62 = vsel %vm3200_vm6, %v5152_v26, %v5156_v16  ;;  %v5165_v33 = vpop.permute.xlu1 %5164  ;;  %v3210_v63 = vsel %vm3200_vm6, %v5151_v44, %v5152_v26  ;;  %v4758_v4 = vpack.c.bf16 %v3212_v61, %v3204_v60 }
 0x1ea   : > { %v4760_v36 = vpack.c.bf16 %v3211_v62, %v3203_v24  ;;  %v5160_v10 = vpop.permute.xlu0 %5159  ;;  %v4754_v53 = vpack.c.bf16 %v3210_v63, %v3202_v22  ;;  %v5167_v41 = vunpack.i.h.bf16 %v5165_v33  ;;  %v5166_v14 = vunpack.i.l.bf16 %v5165_v33 }
 0x1eb   : > { %v5162_v9 = vunpack.i.h.bf16 %v5160_v10  ;;  %v5161_v59 = vunpack.i.l.bf16 %v5160_v10  ;;  %4759 = vmatprep.subr.bf16.mxu1 %v4758_v4 }
 0x1ec   : > { %4755 = vmatprep.subr.bf16.mxu0 %v4754_v53  ;;  %4761 = vmatpush1.bf16.msra.mxu1 %v4760_v36  ;;  %v3206_v50 = vsel %vm3200_vm6, %v5166_v14, %v5167_v41  ;;  %v3205_v32 = vsel %vm3200_vm6, %v5147_v45, %v5166_v14 }
 0x1ed   : > { %v3201_v48 = vsel %vm3200_vm6, %v5161_v59, %v5141_v23  ;;  %v3209_v1 = vsel %vm3200_vm6, %v5162_v9, %v5151_v44  ;;  %v5175_v2 = vpop.permute.xlu1 %5174 }
 0x1ee   : > { %v4756_v3 = vpack.c.bf16 %v3209_v1, %v3201_v48  ;;  %v5170_v5 = vpop.permute.xlu0 %5169  ;;  %v5177_v12 = vunpack.i.h.bf16 %v5175_v2  ;;  %v5176_v40 = vunpack.i.l.bf16 %v5175_v2 }
 0x1ef   : > { %v5172_v55 = vunpack.i.h.bf16 %v5170_v5  ;;  %v5171_v6 = vunpack.i.l.bf16 %v5170_v5 }
 0x1f0   : > { %4757 = vmatpush1.bf16.msra.mxu0 %v4756_v3  ;;  %v3214_v8 = vsel %vm3200_vm6, %v5176_v40, %v5177_v12  ;;  %v3213_v31 = vsel %vm3200_vm6, %v5157_v35, %v5176_v40 }
 0x1f1   : > { %v3185_v7 = vpop.permute.xlu1 %3184  ;;  %v4762_v19 = vpack.c.bf16 %v3214_v8, %v3206_v50  ;;  %v4764_v20 = vpack.c.bf16 %v3213_v31, %v3205_v32  ;;  %v3208_v57 = vsel %vm3200_vm6, %v5171_v6, %v5172_v55  ;;  %v3207_v27 = vsel %vm3200_vm6, %v5167_v41, %v5171_v6 }
 0x1f2   : > { %v5180_v11 = vpop.permute.xlu0 %5179 }
 0x1f3   : > { %v5182_v17 = vunpack.i.h.bf16 %v5180_v11  ;;  %v5181_v42 = vunpack.i.l.bf16 %v5180_v11 }
 0x1f5   : > { %v3189_v0 = vpop.permute.xlu1 %3188  ;;  %v3216_v30 = vsel %vm3200_vm6, %v5181_v42, %v5182_v17  ;;  %v3215_v51 = vsel %vm3200_vm6, %v5177_v12, %v5181_v42 }
 0x1f6   : > { %v3187_v13 = vpop.permute.xlu0 %3186  ;;  %v4766_v21 = vpack.c.bf16 %v3216_v30, %v3208_v57  ;;  %v4768_v56 = vpack.c.bf16 %v3215_v51, %v3207_v27 }
 0x1f7   : > { %v3218_v43 = vsel %vm3200_vm6, %v3185_v7, %v3187_v13  ;;  %v3219_v39 = vsel %vm3200_vm6, %v3187_v13, %v3189_v0 }
 0x1f8   : > { %3256 = vmatprep.subr.mxu0 %v3218_v43 }
 0x1f9   : > { %v3183_v46 = vpop.permute.xlu1 %3182 }
 0x1fa   : > { %v3217_v49 = vsel %vm3200_vm6, %v3183_v46, %v3185_v7  ;;  %v3191_v15 = vpop.permute.xlu0 %3190 }
 0x1fb   : > { %3257 = vmatpush1.msra.mxu0 %v3217_v49  ;;  %v3220_v18 = vsel %vm3200_vm6, %v3189_v0, %v3191_v15 }
 0x1fc   : > { %3327 = vmatprep.subr.mxu1 %v3220_v18  ;;  %4639 = vmatmul.mubr.msk.f32.vlgmr.msra.gmra.mrb[20].mxu0 %vm788_vm1, %v4638_v54 }
 0x1fd   : > { %3328 = vmatpush1.msra.mxu1 %v3219_v39  ;;  %4763 = vmatprep.subr.bf16.mxu0 %v4762_v19  ;;  %v3195_v34 = vpop.permute.xlu1 %3194 }
 0x1fe   : > { %v3193_v29 = vpop.permute.xlu0 %3192  ;;  %4640 = vmatmul.mubr.msk.f32.vlgmr.msra.gmra.mrb[20].mxu1 %vm788_vm1, %v4638_v54  ;;  %4765 = vmatpush1.bf16.msra.mxu0 %v4764_v20  ;;  %v4643_v20 = vld [vmem:[%s6467_s4 + $0x38] sm:$0xff] }
 0x1ff   : > { %4767 = vmatprep.subr.bf16.mxu1 %v4766_v21  ;;  %v3222_v37 = vsel %vm3200_vm6, %v3193_v29, %v3195_v34  ;;  %3458 = vmatprep.mubr.f32.mxu0 %v5341_v25  ;;  %v3221_v28 = vsel %vm3200_vm6, %v3191_v15, %v3193_v29 }
 0x200   : > { %4769 = vmatpush1.bf16.msra.mxu1 %v4768_v56  ;;  %3398 = vmatprep.subr.mxu0 %v3222_v37 }
 0x201   : > { %v3199_v45 = vpop.permute.xlu1 %3198  ;;  %3529 = vmatprep.mubr.f32.mxu1 %v5341_v25 }
 0x202   : > { %v3197_v52 = vpop.permute.xlu0 %3196  ;;  %3399 = vmatpush1.msra.mxu0 %v3221_v28 }
 0x203   : > { %v3223_v38 = vsel %vm3200_vm6, %v3195_v34, %v3197_v52  ;;  %4641 = vmatmul.mubr.msk.f32.vlgmr.msra.gmra.mrb[22].mxu0 %vm788_vm1, %v4638_v54  ;;  %v3224_v23 = vsel %vm3200_vm6, %v3197_v52, %v3199_v45 }
 0x204   : > { %3469 = vmatprep.subr.mxu1 %v3224_v23  ;;  %3724 = vmatprep.mubr.f32.mxu0 %v5341_v25 }
 0x205   : > { %3470 = vmatpush1.msra.mxu1 %v3223_v38  ;;  %v6244_v58 = vpop.permute.xlu1 %5189 }
 0x206   : > { %v5185_v35 = vpop.permute.xlu0 %5184  ;;  %4642 = vmatmul.mubr.msk.f32.vlgmr.msra.gmra.mrb[22].mxu1 %vm788_vm1, %v4638_v54  ;;  %v5192_v16 = vunpack.i.h.bf16 %v6244_v58  ;;  %v5191_v47 = vunpack.i.l.bf16 %v6244_v58 }
 0x207   : > { %3795 = vmatprep.mubr.f32.mxu1 %v5341_v25  ;;  %v5187_v26 = vunpack.i.h.bf16 %v5185_v35  ;;  %v5186_v44 = vunpack.i.l.bf16 %v5185_v35 }
 0x208   : > { %v3612_v4 = vsel %vm3608_vm7, %v5191_v47, %v5192_v16 }
 0x209   : > { %v5200_v24 = vpop.permute.xlu1 %5199  ;;  %v3611_v63 = vsel %vm3608_vm7, %v5187_v26, %v5191_v47  ;;  %v3610_v9 = vsel %vm3608_vm7, %v5186_v44, %v5187_v26 }
 0x20a   : > { %v5202_v60 = vunpack.i.h.bf16 %v5200_v24  ;;  %v5201_v61 = vunpack.i.l.bf16 %v5200_v24  ;;  %v5195_v62 = vpop.permute.xlu0 %5194 }
 0x20b   : > { %v5197_v33 = vunpack.i.h.bf16 %v5195_v62  ;;  %v5196_v22 = vunpack.i.l.bf16 %v5195_v62 }
 0x20c   : > { %v3620_v36 = vsel %vm3608_vm7, %v5201_v61, %v5202_v60 }
 0x20d   : > { %v3619_v10 = vsel %vm3608_vm7, %v5197_v33, %v5201_v61  ;;  %v5210_v53 = vpop.permute.xlu1 %5209  ;;  %v3618_v59 = vsel %vm3608_vm7, %v5196_v22, %v5197_v33  ;;  %v4774_v48 = vpack.c.bf16 %v3620_v36, %v3612_v4 }
 0x20e   : > { %v4776_v1 = vpack.c.bf16 %v3619_v10, %v3611_v63  ;;  %v5205_v2 = vpop.permute.xlu0 %5204  ;;  %v4770_v3 = vpack.c.bf16 %v3618_v59, %v3610_v9  ;;  %v5212_v8 = vunpack.i.h.bf16 %v5210_v53  ;;  %v5211_v31 = vunpack.i.l.bf16 %v5210_v53 }
 0x20f   : > { %v5207_v5 = vunpack.i.h.bf16 %v5205_v2  ;;  %v5206_v7 = vunpack.i.l.bf16 %v5205_v2  ;;  %4775 = vmatprep.subr.bf16.mxu1 %v4774_v48 }
 0x210   : > { %4771 = vmatprep.subr.bf16.mxu0 %v4770_v3  ;;  %4777 = vmatpush1.bf16.msra.mxu1 %v4776_v1  ;;  %v3614_v34 = vsel %vm3608_vm7, %v5211_v31, %v5212_v8  ;;  %v3613_v56 = vsel %vm3608_vm7, %v5192_v16, %v5211_v31 }
 0x211   : > { %v3609_v11 = vsel %vm3608_vm7, %v5206_v7, %v5186_v44  ;;  %v3617_v12 = vsel %vm3608_vm7, %v5207_v5, %v5196_v22  ;;  %v5220_v40 = vpop.permute.xlu1 %5219 }
 0x212   : > { %v4772_v0 = vpack.c.bf16 %v3617_v12, %v3609_v11  ;;  %v5215_v41 = vpop.permute.xlu0 %5214  ;;  %v5222_v42 = vunpack.i.h.bf16 %v5220_v40  ;;  %v5221_v13 = vunpack.i.l.bf16 %v5220_v40 }
 0x213   : > { %v5217_v50 = vunpack.i.h.bf16 %v5215_v41  ;;  %v5216_v30 = vunpack.i.l.bf16 %v5215_v41 }
 0x214   : > { %4773 = vmatpush1.bf16.msra.mxu0 %v4772_v0  ;;  %v3622_v32 = vsel %vm3608_vm7, %v5221_v13, %v5222_v42  ;;  %v3621_v18 = vsel %vm3608_vm7, %v5202_v60, %v5221_v13 }
 0x215   : > { %v3593_v14 = vpop.permute.xlu1 %3592  ;;  %v4778_v28 = vpack.c.bf16 %v3622_v32, %v3614_v34  ;;  %v4780_v45 = vpack.c.bf16 %v3621_v18, %v3613_v56  ;;  %v3616_v38 = vsel %vm3608_vm7, %v5216_v30, %v5217_v50  ;;  %v3615_v58 = vsel %vm3608_vm7, %v5212_v8, %v5216_v30 }
 0x216   : > { %v5225_v17 = vpop.permute.xlu0 %5224 }
 0x217   : > { %v5227_v46 = vunpack.i.h.bf16 %v5225_v17  ;;  %v5226_v54 = vunpack.i.l.bf16 %v5225_v17 }
 0x218   : > { %v6258_v43 = vpop.f32.mrb[0].mxu0 }
 0x219   : > { %v3597_v55 = vpop.permute.xlu1 %3596  ;;  %v6260_v6 = vpop.f32.mrb[1].mxu0  ;;  %v3624_v21 = vsel %vm3608_vm7, %v5226_v54, %v5227_v46  ;;  %v3623_v29 = vsel %vm3608_vm7, %v5222_v42, %v5226_v54 }
 0x21a   : > { %v3595_v49 = vpop.permute.xlu0 %3594  ;;  %v4782_v16 = vpack.c.bf16 %v3624_v21, %v3616_v38  ;;  %v4784_v26 = vpack.c.bf16 %v3623_v29, %v3615_v58 }
 0x21b   : > { %v3626_v15 = vsel %vm3608_vm7, %v3593_v14, %v3595_v49  ;;  %v3627_v52 = vsel %vm3608_vm7, %v3595_v49, %v3597_v55 }
 0x21c   : > { %3664 = vmatprep.subr.mxu0 %v3626_v15  ;;  %v6264_v51 = vpop.f32.mrb[0].mxu1 }
 0x21d   : > { %v3591_v19 = vpop.permute.xlu1 %3590  ;;  %v6270_v39 = vpop.f32.mrb[1].mxu1 }
 0x21e   : > { %v3625_v57 = vsel %vm3608_vm7, %v3591_v19, %v3593_v14  ;;  %v3599_v27 = vpop.permute.xlu0 %3598 }
 0x21f   : > { %3665 = vmatpush1.msra.mxu0 %v3625_v57  ;;  %v3628_v37 = vsel %vm3608_vm7, %v3597_v55, %v3599_v27 }
 0x220   : > { %3735 = vmatprep.subr.mxu1 %v3628_v37  ;;  %4644 = vmatmul.mubr.msk.f32.vlgmr.msra.gmra.mrb[4].mxu0 %vm788_vm1, %v4643_v20  ;;  %v6281_v23 = vpop.f32.mrb[2].mxu0 }
 0x221   : > { %3736 = vmatpush1.msra.mxu1 %v3627_v52  ;;  %4779 = vmatprep.subr.bf16.mxu0 %v4778_v28  ;;  %v3603_v35 = vpop.permute.xlu1 %3602  ;;  %v6284_v47 = vpop.f32.mrb[3].mxu0 }
 0x222   : > { %v3601_v44 = vpop.permute.xlu0 %3600  ;;  %4645 = vmatmul.mubr.msk.f32.vlgmr.msra.gmra.mrb[4].mxu1 %vm788_vm1, %v4643_v20  ;;  %4781 = vmatpush1.bf16.msra.mxu0 %v4780_v45 }
 0x223   : > { %4783 = vmatprep.subr.bf16.mxu1 %v4782_v16  ;;  %v3630_v24 = vsel %vm3608_vm7, %v3601_v44, %v3603_v35  ;;  %3866 = vmatprep.mubr.f32.mxu0 %v5341_v25  ;;  %v3629_v61 = vsel %vm3608_vm7, %v3599_v27, %v3601_v44  ;;  %v4648_v16 = vld [vmem:[%s6467_s4 + $0x40] sm:$0xff] }
 0x224   : > { %4785 = vmatpush1.bf16.msra.mxu1 %v4784_v26  ;;  %3806 = vmatprep.subr.mxu0 %v3630_v24  ;;  %v6289_v60 = vpop.f32.mrb[2].mxu1 }
 0x225   : > { %v3607_v62 = vpop.permute.xlu1 %3606  ;;  %3937 = vmatprep.mubr.f32.mxu1 %v5341_v25  ;;  %v6293_v33 = vpop.f32.mrb[3].mxu1 }
 0x226   : > { %v3605_v22 = vpop.permute.xlu0 %3604  ;;  %3807 = vmatpush1.msra.mxu0 %v3629_v61 }
 0x227   : > { %v3631_v63 = vsel %vm3608_vm7, %v3603_v35, %v3605_v22  ;;  %4646 = vmatmul.mubr.msk.f32.vlgmr.msra.gmra.mrb[6].mxu0 %vm788_vm1, %v4643_v20  ;;  %v3632_v4 = vsel %vm3608_vm7, %v3605_v22, %v3607_v62 }
 0x228   : > { %3877 = vmatprep.subr.mxu1 %v3632_v4  ;;  %4124 = vmatprep.mubr.f32.mxu0 %v5341_v25 }
 0x229   : > { %3878 = vmatpush1.msra.mxu1 %v3631_v63  ;;  %v5235_v36 = vpop.permute.xlu1 %5234 }
 0x22a   : > { %v5230_v10 = vpop.permute.xlu0 %5229  ;;  %4647 = vmatmul.mubr.msk.f32.vlgmr.msra.gmra.mrb[6].mxu1 %vm788_vm1, %v4643_v20  ;;  %v5237_v53 = vunpack.i.h.bf16 %v5235_v36  ;;  %v5236_v9 = vunpack.i.l.bf16 %v5235_v36 }
 0x22b   : > { %4195 = vmatprep.mubr.f32.mxu1 %v5341_v25  ;;  %v5232_v59 = vunpack.i.h.bf16 %v5230_v10  ;;  %v5231_v48 = vunpack.i.l.bf16 %v5230_v10 }
 0x22c   : > { %v4012_v40 = vsel %vm4008_vm8, %v5236_v9, %v5237_v53 }
 0x22d   : > { %v5245_v1 = vpop.permute.xlu1 %5244  ;;  %v4011_v12 = vsel %vm4008_vm8, %v5232_v59, %v5236_v9  ;;  %v4010_v17 = vsel %vm4008_vm8, %v5231_v48, %v5232_v59 }
 0x22e   : > { %v5247_v2 = vunpack.i.h.bf16 %v5245_v1  ;;  %v5246_v3 = vunpack.i.l.bf16 %v5245_v1  ;;  %v5240_v5 = vpop.permute.xlu0 %5239 }
 0x22f   : > { %v5242_v7 = vunpack.i.h.bf16 %v5240_v5  ;;  %v5241_v11 = vunpack.i.l.bf16 %v5240_v5 }
 0x230   : > { %v4020_v0 = vsel %vm4008_vm8, %v5246_v3, %v5247_v2 }
 0x231   : > { %v4019_v41 = vsel %vm4008_vm8, %v5242_v7, %v5246_v3  ;;  %v5255_v14 = vpop.permute.xlu1 %5254  ;;  %v4018_v42 = vsel %vm4008_vm8, %v5241_v11, %v5242_v7  ;;  %v4790_v13 = vpack.c.bf16 %v4020_v0, %v4012_v40  ;;  %v1078_v0 = vlaneseq }
 0x232   : > { %v4792_v55 = vpack.c.bf16 %v4019_v41, %v4011_v12  ;;  %v5250_v8 = vpop.permute.xlu0 %5249  ;;  %v4786_v31 = vpack.c.bf16 %v4018_v42, %v4010_v17  ;;  %v5257_v34 = vunpack.i.h.bf16 %v5255_v14  ;;  %v5256_v21 = vunpack.i.l.bf16 %v5255_v14  ;;  %v1076_v17 = vld [vmem:[%s6463_s0] ss:$2 sm:$0xff] }
 0x233   : > { %v5252_v46 = vunpack.i.h.bf16 %v5250_v8  ;;  %v5251_v54 = vunpack.i.l.bf16 %v5250_v8  ;;  %4791 = vmatprep.subr.bf16.mxu1 %v4790_v13  ;;  %v1079_v41 = vshrl.u32 %v1078_v0, 7 }
 0x234   : > { %4787 = vmatprep.subr.bf16.mxu0 %v4786_v31  ;;  %4793 = vmatpush1.bf16.msra.mxu1 %v4792_v55  ;;  %v4014_v24 = vsel %vm4008_vm8, %v5256_v21, %v5257_v34  ;;  %v4013_v62 = vsel %vm4008_vm8, %v5237_v53, %v5256_v21  ;;  %v4622_v55 = vld [vmem:[%s6463_s0 + $0x1] ss:$2 sm:$0xff] }
 0x235   : > { %v4009_v49 = vsel %vm4008_vm8, %v5251_v54, %v5231_v48  ;;  %v4017_v15 = vsel %vm4008_vm8, %v5252_v46, %v5241_v11  ;;  %v1080_v14 = vsub.s32 0, %v1079_v41  ;;  %v1088_v42 = vsub.s32 2, %v1079_v41 }
 0x236   : > { %v4788_v50 = vpack.c.bf16 %v4017_v15, %v4009_v49  ;;  %v1092_v13 = vsub.s32 3, %v1079_v41 }
 0x237   : > { %v5265_v30 = vpop.permute.xlu1 %5264  ;;  %v5260_v32 = vpop.permute.xlu0 %5259  ;;  %v6340_v8 = vrot.slane %v1076_v17, %v1080_v14  ;;  %v6344_v46 = vrot.slane %v1076_v17, %v1088_v42  ;;  %v6346_v54 = vrot.slane %v4622_v55, %v1080_v14 }
 0x238   : > { %4789 = vmatpush1.bf16.msra.mxu0 %v4788_v50  ;;  %v5267_v20 = vunpack.i.h.bf16 %v5265_v30  ;;  %v5266_v57 = vunpack.i.l.bf16 %v5265_v30  ;;  %v5262_v45 = vunpack.i.h.bf16 %v5260_v32  ;;  %v5261_v52 = vunpack.i.l.bf16 %v5260_v32 }
 0x239   : > { %v6348_v49 = vrot.slane %v1076_v17, %v1092_v13  ;;  %v1118_v50 = vmul.f32 %v6340_v8, %v6258_v43  ;;  %v1096_v30 = vsub.s32 4, %v1079_v41  ;;  %v1104_v32 = vsub.s32 6, %v1079_v41 }
 0x23a   : > { %v4022_v38 = vsel %vm4008_vm8, %v5266_v57, %v5267_v20  ;;  %v4021_v58 = vsel %vm4008_vm8, %v5247_v2, %v5266_v57  ;;  %v4016_v9 = vsel %vm4008_vm8, %v5261_v52, %v5262_v45  ;;  %v4015_v59 = vsel %vm4008_vm8, %v5257_v34, %v5261_v52 }
 0x23b   : > { %v3993_v18 = vpop.permute.xlu1 %3992  ;;  %v5270_v19 = vpop.permute.xlu0 %5269  ;;  %v4794_v4 = vpack.c.bf16 %v4022_v38, %v4014_v24  ;;  %v4796_v36 = vpack.c.bf16 %v4021_v58, %v4013_v62  ;;  %v1108_v57 = vsub.s32 7, %v1079_v41  ;;  %v6358_v34 = vrot.slane %v4622_v55, %v1092_v13 }
 0x23c   : > { %v5272_v56 = vunpack.i.h.bf16 %v5270_v19  ;;  %v5271_v29 = vunpack.i.l.bf16 %v5270_v19  ;;  %v1120_v21 = vmul.f32 %v6344_v46, %v6264_v51  ;;  %v1121_v43 = vmul.f32 %v6348_v49, %v6270_v39 }
 0x23d   : > { %v6366_v45 = vrot.slane %v1076_v17, %v1096_v30  ;;  %v6373_v51 = vrot.slane %v1076_v17, %v1108_v57  ;;  %v6376_v39 = vrot.slane %v4622_v55, %v1096_v30  ;;  %v6378_v24 = vrot.slane %v4622_v55, %v1104_v32 }
 0x23e   : > { %v4024_v61 = vsel %vm4008_vm8, %v5271_v29, %v5272_v56  ;;  %v4023_v22 = vsel %vm4008_vm8, %v5267_v20, %v5271_v29  ;;  %v1100_v20 = vsub.s32 5, %v1079_v41 }
 0x23f   : > { %v4798_v53 = vpack.c.bf16 %v4024_v61, %v4016_v9  ;;  %v4800_v1 = vpack.c.bf16 %v4023_v22, %v4015_v59  ;;  %v6382_v22 = vrot.slane %v4622_v55, %v1108_v57 }
 0x240   : > { %v3997_v27 = vpop.permute.xlu1 %3996  ;;  %v6380_v62 = vrot.slane %v4622_v55, %v1100_v20 }
 0x241   : > { %v3995_v37 = vpop.permute.xlu0 %3994 }
 0x242   : > { %v4026_v28 = vsel %vm4008_vm8, %v3993_v18, %v3995_v37  ;;  %v4027_v10 = vsel %vm4008_vm8, %v3995_v37, %v3997_v27 }
 0x243   : > { %4064 = vmatprep.subr.mxu0 %v4026_v28 }
 0x244   : > { %v3991_v35 = vpop.permute.xlu1 %3990 }
 0x245   : > { %v4025_v26 = vsel %vm4008_vm8, %v3991_v35, %v3993_v18  ;;  %v3999_v44 = vpop.permute.xlu0 %3998  ;;  %v6354_v18 = vrot.slane %v4622_v55, %v1088_v42  ;;  %v6371_v35 = vrot.slane %v1076_v17, %v1100_v20 }
 0x246   : > { %4065 = vmatpush1.msra.mxu0 %v4025_v26  ;;  %v4028_v63 = vsel %vm4008_vm8, %v3997_v27, %v3999_v44 }
 0x247   : > { %4135 = vmatprep.subr.mxu1 %v4028_v63  ;;  %4649 = vmatmul.mubr.msk.f32.vlgmr.msra.gmra.mrb[24].mxu0 %vm788_vm1, %v4648_v16  ;;  %v1122_v63 = vmul.f32 %v6366_v45, %v6281_v23 }
 0x248   : > { %4136 = vmatpush1.msra.mxu1 %v4027_v10  ;;  %4795 = vmatprep.subr.bf16.mxu0 %v4794_v4  ;;  %v4003_v48 = vpop.permute.xlu1 %4002  ;;  %v1125_v10 = vmul.f32 %v6373_v51, %v6293_v33 }
 0x249   : > { %v4001_v2 = vpop.permute.xlu0 %4000  ;;  %4650 = vmatmul.mubr.msk.f32.vlgmr.msra.gmra.mrb[24].mxu1 %vm788_vm1, %v4648_v16  ;;  %4797 = vmatpush1.bf16.msra.mxu0 %v4796_v36  ;;  %v1123_v36 = vmul.f32 %v6371_v35, %v6284_v47 }
 0x24a   : > { %4799 = vmatprep.subr.bf16.mxu1 %v4798_v53  ;;  %v4030_v3 = vsel %vm4008_vm8, %v4001_v2, %v4003_v48  ;;  %4266 = vmatprep.mubr.f32.mxu0 %v5341_v25  ;;  %v4029_v5 = vsel %vm4008_vm8, %v3999_v44, %v4001_v2 }
 0x24b   : > { %4801 = vmatpush1.bf16.msra.mxu1 %v4800_v1  ;;  %4206 = vmatprep.subr.mxu0 %v4030_v3 }
 0x24c   : > { %v4007_v7 = vpop.permute.xlu1 %4006  ;;  %4337 = vmatprep.mubr.f32.mxu1 %v5341_v25  ;;  %v1084_v25 = vsub.s32 1, %v1079_v41 }
 0x24d   : > { %v4005_v11 = vpop.permute.xlu0 %4004  ;;  %4207 = vmatpush1.msra.mxu0 %v4029_v5 }
 0x24e   : > { %v4031_v12 = vsel %vm4008_vm8, %v4003_v48, %v4005_v11  ;;  %4651 = vmatmul.mubr.msk.f32.vlgmr.msra.gmra.mrb[26].mxu0 %vm788_vm1, %v4648_v16  ;;  %v4032_v40 = vsel %vm4008_vm8, %v4005_v11, %v4007_v7  ;;  %v6342_v31 = vrot.slane %v1076_v17, %v1084_v25  ;;  %v6350_v15 = vrot.slane %v4622_v55, %v1084_v25 }
 0x24f   : > { %4277 = vmatprep.subr.mxu1 %v4032_v40 }
 0x250   : > { %4278 = vmatpush1.msra.mxu1 %v4031_v12  ;;  %v1119_v19 = vmul.f32 %v6342_v31, %v6260_v6  ;;  %v6368_v6 = vrot.slane %v1076_v17, %v1104_v32 }
 0x251   : > { %4652 = vmatmul.mubr.msk.f32.vlgmr.msra.gmra.mrb[26].mxu1 %vm788_vm1, %v4648_v16 }
 0x252   : > { %v1124_v4 = vmul.f32 %v6368_v6, %v6289_v60 }
 0x264   : > { %v1700_v27 = vpop.f32.mrb[8].mxu0 }
 0x265   : > { %v1961_v56 = vmul.f32 %v6346_v54, %v1700_v27  ;;  %v1702_v29 = vpop.f32.mrb[9].mxu0 }
 0x266   : > { %v1771_v37 = vpop.f32.mrb[8].mxu1  ;;  %v1962_v28 = vmul.f32 %v6350_v15, %v1702_v29 }
 0x267   : > { %v4802_v52 = vadd.f32 %v1961_v56, %v1118_v50  ;;  %v1963_v38 = vmul.f32 %v6354_v18, %v1771_v37  ;;  %v1773_v58 = vpop.f32.mrb[9].mxu1 }
 0x268   : > { %v4807_v16 = vadd.f32 %v1962_v28, %v1119_v19  ;;  %v1964_v26 = vmul.f32 %v6358_v34, %v1773_v58 }
 0x269   : > { %v4812_v44 = vadd.f32 %v1963_v38, %v1120_v21 }
 0x26a   : > { %v4817_v61 = vadd.f32 %v1964_v26, %v1121_v43 }
 0x26c   : > { %v1842_v9 = vpop.f32.mrb[10].mxu0  ;;  %v1913_v59 = vpop.f32.mrb[10].mxu1 }
 0x26d   : > { %v1965_v48 = vmul.f32 %v6376_v39, %v1842_v9  ;;  %v1967_v53 = vmul.f32 %v6378_v24, %v1913_v59  ;;  %v1844_v1 = vpop.f32.mrb[11].mxu0  ;;  %v1915_v2 = vpop.f32.mrb[11].mxu1 }
 0x26e   : > { %v1966_v3 = vmul.f32 %v6380_v62, %v1844_v1  ;;  %v1968_v23 = vmul.f32 %v6382_v22, %v1915_v2 }
 0x26f   : > { %v4822_v5 = vadd.f32 %v1965_v48, %v1122_v63  ;;  %v4832_v60 = vadd.f32 %v1967_v53, %v1124_v4 }
 0x270   : > { %v4827_v7 = vadd.f32 %v1966_v3, %v1123_v36  ;;  %v4837_v11 = vadd.f32 %v1968_v23, %v1125_v10 }
 0x288   : > { %v2151_v47 = vpop.f32.mrb[12].mxu0 }
 0x289   : > { %v2369_v12 = vmul.f32 %v2151_v47, %v6340_v8  ;;  %v2153_v33 = vpop.f32.mrb[13].mxu0 }
 0x28a   : > { %v2222_v40 = vpop.f32.mrb[12].mxu1  ;;  %v2370_v0 = vmul.f32 %v2153_v33, %v6342_v31 }
 0x28b   : > { %v4803_v41 = vadd.f32 %v4802_v52, %v2369_v12  ;;  %v2371_v14 = vmul.f32 %v2222_v40, %v6344_v46  ;;  %v2224_v17 = vpop.f32.mrb[13].mxu1 }
 0x28c   : > { %v4808_v25 = vadd.f32 %v4807_v16, %v2370_v0  ;;  %v2372_v42 = vmul.f32 %v2224_v17, %v6348_v49 }
 0x28d   : > { %v4813_v13 = vadd.f32 %v4812_v44, %v2371_v14 }
 0x28e   : > { %v4818_v55 = vadd.f32 %v4817_v61, %v2372_v42 }
 0x290   : > { %v2293_v50 = vpop.f32.mrb[14].mxu0 }
 0x291   : > { %v2373_v30 = vmul.f32 %v2293_v50, %v6366_v45  ;;  %v2295_v32 = vpop.f32.mrb[15].mxu0 }
 0x292   : > { %v2364_v19 = vpop.f32.mrb[14].mxu1  ;;  %v2374_v20 = vmul.f32 %v2295_v32, %v6371_v35 }
 0x293   : > { %v4823_v57 = vadd.f32 %v4822_v5, %v2373_v30  ;;  %v2375_v27 = vmul.f32 %v2364_v19, %v6368_v6  ;;  %v2366_v21 = vpop.f32.mrb[15].mxu1 }
 0x294   : > { %v4828_v56 = vadd.f32 %v4827_v7, %v2374_v20  ;;  %v2376_v29 = vmul.f32 %v2366_v21, %v6373_v51 }
 0x295   : > { %v4833_v43 = vadd.f32 %v4832_v60, %v2375_v27 }
 0x296   : > { %v4838_v37 = vadd.f32 %v4837_v11, %v2376_v29 }
 0x2ac   : > { %v2910_v28 = vpop.f32.mrb[16].mxu0 }
 0x2ad   : > { %v3128_v52 = vmul.f32 %v2910_v28, %v6346_v54  ;;  %v2912_v38 = vpop.f32.mrb[17].mxu0 }
 0x2ae   : > { %v2981_v58 = vpop.f32.mrb[16].mxu1  ;;  %v3129_v16 = vmul.f32 %v2912_v38, %v6350_v15 }
 0x2af   : > { %v4804_v26 = vadd.f32 %v4803_v41, %v3128_v52  ;;  %v3130_v44 = vmul.f32 %v2981_v58, %v6354_v18  ;;  %v2983_v61 = vpop.f32.mrb[17].mxu1 }
 0x2b0   : > { %v4809_v63 = vadd.f32 %v4808_v25, %v3129_v16  ;;  %v3131_v4 = vmul.f32 %v2983_v61, %v6358_v34 }
 0x2b1   : > { %v4814_v36 = vadd.f32 %v4813_v13, %v3130_v44 }
 0x2b2   : > { %v4819_v10 = vadd.f32 %v4818_v55, %v3131_v4  ;;  %v3052_v9 = vpop.f32.mrb[18].mxu0 }
 0x2b3   : > { %v3132_v59 = vmul.f32 %v3052_v9, %v6376_v39  ;;  %v3054_v48 = vpop.f32.mrb[19].mxu0 }
 0x2b4   : > { %v3123_v53 = vpop.f32.mrb[18].mxu1  ;;  %v3133_v1 = vmul.f32 %v3054_v48, %v6380_v62 }
 0x2b5   : > { %v4824_v2 = vadd.f32 %v4823_v57, %v3132_v59  ;;  %v3134_v3 = vmul.f32 %v3123_v53, %v6378_v24  ;;  %v3125_v23 = vpop.f32.mrb[19].mxu1  ;;  %v4364_v59 = vpop.permute.xlu0 %4363 }
 0x2b6   : > { %v4829_v5 = vadd.f32 %v4828_v56, %v3133_v1  ;;  %v3135_v60 = vmul.f32 %v3125_v23, %v6382_v22 }
 0x2b7   : > { %v4834_v7 = vadd.f32 %v4833_v43, %v3134_v3 }
 0x2b8   : > { %v4839_v11 = vadd.f32 %v4838_v37, %v3135_v60 }
 0x2cf   : > { %v3318_v47 = vpop.f32.mrb[20].mxu0 }
 0x2d0   : > { %v3536_v12 = vmul.f32 %v3318_v47, %v6340_v8  ;;  %v3320_v33 = vpop.f32.mrb[21].mxu0 }
 0x2d1   : > { %v3537_v40 = vmul.f32 %v3320_v33, %v6342_v31  ;;  %v3389_v0 = vpop.f32.mrb[20].mxu1 }
 0x2d2   : > { %v3538_v41 = vmul.f32 %v3389_v0, %v6344_v46  ;;  %v3391_v14 = vpop.f32.mrb[21].mxu1  ;;  %v4805_v17 = vadd.f32 %v4804_v26, %v3536_v12 }
 0x2d3   : > { %v3539_v25 = vmul.f32 %v3391_v14, %v6348_v49  ;;  %v4810_v42 = vadd.f32 %v4809_v63, %v3537_v40 }
 0x2d4   : > { %v4815_v13 = vadd.f32 %v4814_v36, %v3538_v41 }
 0x2d5   : > { %v4820_v55 = vadd.f32 %v4819_v10, %v3539_v25 }
 0x2d6   : > { %v3460_v50 = vpop.f32.mrb[22].mxu0 }
 0x2d7   : > { %v3540_v30 = vmul.f32 %v3460_v50, %v6366_v45  ;;  %v3462_v32 = vpop.f32.mrb[23].mxu0 }
 0x2d8   : > { %v3541_v19 = vmul.f32 %v3462_v32, %v6371_v35 }
 0x2d9   : > { %v3531_v8 = vpop.f32.mrb[22].mxu1  ;;  %v4825_v20 = vadd.f32 %v4824_v2, %v3540_v30 }
 0x2da   : > { %v3542_v31 = vmul.f32 %v3531_v8, %v6368_v6  ;;  %v3533_v57 = vpop.f32.mrb[23].mxu1  ;;  %v4830_v27 = vadd.f32 %v4829_v5, %v3541_v19 }
 0x2db   : > { %v3543_v46 = vmul.f32 %v3533_v57, %v6373_v51 }
 0x2dc   : > { %v4835_v21 = vadd.f32 %v4834_v7, %v3542_v31 }
 0x2dd   : > { %v4840_v56 = vadd.f32 %v4839_v11, %v3543_v46 }
 0x2f3   : > { %v3726_v49 = vpop.f32.mrb[4].mxu0 }
 0x2f4   : > { %v4806_v29 = vadd.f32 %v4805_v17, %v3726_v49  ;;  %v3728_v43 = vpop.f32.mrb[5].mxu0 }
 0x2f5   : > { %v4811_v37 = vadd.f32 %v4810_v42, %v3728_v43  ;;  %v3797_v28 = vpop.f32.mrb[4].mxu1 }
 0x2f6   : > { %v4816_v52 = vadd.f32 %v4815_v13, %v3797_v28  ;;  %v3799_v45 = vpop.f32.mrb[5].mxu1 }
 0x2f7   : > { %v4821_v38 = vadd.f32 %v4820_v55, %v3799_v45 }
 0x2fa   : > { %v3868_v58 = vpop.f32.mrb[6].mxu0 }
 0x2fb   : > { %v4826_v35 = vadd.f32 %v4825_v20, %v3868_v58  ;;  %v3870_v16 = vpop.f32.mrb[7].mxu0 }
 0x2fc   : > { %v4831_v26 = vadd.f32 %v4830_v27, %v3870_v16 }
 0x2fd   : > { %v3939_v44 = vpop.f32.mrb[6].mxu1 }
 0x2fe   : > { %v4836_v6 = vadd.f32 %v4835_v21, %v3939_v44  ;;  %v3941_v61 = vpop.f32.mrb[7].mxu1 }
 0x2ff   : > { %v4841_v63 = vadd.f32 %v4840_v56, %v3941_v61 }
 0x31a   : > { %v4126_v4 = vpop.f32.mrb[24].mxu0 }
 0x31b   : > { %v4344_v51 = vmul.f32 %v4126_v4, %v6346_v54  ;;  %v4128_v36 = vpop.f32.mrb[25].mxu0 }
 0x31c   : > { %v4345_v10 = vmul.f32 %v4128_v36, %v6350_v15  ;;  %v4197_v9 = vpop.f32.mrb[24].mxu1 }
 0x31d   : > { %v4352_v48 = vadd.f32 %v4806_v29, %v4344_v51  ;;  %v4346_v53 = vmul.f32 %v4197_v9, %v6354_v18  ;;  %v4199_v1 = vpop.f32.mrb[25].mxu1 }
 0x31e   : > { %v4353_v2 = vadd.f32 %v4811_v37, %v4345_v10  ;;  %v4347_v3 = vmul.f32 %v4199_v1, %v6358_v34 }
 0x31f   : > { %v4354_v23 = vadd.f32 %v4816_v52, %v4346_v53  ;;  %v4366_v5 = vadd.f32 %v4364_v59, %v4352_v48 }
 0x320   : > { %v4355_v60 = vadd.f32 %v4821_v38, %v4347_v3  ;;  %v4367_v7 = vadd.f32 %v4364_v59, %v4353_v2 }
 0x321   : > { %v4368_v54 = vadd.f32 %v4364_v59, %v4354_v23  ;;  %4374 = vst [vmem:[%s5443_s11] sm:$0xff] %v4366_v5  ;;  %v4268_v11 = vpop.f32.mrb[26].mxu0 }
 0x322   : > { %v4369_v15 = vadd.f32 %v4364_v59, %v4355_v60  ;;  %4375 = vst [vmem:[%s5443_s11 + $0x8] sm:$0xff] %v4367_v7  ;;  %v4348_v47 = vmul.f32 %v4268_v11, %v6376_v39  ;;  %v4270_v12 = vpop.f32.mrb[27].mxu0 }
 0x323   : > { %4376 = vst [vmem:[%s5443_s11 + $0x10] sm:$0xff] %v4368_v54  ;;  %v4349_v18 = vmul.f32 %v4270_v12, %v6380_v62  ;;  %v5350_v62 = vmov (!%p4581_p7), 0.0  }
 0x324   : > { %4377 = vst [vmem:[%s5443_s11 + $0x18] sm:$0xff] %v4369_v15  ;;  %v4356_v34 = vadd.f32 %v4826_v35, %v4348_v47  ;;  %v4339_v33 = vpop.f32.mrb[26].mxu1  ;;  %4385 = vst.msk [vmem:[%s5438_s24] sm:$0xff] (!%p4581_p7), %vm2033_vm4, %v5350_v62 }
 0x325   : > { %v4357_v40 = vadd.f32 %v4831_v26, %v4349_v18  ;;  %v4350_v0 = vmul.f32 %v4339_v33, %v6378_v24  ;;  %v4341_v41 = vpop.f32.mrb[27].mxu1  ;;  %4386 = vst.msk [vmem:[%s5448_s15] sm:$0xff] (!%p4581_p7), %vm2033_vm4, %v5350_v62 }
 0x326   : > { %v4370_v14 = vadd.f32 %v4364_v59, %v4356_v34  ;;  %v4351_v17 = vmul.f32 %v4341_v41, %v6382_v22  ;;  %4384 = sbr.rel (%p4581_p7) target bundleno = 813 (0x32d), region = 52 }
 0x327   : > { %v4371_v25 = vadd.f32 %v4364_v59, %v4357_v40  ;;  %v4358_v42 = vadd.f32 %v4836_v6, %v4350_v0 }
 0x328   : > { %4378 = vst [vmem:[%s5443_s11 + $0x20] sm:$0xff] %v4370_v14  ;;  %v4359_v39 = vadd.f32 %v4841_v63, %v4351_v17 }
 0x329   : > { %4379 = vst [vmem:[%s5443_s11 + $0x28] sm:$0xff] %v4371_v25  ;;  %v4372_v13 = vadd.f32 %v4364_v59, %v4358_v42 }
 0x32a   : > { %v4373_v55 = vadd.f32 %v4364_v59, %v4359_v39 }
 0x32b   : > { %4380 = vst [vmem:[%s5443_s11 + $0x30] sm:$0xff] %v4372_v13 }
 0x32c   : > { %4381 = vst [vmem:[%s5443_s11 + $0x38] sm:$0xff] %v4373_v55 }
 0x32d PF: > { %v4388_v24 = vadd.f32 %v4367_v7, %v4366_v5  ;;  %v4400_v22 = vmul.f32 %v4366_v5, %v4366_v5  ;;  %v4401_v50 = vmul.f32 %v4367_v7, %v4367_v7  ;;  %v4402_v30 = vmul.f32 %v4368_v54, %v4368_v54  ;;  %v4387_v58 = vld [vmem:[%s5438_s24] sm:$0xff] }
 0x32e   : > { %v4403_v19 = vmul.f32 %v4369_v15, %v4369_v15  ;;  %v4404_v31 = vmul.f32 %v4370_v14, %v4370_v14  ;;  %v4405_v46 = vmul.f32 %v4371_v25, %v4371_v25  ;;  %v4406_v49 = vmul.f32 %v4372_v13, %v4372_v13  ;;  %v4399_v26 = vld [vmem:[%s5448_s15] sm:$0xff] }
 0x32f   : > { %v4389_v32 = vadd.f32 %v4388_v24, %v4368_v54  ;;  %v4408_v8 = vadd.f32 %v4401_v50, %v4400_v22  ;;  %v4407_v37 = vmul.f32 %v4373_v55, %v4373_v55 }
 0x331   : > { %v4390_v20 = vadd.f32 %v4389_v32, %v4369_v15  ;;  %v4409_v57 = vadd.f32 %v4408_v8, %v4402_v30 }
 0x333   : > { %v4391_v27 = vadd.f32 %v4390_v20, %v4370_v14  ;;  %v4410_v21 = vadd.f32 %v4409_v57, %v4403_v19 }
 0x335   : > { %v4392_v56 = vadd.f32 %v4391_v27, %v4371_v25  ;;  %v4411_v29 = vadd.f32 %v4410_v21, %v4404_v31 }
 0x337   : > { %v4393_v43 = vadd.f32 %v4392_v56, %v4372_v13  ;;  %v4412_v28 = vadd.f32 %v4411_v29, %v4405_v46 }
 0x339   : > { %v4394_v52 = vadd.f32 %v4393_v43, %v4373_v55  ;;  %v4413_v45 = vadd.f32 %v4412_v28, %v4406_v49 }
 0x33b   : > { %4395 = vadd.xlane.f32.xlu0 %v4394_v52  ;;  %v4414_v38 = vadd.f32 %v4413_v45, %v4407_v37 }
 0x33f   : > { %4415 = vadd.xlane.f32.xlu0 %v4414_v38 }
 0x3c8   : > { %v4396_v35 = vpop.xlane.xlu0 %4395 }
 0x3c9   : > { %v4397_v16 = vadd.f32 %v4396_v35, %v4387_v58 }
 0x3cb   : > { %4398 = vst.msk [vmem:[%s5438_s24] sm:$0xff] %vm2033_vm4, %v4397_v16 }
 0x3cc   : > { %v4416_v44 = vpop.xlane.xlu0 %4415 }
 0x3cd   : > { %v4417_v6 = vadd.f32 %v4416_v44, %v4399_v26 }
 0x3cf   : > { %4418 = vst.msk [vmem:[%s5448_s15] sm:$0xff] %vm2033_vm4, %v4417_v6 }
 0x3d0 PF: > { %s19_s9 = sadd.s32 1, %s5336_s9   ;;  %s6476_s28 = sld [smem:[#allocation3_spill]] }
 0x3d1   : > { %p16_p8 = scmp.ge.s32.totalorder %s19_s9, 10   ;;  %s6477_s11 = sld [smem:[#allocation4_spill]] }
 0x3d2   : > { %s6478_s30 = sld [smem:[#allocation5_spill]]  ;;  %s6479_s27 = smov %s5328_s29 }
 0x3d3   :  { %18 = sbr.rel (!%p16_p8) target bundleno = 3 (0x3), region = 119 }
 0x3d7   : > { %s6480_s29 = smov %s6477_s11 }

</bundles_post_ra>
